<compile_context>
chip_gen: v7x
topology: tpu7x:2x2x1
jax: 0.10.0
libtpu: 0.0.40
codegen_flags: <defaults>
</compile_context>

<pallas_src>
import jax
import jax.numpy as jnp
from jax.experimental import pallas as pl
from jax.experimental.pallas import tpu as pltpu


def _make_kernel(H, W, c_in, growth, residual_beta):
    HW = H * W
    margin = ((W + 7) // 8) * 8          # >= W zero rows above/below, 8-aligned
    nb = 5
    cins = [c_in + growth * i for i in range(nb)]
    couts = [growth if i < nb - 1 else c_in for i in range(nb)]

    def kernel(*refs):
        x_ref = refs[0]
        p = 1
        wx_refs = refs[p:p + nb]; p += nb            # (3, c_in, 3*cout_i)  bf16
        wg_refs = refs[p:p + nb - 1]; p += nb - 1    # (3, i*growth, 3*cout_i) bf16
        b_refs = refs[p:p + nb]; p += nb             # (1, cout_i)          f32
        o_ref = refs[p]; p += 1
        xs_ref, gs_ref = refs[p], refs[p + 1]        # bf16 scratches

        c_g = gs_ref.shape[1]                        # 4 * growth (lane dense)

        # Zero only the margin bands: they are the conv's vertical zero padding.
        # Interior rows of every column read by block i are written earlier in
        # the same step, so they never need clearing.  Done every step (cheap,
        # megacore-safe: each core owns a private scratch copy).
        zx = jnp.zeros((margin, c_in), xs_ref.dtype)
        zg = jnp.zeros((margin, c_g), gs_ref.dtype)
        xs_ref[pl.ds(0, margin), :] = zx
        xs_ref[pl.ds(margin + HW, margin), :] = zx
        gs_ref[pl.ds(0, margin), :] = zg
        gs_ref[pl.ds(margin + HW, margin), :] = zg

        # Stage the input block as bf16 operands (f32 accumulation on the MXU).
        xs_ref[pl.ds(margin, HW), :] = x_ref[0].astype(xs_ref.dtype)

        # In-kernel horizontal-boundary column index (masks applied on the
        # matmul OUTPUT, which commutes with the matmul since it is row scaling).
        col_g = jax.lax.broadcasted_iota(jnp.int32, (HW, growth), 0) % W
        col_c = jax.lax.broadcasted_iota(jnp.int32, (HW, c_in), 0) % W

        out = None
        for i in range(nb):
            cout = couts[i]
            col = col_g if cout == growth else col_c

            # One fused (cin_part, 3*cout) matmul per ky tap; the three ky taps
            # accumulate into a single (HW, 3*cout) value with a clean
            # matmul-add chain (MRB accumulation on v7x).
            acc3 = None
            for ky in range(3):
                start = margin + (ky - 1) * W        # static, 8-sublane aligned
                xpatch = xs_ref[pl.ds(start, HW), :]
                term = jnp.dot(xpatch, wx_refs[i][ky],
                               preferred_element_type=jnp.float32)
                acc3 = term if acc3 is None else acc3 + term
                if i > 0:
                    gpatch = gs_ref[pl.ds(start, HW), pl.ds(0, i * growth)]
                    acc3 = acc3 + jnp.dot(gpatch, wg_refs[i - 1][ky],
                                          preferred_element_type=jnp.float32)

            # Horizontal +/-1 shifts on the OUTPUT via sublane rolls (XLU) +
            # boundary masks; the row wrap-around of the roll is masked away.
            left = pltpu.roll(acc3[:, 0:cout], 1, 0)               # kx=0: in[x-1]
            center = acc3[:, cout:2 * cout]                        # kx=1: in[x]
            right = pltpu.roll(acc3[:, 2 * cout:3 * cout], HW - 1, 0)  # kx=2: in[x+1]
            out = (jnp.where(col >= 1, left, 0.0)
                   + center
                   + jnp.where(col <= W - 2, right, 0.0)
                   + b_refs[i][...])                               # (HW, cout)

            if i < nb - 1:
                out = jnp.where(out >= 0, out, 0.2 * out)          # LeakyReLU(0.2)
                gs_ref[pl.ds(margin, HW),
                       pl.ds(i * growth, growth)] = out.astype(gs_ref.dtype)

        # Residual in full input precision (do NOT read x back from bf16 scratch).
        o_ref[0] = (residual_beta * out
                    + x_ref[0].astype(jnp.float32)).astype(o_ref.dtype)

    return kernel, margin, cins, couts


def dense_residual_block(x_nhwc, weights, biases, *, channels=32, residual_beta=0.2):
    """Channels-last DenseResidualBlock forward.

    x_nhwc:     (N, H, W, C)
    weights[i]: (3, 3, C + i*channels, Cout_i) in HWIO layout
    biases[i]:  (Cout_i,)          where Cout_i = channels for i<4 else C
    """
    N, H, W, c_in = x_nhwc.shape
    HW = H * W
    growth = channels
    kernel, margin, cins, couts = _make_kernel(H, W, c_in, growth, residual_beta)

    x_flat = x_nhwc.reshape(N, HW, c_in)            # free row-major reshape

    # Host-side weight prep: HWIO (ky,kx,cin,cout) -> per-ky stacked (ky, cin, 3*cout)
    # (kx folded onto the output axis), split into x-part and growth-part, bf16.
    wx, wg, bs = [], [], []
    for i in range(5):
        cin_i, cout_i = cins[i], couts[i]
        assert weights[i].shape == (3, 3, cin_i, cout_i)
        w = jnp.transpose(weights[i], (0, 2, 1, 3)).reshape(3, cin_i, 3 * cout_i)
        w = w.astype(jnp.bfloat16)
        wx.append(w[:, :c_in, :])
        if i > 0:
            wg.append(w[:, c_in:, :])
        bs.append(biases[i].reshape(1, cout_i).astype(jnp.float32))

    args = [x_flat] + wx + wg + bs
    in_specs = [pl.BlockSpec((1, HW, c_in), lambda i: (i, 0, 0))]
    for a in wx + wg:
        in_specs.append(pl.BlockSpec(a.shape, lambda i: (0, 0, 0)))
    for a in bs:
        in_specs.append(pl.BlockSpec(a.shape, lambda i: (0, 0)))

    rows = 2 * margin + HW
    c_g = 4 * growth
    scratch_shapes = [pltpu.VMEM((rows, c_in), jnp.bfloat16),
                      pltpu.VMEM((rows, c_g), jnp.bfloat16)]

    # Explicit scoped-VMEM budget (v5e default is only 16 MiB), with headroom,
    # capped below v7x's 64 MiB physical VMEM.
    def _rup(v, m):
        return ((v + m - 1) // m) * m
    lane = 128
    itemsize = jnp.dtype(x_nhwc.dtype).itemsize
    scratch_b = rows * (_rup(c_in, lane) + _rup(c_g, lane)) * 2
    io_b = 2 * 2 * HW * _rup(c_in, lane) * itemsize          # x + out, double-buffered
    w_b = 2 * (sum(int(a.size) * 2 for a in wx + wg) + sum(int(a.size) * 4 for a in bs))
    need = scratch_b + io_b + w_b
    vmem_limit = int(min(48 * 2**20, max(16 * 2**20, 2 * need + (1 << 20))))

    out = pl.pallas_call(
        kernel,
        out_shape=jax.ShapeDtypeStruct((N, HW, c_in), x_nhwc.dtype),
        grid_spec=pltpu.PrefetchScalarGridSpec(
            num_scalar_prefetch=0,
            grid=(N,),
            in_specs=in_specs,
            out_specs=pl.BlockSpec((1, HW, c_in), lambda i: (i, 0, 0)),
            scratch_shapes=scratch_shapes),
        compiler_params=pltpu.CompilerParams(
            dimension_semantics=("parallel",),
            vmem_limit_bytes=vmem_limit),
    )(*args)

    return out.reshape(N, H, W, c_in)


def _reference(x_nhwc, weights, biases, *, channels=32, residual_beta=0.2):
    """Pure-JAX f32 reference mirroring the PyTorch module (channels-last)."""
    feat = x_nhwc.astype(jnp.float32)
    out = None
    for i in range(5):
        out = jax.lax.conv_general_dilated(
            feat, weights[i].astype(jnp.float32),
            window_strides=(1, 1), padding="SAME",
            dimension_numbers=("NHWC", "HWIO", "NHWC"),
            precision=jax.lax.Precision.HIGHEST,
        ) + biases[i].astype(jnp.float32)
        if i <= 3:
            out = jnp.where(out >= 0, out, 0.2 * out)       # LeakyReLU(0.2)
            feat = jnp.concatenate([feat, out], axis=-1)
    return (residual_beta * out + x_nhwc.astype(jnp.float32)).astype(x_nhwc.dtype)


if __name__ == "__main__":
    key = jax.random.PRNGKey(0)
    keys = jax.random.split(key, 11)

    # Small shapes consistent with the module: batch=2, in_channels=4, spatial=16.
    N, Cin, H, W = 2, 4, 16, 16
    growth = 32          # `channels` in the PyTorch module
    beta = 0.2

    # x in channels-last layout (equivalent of the PyTorch NCHW (2, 4, 16, 16) input).
    x = jax.random.normal(keys[0], (N, H, W, Cin), dtype=jnp.float32)

    weights, biases = [], []
    k = 1
    for i in range(5):
        cin_i = Cin + growth * i
        cout_i = growth if i <= 3 else Cin
        weights.append(0.05 * jax.random.normal(keys[k], (3, 3, cin_i, cout_i),
                                                dtype=jnp.float32)); k += 1
        biases.append(0.05 * jax.random.normal(keys[k], (cout_i,),
                                               dtype=jnp.float32)); k += 1

    y = dense_residual_block(x, weights, biases, channels=growth, residual_beta=beta)
    y = jax.block_until_ready(y)

    y_ref = _reference(x, weights, biases, channels=growth, residual_beta=beta)
    assert y.shape == x.shape and y.dtype == x.dtype
    # bf16 MXU operands with f32 accumulation -> looser tolerance than the f32 kernel.
    assert jnp.allclose(y, y_ref, atol=2e-2, rtol=2e-2), "mismatch vs reference"

    print("KERNEL_OK")
</pallas_src>

<mosaic_0001>
module attributes {stable_mosaic.version = 11 : i64} {
  func.func @kernel(%arg0: i32, %arg1: memref<1x256x4xf32, #tpu.memory_space<vmem>>, %arg2: memref<3x4x96xbf16, #tpu.memory_space<vmem>>, %arg3: memref<3x4x96xbf16, #tpu.memory_space<vmem>>, %arg4: memref<3x4x96xbf16, #tpu.memory_space<vmem>>, %arg5: memref<3x4x96xbf16, #tpu.memory_space<vmem>>, %arg6: memref<3x4x12xbf16, #tpu.memory_space<vmem>>, %arg7: memref<3x32x96xbf16, #tpu.memory_space<vmem>>, %arg8: memref<3x64x96xbf16, #tpu.memory_space<vmem>>, %arg9: memref<3x96x96xbf16, #tpu.memory_space<vmem>>, %arg10: memref<3x128x12xbf16, #tpu.memory_space<vmem>>, %arg11: memref<1x32xf32, #tpu.memory_space<vmem>>, %arg12: memref<1x32xf32, #tpu.memory_space<vmem>>, %arg13: memref<1x32xf32, #tpu.memory_space<vmem>>, %arg14: memref<1x32xf32, #tpu.memory_space<vmem>>, %arg15: memref<1x4xf32, #tpu.memory_space<vmem>>, %arg16: memref<1x256x4xf32, #tpu.memory_space<vmem>>, %arg17: memref<288x4xbf16, #tpu.memory_space<vmem>>, %arg18: memref<288x128xbf16, #tpu.memory_space<vmem>>) attributes {dimension_semantics = [#tpu.dimension_semantics<parallel>], iteration_bounds = array<i64: 2>, scalar_prefetch = 0 : i64, scratch_operands = 2 : i64, tpu.core_type = #tpu.core_type<tc>, window_params = [{transform_indices = @transform_0, window_bounds = array<i64: 1, 256, 4>}, {pipeline_mode = #tpu.pipeline_mode<synchronous>, transform_indices = @transform_1, window_bounds = array<i64: 3, 4, 96>}, {pipeline_mode = #tpu.pipeline_mode<synchronous>, transform_indices = @transform_2, window_bounds = array<i64: 3, 4, 96>}, {pipeline_mode = #tpu.pipeline_mode<synchronous>, transform_indices = @transform_3, window_bounds = array<i64: 3, 4, 96>}, {pipeline_mode = #tpu.pipeline_mode<synchronous>, transform_indices = @transform_4, window_bounds = array<i64: 3, 4, 96>}, {pipeline_mode = #tpu.pipeline_mode<synchronous>, transform_indices = @transform_5, window_bounds = array<i64: 3, 4, 12>}, {pipeline_mode = #tpu.pipeline_mode<synchronous>, transform_indices = @transform_6, window_bounds = array<i64: 3, 32, 96>}, {pipeline_mode = #tpu.pipeline_mode<synchronous>, transform_indices = @transform_7, window_bounds = array<i64: 3, 64, 96>}, {pipeline_mode = #tpu.pipeline_mode<synchronous>, transform_indices = @transform_8, window_bounds = array<i64: 3, 96, 96>}, {pipeline_mode = #tpu.pipeline_mode<synchronous>, transform_indices = @transform_9, window_bounds = array<i64: 3, 128, 12>}, {pipeline_mode = #tpu.pipeline_mode<synchronous>, transform_indices = @transform_10, window_bounds = array<i64: 1, 32>}, {pipeline_mode = #tpu.pipeline_mode<synchronous>, transform_indices = @transform_11, window_bounds = array<i64: 1, 32>}, {pipeline_mode = #tpu.pipeline_mode<synchronous>, transform_indices = @transform_12, window_bounds = array<i64: 1, 32>}, {pipeline_mode = #tpu.pipeline_mode<synchronous>, transform_indices = @transform_13, window_bounds = array<i64: 1, 32>}, {pipeline_mode = #tpu.pipeline_mode<synchronous>, transform_indices = @transform_14, window_bounds = array<i64: 1, 4>}, {transform_indices = @transform_15, window_bounds = array<i64: 1, 256, 4>}]} {
    %cst = arith.constant 0.000000e+00 : bf16
    %0 = vector.broadcast %cst : bf16 to vector<16x4xbf16>
    %cst_0 = arith.constant 0.000000e+00 : bf16
    %1 = vector.broadcast %cst_0 : bf16 to vector<16x128xbf16>
    %c0 = arith.constant 0 : index
    %c0_1 = arith.constant 0 : index
    %2 = vector.load %arg17[%c0, %c0_1] : memref<288x4xbf16, #tpu.memory_space<vmem>>, vector<16x4xbf16>
    tpu.vector_store %arg17[%c0, %c0_1], %0 {strides = array<i32>} : memref<288x4xbf16, #tpu.memory_space<vmem>>, vector<16x4xbf16>,
    %c272 = arith.constant 272 : index
    %c0_2 = arith.constant 0 : index
    %3 = vector.load %arg17[%c272, %c0_2] : memref<288x4xbf16, #tpu.memory_space<vmem>>, vector<16x4xbf16>
    tpu.vector_store %arg17[%c272, %c0_2], %0 {strides = array<i32>} : memref<288x4xbf16, #tpu.memory_space<vmem>>, vector<16x4xbf16>,
    %c0_3 = arith.constant 0 : index
    %c0_4 = arith.constant 0 : index
    %4 = vector.load %arg18[%c0_3, %c0_4] : memref<288x128xbf16, #tpu.memory_space<vmem>>, vector<16x128xbf16>
    tpu.vector_store %arg18[%c0_3, %c0_4], %1 {strides = array<i32>} : memref<288x128xbf16, #tpu.memory_space<vmem>>, vector<16x128xbf16>,
    %c272_5 = arith.constant 272 : index
    %c0_6 = arith.constant 0 : index
    %5 = vector.load %arg18[%c272_5, %c0_6] : memref<288x128xbf16, #tpu.memory_space<vmem>>, vector<16x128xbf16>
    tpu.vector_store %arg18[%c272_5, %c0_6], %1 {strides = array<i32>} : memref<288x128xbf16, #tpu.memory_space<vmem>>, vector<16x128xbf16>,
    %c0_7 = arith.constant 0 : index
    %c0_8 = arith.constant 0 : index
    %c0_9 = arith.constant 0 : index
    %6 = vector.load %arg1[%c0_7, %c0_8, %c0_9] : memref<1x256x4xf32, #tpu.memory_space<vmem>>, vector<1x256x4xf32>
    %7 = vector.shape_cast %6 : vector<1x256x4xf32> to vector<256x4xf32>
    %8 = arith.truncf %7 : vector<256x4xf32> to vector<256x4xbf16>
    %c16 = arith.constant 16 : index
    %c0_10 = arith.constant 0 : index
    %9 = vector.load %arg17[%c16, %c0_10] : memref<288x4xbf16, #tpu.memory_space<vmem>>, vector<256x4xbf16>
    tpu.vector_store %arg17[%c16, %c0_10], %8 {strides = array<i32>} : memref<288x4xbf16, #tpu.memory_space<vmem>>, vector<256x4xbf16>,
    %10 = tpu.iota {dimensions = array<i32: 0>} : vector<256x32xi32>
    %c16_i32 = arith.constant 16 : i32
    %c0_i32 = arith.constant 0 : i32
    %11 = arith.cmpi eq, %c16_i32, %c0_i32 : i32
    %c1_i32 = arith.constant 1 : i32
    %12 = arith.select %11, %c1_i32, %c16_i32 : i32
    %13 = vector.broadcast %12 : i32 to vector<256x32xi32>
    %14 = arith.remsi %10, %13 : vector<256x32xi32>
    %c0_i32_11 = arith.constant 0 : i32
    %15 = vector.broadcast %c0_i32_11 : i32 to vector<256x32xi32>
    %16 = arith.cmpi ne, %14, %15 : vector<256x32xi32>
    %c0_i32_12 = arith.constant 0 : i32
    %17 = vector.broadcast %c0_i32_12 : i32 to vector<256x32xi32>
    %18 = arith.cmpi slt, %14, %17 : vector<256x32xi32>
    %c0_i32_13 = arith.constant 0 : i32
    %19 = arith.cmpi slt, %12, %c0_i32_13 : i32
    %20 = vector.broadcast %19 : i1 to vector<256x32xi1>
    %21 = vector.broadcast %20 : vector<256x32xi1> to vector<256x32xi1>
    %22 = arith.xori %18, %21 : vector<256x32xi1>
    %23 = arith.andi %22, %16 : vector<256x32xi1>
    %24 = vector.broadcast %12 : i32 to vector<256x32xi32>
    %25 = arith.addi %14, %24 : vector<256x32xi32>
    %26 = arith.select %23, %25, %14 : vector<256x32xi1>, vector<256x32xi32>
    %27 = tpu.iota {dimensions = array<i32: 0>} : vector<256x4xi32>
    %c16_i32_14 = arith.constant 16 : i32
    %c0_i32_15 = arith.constant 0 : i32
    %28 = arith.cmpi eq, %c16_i32_14, %c0_i32_15 : i32
    %c1_i32_16 = arith.constant 1 : i32
    %29 = arith.select %28, %c1_i32_16, %c16_i32_14 : i32
    %30 = vector.broadcast %29 : i32 to vector<256x4xi32>
    %31 = arith.remsi %27, %30 : vector<256x4xi32>
    %c0_i32_17 = arith.constant 0 : i32
    %32 = vector.broadcast %c0_i32_17 : i32 to vector<256x4xi32>
    %33 = arith.cmpi ne, %31, %32 : vector<256x4xi32>
    %c0_i32_18 = arith.constant 0 : i32
    %34 = vector.broadcast %c0_i32_18 : i32 to vector<256x4xi32>
    %35 = arith.cmpi slt, %31, %34 : vector<256x4xi32>
    %c0_i32_19 = arith.constant 0 : i32
    %36 = arith.cmpi slt, %29, %c0_i32_19 : i32
    %37 = vector.broadcast %36 : i1 to vector<256x4xi1>
    %38 = vector.broadcast %37 : vector<256x4xi1> to vector<256x4xi1>
    %39 = arith.xori %35, %38 : vector<256x4xi1>
    %40 = arith.andi %39, %33 : vector<256x4xi1>
    %41 = vector.broadcast %29 : i32 to vector<256x4xi32>
    %42 = arith.addi %31, %41 : vector<256x4xi32>
    %43 = arith.select %40, %42, %31 : vector<256x4xi1>, vector<256x4xi32>
    %c0_20 = arith.constant 0 : index
    %c0_21 = arith.constant 0 : index
    %44 = vector.load %arg17[%c0_20, %c0_21] : memref<288x4xbf16, #tpu.memory_space<vmem>>, vector<256x4xbf16>
    %c0_22 = arith.constant 0 : index
    %c0_23 = arith.constant 0 : index
    %c0_24 = arith.constant 0 : index
    %45 = vector.load %arg2[%c0_22, %c0_23, %c0_24] : memref<3x4x96xbf16, #tpu.memory_space<vmem>>, vector<1x4x96xbf16>
    %46 = vector.shape_cast %45 : vector<1x4x96xbf16> to vector<4x96xbf16>
    %cst_25 = arith.constant dense<0.000000e+00> : vector<256x96xf32>
    %47 = tpu.matmul %44, %46, %cst_25 {dimension_numbers = #tpu.dot_dimension_numbers<[1], [0], [0], [1], [0, 0, 1, 1], [], []>} : vector<256x4xbf16>, vector<4x96xbf16>, vector<256x96xf32> -> vector<256x96xf32>
    %c16_26 = arith.constant 16 : index
    %c0_27 = arith.constant 0 : index
    %48 = vector.load %arg17[%c16_26, %c0_27] : memref<288x4xbf16, #tpu.memory_space<vmem>>, vector<256x4xbf16>
    %c1 = arith.constant 1 : index
    %c0_28 = arith.constant 0 : index
    %c0_29 = arith.constant 0 : index
    %49 = vector.load %arg2[%c1, %c0_28, %c0_29] : memref<3x4x96xbf16, #tpu.memory_space<vmem>>, vector<1x4x96xbf16>
    %50 = vector.shape_cast %49 : vector<1x4x96xbf16> to vector<4x96xbf16>
    %cst_30 = arith.constant dense<0.000000e+00> : vector<256x96xf32>
    %51 = tpu.matmul %48, %50, %cst_30 {dimension_numbers = #tpu.dot_dimension_numbers<[1], [0], [0], [1], [0, 0, 1, 1], [], []>} : vector<256x4xbf16>, vector<4x96xbf16>, vector<256x96xf32> -> vector<256x96xf32>
    %52 = arith.addf %47, %51 : vector<256x96xf32>
    %c32 = arith.constant 32 : index
    %c0_31 = arith.constant 0 : index
    %53 = vector.load %arg17[%c32, %c0_31] : memref<288x4xbf16, #tpu.memory_space<vmem>>, vector<256x4xbf16>
    %c2 = arith.constant 2 : index
    %c0_32 = arith.constant 0 : index
    %c0_33 = arith.constant 0 : index
    %54 = vector.load %arg2[%c2, %c0_32, %c0_33] : memref<3x4x96xbf16, #tpu.memory_space<vmem>>, vector<1x4x96xbf16>
    %55 = vector.shape_cast %54 : vector<1x4x96xbf16> to vector<4x96xbf16>
    %cst_34 = arith.constant dense<0.000000e+00> : vector<256x96xf32>
    %56 = tpu.matmul %53, %55, %cst_34 {dimension_numbers = #tpu.dot_dimension_numbers<[1], [0], [0], [1], [0, 0, 1, 1], [], []>} : vector<256x4xbf16>, vector<4x96xbf16>, vector<256x96xf32> -> vector<256x96xf32>
    %57 = arith.addf %52, %56 : vector<256x96xf32>
    %58 = vector.extract_strided_slice %57 {offsets = [0, 0], sizes = [256, 32], strides = [1, 1]} : vector<256x96xf32> to vector<256x32xf32>
    %c1_i32_35 = arith.constant 1 : i32
    %59 = tpu.dynamic_rotate %58 by %c1_i32_35 dim 0 : vector<256x32xf32>, i32 -> vector<256x32xf32>
    %60 = vector.extract_strided_slice %57 {offsets = [0, 32], sizes = [256, 32], strides = [1, 1]} : vector<256x96xf32> to vector<256x32xf32>
    %61 = vector.extract_strided_slice %57 {offsets = [0, 64], sizes = [256, 32], strides = [1, 1]} : vector<256x96xf32> to vector<256x32xf32>
    %c255_i32 = arith.constant 255 : i32
    %62 = tpu.dynamic_rotate %61 by %c255_i32 dim 0 : vector<256x32xf32>, i32 -> vector<256x32xf32>
    %c1_i32_36 = arith.constant 1 : i32
    %63 = vector.broadcast %c1_i32_36 : i32 to vector<256x32xi32>
    %64 = arith.cmpi sge, %26, %63 : vector<256x32xi32>
    %cst_37 = arith.constant 0.000000e+00 : f32
    %65 = vector.broadcast %cst_37 : f32 to vector<256x32xf32>
    %66 = arith.select %64, %59, %65 : vector<256x32xi1>, vector<256x32xf32>
    %67 = arith.addf %66, %60 : vector<256x32xf32>
    %c14_i32 = arith.constant 14 : i32
    %68 = vector.broadcast %c14_i32 : i32 to vector<256x32xi32>
    %69 = arith.cmpi sle, %26, %68 : vector<256x32xi32>
    %cst_38 = arith.constant 0.000000e+00 : f32
    %70 = vector.broadcast %cst_38 : f32 to vector<256x32xf32>
    %71 = arith.select %69, %62, %70 : vector<256x32xi1>, vector<256x32xf32>
    %72 = arith.addf %67, %71 : vector<256x32xf32>
    %c0_39 = arith.constant 0 : index
    %c0_40 = arith.constant 0 : index
    %73 = vector.load %arg11[%c0_39, %c0_40] : memref<1x32xf32, #tpu.memory_space<vmem>>, vector<1x32xf32>
    %74 = vector.broadcast %73 : vector<1x32xf32> to vector<256x32xf32>
    %75 = arith.addf %72, %74 : vector<256x32xf32>
    %cst_41 = arith.constant 0.000000e+00 : f32
    %76 = vector.broadcast %cst_41 : f32 to vector<256x32xf32>
    %77 = arith.cmpf oge, %75, %76 : vector<256x32xf32>
    %cst_42 = arith.constant 2.000000e-01 : f32
    %78 = vector.broadcast %cst_42 : f32 to vector<256x32xf32>
    %79 = arith.mulf %78, %75 : vector<256x32xf32>
    %80 = arith.select %77, %75, %79 : vector<256x32xi1>, vector<256x32xf32>
    %81 = arith.truncf %80 : vector<256x32xf32> to vector<256x32xbf16>
    %c16_43 = arith.constant 16 : index
    %c0_44 = arith.constant 0 : index
    %82 = vector.load %arg18[%c16_43, %c0_44] : memref<288x128xbf16, #tpu.memory_space<vmem>>, vector<256x32xbf16>
    tpu.vector_store %arg18[%c16_43, %c0_44], %81 {strides = array<i32>} : memref<288x128xbf16, #tpu.memory_space<vmem>>, vector<256x32xbf16>,
    %c0_45 = arith.constant 0 : index
    %c0_46 = arith.constant 0 : index
    %83 = vector.load %arg17[%c0_45, %c0_46] : memref<288x4xbf16, #tpu.memory_space<vmem>>, vector<256x4xbf16>
    %c0_47 = arith.constant 0 : index
    %c0_48 = arith.constant 0 : index
    %c0_49 = arith.constant 0 : index
    %84 = vector.load %arg3[%c0_47, %c0_48, %c0_49] : memref<3x4x96xbf16, #tpu.memory_space<vmem>>, vector<1x4x96xbf16>
    %85 = vector.shape_cast %84 : vector<1x4x96xbf16> to vector<4x96xbf16>
    %cst_50 = arith.constant dense<0.000000e+00> : vector<256x96xf32>
    %86 = tpu.matmul %83, %85, %cst_50 {dimension_numbers = #tpu.dot_dimension_numbers<[1], [0], [0], [1], [0, 0, 1, 1], [], []>} : vector<256x4xbf16>, vector<4x96xbf16>, vector<256x96xf32> -> vector<256x96xf32>
    %c0_51 = arith.constant 0 : index
    %c0_52 = arith.constant 0 : index
    %87 = vector.load %arg18[%c0_51, %c0_52] : memref<288x128xbf16, #tpu.memory_space<vmem>>, vector<256x32xbf16>
    %c0_53 = arith.constant 0 : index
    %c0_54 = arith.constant 0 : index
    %c0_55 = arith.constant 0 : index
    %88 = vector.load %arg7[%c0_53, %c0_54, %c0_55] : memref<3x32x96xbf16, #tpu.memory_space<vmem>>, vector<1x32x96xbf16>
    %89 = vector.shape_cast %88 : vector<1x32x96xbf16> to vector<32x96xbf16>
    %cst_56 = arith.constant dense<0.000000e+00> : vector<256x96xf32>
    %90 = tpu.matmul %87, %89, %cst_56 {dimension_numbers = #tpu.dot_dimension_numbers<[1], [0], [0], [1], [0, 0, 1, 1], [], []>} : vector<256x32xbf16>, vector<32x96xbf16>, vector<256x96xf32> -> vector<256x96xf32>
    %91 = arith.addf %86, %90 : vector<256x96xf32>
    %c16_57 = arith.constant 16 : index
    %c0_58 = arith.constant 0 : index
    %92 = vector.load %arg17[%c16_57, %c0_58] : memref<288x4xbf16, #tpu.memory_space<vmem>>, vector<256x4xbf16>
    %c1_59 = arith.constant 1 : index
    %c0_60 = arith.constant 0 : index
    %c0_61 = arith.constant 0 : index
    %93 = vector.load %arg3[%c1_59, %c0_60, %c0_61] : memref<3x4x96xbf16, #tpu.memory_space<vmem>>, vector<1x4x96xbf16>
    %94 = vector.shape_cast %93 : vector<1x4x96xbf16> to vector<4x96xbf16>
    %cst_62 = arith.constant dense<0.000000e+00> : vector<256x96xf32>
    %95 = tpu.matmul %92, %94, %cst_62 {dimension_numbers = #tpu.dot_dimension_numbers<[1], [0], [0], [1], [0, 0, 1, 1], [], []>} : vector<256x4xbf16>, vector<4x96xbf16>, vector<256x96xf32> -> vector<256x96xf32>
    %96 = arith.addf %91, %95 : vector<256x96xf32>
    %c16_63 = arith.constant 16 : index
    %c0_64 = arith.constant 0 : index
    %97 = vector.load %arg18[%c16_63, %c0_64] : memref<288x128xbf16, #tpu.memory_space<vmem>>, vector<256x32xbf16>
    %c1_65 = arith.constant 1 : index
    %c0_66 = arith.constant 0 : index
    %c0_67 = arith.constant 0 : index
    %98 = vector.load %arg7[%c1_65, %c0_66, %c0_67] : memref<3x32x96xbf16, #tpu.memory_space<vmem>>, vector<1x32x96xbf16>
    %99 = vector.shape_cast %98 : vector<1x32x96xbf16> to vector<32x96xbf16>
    %cst_68 = arith.constant dense<0.000000e+00> : vector<256x96xf32>
    %100 = tpu.matmul %97, %99, %cst_68 {dimension_numbers = #tpu.dot_dimension_numbers<[1], [0], [0], [1], [0, 0, 1, 1], [], []>} : vector<256x32xbf16>, vector<32x96xbf16>, vector<256x96xf32> -> vector<256x96xf32>
    %101 = arith.addf %96, %100 : vector<256x96xf32>
    %c32_69 = arith.constant 32 : index
    %c0_70 = arith.constant 0 : index
    %102 = vector.load %arg17[%c32_69, %c0_70] : memref<288x4xbf16, #tpu.memory_space<vmem>>, vector<256x4xbf16>
    %c2_71 = arith.constant 2 : index
    %c0_72 = arith.constant 0 : index
    %c0_73 = arith.constant 0 : index
    %103 = vector.load %arg3[%c2_71, %c0_72, %c0_73] : memref<3x4x96xbf16, #tpu.memory_space<vmem>>, vector<1x4x96xbf16>
    %104 = vector.shape_cast %103 : vector<1x4x96xbf16> to vector<4x96xbf16>
    %cst_74 = arith.constant dense<0.000000e+00> : vector<256x96xf32>
    %105 = tpu.matmul %102, %104, %cst_74 {dimension_numbers = #tpu.dot_dimension_numbers<[1], [0], [0], [1], [0, 0, 1, 1], [], []>} : vector<256x4xbf16>, vector<4x96xbf16>, vector<256x96xf32> -> vector<256x96xf32>
    %106 = arith.addf %101, %105 : vector<256x96xf32>
    %c32_75 = arith.constant 32 : index
    %c0_76 = arith.constant 0 : index
    %107 = vector.load %arg18[%c32_75, %c0_76] : memref<288x128xbf16, #tpu.memory_space<vmem>>, vector<256x32xbf16>
    %c2_77 = arith.constant 2 : index
    %c0_78 = arith.constant 0 : index
    %c0_79 = arith.constant 0 : index
    %108 = vector.load %arg7[%c2_77, %c0_78, %c0_79] : memref<3x32x96xbf16, #tpu.memory_space<vmem>>, vector<1x32x96xbf16>
    %109 = vector.shape_cast %108 : vector<1x32x96xbf16> to vector<32x96xbf16>
    %cst_80 = arith.constant dense<0.000000e+00> : vector<256x96xf32>
    %110 = tpu.matmul %107, %109, %cst_80 {dimension_numbers = #tpu.dot_dimension_numbers<[1], [0], [0], [1], [0, 0, 1, 1], [], []>} : vector<256x32xbf16>, vector<32x96xbf16>, vector<256x96xf32> -> vector<256x96xf32>
    %111 = arith.addf %106, %110 : vector<256x96xf32>
    %112 = vector.extract_strided_slice %111 {offsets = [0, 0], sizes = [256, 32], strides = [1, 1]} : vector<256x96xf32> to vector<256x32xf32>
    %c1_i32_81 = arith.constant 1 : i32
    %113 = tpu.dynamic_rotate %112 by %c1_i32_81 dim 0 : vector<256x32xf32>, i32 -> vector<256x32xf32>
    %114 = vector.extract_strided_slice %111 {offsets = [0, 32], sizes = [256, 32], strides = [1, 1]} : vector<256x96xf32> to vector<256x32xf32>
    %115 = vector.extract_strided_slice %111 {offsets = [0, 64], sizes = [256, 32], strides = [1, 1]} : vector<256x96xf32> to vector<256x32xf32>
    %c255_i32_82 = arith.constant 255 : i32
    %116 = tpu.dynamic_rotate %115 by %c255_i32_82 dim 0 : vector<256x32xf32>, i32 -> vector<256x32xf32>
    %c1_i32_83 = arith.constant 1 : i32
    %117 = vector.broadcast %c1_i32_83 : i32 to vector<256x32xi32>
    %118 = arith.cmpi sge, %26, %117 : vector<256x32xi32>
    %cst_84 = arith.constant 0.000000e+00 : f32
    %119 = vector.broadcast %cst_84 : f32 to vector<256x32xf32>
    %120 = arith.select %118, %113, %119 : vector<256x32xi1>, vector<256x32xf32>
    %121 = arith.addf %120, %114 : vector<256x32xf32>
    %c14_i32_85 = arith.constant 14 : i32
    %122 = vector.broadcast %c14_i32_85 : i32 to vector<256x32xi32>
    %123 = arith.cmpi sle, %26, %122 : vector<256x32xi32>
    %cst_86 = arith.constant 0.000000e+00 : f32
    %124 = vector.broadcast %cst_86 : f32 to vector<256x32xf32>
    %125 = arith.select %123, %116, %124 : vector<256x32xi1>, vector<256x32xf32>
    %126 = arith.addf %121, %125 : vector<256x32xf32>
    %c0_87 = arith.constant 0 : index
    %c0_88 = arith.constant 0 : index
    %127 = vector.load %arg12[%c0_87, %c0_88] : memref<1x32xf32, #tpu.memory_space<vmem>>, vector<1x32xf32>
    %128 = vector.broadcast %127 : vector<1x32xf32> to vector<256x32xf32>
    %129 = arith.addf %126, %128 : vector<256x32xf32>
    %cst_89 = arith.constant 0.000000e+00 : f32
    %130 = vector.broadcast %cst_89 : f32 to vector<256x32xf32>
    %131 = arith.cmpf oge, %129, %130 : vector<256x32xf32>
    %cst_90 = arith.constant 2.000000e-01 : f32
    %132 = vector.broadcast %cst_90 : f32 to vector<256x32xf32>
    %133 = arith.mulf %132, %129 : vector<256x32xf32>
    %134 = arith.select %131, %129, %133 : vector<256x32xi1>, vector<256x32xf32>
    %135 = arith.truncf %134 : vector<256x32xf32> to vector<256x32xbf16>
    %c16_91 = arith.constant 16 : index
    %c32_92 = arith.constant 32 : index
    %136 = vector.load %arg18[%c16_91, %c32_92] : memref<288x128xbf16, #tpu.memory_space<vmem>>, vector<256x32xbf16>
    tpu.vector_store %arg18[%c16_91, %c32_92], %135 {strides = array<i32>} : memref<288x128xbf16, #tpu.memory_space<vmem>>, vector<256x32xbf16>,
    %c0_93 = arith.constant 0 : index
    %c0_94 = arith.constant 0 : index
    %137 = vector.load %arg17[%c0_93, %c0_94] : memref<288x4xbf16, #tpu.memory_space<vmem>>, vector<256x4xbf16>
    %c0_95 = arith.constant 0 : index
    %c0_96 = arith.constant 0 : index
    %c0_97 = arith.constant 0 : index
    %138 = vector.load %arg4[%c0_95, %c0_96, %c0_97] : memref<3x4x96xbf16, #tpu.memory_space<vmem>>, vector<1x4x96xbf16>
    %139 = vector.shape_cast %138 : vector<1x4x96xbf16> to vector<4x96xbf16>
    %cst_98 = arith.constant dense<0.000000e+00> : vector<256x96xf32>
    %140 = tpu.matmul %137, %139, %cst_98 {dimension_numbers = #tpu.dot_dimension_numbers<[1], [0], [0], [1], [0, 0, 1, 1], [], []>} : vector<256x4xbf16>, vector<4x96xbf16>, vector<256x96xf32> -> vector<256x96xf32>
    %c0_99 = arith.constant 0 : index
    %c0_100 = arith.constant 0 : index
    %141 = vector.load %arg18[%c0_99, %c0_100] : memref<288x128xbf16, #tpu.memory_space<vmem>>, vector<256x64xbf16>
    %c0_101 = arith.constant 0 : index
    %c0_102 = arith.constant 0 : index
    %c0_103 = arith.constant 0 : index
    %142 = vector.load %arg8[%c0_101, %c0_102, %c0_103] : memref<3x64x96xbf16, #tpu.memory_space<vmem>>, vector<1x64x96xbf16>
    %143 = vector.shape_cast %142 : vector<1x64x96xbf16> to vector<64x96xbf16>
    %cst_104 = arith.constant dense<0.000000e+00> : vector<256x96xf32>
    %144 = tpu.matmul %141, %143, %cst_104 {dimension_numbers = #tpu.dot_dimension_numbers<[1], [0], [0], [1], [0, 0, 1, 1], [], []>} : vector<256x64xbf16>, vector<64x96xbf16>, vector<256x96xf32> -> vector<256x96xf32>
    %145 = arith.addf %140, %144 : vector<256x96xf32>
    %c16_105 = arith.constant 16 : index
    %c0_106 = arith.constant 0 : index
    %146 = vector.load %arg17[%c16_105, %c0_106] : memref<288x4xbf16, #tpu.memory_space<vmem>>, vector<256x4xbf16>
    %c1_107 = arith.constant 1 : index
    %c0_108 = arith.constant 0 : index
    %c0_109 = arith.constant 0 : index
    %147 = vector.load %arg4[%c1_107, %c0_108, %c0_109] : memref<3x4x96xbf16, #tpu.memory_space<vmem>>, vector<1x4x96xbf16>
    %148 = vector.shape_cast %147 : vector<1x4x96xbf16> to vector<4x96xbf16>
    %cst_110 = arith.constant dense<0.000000e+00> : vector<256x96xf32>
    %149 = tpu.matmul %146, %148, %cst_110 {dimension_numbers = #tpu.dot_dimension_numbers<[1], [0], [0], [1], [0, 0, 1, 1], [], []>} : vector<256x4xbf16>, vector<4x96xbf16>, vector<256x96xf32> -> vector<256x96xf32>
    %150 = arith.addf %145, %149 : vector<256x96xf32>
    %c16_111 = arith.constant 16 : index
    %c0_112 = arith.constant 0 : index
    %151 = vector.load %arg18[%c16_111, %c0_112] : memref<288x128xbf16, #tpu.memory_space<vmem>>, vector<256x64xbf16>
    %c1_113 = arith.constant 1 : index
    %c0_114 = arith.constant 0 : index
    %c0_115 = arith.constant 0 : index
    %152 = vector.load %arg8[%c1_113, %c0_114, %c0_115] : memref<3x64x96xbf16, #tpu.memory_space<vmem>>, vector<1x64x96xbf16>
    %153 = vector.shape_cast %152 : vector<1x64x96xbf16> to vector<64x96xbf16>
    %cst_116 = arith.constant dense<0.000000e+00> : vector<256x96xf32>
    %154 = tpu.matmul %151, %153, %cst_116 {dimension_numbers = #tpu.dot_dimension_numbers<[1], [0], [0], [1], [0, 0, 1, 1], [], []>} : vector<256x64xbf16>, vector<64x96xbf16>, vector<256x96xf32> -> vector<256x96xf32>
    %155 = arith.addf %150, %154 : vector<256x96xf32>
    %c32_117 = arith.constant 32 : index
    %c0_118 = arith.constant 0 : index
    %156 = vector.load %arg17[%c32_117, %c0_118] : memref<288x4xbf16, #tpu.memory_space<vmem>>, vector<256x4xbf16>
    %c2_119 = arith.constant 2 : index
    %c0_120 = arith.constant 0 : index
    %c0_121 = arith.constant 0 : index
    %157 = vector.load %arg4[%c2_119, %c0_120, %c0_121] : memref<3x4x96xbf16, #tpu.memory_space<vmem>>, vector<1x4x96xbf16>
    %158 = vector.shape_cast %157 : vector<1x4x96xbf16> to vector<4x96xbf16>
    %cst_122 = arith.constant dense<0.000000e+00> : vector<256x96xf32>
    %159 = tpu.matmul %156, %158, %cst_122 {dimension_numbers = #tpu.dot_dimension_numbers<[1], [0], [0], [1], [0, 0, 1, 1], [], []>} : vector<256x4xbf16>, vector<4x96xbf16>, vector<256x96xf32> -> vector<256x96xf32>
    %160 = arith.addf %155, %159 : vector<256x96xf32>
    %c32_123 = arith.constant 32 : index
    %c0_124 = arith.constant 0 : index
    %161 = vector.load %arg18[%c32_123, %c0_124] : memref<288x128xbf16, #tpu.memory_space<vmem>>, vector<256x64xbf16>
    %c2_125 = arith.constant 2 : index
    %c0_126 = arith.constant 0 : index
    %c0_127 = arith.constant 0 : index
    %162 = vector.load %arg8[%c2_125, %c0_126, %c0_127] : memref<3x64x96xbf16, #tpu.memory_space<vmem>>, vector<1x64x96xbf16>
    %163 = vector.shape_cast %162 : vector<1x64x96xbf16> to vector<64x96xbf16>
    %cst_128 = arith.constant dense<0.000000e+00> : vector<256x96xf32>
    %164 = tpu.matmul %161, %163, %cst_128 {dimension_numbers = #tpu.dot_dimension_numbers<[1], [0], [0], [1], [0, 0, 1, 1], [], []>} : vector<256x64xbf16>, vector<64x96xbf16>, vector<256x96xf32> -> vector<256x96xf32>
    %165 = arith.addf %160, %164 : vector<256x96xf32>
    %166 = vector.extract_strided_slice %165 {offsets = [0, 0], sizes = [256, 32], strides = [1, 1]} : vector<256x96xf32> to vector<256x32xf32>
    %c1_i32_129 = arith.constant 1 : i32
    %167 = tpu.dynamic_rotate %166 by %c1_i32_129 dim 0 : vector<256x32xf32>, i32 -> vector<256x32xf32>
    %168 = vector.extract_strided_slice %165 {offsets = [0, 32], sizes = [256, 32], strides = [1, 1]} : vector<256x96xf32> to vector<256x32xf32>
    %169 = vector.extract_strided_slice %165 {offsets = [0, 64], sizes = [256, 32], strides = [1, 1]} : vector<256x96xf32> to vector<256x32xf32>
    %c255_i32_130 = arith.constant 255 : i32
    %170 = tpu.dynamic_rotate %169 by %c255_i32_130 dim 0 : vector<256x32xf32>, i32 -> vector<256x32xf32>
    %c1_i32_131 = arith.constant 1 : i32
    %171 = vector.broadcast %c1_i32_131 : i32 to vector<256x32xi32>
    %172 = arith.cmpi sge, %26, %171 : vector<256x32xi32>
    %cst_132 = arith.constant 0.000000e+00 : f32
    %173 = vector.broadcast %cst_132 : f32 to vector<256x32xf32>
    %174 = arith.select %172, %167, %173 : vector<256x32xi1>, vector<256x32xf32>
    %175 = arith.addf %174, %168 : vector<256x32xf32>
    %c14_i32_133 = arith.constant 14 : i32
    %176 = vector.broadcast %c14_i32_133 : i32 to vector<256x32xi32>
    %177 = arith.cmpi sle, %26, %176 : vector<256x32xi32>
    %cst_134 = arith.constant 0.000000e+00 : f32
    %178 = vector.broadcast %cst_134 : f32 to vector<256x32xf32>
    %179 = arith.select %177, %170, %178 : vector<256x32xi1>, vector<256x32xf32>
    %180 = arith.addf %175, %179 : vector<256x32xf32>
    %c0_135 = arith.constant 0 : index
    %c0_136 = arith.constant 0 : index
    %181 = vector.load %arg13[%c0_135, %c0_136] : memref<1x32xf32, #tpu.memory_space<vmem>>, vector<1x32xf32>
    %182 = vector.broadcast %181 : vector<1x32xf32> to vector<256x32xf32>
    %183 = arith.addf %180, %182 : vector<256x32xf32>
    %cst_137 = arith.constant 0.000000e+00 : f32
    %184 = vector.broadcast %cst_137 : f32 to vector<256x32xf32>
    %185 = arith.cmpf oge, %183, %184 : vector<256x32xf32>
    %cst_138 = arith.constant 2.000000e-01 : f32
    %186 = vector.broadcast %cst_138 : f32 to vector<256x32xf32>
    %187 = arith.mulf %186, %183 : vector<256x32xf32>
    %188 = arith.select %185, %183, %187 : vector<256x32xi1>, vector<256x32xf32>
    %189 = arith.truncf %188 : vector<256x32xf32> to vector<256x32xbf16>
    %c16_139 = arith.constant 16 : index
    %c64 = arith.constant 64 : index
    %190 = vector.load %arg18[%c16_139, %c64] : memref<288x128xbf16, #tpu.memory_space<vmem>>, vector<256x32xbf16>
    tpu.vector_store %arg18[%c16_139, %c64], %189 {strides = array<i32>} : memref<288x128xbf16, #tpu.memory_space<vmem>>, vector<256x32xbf16>,
    %c0_140 = arith.constant 0 : index
    %c0_141 = arith.constant 0 : index
    %191 = vector.load %arg17[%c0_140, %c0_141] : memref<288x4xbf16, #tpu.memory_space<vmem>>, vector<256x4xbf16>
    %c0_142 = arith.constant 0 : index
    %c0_143 = arith.constant 0 : index
    %c0_144 = arith.constant 0 : index
    %192 = vector.load %arg5[%c0_142, %c0_143, %c0_144] : memref<3x4x96xbf16, #tpu.memory_space<vmem>>, vector<1x4x96xbf16>
    %193 = vector.shape_cast %192 : vector<1x4x96xbf16> to vector<4x96xbf16>
    %cst_145 = arith.constant dense<0.000000e+00> : vector<256x96xf32>
    %194 = tpu.matmul %191, %193, %cst_145 {dimension_numbers = #tpu.dot_dimension_numbers<[1], [0], [0], [1], [0, 0, 1, 1], [], []>} : vector<256x4xbf16>, vector<4x96xbf16>, vector<256x96xf32> -> vector<256x96xf32>
    %c0_146 = arith.constant 0 : index
    %c0_147 = arith.constant 0 : index
    %195 = vector.load %arg18[%c0_146, %c0_147] : memref<288x128xbf16, #tpu.memory_space<vmem>>, vector<256x96xbf16>
    %c0_148 = arith.constant 0 : index
    %c0_149 = arith.constant 0 : index
    %c0_150 = arith.constant 0 : index
    %196 = vector.load %arg9[%c0_148, %c0_149, %c0_150] : memref<3x96x96xbf16, #tpu.memory_space<vmem>>, vector<1x96x96xbf16>
    %197 = vector.shape_cast %196 : vector<1x96x96xbf16> to vector<96x96xbf16>
    %cst_151 = arith.constant dense<0.000000e+00> : vector<256x96xf32>
    %198 = tpu.matmul %195, %197, %cst_151 {dimension_numbers = #tpu.dot_dimension_numbers<[1], [0], [0], [1], [0, 0, 1, 1], [], []>} : vector<256x96xbf16>, vector<96x96xbf16>, vector<256x96xf32> -> vector<256x96xf32>
    %199 = arith.addf %194, %198 : vector<256x96xf32>
    %c16_152 = arith.constant 16 : index
    %c0_153 = arith.constant 0 : index
    %200 = vector.load %arg17[%c16_152, %c0_153] : memref<288x4xbf16, #tpu.memory_space<vmem>>, vector<256x4xbf16>
    %c1_154 = arith.constant 1 : index
    %c0_155 = arith.constant 0 : index
    %c0_156 = arith.constant 0 : index
    %201 = vector.load %arg5[%c1_154, %c0_155, %c0_156] : memref<3x4x96xbf16, #tpu.memory_space<vmem>>, vector<1x4x96xbf16>
    %202 = vector.shape_cast %201 : vector<1x4x96xbf16> to vector<4x96xbf16>
    %cst_157 = arith.constant dense<0.000000e+00> : vector<256x96xf32>
    %203 = tpu.matmul %200, %202, %cst_157 {dimension_numbers = #tpu.dot_dimension_numbers<[1], [0], [0], [1], [0, 0, 1, 1], [], []>} : vector<256x4xbf16>, vector<4x96xbf16>, vector<256x96xf32> -> vector<256x96xf32>
    %204 = arith.addf %199, %203 : vector<256x96xf32>
    %c16_158 = arith.constant 16 : index
    %c0_159 = arith.constant 0 : index
    %205 = vector.load %arg18[%c16_158, %c0_159] : memref<288x128xbf16, #tpu.memory_space<vmem>>, vector<256x96xbf16>
    %c1_160 = arith.constant 1 : index
    %c0_161 = arith.constant 0 : index
    %c0_162 = arith.constant 0 : index
    %206 = vector.load %arg9[%c1_160, %c0_161, %c0_162] : memref<3x96x96xbf16, #tpu.memory_space<vmem>>, vector<1x96x96xbf16>
    %207 = vector.shape_cast %206 : vector<1x96x96xbf16> to vector<96x96xbf16>
    %cst_163 = arith.constant dense<0.000000e+00> : vector<256x96xf32>
    %208 = tpu.matmul %205, %207, %cst_163 {dimension_numbers = #tpu.dot_dimension_numbers<[1], [0], [0], [1], [0, 0, 1, 1], [], []>} : vector<256x96xbf16>, vector<96x96xbf16>, vector<256x96xf32> -> vector<256x96xf32>
    %209 = arith.addf %204, %208 : vector<256x96xf32>
    %c32_164 = arith.constant 32 : index
    %c0_165 = arith.constant 0 : index
    %210 = vector.load %arg17[%c32_164, %c0_165] : memref<288x4xbf16, #tpu.memory_space<vmem>>, vector<256x4xbf16>
    %c2_166 = arith.constant 2 : index
    %c0_167 = arith.constant 0 : index
    %c0_168 = arith.constant 0 : index
    %211 = vector.load %arg5[%c2_166, %c0_167, %c0_168] : memref<3x4x96xbf16, #tpu.memory_space<vmem>>, vector<1x4x96xbf16>
    %212 = vector.shape_cast %211 : vector<1x4x96xbf16> to vector<4x96xbf16>
    %cst_169 = arith.constant dense<0.000000e+00> : vector<256x96xf32>
    %213 = tpu.matmul %210, %212, %cst_169 {dimension_numbers = #tpu.dot_dimension_numbers<[1], [0], [0], [1], [0, 0, 1, 1], [], []>} : vector<256x4xbf16>, vector<4x96xbf16>, vector<256x96xf32> -> vector<256x96xf32>
    %214 = arith.addf %209, %213 : vector<256x96xf32>
    %c32_170 = arith.constant 32 : index
    %c0_171 = arith.constant 0 : index
    %215 = vector.load %arg18[%c32_170, %c0_171] : memref<288x128xbf16, #tpu.memory_space<vmem>>, vector<256x96xbf16>
    %c2_172 = arith.constant 2 : index
    %c0_173 = arith.constant 0 : index
    %c0_174 = arith.constant 0 : index
    %216 = vector.load %arg9[%c2_172, %c0_173, %c0_174] : memref<3x96x96xbf16, #tpu.memory_space<vmem>>, vector<1x96x96xbf16>
    %217 = vector.shape_cast %216 : vector<1x96x96xbf16> to vector<96x96xbf16>
    %cst_175 = arith.constant dense<0.000000e+00> : vector<256x96xf32>
    %218 = tpu.matmul %215, %217, %cst_175 {dimension_numbers = #tpu.dot_dimension_numbers<[1], [0], [0], [1], [0, 0, 1, 1], [], []>} : vector<256x96xbf16>, vector<96x96xbf16>, vector<256x96xf32> -> vector<256x96xf32>
    %219 = arith.addf %214, %218 : vector<256x96xf32>
    %220 = vector.extract_strided_slice %219 {offsets = [0, 0], sizes = [256, 32], strides = [1, 1]} : vector<256x96xf32> to vector<256x32xf32>
    %c1_i32_176 = arith.constant 1 : i32
    %221 = tpu.dynamic_rotate %220 by %c1_i32_176 dim 0 : vector<256x32xf32>, i32 -> vector<256x32xf32>
    %222 = vector.extract_strided_slice %219 {offsets = [0, 32], sizes = [256, 32], strides = [1, 1]} : vector<256x96xf32> to vector<256x32xf32>
    %223 = vector.extract_strided_slice %219 {offsets = [0, 64], sizes = [256, 32], strides = [1, 1]} : vector<256x96xf32> to vector<256x32xf32>
    %c255_i32_177 = arith.constant 255 : i32
    %224 = tpu.dynamic_rotate %223 by %c255_i32_177 dim 0 : vector<256x32xf32>, i32 -> vector<256x32xf32>
    %c1_i32_178 = arith.constant 1 : i32
    %225 = vector.broadcast %c1_i32_178 : i32 to vector<256x32xi32>
    %226 = arith.cmpi sge, %26, %225 : vector<256x32xi32>
    %cst_179 = arith.constant 0.000000e+00 : f32
    %227 = vector.broadcast %cst_179 : f32 to vector<256x32xf32>
    %228 = arith.select %226, %221, %227 : vector<256x32xi1>, vector<256x32xf32>
    %229 = arith.addf %228, %222 : vector<256x32xf32>
    %c14_i32_180 = arith.constant 14 : i32
    %230 = vector.broadcast %c14_i32_180 : i32 to vector<256x32xi32>
    %231 = arith.cmpi sle, %26, %230 : vector<256x32xi32>
    %cst_181 = arith.constant 0.000000e+00 : f32
    %232 = vector.broadcast %cst_181 : f32 to vector<256x32xf32>
    %233 = arith.select %231, %224, %232 : vector<256x32xi1>, vector<256x32xf32>
    %234 = arith.addf %229, %233 : vector<256x32xf32>
    %c0_182 = arith.constant 0 : index
    %c0_183 = arith.constant 0 : index
    %235 = vector.load %arg14[%c0_182, %c0_183] : memref<1x32xf32, #tpu.memory_space<vmem>>, vector<1x32xf32>
    %236 = vector.broadcast %235 : vector<1x32xf32> to vector<256x32xf32>
    %237 = arith.addf %234, %236 : vector<256x32xf32>
    %cst_184 = arith.constant 0.000000e+00 : f32
    %238 = vector.broadcast %cst_184 : f32 to vector<256x32xf32>
    %239 = arith.cmpf oge, %237, %238 : vector<256x32xf32>
    %cst_185 = arith.constant 2.000000e-01 : f32
    %240 = vector.broadcast %cst_185 : f32 to vector<256x32xf32>
    %241 = arith.mulf %240, %237 : vector<256x32xf32>
    %242 = arith.select %239, %237, %241 : vector<256x32xi1>, vector<256x32xf32>
    %243 = arith.truncf %242 : vector<256x32xf32> to vector<256x32xbf16>
    %c16_186 = arith.constant 16 : index
    %c96 = arith.constant 96 : index
    %244 = vector.load %arg18[%c16_186, %c96] : memref<288x128xbf16, #tpu.memory_space<vmem>>, vector<256x32xbf16>
    tpu.vector_store %arg18[%c16_186, %c96], %243 {strides = array<i32>} : memref<288x128xbf16, #tpu.memory_space<vmem>>, vector<256x32xbf16>,
    %c0_187 = arith.constant 0 : index
    %c0_188 = arith.constant 0 : index
    %245 = vector.load %arg17[%c0_187, %c0_188] : memref<288x4xbf16, #tpu.memory_space<vmem>>, vector<256x4xbf16>
    %c0_189 = arith.constant 0 : index
    %c0_190 = arith.constant 0 : index
    %c0_191 = arith.constant 0 : index
    %246 = vector.load %arg6[%c0_189, %c0_190, %c0_191] : memref<3x4x12xbf16, #tpu.memory_space<vmem>>, vector<1x4x12xbf16>
    %247 = vector.shape_cast %246 : vector<1x4x12xbf16> to vector<4x12xbf16>
    %cst_192 = arith.constant dense<0.000000e+00> : vector<256x12xf32>
    %248 = tpu.matmul %245, %247, %cst_192 {dimension_numbers = #tpu.dot_dimension_numbers<[1], [0], [0], [1], [0, 0, 1, 1], [], []>} : vector<256x4xbf16>, vector<4x12xbf16>, vector<256x12xf32> -> vector<256x12xf32>
    %c0_193 = arith.constant 0 : index
    %c0_194 = arith.constant 0 : index
    %249 = vector.load %arg18[%c0_193, %c0_194] : memref<288x128xbf16, #tpu.memory_space<vmem>>, vector<256x128xbf16>
    %c0_195 = arith.constant 0 : index
    %c0_196 = arith.constant 0 : index
    %c0_197 = arith.constant 0 : index
    %250 = vector.load %arg10[%c0_195, %c0_196, %c0_197] : memref<3x128x12xbf16, #tpu.memory_space<vmem>>, vector<1x128x12xbf16>
    %251 = vector.shape_cast %250 : vector<1x128x12xbf16> to vector<128x12xbf16>
    %cst_198 = arith.constant dense<0.000000e+00> : vector<256x12xf32>
    %252 = tpu.matmul %249, %251, %cst_198 {dimension_numbers = #tpu.dot_dimension_numbers<[1], [0], [0], [1], [0, 0, 1, 1], [], []>} : vector<256x128xbf16>, vector<128x12xbf16>, vector<256x12xf32> -> vector<256x12xf32>
    %253 = arith.addf %248, %252 : vector<256x12xf32>
    %c16_199 = arith.constant 16 : index
    %c0_200 = arith.constant 0 : index
    %254 = vector.load %arg17[%c16_199, %c0_200] : memref<288x4xbf16, #tpu.memory_space<vmem>>, vector<256x4xbf16>
    %c1_201 = arith.constant 1 : index
    %c0_202 = arith.constant 0 : index
    %c0_203 = arith.constant 0 : index
    %255 = vector.load %arg6[%c1_201, %c0_202, %c0_203] : memref<3x4x12xbf16, #tpu.memory_space<vmem>>, vector<1x4x12xbf16>
    %256 = vector.shape_cast %255 : vector<1x4x12xbf16> to vector<4x12xbf16>
    %cst_204 = arith.constant dense<0.000000e+00> : vector<256x12xf32>
    %257 = tpu.matmul %254, %256, %cst_204 {dimension_numbers = #tpu.dot_dimension_numbers<[1], [0], [0], [1], [0, 0, 1, 1], [], []>} : vector<256x4xbf16>, vector<4x12xbf16>, vector<256x12xf32> -> vector<256x12xf32>
    %258 = arith.addf %253, %257 : vector<256x12xf32>
    %c16_205 = arith.constant 16 : index
    %c0_206 = arith.constant 0 : index
    %259 = vector.load %arg18[%c16_205, %c0_206] : memref<288x128xbf16, #tpu.memory_space<vmem>>, vector<256x128xbf16>
    %c1_207 = arith.constant 1 : index
    %c0_208 = arith.constant 0 : index
    %c0_209 = arith.constant 0 : index
    %260 = vector.load %arg10[%c1_207, %c0_208, %c0_209] : memref<3x128x12xbf16, #tpu.memory_space<vmem>>, vector<1x128x12xbf16>
    %261 = vector.shape_cast %260 : vector<1x128x12xbf16> to vector<128x12xbf16>
    %cst_210 = arith.constant dense<0.000000e+00> : vector<256x12xf32>
    %262 = tpu.matmul %259, %261, %cst_210 {dimension_numbers = #tpu.dot_dimension_numbers<[1], [0], [0], [1], [0, 0, 1, 1], [], []>} : vector<256x128xbf16>, vector<128x12xbf16>, vector<256x12xf32> -> vector<256x12xf32>
    %263 = arith.addf %258, %262 : vector<256x12xf32>
    %c32_211 = arith.constant 32 : index
    %c0_212 = arith.constant 0 : index
    %264 = vector.load %arg17[%c32_211, %c0_212] : memref<288x4xbf16, #tpu.memory_space<vmem>>, vector<256x4xbf16>
    %c2_213 = arith.constant 2 : index
    %c0_214 = arith.constant 0 : index
    %c0_215 = arith.constant 0 : index
    %265 = vector.load %arg6[%c2_213, %c0_214, %c0_215] : memref<3x4x12xbf16, #tpu.memory_space<vmem>>, vector<1x4x12xbf16>
    %266 = vector.shape_cast %265 : vector<1x4x12xbf16> to vector<4x12xbf16>
    %cst_216 = arith.constant dense<0.000000e+00> : vector<256x12xf32>
    %267 = tpu.matmul %264, %266, %cst_216 {dimension_numbers = #tpu.dot_dimension_numbers<[1], [0], [0], [1], [0, 0, 1, 1], [], []>} : vector<256x4xbf16>, vector<4x12xbf16>, vector<256x12xf32> -> vector<256x12xf32>
    %268 = arith.addf %263, %267 : vector<256x12xf32>
    %c32_217 = arith.constant 32 : index
    %c0_218 = arith.constant 0 : index
    %269 = vector.load %arg18[%c32_217, %c0_218] : memref<288x128xbf16, #tpu.memory_space<vmem>>, vector<256x128xbf16>
    %c2_219 = arith.constant 2 : index
    %c0_220 = arith.constant 0 : index
    %c0_221 = arith.constant 0 : index
    %270 = vector.load %arg10[%c2_219, %c0_220, %c0_221] : memref<3x128x12xbf16, #tpu.memory_space<vmem>>, vector<1x128x12xbf16>
    %271 = vector.shape_cast %270 : vector<1x128x12xbf16> to vector<128x12xbf16>
    %cst_222 = arith.constant dense<0.000000e+00> : vector<256x12xf32>
    %272 = tpu.matmul %269, %271, %cst_222 {dimension_numbers = #tpu.dot_dimension_numbers<[1], [0], [0], [1], [0, 0, 1, 1], [], []>} : vector<256x128xbf16>, vector<128x12xbf16>, vector<256x12xf32> -> vector<256x12xf32>
    %273 = arith.addf %268, %272 : vector<256x12xf32>
    %274 = vector.extract_strided_slice %273 {offsets = [0, 0], sizes = [256, 4], strides = [1, 1]} : vector<256x12xf32> to vector<256x4xf32>
    %c1_i32_223 = arith.constant 1 : i32
    %275 = tpu.dynamic_rotate %274 by %c1_i32_223 dim 0 : vector<256x4xf32>, i32 -> vector<256x4xf32>
    %276 = vector.extract_strided_slice %273 {offsets = [0, 4], sizes = [256, 4], strides = [1, 1]} : vector<256x12xf32> to vector<256x4xf32>
    %277 = vector.extract_strided_slice %273 {offsets = [0, 8], sizes = [256, 4], strides = [1, 1]} : vector<256x12xf32> to vector<256x4xf32>
    %c255_i32_224 = arith.constant 255 : i32
    %278 = tpu.dynamic_rotate %277 by %c255_i32_224 dim 0 : vector<256x4xf32>, i32 -> vector<256x4xf32>
    %c1_i32_225 = arith.constant 1 : i32
    %279 = vector.broadcast %c1_i32_225 : i32 to vector<256x4xi32>
    %280 = arith.cmpi sge, %43, %279 : vector<256x4xi32>
    %cst_226 = arith.constant 0.000000e+00 : f32
    %281 = vector.broadcast %cst_226 : f32 to vector<256x4xf32>
    %282 = arith.select %280, %275, %281 : vector<256x4xi1>, vector<256x4xf32>
    %283 = arith.addf %282, %276 : vector<256x4xf32>
    %c14_i32_227 = arith.constant 14 : i32
    %284 = vector.broadcast %c14_i32_227 : i32 to vector<256x4xi32>
    %285 = arith.cmpi sle, %43, %284 : vector<256x4xi32>
    %cst_228 = arith.constant 0.000000e+00 : f32
    %286 = vector.broadcast %cst_228 : f32 to vector<256x4xf32>
    %287 = arith.select %285, %278, %286 : vector<256x4xi1>, vector<256x4xf32>
    %288 = arith.addf %283, %287 : vector<256x4xf32>
    %c0_229 = arith.constant 0 : index
    %c0_230 = arith.constant 0 : index
    %289 = vector.load %arg15[%c0_229, %c0_230] : memref<1x4xf32, #tpu.memory_space<vmem>>, vector<1x4xf32>
    %290 = vector.broadcast %289 : vector<1x4xf32> to vector<256x4xf32>
    %291 = arith.addf %288, %290 : vector<256x4xf32>
    %cst_231 = arith.constant 2.000000e-01 : f32
    %292 = vector.broadcast %cst_231 : f32 to vector<256x4xf32>
    %293 = arith.mulf %292, %291 : vector<256x4xf32>
    %c0_232 = arith.constant 0 : index
    %c0_233 = arith.constant 0 : index
    %c0_234 = arith.constant 0 : index
    %294 = vector.load %arg1[%c0_232, %c0_233, %c0_234] : memref<1x256x4xf32, #tpu.memory_space<vmem>>, vector<1x256x4xf32>
    %295 = vector.shape_cast %294 : vector<1x256x4xf32> to vector<256x4xf32>
    %296 = arith.addf %293, %295 : vector<256x4xf32>
    %c0_235 = arith.constant 0 : index
    %c0_236 = arith.constant 0 : index
    %c0_237 = arith.constant 0 : index
    %297 = vector.load %arg16[%c0_235, %c0_236, %c0_237] : memref<1x256x4xf32, #tpu.memory_space<vmem>>, vector<1x256x4xf32>
    %298 = vector.shape_cast %297 : vector<1x256x4xf32> to vector<256x4xf32>
    %299 = vector.shape_cast %296 : vector<256x4xf32> to vector<1x256x4xf32>
    tpu.vector_store %arg16[%c0_235, %c0_236, %c0_237], %299 {strides = array<i32>} : memref<1x256x4xf32, #tpu.memory_space<vmem>>, vector<1x256x4xf32>,
    return
  }
  func.func @transform_0(%arg0: i32) -> (i32, i32, i32) {
    %c0_i32 = arith.constant 0 : i32
    %c0_i32_0 = arith.constant 0 : i32
    %c0_i32_1 = arith.constant 0 : i32
    return %arg0, %c0_i32, %c0_i32_0 : i32, i32, i32
  }
  func.func @transform_1(%arg0: i32) -> (i32, i32, i32) {
    %c0_i32 = arith.constant 0 : i32
    %c0_i32_0 = arith.constant 0 : i32
    %c0_i32_1 = arith.constant 0 : i32
    %c0_i32_2 = arith.constant 0 : i32
    return %c0_i32, %c0_i32_0, %c0_i32_1 : i32, i32, i32
  }
  func.func @transform_2(%arg0: i32) -> (i32, i32, i32) {
    %c0_i32 = arith.constant 0 : i32
    %c0_i32_0 = arith.constant 0 : i32
    %c0_i32_1 = arith.constant 0 : i32
    %c0_i32_2 = arith.constant 0 : i32
    return %c0_i32, %c0_i32_0, %c0_i32_1 : i32, i32, i32
  }
  func.func @transform_3(%arg0: i32) -> (i32, i32, i32) {
    %c0_i32 = arith.constant 0 : i32
    %c0_i32_0 = arith.constant 0 : i32
    %c0_i32_1 = arith.constant 0 : i32
    %c0_i32_2 = arith.constant 0 : i32
    return %c0_i32, %c0_i32_0, %c0_i32_1 : i32, i32, i32
  }
  func.func @transform_4(%arg0: i32) -> (i32, i32, i32) {
    %c0_i32 = arith.constant 0 : i32
    %c0_i32_0 = arith.constant 0 : i32
    %c0_i32_1 = arith.constant 0 : i32
    %c0_i32_2 = arith.constant 0 : i32
    return %c0_i32, %c0_i32_0, %c0_i32_1 : i32, i32, i32
  }
  func.func @transform_5(%arg0: i32) -> (i32, i32, i32) {
    %c0_i32 = arith.constant 0 : i32
    %c0_i32_0 = arith.constant 0 : i32
    %c0_i32_1 = arith.constant 0 : i32
    %c0_i32_2 = arith.constant 0 : i32
    return %c0_i32, %c0_i32_0, %c0_i32_1 : i32, i32, i32
  }
  func.func @transform_6(%arg0: i32) -> (i32, i32, i32) {
    %c0_i32 = arith.constant 0 : i32
    %c0_i32_0 = arith.constant 0 : i32
    %c0_i32_1 = arith.constant 0 : i32
    %c0_i32_2 = arith.constant 0 : i32
    return %c0_i32, %c0_i32_0, %c0_i32_1 : i32, i32, i32
  }
  func.func @transform_7(%arg0: i32) -> (i32, i32, i32) {
    %c0_i32 = arith.constant 0 : i32
    %c0_i32_0 = arith.constant 0 : i32
    %c0_i32_1 = arith.constant 0 : i32
    %c0_i32_2 = arith.constant 0 : i32
    return %c0_i32, %c0_i32_0, %c0_i32_1 : i32, i32, i32
  }
  func.func @transform_8(%arg0: i32) -> (i32, i32, i32) {
    %c0_i32 = arith.constant 0 : i32
    %c0_i32_0 = arith.constant 0 : i32
    %c0_i32_1 = arith.constant 0 : i32
    %c0_i32_2 = arith.constant 0 : i32
    return %c0_i32, %c0_i32_0, %c0_i32_1 : i32, i32, i32
  }
  func.func @transform_9(%arg0: i32) -> (i32, i32, i32) {
    %c0_i32 = arith.constant 0 : i32
    %c0_i32_0 = arith.constant 0 : i32
    %c0_i32_1 = arith.constant 0 : i32
    %c0_i32_2 = arith.constant 0 : i32
    return %c0_i32, %c0_i32_0, %c0_i32_1 : i32, i32, i32
  }
  func.func @transform_10(%arg0: i32) -> (i32, i32) {
    %c0_i32 = arith.constant 0 : i32
    %c0_i32_0 = arith.constant 0 : i32
    %c0_i32_1 = arith.constant 0 : i32
    return %c0_i32, %c0_i32_0 : i32, i32
  }
  func.func @transform_11(%arg0: i32) -> (i32, i32) {
    %c0_i32 = arith.constant 0 : i32
    %c0_i32_0 = arith.constant 0 : i32
    %c0_i32_1 = arith.constant 0 : i32
    return %c0_i32, %c0_i32_0 : i32, i32
  }
  func.func @transform_12(%arg0: i32) -> (i32, i32) {
    %c0_i32 = arith.constant 0 : i32
    %c0_i32_0 = arith.constant 0 : i32
    %c0_i32_1 = arith.constant 0 : i32
    return %c0_i32, %c0_i32_0 : i32, i32
  }
  func.func @transform_13(%arg0: i32) -> (i32, i32) {
    %c0_i32 = arith.constant 0 : i32
    %c0_i32_0 = arith.constant 0 : i32
    %c0_i32_1 = arith.constant 0 : i32
    return %c0_i32, %c0_i32_0 : i32, i32
  }
  func.func @transform_14(%arg0: i32) -> (i32, i32) {
    %c0_i32 = arith.constant 0 : i32
    %c0_i32_0 = arith.constant 0 : i32
    %c0_i32_1 = arith.constant 0 : i32
    return %c0_i32, %c0_i32_0 : i32, i32
  }
  func.func @transform_15(%arg0: i32) -> (i32, i32, i32) {
    %c0_i32 = arith.constant 0 : i32
    %c0_i32_0 = arith.constant 0 : i32
    %c0_i32_1 = arith.constant 0 : i32
    return %arg0, %c0_i32, %c0_i32_0 : i32, i32, i32
  }
}

</mosaic_0001>

<bundles_post_ra>
// kernel: tpu_custom_call.1
= control target key start
LH: loop header
LB: loop body
LE: loop exit
PB: predicated region body
PF: predicated region fallthrough
CT: control target
= control target key end

     0   :  { %s14477_s18 = smov 0   ;;  %s18582_s0 = inlined_call_operand.vmem [shape: f32[2,256,4], index: 0, kind: input, shape index: {}]   ;;  %s18583_s1 = inlined_call_operand.vmem [shape: bf16[3,4,96], index: 1, kind: input, shape index: {}]   ;;  %s18584_s2 = inlined_call_operand.vmem [shape: bf16[3,4,96], index: 2, kind: input, shape index: {}]   ;;  %s18585_s3 = inlined_call_operand.vmem [shape: bf16[3,4,96], index: 3, kind: input, shape index: {}]   ;;  %s18586_s4 = inlined_call_operand.vmem [shape: bf16[3,4,96], index: 4, kind: input, shape index: {}]   ;;  %s18587_s5 = inlined_call_operand.vmem [shape: bf16[3,4,12], index: 5, kind: input, shape index: {}]   ;;  %s18588_s6 = inlined_call_operand.vmem [shape: bf16[3,32,96], index: 6, kind: input, shape index: {}]   ;;  %s18589_s7 = inlined_call_operand.vmem [shape: bf16[3,64,96], index: 7, kind: input, shape index: {}]   ;;  %s18590_s8 = inlined_call_operand.vmem [shape: bf16[3,96,96], index: 8, kind: input, shape index: {}]   ;;  %s18591_s9 = inlined_call_operand.vmem [shape: bf16[3,128,12], index: 9, kind: input, shape index: {}]   ;;  %s18592_s10 = inlined_call_operand.vmem [shape: f32[1,32], index: 10, kind: input, shape index: {}]   ;;  %s18593_s11 = inlined_call_operand.vmem [shape: f32[1,32], index: 11, kind: input, shape index: {}]   ;;  %s18594_s12 = inlined_call_operand.vmem [shape: f32[1,32], index: 12, kind: input, shape index: {}]   ;;  %s18595_s13 = inlined_call_operand.vmem [shape: f32[1,32], index: 13, kind: input, shape index: {}]   ;;  %s18596_s14 = inlined_call_operand.vmem [shape: f32[1,4], index: 14, kind: input, shape index: {}]   ;;  %s18597_s15 = inlined_call_operand.vmem [shape: f32[2,256,4], index: 15, kind: output, shape index: {}]  }
   0x1 LB: > { %s11510_s19 = sadd.s32 4294967295, %s14389_s18   ;;  %p11514_p0 = scmp.ge.s32.totalorder %s14389_s18, 1  ;;  %s14389_s18 = sphi %s14477_s18, %s25_s18  }
   0x2   : > { %p437_p1 = scmp.lt.s32.totalorder %s14389_s18, 3 }
   0x4   : > { %p438_p2 = pnand %p11514_p0, %p437_p1 }
   0x6   : > { %441 = sbr.rel (%p438_p2) target bundleno = 3800 (0xed8), region = 80 }
   0xd   : > { %v998_v0 = vld [vmem:[%s18583_s1] sm:$0x3]  ;;  %vm18605_vm0 = vcmask 1041408   ;;  %v11519_v1 = vld [vmem:[%s18583_s1 + $0x2] sm:$0x3]  ;;  %vm18606_vm1 = vcmask 31744  }
   0xe   : > { %14290 = vmatprep.subr.msk.bf16.mxu0 %vm18605_vm0, %v998_v0  ;;  %v14493_v2 = vsel %vm18605_vm0, %v998_v0, 0  ;;  %14289 = vmatprep.subr.msk.bf16.mxu1 %vm18605_vm0, %v11519_v1  ;;  %v1052_v3 = vsel %vm18605_vm0, %v11519_v1, 0  ;;  %v11552_v4 = vld [vmem:[%s18583_s1 + $0x4] sm:$0x3]  ;;  %p485_p3 = scmp.lt.s32.totalorder %s11510_s19, 1  ;;  %v14391_v5 = vmov 0  }
   0xf   : > { %12604 = vmatpush3.bf16.msra.mxu0 %v14493_v2  ;;  %12570 = vmatpush3.bf16.msra.mxu1 %v1052_v3  ;;  %497 = vst.msk [vmem:[#allocation2] sm:$0xff] %vm18606_vm1, %v14391_v5  ;;  %498 = vst.msk [vmem:[#allocation2 + $0x88] sm:$0xff] %vm18606_vm1, %v14391_v5  ;;  %v1449_v44 = vsel %vm18605_vm0, %v11552_v4, 0  ;;  %s14392_s30 = smov 96   ;;  %s14393_s16 = smov 64   ;;  %vm18615_vm3 = vcmask 261120  }
  0x10   : > { %499 = vst [vmem:[#allocation3] sm:$0xff] %v14391_v5  ;;  %14292 = vmatprep.subr.msk.bf16.mxu0 %vm18605_vm0, %v11552_v4  ;;  %s19642_s19 = smov (!%p485_p3, %s11510_s19), 1  ;;  %14291 = vmatprep.subr.msk.bf16.mxu1 %vm18605_vm0, %v998_v0  ;;  %s14394_s22 = smov 32  }
  0x11   : > { %s12060_s26 = sshll.u32 %s19642_s19, 8  ;;  %s14395_s21 = smov 120  }
  0x12   : > { %s14516_s29 = scalar_lea.vmem %s18582_s0, %s12060_s26  ;;  %s18253_s27 = scalar_lea.vmem %s18597_s15, %s12060_s26 }
  0x13   : > { %v501_v6 = vld [vmem:[%s14516_s29] sm:$0xff]  ;;  %v502_v7 = vld [vmem:[%s14516_s29 + $0x8] sm:$0xff]  ;;  %v503_v8 = vld [vmem:[%s14516_s29 + $0x10] sm:$0xff] }
  0x14   : > { %v533_v9 = vpack.c.bf16 %v502_v7, %v501_v6  ;;  %v504_v10 = vld [vmem:[%s14516_s29 + $0x18] sm:$0xff]  ;;  %v505_v11 = vld [vmem:[%s14516_s29 + $0x20] sm:$0xff]  ;;  %v506_v12 = vld [vmem:[%s14516_s29 + $0x28] sm:$0xff] }
  0x15   : > { %v534_v14 = vpack.c.bf16 %v504_v10, %v503_v8  ;;  %v535_v15 = vpack.c.bf16 %v506_v12, %v505_v11  ;;  %v507_v16 = vld [vmem:[%s14516_s29 + $0x30] sm:$0xff]  ;;  %v508_v17 = vld [vmem:[%s14516_s29 + $0x38] sm:$0xff]  ;;  %v509_v19 = vld [vmem:[%s14516_s29 + $0x40] sm:$0xff] }
  0x16   : > { %v982_v13 = vld [vmem:[#allocation2] sm:$0xff]  ;;  %549 = vst.msk [vmem:[#allocation2 + $0x8] sm:$0xff] %vm18606_vm1, %v533_v9  ;;  %v536_v18 = vpack.c.bf16 %v508_v17, %v507_v16  ;;  %v510_v20 = vld [vmem:[%s14516_s29 + $0x48] sm:$0xff]  ;;  %v511_v21 = vld [vmem:[%s14516_s29 + $0x50] sm:$0xff] }
  0x17   : > { %12605 = vmatprep.mubr.msk.bf16.mxu0 %vm18606_vm1, %v982_v13  ;;  %550 = vst.msk [vmem:[#allocation2 + $0x10] sm:$0xff] %vm18606_vm1, %v534_v14  ;;  %551 = vst.msk [vmem:[#allocation2 + $0x18] sm:$0xff] %vm18606_vm1, %v535_v15  ;;  %v537_v22 = vpack.c.bf16 %v510_v20, %v509_v19  ;;  %v512_v23 = vld [vmem:[%s14516_s29 + $0x58] sm:$0xff]  ;;  %v513_v24 = vld [vmem:[%s14516_s29 + $0x60] sm:$0xff] }
  0x18   : > { %v514_v25 = vld [vmem:[%s14516_s29 + $0x68] sm:$0xff]  ;;  %552 = vst.msk [vmem:[#allocation2 + $0x20] sm:$0xff] %vm18606_vm1, %v536_v18  ;;  %v538_v26 = vpack.c.bf16 %v512_v23, %v511_v21  ;;  %v515_v28 = vld [vmem:[%s14516_s29 + $0x70] sm:$0xff]  ;;  %v516_v29 = vld [vmem:[%s14516_s29 + $0x78] sm:$0xff] }
  0x19   : > { %v539_v27 = vpack.c.bf16 %v514_v25, %v513_v24  ;;  %v517_v30 = vld [vmem:[%s14516_s29 + $0x80] sm:$0xff]  ;;  %553 = vst.msk [vmem:[#allocation2 + $0x28] sm:$0xff] %vm18606_vm1, %v537_v22  ;;  %v540_v31 = vpack.c.bf16 %v516_v29, %v515_v28  ;;  %v518_v32 = vld [vmem:[%s14516_s29 + $0x88] sm:$0xff]  ;;  %v519_v33 = vld [vmem:[%s14516_s29 + $0x90] sm:$0xff] }
  0x1a   : > { %v520_v34 = vld [vmem:[%s14516_s29 + $0x98] sm:$0xff]  ;;  %554 = vst.msk [vmem:[#allocation2 + $0x30] sm:$0xff] %vm18606_vm1, %v538_v26  ;;  %v541_v35 = vpack.c.bf16 %v518_v32, %v517_v30  ;;  %v521_v37 = vld [vmem:[%s14516_s29 + $0xa0] sm:$0xff]  ;;  %v522_v38 = vld [vmem:[%s14516_s29 + $0xa8] sm:$0xff]  ;;  %v565_v26 = vlaneseq }
  0x1b   : > { %555 = vst.msk [vmem:[#allocation2 + $0x38] sm:$0xff] %vm18606_vm1, %v539_v27  ;;  %v542_v36 = vpack.c.bf16 %v520_v34, %v519_v33  ;;  %v523_v39 = vld [vmem:[%s14516_s29 + $0xb0] sm:$0xff]  ;;  %556 = vst.msk [vmem:[#allocation2 + $0x40] sm:$0xff] %vm18606_vm1, %v540_v31  ;;  %v543_v40 = vpack.c.bf16 %v522_v38, %v521_v37  ;;  %v524_v41 = vld [vmem:[%s14516_s29 + $0xb8] sm:$0xff] }
  0x1c   : > { %v525_v42 = vld [vmem:[%s14516_s29 + $0xc0] sm:$0xff]  ;;  %v526_v43 = vld [vmem:[%s14516_s29 + $0xc8] sm:$0xff]  ;;  %557 = vst.msk [vmem:[#allocation2 + $0x48] sm:$0xff] %vm18606_vm1, %v541_v35  ;;  %v544_v45 = vpack.c.bf16 %v524_v41, %v523_v39  ;;  %v527_v47 = vld [vmem:[%s14516_s29 + $0xd0] sm:$0xff]  ;;  %v14630_v32 = vshrl.u32 %v565_v26, 7 }
  0x1d   : > { %558 = vst.msk [vmem:[#allocation2 + $0x50] sm:$0xff] %vm18606_vm1, %v542_v36  ;;  %v545_v46 = vpack.c.bf16 %v526_v43, %v525_v42  ;;  %v528_v48 = vld [vmem:[%s14516_s29 + $0xd8] sm:$0xff]  ;;  %v529_v49 = vld [vmem:[%s14516_s29 + $0xe0] sm:$0xff]  ;;  %v983_v50 = vld [vmem:[#allocation2 + $0x8] sm:$0xff] }
  0x1e   : > { %559 = vst.msk [vmem:[#allocation2 + $0x58] sm:$0xff] %vm18606_vm1, %v543_v40  ;;  %v546_v51 = vpack.c.bf16 %v528_v48, %v527_v47  ;;  %v530_v52 = vld [vmem:[%s14516_s29 + $0xe8] sm:$0xff]  ;;  %v531_v53 = vld [vmem:[%s14516_s29 + $0xf0] sm:$0xff]  ;;  %12571 = vmatprep.mubr.msk.bf16.mxu1 %vm18606_vm1, %v983_v50  ;;  %12606 = vmatmul.mubr.msk.bf16.vlgmr.msra.gmra.mrb[0].mxu0 %vm18606_vm1, %v983_v50  ;;  %v985_v55 = vld [vmem:[#allocation2 + $0x18] sm:$0xff]  ;;  %vm18607_vm2 = vcmp.lt.s32.totalorder %v14630_v32, 1  ;;  %vm18612_vm5 = vcmp.lt.s32.totalorder %v14630_v32, 7 }
  0x1f   : > { %v984_v54 = vld [vmem:[#allocation2 + $0x10] sm:$0xff]  ;;  %560 = vst.msk [vmem:[#allocation2 + $0x60] sm:$0xff] %vm18606_vm1, %v544_v45  ;;  %561 = vst.msk [vmem:[#allocation2 + $0x68] sm:$0xff] %vm18606_vm1, %v545_v46  ;;  %v547_v56 = vpack.c.bf16 %v530_v52, %v529_v49  ;;  %v532_v57 = vld [vmem:[%s14516_s29 + $0xf8] sm:$0xff]  ;;  %12638 = vmatpush3.bf16.msra.mxu0 %v1449_v44 }
  0x20   : > { %12572 = vmatmul.mubr.msk.bf16.vlgmr.msra.gmra.mrb[0].mxu1 %vm18606_vm1, %v984_v54  ;;  %562 = vst.msk [vmem:[#allocation2 + $0x70] sm:$0xff] %vm18606_vm1, %v546_v51  ;;  %v548_v58 = vpack.c.bf16 %v532_v57, %v531_v53  ;;  %12609 = vmatprep.mubr.msk.bf16.mxu0 %vm18606_vm1, %v984_v54  ;;  %v986_v59 = vld [vmem:[#allocation2 + $0x20] sm:$0xff]  ;;  %v987_v60 = vld [vmem:[#allocation2 + $0x28] sm:$0xff] }
  0x21   : > { %12575 = vmatprep.mubr.msk.bf16.mxu1 %vm18606_vm1, %v985_v55  ;;  %563 = vst.msk [vmem:[#allocation2 + $0x78] sm:$0xff] %vm18606_vm1, %v547_v56  ;;  %13584 = vmatpush3.bf16.msra.mxu1 %v14493_v2  ;;  %v988_v61 = vld [vmem:[#allocation2 + $0x30] sm:$0xff]  ;;  %v1397_v9 = vld [vmem:[#allocation2 + $0x88] sm:$0xff]  ;;  %v14319_v50 = vld [vmem:[%s18588_s6] sm:$0xff]  }
  0x22   : > { %564 = vst.msk [vmem:[#allocation2 + $0x80] sm:$0xff] %vm18606_vm1, %v548_v58  ;;  %v989_v62 = vld [vmem:[#allocation2 + $0x38] sm:$0xff]  ;;  %v990_v63 = vld [vmem:[#allocation2 + $0x40] sm:$0xff]  ;;  %12671 = vmatprep.subr.bf16.mxu1 %v14319_v50 }
  0x23   : > { %v991_v0 = vld [vmem:[#allocation2 + $0x48] sm:$0xff] }
  0x24   : > { %v992_v1 = vld [vmem:[#allocation2 + $0x50] sm:$0xff] }
  0x25   : > { %v993_v2 = vld [vmem:[#allocation2 + $0x58] sm:$0xff] }
  0x26   : > { %12610 = vmatmul.mubr.msk.bf16.gmra.mrb[4].mxu0 %vm18606_vm1, %v985_v55  ;;  %v994_v3 = vld [vmem:[#allocation2 + $0x60] sm:$0xff]  ;;  %v995_v4 = vld [vmem:[#allocation2 + $0x68] sm:$0xff] }
  0x27   : > { %12613 = vmatprep.mubr.msk.bf16.mxu0 %vm18606_vm1, %v986_v59  ;;  %v996_v6 = vld [vmem:[#allocation2 + $0x70] sm:$0xff] }
  0x28   : > { %12576 = vmatmul.mubr.msk.bf16.gmra.mrb[4].mxu1 %vm18606_vm1, %v986_v59  ;;  %v997_v7 = vld [vmem:[#allocation2 + $0x78] sm:$0xff] }
  0x29   : > { %12579 = vmatprep.mubr.msk.bf16.mxu1 %vm18606_vm1, %v987_v60  ;;  %v999_v8 = vld [vmem:[#allocation2 + $0x80] sm:$0xff] }
  0x2e   : > { %12614 = vmatmul.mubr.msk.bf16.gmra.mrb[8].mxu0 %vm18606_vm1, %v987_v60 }
  0x2f   : > { %12617 = vmatprep.mubr.msk.bf16.mxu0 %vm18606_vm1, %v988_v61 }
  0x30   : > { %12580 = vmatmul.mubr.msk.bf16.gmra.mrb[8].mxu1 %vm18606_vm1, %v988_v61 }
  0x31   : > { %12583 = vmatprep.mubr.msk.bf16.mxu1 %vm18606_vm1, %v989_v62 }
  0x36   : > { %12618 = vmatmul.mubr.msk.bf16.gmra.mrb[12].mxu0 %vm18606_vm1, %v989_v62 }
  0x37   : > { %12639 = vmatprep.mubr.msk.bf16.mxu0 %vm18606_vm1, %v984_v54 }
  0x38   : > { %12584 = vmatmul.mubr.msk.bf16.gmra.mrb[12].mxu1 %vm18606_vm1, %v990_v63 }
  0x39   : > { %12587 = vmatprep.mubr.msk.bf16.mxu1 %vm18606_vm1, %v991_v0 }
  0x3e   : > { %12640 = vmatmul.mubr.msk.bf16.vlgmr.msra.gmra.mrb[0].mxu0 %vm18606_vm1, %v985_v55 }
  0x3f   : > { %12643 = vmatprep.mubr.msk.bf16.mxu0 %vm18606_vm1, %v986_v59 }
  0x40   : > { %12588 = vmatmul.mubr.msk.bf16.gmra.mrb[16].mxu1 %vm18606_vm1, %v992_v1 }
  0x41   : > { %12591 = vmatprep.mubr.msk.bf16.mxu1 %vm18606_vm1, %v993_v2 }
  0x46   : > { %12644 = vmatmul.mubr.msk.bf16.gmra.mrb[4].mxu0 %vm18606_vm1, %v987_v60 }
  0x47   : > { %12647 = vmatprep.mubr.msk.bf16.mxu0 %vm18606_vm1, %v988_v61 }
  0x48   : > { %12592 = vmatmul.mubr.msk.bf16.gmra.mrb[20].mxu1 %vm18606_vm1, %v994_v3 }
  0x49   : > { %12595 = vmatprep.mubr.msk.bf16.mxu1 %vm18606_vm1, %v995_v4 }
  0x4e   : > { %12648 = vmatmul.mubr.msk.bf16.gmra.mrb[8].mxu0 %vm18606_vm1, %v989_v62 }
  0x4f   : > { %12651 = vmatprep.mubr.msk.bf16.mxu0 %vm18606_vm1, %v990_v63 }
  0x50   : > { %12596 = vmatmul.mubr.msk.bf16.gmra.mrb[24].mxu1 %vm18606_vm1, %v996_v6 }
  0x51   : > { %12599 = vmatprep.mubr.msk.bf16.mxu1 %vm18606_vm1, %v997_v7 }
  0x56   : > { %12652 = vmatmul.mubr.msk.bf16.gmra.mrb[12].mxu0 %vm18606_vm1, %v991_v0 }
  0x57   : > { %12655 = vmatprep.mubr.msk.bf16.mxu0 %vm18606_vm1, %v992_v1 }
  0x58   : > { %12600 = vmatmul.mubr.msk.bf16.gmra.mrb[28].mxu1 %vm18606_vm1, %v999_v8 }
  0x59   : > { %12621 = vmatprep.mubr.msk.bf16.mxu1 %vm18606_vm1, %v990_v63 }
  0x5e   : > { %12656 = vmatmul.mubr.msk.bf16.gmra.mrb[16].mxu0 %vm18606_vm1, %v993_v2 }
  0x5f   : > { %12659 = vmatprep.mubr.msk.bf16.mxu0 %vm18606_vm1, %v994_v3 }
  0x60   : > { %12622 = vmatmul.mubr.msk.bf16.vlgmr.msra.gmra.mrb[16].mxu1 %vm18606_vm1, %v991_v0 }
  0x61   : > { %12625 = vmatprep.mubr.msk.bf16.mxu1 %vm18606_vm1, %v992_v1  ;;  %12672 = vmatpush3.bf16.msra.mxu1 %v14319_v50 }
  0x66   : > { %12660 = vmatmul.mubr.msk.bf16.gmra.mrb[20].mxu0 %vm18606_vm1, %v995_v4 }
  0x67   : > { %12663 = vmatprep.mubr.msk.bf16.mxu0 %vm18606_vm1, %v996_v6 }
  0x68   : > { %12626 = vmatmul.mubr.msk.bf16.gmra.mrb[20].mxu1 %vm18606_vm1, %v993_v2 }
  0x69   : > { %12629 = vmatprep.mubr.msk.bf16.mxu1 %vm18606_vm1, %v994_v3 }
  0x6e   : > { %12664 = vmatmul.mubr.msk.bf16.gmra.mrb[24].mxu0 %vm18606_vm1, %v997_v7 }
  0x6f   : > { %12667 = vmatprep.mubr.msk.bf16.mxu0 %vm18606_vm1, %v999_v8 }
  0x70   : > { %12630 = vmatmul.mubr.msk.bf16.gmra.mrb[24].mxu1 %vm18606_vm1, %v995_v4 }
  0x71   : > { %12633 = vmatprep.mubr.msk.bf16.mxu1 %vm18606_vm1, %v996_v6 }
  0x76   : > { %12668 = vmatmul.mubr.msk.bf16.gmra.mrb[28].mxu0 %vm18606_vm1, %v1397_v9 }
  0x78   : > { %12634 = vmatmul.mubr.msk.bf16.gmra.mrb[28].mxu1 %vm18606_vm1, %v997_v7 }
  0x79   : > { %12675 = vmatprep.mubr.msk.bf16.mxu1 %vm18615_vm3, %v14391_v5  ;;  %v14320_v5 = vld [vmem:[%s18588_s6 + $0x8] sm:$0xff]  }
  0x7a   : > { %12673 = vmatprep.subr.bf16.mxu1 %v14320_v5 }
  0x7b   : > { %12674 = vmatpush3.bf16.msra.mxu1 %v14320_v5 }
  0xf3   : > { %v12573_v10 = vpop.f32.mrb[0].mxu1 }
  0xf4   : > { %v1088_v11 = vpop.f32.mrb[1].mxu1 }
  0xf5   : > { %v12574_v12 = vpop.f32.mrb[2].mxu1 }
  0xf6   : > { %v1091_v13 = vpop.f32.mrb[3].mxu1 }
  0xfb   : > { %v12577_v14 = vpop.f32.mrb[4].mxu1 }
  0xfc   : > { %v1104_v15 = vpop.f32.mrb[5].mxu1 }
  0xfd   : > { %v12578_v16 = vpop.f32.mrb[6].mxu1 }
  0xfe   : > { %v1107_v17 = vpop.f32.mrb[7].mxu1 }
 0x103   : > { %v12581_v18 = vpop.f32.mrb[8].mxu1 }
 0x104   : > { %v1120_v19 = vpop.f32.mrb[9].mxu1 }
 0x105   : > { %v14616_v20 = vpop.f32.mrb[10].mxu1 }
 0x106   : > { %v14618_v21 = vpop.f32.mrb[11].mxu1 }
 0x10b   : > { %v14620_v22 = vpop.f32.mrb[12].mxu1 }
 0x10c   : > { %v14622_v23 = vpop.f32.mrb[13].mxu1 }
 0x10d   : > { %v14624_v24 = vpop.f32.mrb[14].mxu1 }
 0x10e   : > { %v14626_v25 = vpop.f32.mrb[15].mxu1 }
 0x111   : > { %v12641_v27 = vpop.f32.mrb[0].mxu0 }
 0x112   : > { %v13585_v28 = vadd.f32 %v12641_v27, %v12573_v10  ;;  %v1485_v29 = vpop.f32.mrb[1].mxu0 }
 0x113   : > { %v14628_v30 = vadd.f32 %v1485_v29, %v1088_v11  ;;  %v12642_v31 = vpop.f32.mrb[2].mxu0 }
 0x114   : > { %v13587_v33 = vadd.f32 %v12642_v31, %v12574_v12  ;;  %v1488_v34 = vpop.f32.mrb[3].mxu0  ;;  %1970 = vrot.lane.b32.xlu1 %v13585_v28, %s14392_s30  ;;  %1745 = vrot.lane.b32.xlu0 %v13585_v28, %s14393_s16  ;;  %v1646_v36 = vrot.slane %v13585_v28, 7 }
 0x115   : > { %v13588_v35 = vadd.f32 %v1488_v34, %v1091_v13  ;;  %v1644_v38 = vrot.slane %v14628_v30, 7 }
 0x116   : > { %v1647_v37 = vrot.slane %v13587_v33, 7 }
 0x117   : > { %v1645_v39 = vrot.slane %v13588_v35, 7 }
 0x118   : > { %1741 = vrot.lane.b32.xlu1 %v14628_v30, %s14393_s16  ;;  %1972 = vrot.lane.b32.xlu0 %v13587_v33, %s14392_s30  ;;  %v14641_v40 = vsel %vm18607_vm2, %v1646_v36, %v1647_v37 }
 0x119   : > { %v12645_v41 = vpop.f32.mrb[4].mxu0  ;;  %v14645_v42 = vsel %vm18607_vm2, %v1645_v39, %v1646_v36  ;;  %v14651_v43 = vsel %vm18607_vm2, %v1644_v38, %v1645_v39 }
 0x11a   : > { %v13589_v44 = vadd.f32 %v12645_v41, %v12577_v14  ;;  %v1501_v45 = vpop.f32.mrb[5].mxu0 }
 0x11b   : > { %v13590_v46 = vadd.f32 %v1501_v45, %v1104_v15  ;;  %v12646_v47 = vpop.f32.mrb[6].mxu0 }
 0x11c   : > { %v13591_v48 = vadd.f32 %v12646_v47, %v12578_v16  ;;  %v1504_v49 = vpop.f32.mrb[7].mxu0  ;;  %1966 = vrot.lane.b32.xlu1 %v14628_v30, %s14392_s30  ;;  %1743 = vrot.lane.b32.xlu0 %v13588_v35, %s14393_s16  ;;  %v1650_v53 = vrot.slane %v13589_v44, 7  ;;  %v14892_v30 = vld [vmem:[%s18584_s2] sm:$0x3] }
 0x11d   : > { %v1648_v51 = vrot.slane %v13590_v46, 7  ;;  %v13592_v52 = vadd.f32 %v1504_v49, %v1107_v17  ;;  %14293 = vmatprep.subr.msk.bf16.mxu1 %vm18605_vm0, %v14892_v30 }
 0x11e   : > { %v1651_v54 = vrot.slane %v13591_v48, 7 }
 0x11f   : > { %v1649_v55 = vrot.slane %v13592_v52, 7  ;;  %v14663_v56 = vsel %vm18607_vm2, %v1647_v37, %v1648_v51 }
 0x120   : > { %1747 = vrot.lane.b32.xlu1 %v13587_v33, %s14393_s16  ;;  %1968 = vrot.lane.b32.xlu0 %v13588_v35, %s14392_s30  ;;  %v14669_v57 = vsel %vm18607_vm2, %v1650_v53, %v1651_v54 }
 0x121   : > { %v12649_v58 = vpop.f32.mrb[8].mxu0  ;;  %v14676_v59 = vsel %vm18607_vm2, %v1649_v55, %v1650_v53  ;;  %v14680_v60 = vsel %vm18607_vm2, %v1648_v51, %v1649_v55 }
 0x122   : > { %v13593_v61 = vadd.f32 %v12649_v58, %v12581_v18  ;;  %v1517_v62 = vpop.f32.mrb[9].mxu0 }
 0x123   : > { %v13594_v63 = vadd.f32 %v1517_v62, %v1120_v19  ;;  %v12650_v0 = vpop.f32.mrb[10].mxu0 }
 0x124   : > { %v14683_v1 = vadd.f32 %v12650_v0, %v14616_v20  ;;  %v1520_v2 = vpop.f32.mrb[11].mxu0  ;;  %1978 = vrot.lane.b32.xlu1 %v13589_v44, %s14392_s30  ;;  %1753 = vrot.lane.b32.xlu0 %v13589_v44, %s14393_s16  ;;  %v1654_v6 = vrot.slane %v13593_v61, 7 }
 0x125   : > { %v1652_v3 = vrot.slane %v13594_v63, 7  ;;  %v14688_v4 = vadd.f32 %v1520_v2, %v14618_v21 }
 0x126   : > { %v1655_v7 = vrot.slane %v14683_v1, 7 }
 0x127   : > { %v1653_v8 = vrot.slane %v14688_v4, 7  ;;  %v14694_v9 = vsel %vm18607_vm2, %v1651_v54, %v1652_v3 }
 0x128   : > { %1974 = vrot.lane.b32.xlu1 %v13590_v46, %s14392_s30  ;;  %1749 = vrot.lane.b32.xlu0 %v13590_v46, %s14393_s16  ;;  %v14700_v10 = vsel %vm18607_vm2, %v1654_v6, %v1655_v7 }
 0x129   : > { %v12653_v11 = vpop.f32.mrb[12].mxu0  ;;  %v14704_v12 = vsel %vm18607_vm2, %v1653_v8, %v1654_v6  ;;  %v14708_v13 = vsel %vm18607_vm2, %v1652_v3, %v1653_v8 }
 0x12a   : > { %v14711_v14 = vadd.f32 %v12653_v11, %v14620_v22  ;;  %v1533_v15 = vpop.f32.mrb[13].mxu0 }
 0x12b   : > { %v14714_v16 = vadd.f32 %v1533_v15, %v14622_v23  ;;  %v12654_v17 = vpop.f32.mrb[14].mxu0 }
 0x12c   : > { %v14717_v18 = vadd.f32 %v12654_v17, %v14624_v24  ;;  %v1536_v19 = vpop.f32.mrb[15].mxu0  ;;  %1980 = vrot.lane.b32.xlu0 %v13591_v48, %s14392_s30  ;;  %1755 = vrot.lane.b32.xlu1 %v13591_v48, %s14393_s16  ;;  %v1658_v22 = vrot.slane %v14711_v14, 7 }
 0x12d   : > { %v1656_v20 = vrot.slane %v14714_v16, 7  ;;  %v14723_v21 = vadd.f32 %v1536_v19, %v14626_v25 }
 0x12e   : > { %v1659_v26 = vrot.slane %v14717_v18, 7 }
 0x12f   : > { %v1657_v23 = vrot.slane %v14723_v21, 7  ;;  %v14730_v24 = vsel %vm18607_vm2, %v1655_v7, %v1656_v20 }
 0x130   : > { %1976 = vrot.lane.b32.xlu0 %v13592_v52, %s14392_s30  ;;  %1751 = vrot.lane.b32.xlu1 %v13592_v52, %s14393_s16  ;;  %v14736_v27 = vsel %vm18607_vm2, %v1658_v22, %v1659_v26 }
 0x131   : > { %v12657_v25 = vpop.f32.mrb[16].mxu0  ;;  %v14740_v28 = vsel %vm18607_vm2, %v1657_v23, %v1658_v22  ;;  %v14744_v29 = vsel %vm18607_vm2, %v1656_v20, %v1657_v23 }
 0x132   : > { %v1549_v33 = vpop.f32.mrb[17].mxu0 }
 0x133   : > { %v12623_v31 = vpop.f32.mrb[16].mxu1  ;;  %v12658_v36 = vpop.f32.mrb[18].mxu0 }
 0x134   : > { %v14746_v34 = vadd.f32 %v12657_v25, %v12623_v31  ;;  %v1319_v35 = vpop.f32.mrb[17].mxu1  ;;  %1986 = vrot.lane.b32.xlu1 %v13593_v61, %s14392_s30  ;;  %1761 = vrot.lane.b32.xlu0 %v13593_v61, %s14393_s16  ;;  %v1552_v41 = vpop.f32.mrb[19].mxu0 }
 0x135   : > { %v14748_v37 = vadd.f32 %v1549_v33, %v1319_v35  ;;  %v12624_v39 = vpop.f32.mrb[18].mxu1 }
 0x136   : > { %v14752_v44 = vadd.f32 %v12658_v36, %v12624_v39  ;;  %v1322_v45 = vpop.f32.mrb[19].mxu1  ;;  %v1662_v48 = vrot.slane %v14746_v34, 7 }
 0x137   : > { %v1660_v46 = vrot.slane %v14748_v37, 7  ;;  %v14755_v47 = vadd.f32 %v1552_v41, %v1322_v45 }
 0x138   : > { %v1663_v49 = vrot.slane %v14752_v44, 7  ;;  %1982 = vrot.lane.b32.xlu1 %v13594_v63, %s14392_s30  ;;  %1757 = vrot.lane.b32.xlu0 %v13594_v63, %s14393_s16 }
 0x139   : > { %v1661_v50 = vrot.slane %v14755_v47, 7  ;;  %v14764_v51 = vsel %vm18607_vm2, %v1659_v26, %v1660_v46  ;;  %v12661_v52 = vpop.f32.mrb[20].mxu0 }
 0x13a   : > { %v14768_v53 = vsel %vm18607_vm2, %v1662_v48, %v1663_v49  ;;  %v1565_v55 = vpop.f32.mrb[21].mxu0 }
 0x13b   : > { %v12627_v54 = vpop.f32.mrb[20].mxu1  ;;  %v14772_v5 = vsel %vm18607_vm2, %v1661_v50, %v1662_v48  ;;  %v14776_v58 = vsel %vm18607_vm2, %v1660_v46, %v1661_v50  ;;  %v12662_v63 = vpop.f32.mrb[22].mxu0 }
 0x13c   : > { %v14778_v61 = vadd.f32 %v12661_v52, %v12627_v54  ;;  %v1335_v62 = vpop.f32.mrb[21].mxu1  ;;  %1988 = vrot.lane.b32.xlu0 %v14683_v1, %s14392_s30  ;;  %1763 = vrot.lane.b32.xlu1 %v14683_v1, %s14393_s16  ;;  %v1568_v3 = vpop.f32.mrb[23].mxu0 }
 0x13d   : > { %v14780_v0 = vadd.f32 %v1565_v55, %v1335_v62  ;;  %v12628_v2 = vpop.f32.mrb[22].mxu1 }
 0x13e   : > { %v14786_v6 = vadd.f32 %v12662_v63, %v12628_v2  ;;  %v1338_v7 = vpop.f32.mrb[23].mxu1  ;;  %v1666_v15 = vrot.slane %v14778_v61, 7 }
 0x13f   : > { %v1664_v8 = vrot.slane %v14780_v0, 7  ;;  %v14789_v11 = vadd.f32 %v1568_v3, %v1338_v7 }
 0x140   : > { %v1667_v17 = vrot.slane %v14786_v6, 7  ;;  %1984 = vrot.lane.b32.xlu0 %v14688_v4, %s14392_s30  ;;  %1759 = vrot.lane.b32.xlu1 %v14688_v4, %s14393_s16 }
 0x141   : > { %v1665_v19 = vrot.slane %v14789_v11, 7  ;;  %v14800_v1 = vsel %vm18607_vm2, %v1663_v49, %v1664_v8  ;;  %v12665_v20 = vpop.f32.mrb[24].mxu0 }
 0x142   : > { %v14804_v22 = vsel %vm18607_vm2, %v1666_v15, %v1667_v17  ;;  %v1581_v23 = vpop.f32.mrb[25].mxu0 }
 0x143   : > { %v12631_v26 = vpop.f32.mrb[24].mxu1  ;;  %v14808_v25 = vsel %vm18607_vm2, %v1665_v19, %v1666_v15  ;;  %v14812_v31 = vsel %vm18607_vm2, %v1664_v8, %v1665_v19  ;;  %v12666_v35 = vpop.f32.mrb[26].mxu0 }
 0x144   : > { %v14814_v4 = vadd.f32 %v12665_v20, %v12631_v26  ;;  %v1351_v33 = vpop.f32.mrb[25].mxu1  ;;  %1994 = vrot.lane.b32.xlu1 %v14711_v14, %s14392_s30  ;;  %1769 = vrot.lane.b32.xlu0 %v14711_v14, %s14393_s16  ;;  %v1584_v41 = vpop.f32.mrb[27].mxu0 }
 0x145   : > { %v13610_v36 = vadd.f32 %v1581_v23, %v1351_v33  ;;  %v12632_v39 = vpop.f32.mrb[26].mxu1 }
 0x146   : > { %v13611_v45 = vadd.f32 %v12666_v35, %v12632_v39  ;;  %v1354_v46 = vpop.f32.mrb[27].mxu1  ;;  %v1670_v50 = vrot.slane %v14814_v4, 7 }
 0x147   : > { %v1668_v48 = vrot.slane %v13610_v36, 7  ;;  %v13612_v49 = vadd.f32 %v1584_v41, %v1354_v46 }
 0x148   : > { %v1671_v52 = vrot.slane %v13611_v45, 7  ;;  %1990 = vrot.lane.b32.xlu1 %v14714_v16, %s14392_s30  ;;  %1765 = vrot.lane.b32.xlu0 %v14714_v16, %s14393_s16 }
 0x149   : > { %v1669_v54 = vrot.slane %v13612_v49, 7  ;;  %v14827_v55 = vsel %vm18607_vm2, %v1667_v17, %v1668_v48  ;;  %v12669_v14 = vpop.f32.mrb[28].mxu0 }
 0x14a   : > { %v14831_v62 = vsel %vm18607_vm2, %v1670_v50, %v1671_v52  ;;  %v1597_v2 = vpop.f32.mrb[29].mxu0 }
 0x14b   : > { %v12635_v63 = vpop.f32.mrb[28].mxu1  ;;  %v14835_v3 = vsel %vm18607_vm2, %v1668_v48, %v1669_v54  ;;  %v14839_v7 = vsel %vm18607_vm2, %v1669_v54, %v1670_v50  ;;  %v12670_v15 = vpop.f32.mrb[30].mxu0 }
 0x14c   : > { %v14841_v16 = vadd.f32 %v12669_v14, %v12635_v63  ;;  %v1367_v8 = vpop.f32.mrb[29].mxu1  ;;  %1996 = vrot.lane.b32.xlu0 %v14717_v18, %s14392_s30  ;;  %1771 = vrot.lane.b32.xlu1 %v14717_v18, %s14393_s16  ;;  %v1600_v20 = vpop.f32.mrb[31].mxu0  ;;  %v14952_v14 = vld [vmem:[%s18592_s10] ss:$0 sm:$0xff] }
 0x14d   : > { %v13614_v17 = vadd.f32 %v1597_v2, %v1367_v8  ;;  %v12636_v19 = vpop.f32.mrb[30].mxu1  ;;  %v18718_v8 = vmov 0 }
 0x14e   : > { %v14847_v26 = vadd.f32 %v12670_v15, %v12636_v19  ;;  %v1370_v23 = vpop.f32.mrb[31].mxu1 }
 0x14f   : > { %v1672_v33 = vrot.slane %v13614_v17, 7  ;;  %v14849_v35 = vadd.f32 %v1600_v20, %v1370_v23 }
 0x150   : > { %v18598_v39 = vrot.slane %v14847_v26, 7  ;;  %1992 = vrot.lane.b32.xlu0 %v14723_v21, %s14392_s30  ;;  %1767 = vrot.lane.b32.xlu1 %v14723_v21, %s14393_s16 }
 0x151   : > { %v18600_v41 = vrot.slane %v14849_v35, 7  ;;  %v14859_v18 = vsel %vm18607_vm2, %v1671_v52, %v1672_v33 }
 0x152   : > { %v1708_v46 = vsel %vm18607_vm2, %v18598_v39, %v1644_v38 }
 0x153   : > { %v14871_v48 = vsel %vm18607_vm2, %v1672_v33, %v18600_v41 }
 0x154   : > { %2002 = vrot.lane.b32.xlu1 %v14746_v34, %s14392_s30  ;;  %1777 = vrot.lane.b32.xlu0 %v14746_v34, %s14393_s16  ;;  %v602_v34 = vand.u32 15, %v14630_v32 }
 0x156   : > { %vm14933_vm4 = vcmp.ge.s32.totalorder %v602_v34, 1 }
 0x158   : > { %1998 = vrot.lane.b32.xlu1 %v14748_v37, %s14392_s30  ;;  %1773 = vrot.lane.b32.xlu0 %v14748_v37, %s14393_s16  ;;  %v567_v37 = vadd.s32 8, %v14630_v32 }
 0x15c   : > { %2004 = vrot.lane.b32.xlu0 %v14752_v44, %s14392_s30  ;;  %1779 = vrot.lane.b32.xlu1 %v14752_v44, %s14393_s16  ;;  %v568_v44 = vadd.s32 16, %v14630_v32 }
 0x160   : > { %2000 = vrot.lane.b32.xlu0 %v14755_v47, %s14392_s30  ;;  %1775 = vrot.lane.b32.xlu1 %v14755_v47, %s14393_s16 }
 0x164   : > { %2010 = vrot.lane.b32.xlu1 %v14778_v61, %s14392_s30  ;;  %1785 = vrot.lane.b32.xlu0 %v14778_v61, %s14393_s16 }
 0x168   : > { %2006 = vrot.lane.b32.xlu1 %v14780_v0, %s14392_s30  ;;  %1781 = vrot.lane.b32.xlu0 %v14780_v0, %s14393_s16 }
 0x16c   : > { %2012 = vrot.lane.b32.xlu0 %v14786_v6, %s14392_s30  ;;  %1787 = vrot.lane.b32.xlu1 %v14786_v6, %s14393_s16  ;;  %v609_v6 = vand.u32 15, %v567_v37 }
 0x16e   : > { %vm14960_vm6 = vcmp.le.s32.totalorder %v609_v6, 14 }
 0x16f   : > { %v18719_v8 = vsel %vm14960_vm6, 4294967295, %v18718_v8 }
 0x170   : > { %2008 = vrot.lane.b32.xlu0 %v14789_v11, %s14392_s30  ;;  %1783 = vrot.lane.b32.xlu1 %v14789_v11, %s14393_s16  ;;  %v616_v11 = vand.u32 15, %v568_v44  ;;  %18720 = vst [vmem:[#allocation4_spill] sm:$0xff] %v18719_v8 }
 0x172   : > { %vm14964_vm7 = vcmp.ge.s32.totalorder %v616_v11, 1 }
 0x173   : > { %v1936_v37 = vsel %vm14964_vm7, %v14645_v42, 0.0  ;;  %v572_v42 = vadd.s32 48, %v14630_v32 }
 0x174   : > { %1793 = vrot.lane.b32.xlu0 %v14814_v4, %s14393_s16  ;;  %2014 = vrot.lane.b32.xlu1 %v13610_v36, %s14392_s30 }
 0x178   : > { %1789 = vrot.lane.b32.xlu0 %v13610_v36, %s14393_s16  ;;  %1795 = vrot.lane.b32.xlu1 %v13611_v45, %s14393_s16  ;;  %v1934_v36 = vsel %vm14933_vm4, %v1708_v46, 0.0  ;;  %v569_v46 = vadd.s32 24, %v14630_v32 }
 0x17c   : > { %2020 = vrot.lane.b32.xlu0 %v13611_v45, %s14392_s30  ;;  %1791 = vrot.lane.b32.xlu1 %v13612_v49, %s14393_s16 }
 0x180   : > { %2016 = vrot.lane.b32.xlu0 %v13612_v49, %s14392_s30  ;;  %2018 = vrot.lane.b32.xlu1 %v14814_v4, %s14392_s30 }
 0x184   : > { %1801 = vrot.lane.b32.xlu0 %v14841_v16, %s14393_s16  ;;  %1799 = vrot.lane.b32.xlu1 %v14849_v35, %s14393_s16 }
 0x186   : > { %v1971_v38 = vpop.permute.xlu1 %1970  ;;  %v1746_v21 = vpop.permute.xlu0 %1745 }
 0x187   : > { %v1839_v49 = vrot.slane %v1746_v21, 1  ;;  %v2064_v11 = vadd.f32 %v1971_v38, %v1936_v37  ;;  %v571_v38 = vadd.s32 40, %v14630_v32 }
 0x188   : > { %1797 = vrot.lane.b32.xlu0 %v13614_v17, %s14393_s16  ;;  %2022 = vrot.lane.b32.xlu1 %v13614_v17, %s14392_s30 }
 0x18a   : > { %v14931_v47 = vpop.permute.xlu1 %1741  ;;  %v1973_v61 = vpop.permute.xlu0 %1972 }
 0x18b   : > { %v18599_v50 = vrot.slane %v14931_v47, 1 }
 0x18c   : > { %2024 = vrot.lane.b32.xlu0 %v14849_v35, %s14392_s30  ;;  %1803 = vrot.lane.b32.xlu1 %v14847_v26, %s14393_s16 }
 0x18e   : > { %v1967_v4 = vpop.permute.xlu1 %1966  ;;  %v1744_v45 = vpop.permute.xlu0 %1743 }
 0x18f   : > { %v2062_v52 = vadd.f32 %v1967_v4, %v1934_v36  ;;  %v1838_v54 = vrot.slane %v1744_v45, 1 }
 0x190   : > { %2026 = vrot.lane.b32.xlu0 %v14841_v16, %s14392_s30  ;;  %2028 = vrot.lane.b32.xlu1 %v14847_v26, %s14392_s30 }
 0x191   : > { %v1900_v63 = vsel %vm18612_vm5, %v18599_v50, %v1838_v54  ;;  %v1899_v2 = vsel %vm18612_vm5, %v1838_v54, %v1839_v49  ;;  %v623_v54 = vand.u32 15, %v569_v46 }
 0x192   : > { %v2158_v17 = vadd.f32 %v2062_v52, %v1900_v63  ;;  %v1748_v19 = vpop.permute.xlu1 %1747  ;;  %v1969_v20 = vpop.permute.xlu0 %1968  ;;  %v2127_v34 = vsel %vm14960_vm6, %v1899_v2, 0.0 }
 0x193   : > { %v1840_v23 = vrot.slane %v1748_v19, 1  ;;  %v2063_v33 = vadd.f32 %v1969_v20, %v14651_v43  ;;  %v570_v43 = vadd.s32 32, %v14630_v32  ;;  %vm14984_vm10 = vcmp.le.s32.totalorder %v623_v54, 14 }
 0x194   : > { %v2197_v21 = vadd.f32 %v14952_v14, %v2158_v17  ;;  %v637_v54 = vand.u32 15, %v571_v38 }
 0x195   : > { %v1898_v44 = vsel %vm18612_vm5, %v1839_v49, %v1840_v23  ;;  %v2159_v6 = vadd.f32 %v2127_v34, %v2063_v33  ;;  %v630_v17 = vand.u32 15, %v570_v43  ;;  %v644_v43 = vand.u32 15, %v572_v42 }
 0x196   : > { %v14978_v4 = vpop.permute.xlu1 %1978  ;;  %v1754_v36 = vpop.permute.xlu0 %1753  ;;  %v2261_v45 = vmul.f32 0.2, %v2197_v21  ;;  %vm2229_vm8 = vcmp.ge.f32.partialorder %v2197_v21, 0.0  ;;  %v2160_v63 = vadd.f32 %v2064_v11, %v1898_v44  ;;  %v2065_v44 = vadd.f32 %v1973_v61, %v14641_v40 }
 0x197   : > { %v2198_v52 = vadd.f32 %v14952_v14, %v2159_v6  ;;  %vm14997_vm11 = vcmp.ge.s32.totalorder %v630_v17, 1  ;;  %vm15002_vm13 = vcmp.ge.s32.totalorder %v644_v43, 1  ;;  %v18727_v61 = vmov 0 }
 0x198   : > { %v2293_v20 = vsel %vm2229_vm8, %v2197_v21, %v2261_v45  ;;  %v2199_v46 = vadd.f32 %v14952_v14, %v2160_v63  ;;  %v18728_v61 = vsel %vm15002_vm13, 4294967295, %v18727_v61  ;;  %v1938_v42 = vsel %vm14997_vm11, %v14663_v56, 0.0 }
 0x199   : > { %vm2230_vm9 = vcmp.ge.f32.partialorder %v2198_v52, 0.0  ;;  %v2262_v2 = vmul.f32 0.2, %v2198_v52  ;;  %18729 = vst [vmem:[#allocation5_spill] sm:$0xff] %v18728_v61  ;;  %vm15009_vm14 = vcmp.le.s32.totalorder %v637_v54, 14  ;;  %v18730_v17 = vmov 0 }
 0x19a   : > { %v1975_v19 = vpop.permute.xlu1 %1974  ;;  %v1750_v49 = vpop.permute.xlu0 %1749  ;;  %vm2231_vm12 = vcmp.ge.f32.partialorder %v2199_v46, 0.0  ;;  %v18731_v17 = vsel %vm15009_vm14, 4294967295, %v18730_v17 }
 0x19b   : > { %v2294_v33 = vsel %vm2230_vm9, %v2198_v52, %v2262_v2  ;;  %v1841_v37 = vrot.slane %v1750_v49, 1  ;;  %v2263_v49 = vmul.f32 0.2, %v2199_v46  ;;  %18732 = vst [vmem:[#allocation6_spill] sm:$0xff] %v18731_v17  ;;  %v2066_v43 = vadd.f32 %v1975_v19, %v1938_v42  ;;  %v15027_v19 = vld [vmem:[%s18584_s2 + $0x2] sm:$0x3] }
 0x19c   : > { %v2325_v6 = vpack.c.bf16 %v2294_v33, %v2293_v20 }
 0x19d   : > { %v1897_v11 = vsel %vm18612_vm5, %v1840_v23, %v1841_v37  ;;  %v1843_v23 = vrot.slane %v1754_v36, 1  ;;  %v2665_v36 = vsel %vm18605_vm0, %v14892_v30, 0 }
 0x19e   : > { %2342 = vst.msk [vmem:[#allocation3 + $0x8] sm:$0xff] %vm18615_vm3, %v2325_v6  ;;  %v2129_v21 = vsel %vm14984_vm10, %v1897_v11, 0.0  ;;  %v1981_v45 = vpop.permute.xlu0 %1980  ;;  %v14995_v52 = vpop.permute.xlu1 %1755  ;;  %v2295_v11 = vsel %vm2231_vm12, %v2199_v46, %v2263_v49 }
 0x19f   : > { %v2161_v63 = vadd.f32 %v2129_v21, %v2065_v44  ;;  %v1844_v6 = vrot.slane %v14995_v52, 1  ;;  %v573_v21 = vadd.s32 56, %v14630_v32 }
 0x1a1   : > { %v2200_v40 = vadd.f32 %v14952_v14, %v2161_v63  ;;  %v1894_v49 = vsel %vm18612_vm5, %v1843_v23, %v1844_v6 }
 0x1a2   : > { %v1977_v20 = vpop.permute.xlu0 %1976  ;;  %v1752_v38 = vpop.permute.xlu1 %1751 }
 0x1a3   : > { %vm2232_vm15 = vcmp.ge.f32.partialorder %v2200_v40, 0.0  ;;  %v2264_v33 = vmul.f32 0.2, %v2200_v40  ;;  %v1842_v44 = vrot.slane %v1752_v38, 1  ;;  %v2067_v56 = vadd.f32 %v1977_v20, %v14680_v60 }
 0x1a4   : > { %v574_v38 = vadd.s32 64, %v14630_v32 }
 0x1a5   : > { %v2296_v63 = vsel %vm2232_vm15, %v2200_v40, %v2264_v33  ;;  %v1895_v54 = vsel %vm18612_vm5, %v1842_v44, %v1843_v23  ;;  %v1896_v39 = vsel %vm18612_vm5, %v1841_v37, %v1842_v44  ;;  %v15022_v50 = vld [vmem:[#allocation3 + $0x8] sm:$0xff]  ;;  %v1940_v37 = vsel %vm15002_vm13, %v14676_v59, 0.0 }
 0x1a6   : > { %v2326_v46 = vpack.c.bf16 %v2296_v63, %v2295_v11  ;;  %v2131_v30 = vsel %vm15009_vm14, %v1895_v54, 0.0  ;;  %v15031_v52 = vpop.permute.xlu1 %1986  ;;  %v15033_v60 = vpop.permute.xlu0 %1761  ;;  %12676 = vmatmul.mubr.msk.bf16.vlgmr.msra.gmra.mrb[32].mxu1 %vm18615_vm3, %v15022_v50  ;;  %v2162_v40 = vadd.f32 %v2066_v43, %v1896_v39  ;;  %v2068_v20 = vadd.f32 %v14978_v4, %v1940_v37 }
 0x1a7   : > { %v2163_v42 = vadd.f32 %v2131_v30, %v2067_v56  ;;  %12708 = vmatpush3.bf16.msra.mxu1 %v2665_v36  ;;  %v651_v33 = vand.u32 15, %v573_v21  ;;  %v576_v11 = vadd.s32 80, %v14630_v32  ;;  %v575_v39 = vadd.s32 72, %v14630_v32 }
 0x1a8   : > { %2343 = vst.msk [vmem:[#allocation3 + $0x10] sm:$0xff] %vm18615_vm3, %v2326_v46  ;;  %14294 = vmatprep.subr.msk.bf16.mxu1 %vm18605_vm0, %v15027_v19  ;;  %v2201_v44 = vadd.f32 %v14952_v14, %v2162_v40  ;;  %v2164_v23 = vadd.f32 %v2068_v20, %v1894_v49  ;;  %v658_v56 = vand.u32 15, %v574_v38 }
 0x1a9   : > { %v2202_v59 = vadd.f32 %v14952_v14, %v2163_v42  ;;  %vm15051_vm12 = vcmp.le.s32.totalorder %v651_v33, 14  ;;  %v672_v37 = vand.u32 15, %v576_v11  ;;  %v665_v40 = vand.u32 15, %v575_v39 }
 0x1aa   : > { %v1983_v43 = vpop.permute.xlu1 %1982  ;;  %v1758_v36 = vpop.permute.xlu0 %1757  ;;  %vm2233_vm8 = vcmp.ge.f32.partialorder %v2201_v44, 0.0  ;;  %v2265_v4 = vmul.f32 0.2, %v2201_v44  ;;  %v2069_v42 = vadd.f32 %v1981_v45, %v14669_v57  ;;  %v2203_v49 = vadd.f32 %v14952_v14, %v2164_v23 }
 0x1ab   : > { %vm2234_vm9 = vcmp.ge.f32.partialorder %v2202_v59, 0.0  ;;  %v2266_v63 = vmul.f32 0.2, %v2202_v59  ;;  %v1845_v54 = vrot.slane %v1758_v36, 1  ;;  %vm15068_vm15 = vcmp.ge.s32.totalorder %v658_v56, 1 }
 0x1ac   : > { %v2297_v46 = vsel %vm2233_vm8, %v2201_v44, %v2265_v4  ;;  %v18735_v57 = vmov 0  ;;  %v2267_v45 = vmul.f32 0.2, %v2203_v49  ;;  %vm15072_vm8 = vcmp.ge.s32.totalorder %v672_v37, 1 }
 0x1ad   : > { %v2298_v30 = vsel %vm2234_vm9, %v2202_v59, %v2266_v63  ;;  %v1893_v41 = vsel %vm18612_vm5, %v1844_v6, %v1845_v54  ;;  %v18736_v57 = vsel %vm15068_vm15, 4294967295, %v18735_v57  ;;  %v18737_v6 = vmov 0 }
 0x1ae   : > { %v2327_v20 = vpack.c.bf16 %v2298_v30, %v2297_v46  ;;  %v1989_v61 = vpop.permute.xlu0 %1988  ;;  %v15059_v17 = vpop.permute.xlu1 %1763  ;;  %v2133_v38 = vsel %vm15051_vm12, %v1893_v41, 0.0  ;;  %v18738_v6 = vsel %vm15072_vm8, 4294967295, %v18737_v6  ;;  %vm15077_vm9 = vcmp.le.s32.totalorder %v665_v40, 14 }
 0x1af   : > { %v15063_v33 = vld [vmem:[#allocation3 + $0x10] sm:$0xff]  ;;  %v2165_v44 = vadd.f32 %v2133_v38, %v2069_v42  ;;  %18739 = vst [vmem:[#allocation7_spill] sm:$0xff] %v18738_v6  ;;  %v18740_v11 = vmov 0  ;;  %vm2235_vm0 = vcmp.ge.f32.partialorder %v2203_v49, 0.0  ;;  %v1847_v23 = vrot.slane %v15033_v60, 1 }
 0x1b0   : > { %2344 = vst.msk [vmem:[#allocation3 + $0x18] sm:$0xff] %vm18615_vm3, %v2327_v20  ;;  %12679 = vmatprep.mubr.msk.bf16.mxu1 %vm18615_vm3, %v15063_v33  ;;  %v18741_v11 = vsel %vm15077_vm9, 4294967295, %v18740_v11  ;;  %v1848_v36 = vrot.slane %v15059_v17, 1  ;;  %v1942_v63 = vsel %vm15068_vm15, %v14694_v9, 0.0  ;;  %v577_v46 = vadd.s32 88, %v14630_v32 }
 0x1b1   : > { %v2204_v59 = vadd.f32 %v14952_v14, %v2165_v44  ;;  %18742 = vst [vmem:[#allocation8_spill] sm:$0xff] %v18741_v11  ;;  %v2070_v30 = vadd.f32 %v1983_v43, %v1942_v63  ;;  %v2299_v42 = vsel %vm2235_vm0, %v2203_v49, %v2267_v45  ;;  %v1944_v17 = vsel %vm15072_vm8, %v14704_v12, 0.0 }
 0x1b2   : > { %v1985_v41 = vpop.permute.xlu0 %1984  ;;  %v1760_v39 = vpop.permute.xlu1 %1759  ;;  %v1890_v44 = vsel %vm18612_vm5, %v1847_v23, %v1848_v36  ;;  %v2072_v49 = vadd.f32 %v15031_v52, %v1944_v17  ;;  %v578_v12 = vadd.s32 96, %v14630_v32  ;;  %v679_v45 = vand.u32 15, %v577_v46 }
 0x1b3   : > { %v1846_v4 = vrot.slane %v1760_v39, 1  ;;  %vm2236_vm1 = vcmp.ge.f32.partialorder %v2204_v59, 0.0  ;;  %v2268_v56 = vmul.f32 0.2, %v2204_v59  ;;  %v2071_v37 = vadd.f32 %v1985_v41, %v14708_v13 }
 0x1b4   : > { %v579_v63 = vadd.s32 104, %v14630_v32  ;;  %vm15114_vm2 = vcmp.le.s32.totalorder %v679_v45, 14  ;;  %v18743_v46 = vmov 0  ;;  %vm18753_vm8 = vcmp.lt.s32.totalorder %v14630_v32, 7 }
 0x1b5   : > { %v1891_v40 = vsel %vm18612_vm5, %v1846_v4, %v1847_v23  ;;  %v1892_v60 = vsel %vm18612_vm5, %v1845_v54, %v1846_v4  ;;  %v2300_v20 = vsel %vm2236_vm1, %v2204_v59, %v2268_v56  ;;  %v580_v23 = vadd.s32 112, %v14630_v32 }
 0x1b6   : > { %v2135_v9 = vsel %vm15077_vm9, %v1891_v40, 0.0  ;;  %v15097_v38 = vpop.permute.xlu1 %1994  ;;  %v15099_v43 = vpop.permute.xlu0 %1769  ;;  %v2328_v13 = vpack.c.bf16 %v2300_v20, %v2299_v42  ;;  %v2166_v41 = vadd.f32 %v2070_v30, %v1892_v60  ;;  %v2168_v56 = vadd.f32 %v2072_v49, %v1890_v44  ;;  %vm18754_vm9 = vmmov %vm18753_vm8 }
 0x1b7   : > { %v2167_v39 = vadd.f32 %v2135_v9, %v2071_v37  ;;  %v15103_v54 = vld [vmem:[#allocation3 + $0x18] sm:$0xff]  ;;  %v686_v60 = vand.u32 15, %v578_v12  ;;  %v18744_v46 = vsel %vm15114_vm2, 4294967295, %v18743_v46  ;;  %v700_v9 = vand.u32 15, %v580_v23 }
 0x1b8   : > { %12680 = vmatmul.mubr.msk.bf16.gmra.mrb[36].mxu1 %vm18615_vm3, %v15103_v54  ;;  %2345 = vst.msk [vmem:[#allocation3 + $0x20] sm:$0xff] %vm18615_vm3, %v2328_v13  ;;  %v2205_v59 = vadd.f32 %v14952_v14, %v2166_v41  ;;  %v693_v13 = vand.u32 15, %v579_v63  ;;  %v2073_v41 = vadd.f32 %v1989_v61, %v14700_v10  ;;  %v2207_v44 = vadd.f32 %v14952_v14, %v2168_v56 }
 0x1b9   : > { %v2206_v4 = vadd.f32 %v14952_v14, %v2167_v39  ;;  %v18747_v61 = vmov 0  ;;  %v18750_v63 = vmov 0  ;;  %vm18830_vm15 = vcmp.lt.s32.totalorder %v14630_v32, 1 }
 0x1ba   : > { %v1991_v30 = vpop.permute.xlu1 %1990  ;;  %v1766_v37 = vpop.permute.xlu0 %1765  ;;  %vm2237_vm0 = vcmp.ge.f32.partialorder %v2205_v59, 0.0  ;;  %v2269_v52 = vmul.f32 0.2, %v2205_v59  ;;  %v2271_v10 = vmul.f32 0.2, %v2207_v44 }
 0x1bb   : > { %vm2238_vm1 = vcmp.ge.f32.partialorder %v2206_v4, 0.0  ;;  %v2270_v40 = vmul.f32 0.2, %v2206_v4  ;;  %v1849_v42 = vrot.slane %v1766_v37, 1  ;;  %v1851_v37 = vrot.slane %v15099_v43, 1 }
 0x1bc   : > { %v2301_v17 = vsel %vm2237_vm0, %v2205_v59, %v2269_v52  ;;  %vm15129_vm0 = vcmp.ge.s32.totalorder %v686_v60, 1 }
 0x1bd   : > { %v2302_v20 = vsel %vm2238_vm1, %v2206_v4, %v2270_v40  ;;  %v1889_v49 = vsel %vm18612_vm5, %v1848_v36, %v1849_v42  ;;  %v18745_v4 = vmov 0  ;;  %vm15135_vm1 = vcmp.ge.s32.totalorder %v700_v9, 1 }
 0x1be   : > { %v2329_v39 = vpack.c.bf16 %v2302_v20, %v2301_v17  ;;  %v1997_v6 = vpop.permute.xlu0 %1996  ;;  %v15122_v11 = vpop.permute.xlu1 %1771  ;;  %v2137_v12 = vsel %vm15114_vm2, %v1889_v49, 0.0  ;;  %v18746_v4 = vsel %vm15129_vm0, 4294967295, %v18745_v4  ;;  %v18748_v61 = vsel %vm15135_vm1, 4294967295, %v18747_v61 }
 0x1bf   : > { %v2169_v45 = vadd.f32 %v2137_v12, %v2073_v41  ;;  %v15127_v59 = vld [vmem:[#allocation3 + $0x20] sm:$0xff]  ;;  %18749 = vst [vmem:[#allocation9_spill] sm:$0xff] %v18748_v61  ;;  %vm15140_vm5 = vcmp.le.s32.totalorder %v693_v13, 14  ;;  %vm2239_vm2 = vcmp.ge.f32.partialorder %v2207_v44, 0.0  ;;  %v1852_v52 = vrot.slane %v15122_v11, 1 }
 0x1c0   : > { %2346 = vst.msk [vmem:[#allocation3 + $0x28] sm:$0xff] %vm18615_vm3, %v2329_v39  ;;  %12683 = vmatprep.mubr.msk.bf16.mxu1 %vm18615_vm3, %v15127_v59  ;;  %v18751_v63 = vsel %vm15140_vm5, 4294967295, %v18750_v63  ;;  %v1946_v60 = vsel %vm15129_vm0, %v14730_v24, 0.0  ;;  %v581_v20 = vadd.s32 120, %v14630_v32  ;;  %v2303_v39 = vsel %vm2239_vm2, %v2207_v44, %v2271_v10  ;;  %vm18755_vm0 = vmmov %vm18753_vm8 }
 0x1c1   : > { %v2208_v36 = vadd.f32 %v14952_v14, %v2169_v45  ;;  %18752 = vst [vmem:[#allocation10_spill] sm:$0xff] %v18751_v63  ;;  %v2074_v9 = vadd.f32 %v1991_v30, %v1946_v60  ;;  %v1948_v11 = vsel %vm15135_vm1, %v14740_v28, 0.0  ;;  %v1886_v45 = vsel %vm18755_vm0, %v1851_v37, %v1852_v52 }
 0x1c2   : > { %v1993_v23 = vpop.permute.xlu0 %1992  ;;  %v1768_v56 = vpop.permute.xlu1 %1767  ;;  %v2076_v44 = vadd.f32 %v15097_v38, %v1948_v11  ;;  %vm18756_vm2 = vcmask 261120   ;;  %v582_v28 = vadd.s32 128, %v14630_v32  ;;  %v707_v10 = vand.u32 15, %v581_v20 }
 0x1c3   : > { %v1850_v40 = vrot.slane %v1768_v56, 1  ;;  %vm2240_vm3 = vcmp.ge.f32.partialorder %v2208_v36, 0.0  ;;  %v2272_v17 = vmul.f32 0.2, %v2208_v36  ;;  %v2075_v13 = vadd.f32 %v1993_v23, %v14744_v29 }
 0x1c4   : > { %v583_v60 = vadd.s32 136, %v14630_v32  ;;  %vm15177_vm0 = vcmp.le.s32.totalorder %v707_v10, 14  ;;  %v18758_v20 = vmov 0  ;;  %vm18770_vm1 = vcmp.lt.s32.totalorder %v14630_v32, 7 }
 0x1c5   : > { %v1887_v41 = vsel %vm18753_vm8, %v1850_v40, %v1851_v37  ;;  %v1888_v43 = vsel %vm18754_vm9, %v1849_v42, %v1850_v40  ;;  %v2304_v49 = vsel %vm2240_vm3, %v2208_v36, %v2272_v17  ;;  %vm18757_vm3 = vmmov %vm18756_vm2  ;;  %v584_v37 = vadd.s32 144, %v14630_v32 }
 0x1c6   : > { %v2139_v24 = vsel %vm15140_vm5, %v1887_v41, 0.0  ;;  %v15160_v12 = vpop.permute.xlu1 %2002  ;;  %v15162_v30 = vpop.permute.xlu0 %1777  ;;  %v2330_v29 = vpack.c.bf16 %v2304_v49, %v2303_v39  ;;  %v2170_v23 = vadd.f32 %v2074_v9, %v1888_v43  ;;  %v2172_v17 = vadd.f32 %v2076_v44, %v1886_v45  ;;  %vm18771_vm5 = vmmov %vm18770_vm1 }
 0x1c7   : > { %v2171_v56 = vadd.f32 %v2139_v24, %v2075_v13  ;;  %v15166_v42 = vld [vmem:[#allocation3 + $0x28] sm:$0xff]  ;;  %v714_v43 = vand.u32 15, %v582_v28  ;;  %v18759_v20 = vsel %vm15177_vm0, 4294967295, %v18758_v20  ;;  %v728_v24 = vand.u32 15, %v584_v37 }
 0x1c8   : > { %12684 = vmatmul.mubr.msk.bf16.gmra.mrb[40].mxu1 %vm18756_vm2, %v15166_v42  ;;  %2347 = vst.msk [vmem:[#allocation3 + $0x30] sm:$0xff] %vm18757_vm3, %v2330_v29  ;;  %v2209_v36 = vadd.f32 %v14952_v14, %v2170_v23  ;;  %v721_v29 = vand.u32 15, %v583_v60  ;;  %v2077_v23 = vadd.f32 %v1997_v6, %v14736_v27  ;;  %v2211_v45 = vadd.f32 %v14952_v14, %v2172_v17 }
 0x1c9   : > { %v2210_v40 = vadd.f32 %v14952_v14, %v2171_v56  ;;  %vm18760_vm2 = vcmp.lt.s32.totalorder %v14630_v32, 7  ;;  %v18764_v6 = vmov 0  ;;  %v18767_v60 = vmov 0 }
 0x1ca   : > { %v1999_v9 = vpop.permute.xlu1 %1998  ;;  %v1774_v13 = vpop.permute.xlu0 %1773  ;;  %vm2241_vm8 = vcmp.ge.f32.partialorder %v2209_v36, 0.0  ;;  %v2273_v38 = vmul.f32 0.2, %v2209_v36  ;;  %v2275_v27 = vmul.f32 0.2, %v2211_v45 }
 0x1cb   : > { %vm2242_vm9 = vcmp.ge.f32.partialorder %v2210_v40, 0.0  ;;  %v2274_v41 = vmul.f32 0.2, %v2210_v40  ;;  %v1853_v39 = vrot.slane %v1774_v13, 1  ;;  %v1855_v13 = vrot.slane %v15162_v30, 1 }
 0x1cc   : > { %v2305_v11 = vsel %vm2241_vm8, %v2209_v36, %v2273_v38  ;;  %vm15192_vm8 = vcmp.ge.s32.totalorder %v714_v43, 1 }
 0x1cd   : > { %v2306_v49 = vsel %vm2242_vm9, %v2210_v40, %v2274_v41  ;;  %v1885_v44 = vsel %vm18760_vm2, %v1852_v52, %v1853_v39  ;;  %v18761_v40 = vmov 0  ;;  %vm18763_vm9 = vmmov %vm18757_vm3  ;;  %vm15198_vm2 = vcmp.ge.s32.totalorder %v728_v24, 1 }
 0x1ce   : > { %v2331_v56 = vpack.c.bf16 %v2306_v49, %v2305_v11  ;;  %v2005_v61 = vpop.permute.xlu0 %2004  ;;  %v15185_v63 = vpop.permute.xlu1 %1779  ;;  %v2141_v28 = vsel %vm15177_vm0, %v1885_v44, 0.0  ;;  %v18762_v40 = vsel %vm15192_vm8, 4294967295, %v18761_v40  ;;  %v18765_v6 = vsel %vm15198_vm2, 4294967295, %v18764_v6 }
 0x1cf   : > { %v2173_v10 = vadd.f32 %v2141_v28, %v2077_v23  ;;  %v15190_v36 = vld [vmem:[#allocation3 + $0x30] sm:$0xff]  ;;  %18766 = vst [vmem:[#allocation11_spill] sm:$0xff] %v18765_v6  ;;  %vm15203_vm0 = vcmp.le.s32.totalorder %v721_v29, 14  ;;  %v1856_v38 = vrot.slane %v15185_v63, 1  ;;  %v1950_v43 = vsel %vm15192_vm8, %v14764_v51, 0.0  ;;  %vm18772_vm8 = vmmov %vm18770_vm1 }
 0x1d0   : > { %2348 = vst.msk [vmem:[#allocation3 + $0x38] sm:$0xff] %vm18757_vm3, %v2331_v56  ;;  %12687 = vmatprep.mubr.msk.bf16.mxu1 %vm18763_vm9, %v15190_v36  ;;  %v18768_v60 = vsel %vm15203_vm0, 4294967295, %v18767_v60  ;;  %vm2243_vm3 = vcmp.ge.f32.partialorder %v2211_v45, 0.0  ;;  %v585_v49 = vadd.s32 152, %v14630_v32  ;;  %v2078_v24 = vadd.f32 %v1999_v9, %v1950_v43 }
 0x1d1   : > { %v2212_v52 = vadd.f32 %v14952_v14, %v2173_v10  ;;  %18769 = vst [vmem:[#allocation12_spill] sm:$0xff] %v18768_v60  ;;  %v2307_v56 = vsel %vm2243_vm3, %v2211_v45, %v2275_v27  ;;  %v1952_v63 = vsel %vm15198_vm2, %v14772_v5, 0.0  ;;  %v1882_v10 = vsel %vm18772_vm8, %v1855_v13, %v1856_v38 }
 0x1d2   : > { %v2001_v37 = vpop.permute.xlu0 %2000  ;;  %v1776_v17 = vpop.permute.xlu1 %1775  ;;  %v2080_v45 = vadd.f32 %v15160_v12, %v1952_v63  ;;  %v586_v5 = vadd.s32 160, %v14630_v32  ;;  %v735_v27 = vand.u32 15, %v585_v49  ;;  %v587_v43 = vadd.s32 168, %v14630_v32 }
 0x1d3   : > { %v1854_v41 = vrot.slane %v1776_v17, 1  ;;  %vm2244_vm9 = vcmp.ge.f32.partialorder %v2212_v52, 0.0  ;;  %v2276_v11 = vmul.f32 0.2, %v2212_v52  ;;  %v2079_v29 = vadd.f32 %v2001_v37, %v14776_v58 }
 0x1d4   : > { %v18775_v49 = vmov 0  ;;  %vm18789_vm2 = vcmp.lt.s32.totalorder %v14630_v32, 7 }
 0x1d5   : > { %v1883_v23 = vsel %vm18770_vm1, %v1854_v41, %v1855_v13  ;;  %v1884_v30 = vsel %vm18771_vm5, %v1853_v39, %v1854_v41  ;;  %v2308_v44 = vsel %vm2244_vm9, %v2212_v52, %v2276_v11  ;;  %vm18773_vm5 = vcmask 261120  }
 0x1d6   : > { %v2143_v51 = vsel %vm15203_vm0, %v1883_v23, 0.0  ;;  %v15223_v28 = vpop.permute.xlu1 %2010  ;;  %v15225_v9 = vpop.permute.xlu0 %1785  ;;  %v2332_v58 = vpack.c.bf16 %v2308_v44, %v2307_v56  ;;  %v2174_v37 = vadd.f32 %v2078_v24, %v1884_v30  ;;  %vm18774_vm1 = vmmov %vm18773_vm5  ;;  %v588_v13 = vadd.s32 176, %v14630_v32 }
 0x1d7   : > { %v2175_v17 = vadd.f32 %v2143_v51, %v2079_v29  ;;  %v15229_v39 = vld [vmem:[#allocation3 + $0x38] sm:$0xff]  ;;  %v2176_v11 = vadd.f32 %v2080_v45, %v1882_v10  ;;  %v742_v30 = vand.u32 15, %v586_v5  ;;  %vm15240_vm9 = vcmp.le.s32.totalorder %v735_v27, 14  ;;  %vm18790_vm0 = vmmov %vm18789_vm2 }
 0x1d8   : > { %12688 = vmatmul.mubr.msk.bf16.gmra.mrb[44].mxu1 %vm18773_vm5, %v15229_v39  ;;  %2349 = vst.msk [vmem:[#allocation3 + $0x40] sm:$0xff] %vm18774_vm1, %v2332_v58  ;;  %v2213_v52 = vadd.f32 %v14952_v14, %v2174_v37  ;;  %v18776_v49 = vsel %vm15240_vm9, 4294967295, %v18775_v49  ;;  %v756_v51 = vand.u32 15, %v588_v13  ;;  %v749_v58 = vand.u32 15, %v587_v43 }
 0x1d9   : > { %v2214_v41 = vadd.f32 %v14952_v14, %v2175_v17  ;;  %18777 = vst [vmem:[#allocation13_spill] sm:$0xff] %v18776_v49  ;;  %v2081_v37 = vadd.f32 %v2005_v61, %v14768_v53  ;;  %v2215_v10 = vadd.f32 %v14952_v14, %v2176_v11  ;;  %vm18778_vm5 = vcmp.lt.s32.totalorder %v14630_v32, 7 }
 0x1da   : > { %v2007_v24 = vpop.permute.xlu1 %2006  ;;  %v1782_v29 = vpop.permute.xlu0 %1781  ;;  %vm2245_vm8 = vcmp.ge.f32.partialorder %v2213_v52, 0.0  ;;  %v2277_v12 = vmul.f32 0.2, %v2213_v52  ;;  %v18779_v53 = vmov 0  ;;  %v18782_v61 = vmov 0 }
 0x1db   : > { %vm2246_vm3 = vcmp.ge.f32.partialorder %v2214_v41, 0.0  ;;  %v2278_v23 = vmul.f32 0.2, %v2214_v41  ;;  %v1857_v56 = vrot.slane %v1782_v29, 1  ;;  %v2279_v13 = vmul.f32 0.2, %v2215_v10 }
 0x1dc   : > { %v2309_v63 = vsel %vm2245_vm8, %v2213_v52, %v2277_v12  ;;  %vm15257_vm8 = vcmp.ge.s32.totalorder %v756_v51, 1  ;;  %v18786_v29 = vmov 0 }
 0x1dd   : > { %v2310_v44 = vsel %vm2246_vm3, %v2214_v41, %v2278_v23  ;;  %v1881_v45 = vsel %vm18778_vm5, %v1856_v38, %v1857_v56  ;;  %v18780_v53 = vsel %vm15257_vm8, 4294967295, %v18779_v53  ;;  %vm15261_vm3 = vcmp.ge.s32.totalorder %v742_v30, 1  ;;  %vm18785_vm5 = vmmov %vm18774_vm1 }
 0x1de   : > { %v2333_v17 = vpack.c.bf16 %v2310_v44, %v2309_v63  ;;  %v15248_v6 = vpop.permute.xlu0 %2012  ;;  %v15250_v5 = vpop.permute.xlu1 %1787  ;;  %v2145_v27 = vsel %vm15240_vm9, %v1881_v45, 0.0  ;;  %18781 = vst [vmem:[#allocation14_spill] sm:$0xff] %v18780_v53  ;;  %v18783_v61 = vsel %vm15261_vm3, 4294967295, %v18782_v61  ;;  %v590_v38 = vadd.s32 192, %v14630_v32 }
 0x1df   : > { %v2177_v52 = vadd.f32 %v2145_v27, %v2081_v37  ;;  %v15255_v41 = vld [vmem:[#allocation3 + $0x40] sm:$0xff]  ;;  %18784 = vst [vmem:[#allocation15_spill] sm:$0xff] %v18783_v61  ;;  %v592_v23 = vadd.s32 208, %v14630_v32  ;;  %vm2247_vm9 = vcmp.ge.f32.partialorder %v2215_v10, 0.0  ;;  %v1859_v30 = vrot.slane %v15225_v9, 1 }
 0x1e0   : > { %2350 = vst.msk [vmem:[#allocation3 + $0x48] sm:$0xff] %vm18774_vm1, %v2333_v17  ;;  %12691 = vmatprep.mubr.msk.bf16.mxu1 %vm18785_vm5, %v15255_v41  ;;  %vm15269_vm1 = vcmp.le.s32.totalorder %v749_v58, 14  ;;  %v1860_v63 = vrot.slane %v15250_v5, 1  ;;  %v1954_v51 = vsel %vm15261_vm3, %v14800_v1, 0.0  ;;  %v589_v58 = vadd.s32 184, %v14630_v32  ;;  %vm18791_vm3 = vmmov %vm18790_vm0 }
 0x1e1   : > { %v2216_v43 = vadd.f32 %v14952_v14, %v2177_v52  ;;  %v18787_v29 = vsel %vm15269_vm1, 4294967295, %v18786_v29  ;;  %v2082_v17 = vadd.f32 %v2007_v24, %v1954_v51  ;;  %v2311_v52 = vsel %vm2247_vm9, %v2215_v10, %v2279_v13 }
 0x1e2   : > { %v2009_v11 = vpop.permute.xlu0 %2008  ;;  %18788 = vst [vmem:[#allocation16_spill] sm:$0xff] %v18787_v29  ;;  %v1784_v12 = vpop.permute.xlu1 %1783  ;;  %v1956_v5 = vsel %vm15257_vm8, %v14808_v25, 0.0  ;;  %v770_v10 = vand.u32 15, %v590_v38  ;;  %v763_v25 = vand.u32 15, %v589_v58  ;;  %v784_v13 = vand.u32 15, %v592_v23 }
 0x1e3   : > { %v1858_v44 = vrot.slane %v1784_v12, 1  ;;  %vm2248_vm5 = vcmp.ge.f32.partialorder %v2216_v43, 0.0  ;;  %v2280_v37 = vmul.f32 0.2, %v2216_v43  ;;  %v2083_v45 = vadd.f32 %v2009_v11, %v14812_v31 }
 0x1e4   : > { %v1878_v31 = vsel %vm18791_vm3, %v1859_v30, %v1860_v63  ;;  %v18794_v23 = vmov 0  ;;  %vm18803_vm8 = vcmp.lt.s32.totalorder %v14630_v32, 7 }
 0x1e5   : > { %v1879_v27 = vsel %vm18789_vm2, %v1858_v44, %v1859_v30  ;;  %v1880_v9 = vsel %vm18790_vm0, %v1857_v56, %v1858_v44  ;;  %v2312_v12 = vsel %vm2248_vm5, %v2216_v43, %v2280_v37  ;;  %v2084_v56 = vadd.f32 %v15223_v28, %v1956_v5 }
 0x1e6   : > { %v2147_v1 = vsel %vm15269_vm1, %v1879_v27, 0.0  ;;  %v15290_v61 = vpop.permute.xlu0 %1793  ;;  %v2015_v24 = vpop.permute.xlu1 %2014  ;;  %v2334_v51 = vpack.c.bf16 %v2312_v12, %v2311_v52  ;;  %v2178_v11 = vadd.f32 %v2082_v17, %v1880_v9  ;;  %vm18792_vm0 = vcmask 261120  }
 0x1e7   : > { %v2179_v49 = vadd.f32 %v2147_v1, %v2083_v45  ;;  %v15294_v60 = vld [vmem:[#allocation3 + $0x48] sm:$0xff]  ;;  %vm18793_vm2 = vmmov %vm18792_vm0  ;;  %v591_v30 = vadd.s32 200, %v14630_v32  ;;  %v15304_v37 = vadd.s32 224, %v14630_v32  ;;  %v2180_v17 = vadd.f32 %v2084_v56, %v1878_v31 }
 0x1e8   : > { %12692 = vmatmul.mubr.msk.bf16.gmra.mrb[48].mxu1 %vm18792_vm0, %v15294_v60  ;;  %2351 = vst.msk [vmem:[#allocation3 + $0x50] sm:$0xff] %vm18793_vm2, %v2334_v51  ;;  %v2217_v43 = vadd.f32 %v14952_v14, %v2178_v11  ;;  %vm15308_vm5 = vcmp.ge.s32.totalorder %v770_v10, 1  ;;  %vm15312_vm0 = vcmp.le.s32.totalorder %v763_v25, 14  ;;  %v18797_v27 = vmov 0 }
 0x1e9   : > { %v2218_v44 = vadd.f32 %v14952_v14, %v2179_v49  ;;  %v18795_v23 = vsel %vm15308_vm5, 4294967295, %v18794_v23  ;;  %v18798_v27 = vsel %vm15312_vm0, 4294967295, %v18797_v27  ;;  %vm15316_vm2 = vcmp.ge.s32.totalorder %v784_v13, 1 }
 0x1ea   : > { %v1790_v45 = vpop.permute.xlu0 %1789  ;;  %v15306_v28 = vpop.permute.xlu1 %1795  ;;  %vm2249_vm9 = vcmp.ge.f32.partialorder %v2217_v43, 0.0  ;;  %v2281_v38 = vmul.f32 0.2, %v2217_v43  ;;  %18796 = vst [vmem:[#allocation17_spill] sm:$0xff] %v18795_v23  ;;  %18799 = vst [vmem:[#allocation18_spill] sm:$0xff] %v18798_v27  ;;  %v18800_v9 = vmov 0  ;;  %v2085_v51 = vadd.f32 %v15248_v6, %v14804_v22 }
 0x1eb   : > { %vm2250_vm3 = vcmp.ge.f32.partialorder %v2218_v44, 0.0  ;;  %v2282_v58 = vmul.f32 0.2, %v2218_v44  ;;  %v1861_v49 = vrot.slane %v1790_v45, 1  ;;  %v18801_v9 = vsel %vm15316_vm2, 4294967295, %v18800_v9 }
 0x1ec   : > { %18802 = vst [vmem:[#allocation19_spill] sm:$0xff] %v18801_v9  ;;  %v2313_v52 = vsel %vm2249_vm9, %v2217_v43, %v2281_v38  ;;  %v777_v12 = vand.u32 15, %v591_v30  ;;  %v798_v1 = vand.u32 15, %v15304_v37  ;;  %v2219_v31 = vadd.f32 %v14952_v14, %v2180_v17 }
 0x1ed   : > { %v2314_v5 = vsel %vm2250_vm3, %v2218_v44, %v2282_v58  ;;  %v1877_v56 = vsel %vm18803_vm8, %v1860_v63, %v1861_v49  ;;  %v1863_v13 = vrot.slane %v15290_v61, 1  ;;  %v1958_v43 = vsel %vm15308_vm5, %v14827_v55, 0.0 }
 0x1ee   : > { %v2335_v11 = vpack.c.bf16 %v2314_v5, %v2313_v52  ;;  %v15326_v10 = vpop.permute.xlu0 %2020  ;;  %v1792_v25 = vpop.permute.xlu1 %1791  ;;  %v2149_v44 = vsel %vm15312_vm0, %v1877_v56, 0.0  ;;  %vm18804_vm9 = vcmask 261120   ;;  %v2086_v22 = vadd.f32 %v2015_v24, %v1958_v43 }
 0x1ef   : > { %v1862_v30 = vrot.slane %v1792_v25, 1  ;;  %v2181_v6 = vadd.f32 %v2149_v44, %v2085_v51  ;;  %v15335_v37 = vld [vmem:[#allocation3 + $0x50] sm:$0xff]  ;;  %v1960_v63 = vsel %vm15316_vm2, %v14839_v7, 0.0  ;;  %v596_v61 = vadd.s32 240, %v14630_v32  ;;  %vm18805_vm3 = vmmov %vm18804_vm9 }
 0x1f0   : > { %2352 = vst.msk [vmem:[#allocation3 + $0x58] sm:$0xff] %vm18804_vm9, %v2335_v11  ;;  %v1864_v17 = vrot.slane %v15306_v28, 1  ;;  %12695 = vmatprep.mubr.msk.bf16.mxu1 %vm18805_vm3, %v15335_v37  ;;  %vm15346_vm0 = vcmp.le.s32.totalorder %v777_v12, 14  ;;  %v18806_v45 = vmov 0  ;;  %vm18809_vm9 = vmmov %vm18803_vm8  ;;  %v2283_v38 = vmul.f32 0.2, %v2219_v31 }
 0x1f1   : > { %v1876_v55 = vsel %vm18803_vm8, %v1861_v49, %v1862_v30  ;;  %v18807_v45 = vsel %vm15346_vm0, 4294967295, %v18806_v45  ;;  %v1875_v24 = vsel %vm18809_vm9, %v1862_v30, %v1863_v13  ;;  %v2220_v7 = vadd.f32 %v14952_v14, %v2181_v6  ;;  %vm18810_vm3 = vmmov %vm18809_vm9 }
 0x1f2   : > { %18808 = vst [vmem:[#allocation20_spill] sm:$0xff] %v18807_v45  ;;  %v2182_v58 = vadd.f32 %v2086_v22, %v1876_v55  ;;  %v2017_v52 = vpop.permute.xlu0 %2016  ;;  %v2019_v5 = vpop.permute.xlu1 %2018  ;;  %v593_v28 = vadd.s32 216, %v14630_v32  ;;  %vm2251_vm2 = vcmp.ge.f32.partialorder %v2219_v31, 0.0  ;;  %v595_v12 = vadd.s32 232, %v14630_v32 }
 0x1f3   : > { %v2087_v49 = vadd.f32 %v2017_v52, %v14835_v3  ;;  %v2088_v51 = vadd.f32 %v2019_v5, %v1960_v63  ;;  %vm2252_vm8 = vcmp.ge.f32.partialorder %v2220_v7, 0.0  ;;  %v2284_v11 = vmul.f32 0.2, %v2220_v7 }
 0x1f4   : > { %v2221_v56 = vadd.f32 %v14952_v14, %v2182_v58  ;;  %v2151_v25 = vsel %vm15346_vm0, %v1875_v24, 0.0  ;;  %v1874_v44 = vsel %vm18810_vm3, %v1863_v13, %v1864_v17  ;;  %v812_v30 = vand.u32 15, %v596_v61 }
 0x1f5   : > { %v2183_v43 = vadd.f32 %v2151_v25, %v2087_v49  ;;  %v2315_v22 = vsel %vm2251_vm2, %v2219_v31, %v2283_v38  ;;  %v2316_v6 = vsel %vm2252_vm8, %v2220_v7, %v2284_v11  ;;  %v2184_v55 = vadd.f32 %v2088_v51, %v1874_v44 }
 0x1f6   : > { %v15361_v9 = vpop.permute.xlu0 %1801  ;;  %v1800_v3 = vpop.permute.xlu1 %1799  ;;  %v791_v63 = vand.u32 15, %v593_v28  ;;  %v2336_v52 = vpack.c.bf16 %v2316_v6, %v2315_v22  ;;  %v2285_v5 = vmul.f32 0.2, %v2221_v56  ;;  %vm15366_vm9 = vcmp.ge.s32.totalorder %v798_v1, 1 }
 0x1f7   : > { %v2222_v27 = vadd.f32 %v14952_v14, %v2183_v43  ;;  %v15364_v58 = vld [vmem:[#allocation3 + $0x58] sm:$0xff]  ;;  %v18811_v24 = vmov 0  ;;  %vm2253_vm0 = vcmp.ge.f32.partialorder %v2221_v56, 0.0  ;;  %vm18814_vm3 = vcmask 261120  }
 0x1f8   : > { %v18812_v24 = vsel %vm15366_vm9, 4294967295, %v18811_v24  ;;  %12696 = vmatmul.mubr.msk.bf16.gmra.mrb[52].mxu1 %vm18814_vm3, %v15364_v58  ;;  %v805_v31 = vand.u32 15, %v595_v12  ;;  %v597_v13 = vadd.s32 248, %v14630_v32  ;;  %vm18815_vm2 = vmmov %vm18814_vm3  ;;  %v1867_v38 = vrot.slane %v15361_v9, 1 }
 0x1f9   : > { %18813 = vst [vmem:[#allocation21_spill] sm:$0xff] %v18812_v24  ;;  %2353 = vst.msk [vmem:[#allocation3 + $0x60] sm:$0xff] %vm18815_vm2, %v2336_v52  ;;  %vm2254_vm8 = vcmp.ge.f32.partialorder %v2222_v27, 0.0  ;;  %v2286_v61 = vmul.f32 0.2, %v2222_v27  ;;  %v1866_v7 = vrot.slane %v1800_v3, 1  ;;  %v2223_v28 = vadd.f32 %v14952_v14, %v2184_v55 }
 0x1fa   : > { %vm15376_vm5 = vcmp.le.s32.totalorder %v791_v63, 14  ;;  %v18816_v1 = vmov 0  ;;  %v1798_v49 = vpop.permute.xlu0 %1797  ;;  %v1962_v51 = vsel %vm15366_vm9, %v14859_v18, 0.0  ;;  %v2023_v12 = vpop.permute.xlu1 %2022  ;;  %vm15383_vm3 = vcmp.ge.s32.totalorder %v812_v30, 1 }
 0x1fb   : > { %v18817_v1 = vsel %vm15376_vm5, 4294967295, %v18816_v1  ;;  %v18819_v11 = vmov 0  ;;  %v2317_v25 = vsel %vm2253_vm0, %v2221_v56, %v2285_v5  ;;  %v2318_v43 = vsel %vm2254_vm8, %v2222_v27, %v2286_v61 }
 0x1fc   : > { %18818 = vst [vmem:[#allocation22_spill] sm:$0xff] %v18817_v1  ;;  %v18820_v11 = vsel %vm15383_vm3, 4294967295, %v18819_v11  ;;  %v1865_v9 = vrot.slane %v1798_v49, 1  ;;  %v2090_v44 = vadd.f32 %v2023_v12, %v1962_v51  ;;  %v1674_v22 = vrot.slane %v14841_v16, 7 }
 0x1fd   : > { %18821 = vst [vmem:[#allocation23_spill] sm:$0xff] %v18820_v11  ;;  %v2337_v6 = vpack.c.bf16 %v2318_v43, %v2317_v25  ;;  %vm15388_vm2 = vcmp.le.s32.totalorder %v805_v31, 14  ;;  %v18822_v55 = vmov 0  ;;  %v819_v3 = vand.u32 15, %v597_v13 }
 0x1fe   : > { %v18823_v55 = vsel %vm15388_vm2, 4294967295, %v18822_v55  ;;  %v2089_v18 = vadd.f32 %v15326_v10, %v14831_v62  ;;  %vm18825_vm9 = vcmp.lt.s32.totalorder %v14630_v32, 7  ;;  %vm18828_vm8 = vcmask 261120   ;;  %v2025_v5 = vpop.permute.xlu0 %2024  ;;  %v1804_v31 = vpop.permute.xlu1 %1803 }
 0x1ff   : > { %18824 = vst [vmem:[#allocation24_spill] sm:$0xff] %v18823_v55  ;;  %v1873_v30 = vsel %vm18825_vm9, %v1864_v17, %v1865_v9  ;;  %vm18826_vm1 = vmmov %vm18825_vm9  ;;  %v2287_v16 = vmul.f32 0.2, %v2223_v28  ;;  %v18829_v62 = vrot.slane %v14849_v35, 7  ;;  %vm2255_vm9 = vcmp.ge.f32.partialorder %v2223_v28, 0.0 }
 0x200   : > { %v1872_v56 = vsel %vm18826_vm1, %v1865_v9, %v1866_v7  ;;  %vm18827_vm0 = vmmov %vm18826_vm1  ;;  %2354 = vst.msk [vmem:[#allocation3 + $0x68] sm:$0xff] %vm18828_vm8, %v2337_v6  ;;  %v2153_v63 = vsel %vm15376_vm5, %v1873_v30, 0.0  ;;  %v2091_v13 = vadd.f32 %v2025_v5, %v14871_v48  ;;  %v1868_v61 = vrot.slane %v1804_v31, 1  ;;  %v15411_v51 = vld [vmem:[#allocation3 + $0x60] sm:$0xff] }
 0x201   : > { %v1871_v27 = vsel %vm18827_vm0, %v1866_v7, %v1867_v38  ;;  %v2186_v52 = vadd.f32 %v2090_v44, %v1872_v56  ;;  %v1678_v10 = vsel %vm18830_vm15, %v18829_v62, %v1674_v22  ;;  %v2185_v17 = vadd.f32 %v2153_v63, %v2089_v18  ;;  %vm18831_vm1 = vmmov %vm18828_vm8 }
 0x202   : > { %v2155_v49 = vsel %vm15388_vm2, %v1871_v27, 0.0  ;;  %12699 = vmatprep.mubr.msk.bf16.mxu1 %vm18831_vm1, %v15411_v51  ;;  %v18832_v35 = vrot.slane %v14931_v47, 1  ;;  %vm18833_vm15 = vmmov %vm18827_vm0  ;;  %vm15420_vm0 = vcmp.le.s32.totalorder %v819_v3, 14  ;;  %v18834_v48 = vmov 0  ;;  %v2027_v6 = vpop.permute.xlu0 %2026  ;;  %v2029_v27 = vpop.permute.xlu1 %2028 }
 0x203   : > { %v2225_v7 = vadd.f32 %v14952_v14, %v2186_v52  ;;  %v2224_v12 = vadd.f32 %v14952_v14, %v2185_v17  ;;  %v2187_v25 = vadd.f32 %v2155_v49, %v2091_v13  ;;  %v18835_v48 = vsel %vm15420_vm0, 4294967295, %v18834_v48 }
 0x204   : > { %v1901_v43 = vsel %vm18833_vm15, %v1868_v61, %v18832_v35  ;;  %18836 = vst [vmem:[#allocation25_spill] sm:$0xff] %v18835_v48  ;;  %v2319_v9 = vsel %vm2255_vm9, %v2223_v28, %v2287_v16  ;;  %v1964_v18 = vsel %vm15383_vm3, %v1678_v10, 0.0  ;;  %v18837_v30 = vrot.slane %v14847_v26, 7 }
 0x205   : > { %v2289_v44 = vmul.f32 0.2, %v2225_v7  ;;  %vm18838_vm8 = vcmp.lt.s32.totalorder %v14630_v32, 1  ;;  %vm2256_vm1 = vcmp.ge.f32.partialorder %v2224_v12, 0.0  ;;  %v2288_v47 = vmul.f32 0.2, %v2224_v12 }
 0x206   : > { %v1677_v56 = vsel %vm18838_vm8, %v1674_v22, %v18837_v30  ;;  %v2226_v63 = vadd.f32 %v14952_v14, %v2187_v25  ;;  %v2092_v3 = vadd.f32 %v2027_v6, %v1964_v18  ;;  %vm2257_vm15 = vcmp.ge.f32.partialorder %v2225_v7, 0.0  ;;  %v15455_v30 = vld [vmem:[#allocation2 + $0x10] sm:$0xff] }
 0x207   : > { %vm18839_vm2 = vcmp.lt.s32.totalorder %v14630_v32, 7  ;;  %v2157_v16 = vsel %vm15420_vm0, %v1901_v43, 0.0  ;;  %v2093_v52 = vadd.f32 %v2029_v27, %v1677_v56  ;;  %v2320_v5 = vsel %vm2256_vm1, %v2224_v12, %v2288_v47  ;;  %v15435_v62 = vld [vmem:[#allocation3 + $0x68] sm:$0xff]  ;;  %v14321_v56 = vld [vmem:[%s18588_s6 + $0x10] sm:$0xff]   ;;  %v15465_v47 = vld [vmem:[#allocation2 + $0x20] sm:$0xff] }
 0x208   : > { %v1870_v28 = vsel %vm18839_vm2, %v1867_v38, %v1868_v61  ;;  %vm2258_vm9 = vcmp.ge.f32.partialorder %v2226_v63, 0.0  ;;  %v2290_v26 = vmul.f32 0.2, %v2226_v63  ;;  %v2338_v22 = vpack.c.bf16 %v2320_v5, %v2319_v9  ;;  %v15463_v27 = vld [vmem:[#allocation2 + $0x18] sm:$0xff] }
 0x209   : > { %v2188_v31 = vadd.f32 %v2092_v3, %v1870_v28  ;;  %v2189_v10 = vadd.f32 %v2157_v16, %v2093_v52  ;;  %vm18840_vm8 = vcmask 261120   ;;  %v2321_v17 = vsel %vm2257_vm15, %v2225_v7, %v2289_v44  ;;  %v2358_v44 = vld [vmem:[#allocation2] sm:$0xff]  ;;  %v15479_v3 = vld [vmem:[#allocation2 + $0x38] sm:$0xff]  ;;  %v15487_v16 = vld [vmem:[#allocation2 + $0x48] sm:$0xff] }
 0x20a   : > { %12700 = vmatmul.mubr.msk.bf16.gmra.mrb[56].mxu1 %vm18840_vm8, %v15435_v62  ;;  %v2322_v13 = vsel %vm2258_vm9, %v2226_v63, %v2290_v26  ;;  %vm18841_vm2 = vmmov %vm18840_vm8  ;;  %vm18846_vm8 = vcmask 31744   ;;  %v15473_v63 = vld [vmem:[#allocation2 + $0x30] sm:$0xff]  ;;  %v15481_v28 = vld [vmem:[#allocation2 + $0x40] sm:$0xff] }
 0x20b   : > { %v2227_v49 = vadd.f32 %v14952_v14, %v2188_v31  ;;  %2355 = vst.msk [vmem:[#allocation3 + $0x70] sm:$0xff] %vm18841_vm2, %v2338_v22  ;;  %v2339_v38 = vpack.c.bf16 %v2322_v13, %v2321_v17  ;;  %v2228_v61 = vadd.f32 %v14952_v14, %v2189_v10  ;;  %vm18842_vm0 = vmmov %vm18841_vm2  ;;  %v2359_v14 = vld [vmem:[#allocation2 + $0x8] sm:$0xff]  ;;  %v15489_v52 = vld [vmem:[#allocation2 + $0x50] sm:$0xff] }
 0x20c   : > { %vm18843_vm5 = vmmov %vm18842_vm0  ;;  %v15495_v5 = vld [vmem:[#allocation2 + $0x58] sm:$0xff]  ;;  %v15497_v26 = vld [vmem:[#allocation2 + $0x60] sm:$0xff] }
 0x20d   : > { %vm2259_vm1 = vcmp.ge.f32.partialorder %v2227_v49, 0.0  ;;  %v2291_v12 = vmul.f32 0.2, %v2227_v49  ;;  %2356 = vst.msk [vmem:[#allocation3 + $0x78] sm:$0xff] %vm18842_vm0, %v2339_v38  ;;  %vm2260_vm3 = vcmp.ge.f32.partialorder %v2228_v61, 0.0  ;;  %vm18844_vm15 = vmmov %vm18842_vm0  ;;  %v15503_v31 = vld [vmem:[#allocation2 + $0x68] sm:$0xff] }
 0x20e   : > { %v2292_v25 = vmul.f32 0.2, %v2228_v61  ;;  %vm18845_vm9 = vmmov %vm18842_vm0  ;;  %vm18847_vm0 = vcmask 1041408   ;;  %v15505_v22 = vld [vmem:[#allocation2 + $0x70] sm:$0xff]  ;;  %v15511_v10 = vld [vmem:[#allocation2 + $0x78] sm:$0xff] }
 0x20f   : > { %v2323_v35 = vsel %vm2259_vm1, %v2227_v49, %v2291_v12  ;;  %v2895_v18 = vsel %vm18847_vm0, %v15027_v19, 0  ;;  %v15471_v19 = vld [vmem:[#allocation2 + $0x28] sm:$0xff]  ;;  %v14322_v17 = vld [vmem:[%s18588_s6 + $0x18] sm:$0xff]   ;;  %v11643_v13 = vld [vmem:[%s18584_s2 + $0x4] sm:$0x3] }
 0x210   : > { %v2324_v43 = vsel %vm2260_vm3, %v2228_v61, %v2292_v25  ;;  %v2843_v49 = vld [vmem:[#allocation2 + $0x80] sm:$0xff]  ;;  %v3379_v12 = vld [vmem:[#allocation2 + $0x88] sm:$0xff] }
 0x211   : > { %v2340_v9 = vpack.c.bf16 %v2324_v43, %v2323_v35  ;;  %v14323_v61 = vld [vmem:[%s18588_s6 + $0x20] sm:$0xff]  }
 0x212   : > { %v15444_v7 = vld [vmem:[#allocation3 + $0x70] sm:$0xff] }
 0x213   : > { %2357 = vst.msk [vmem:[#allocation3 + $0x80] sm:$0xff] %vm18843_vm5, %v2340_v9  ;;  %12703 = vmatprep.mubr.msk.bf16.mxu1 %vm18844_vm15, %v15444_v7  ;;  %vm18848_vm5 = vmmov %vm18846_vm8  ;;  %v3626_v25 = vld [vmem:[#allocation3 + $0x10] sm:$0xff] }
 0x214   : > { %v15448_v6 = vld [vmem:[#allocation3 + $0x78] sm:$0xff]  ;;  %vm18849_vm3 = vmmov %vm18848_vm5 }
 0x215   : > { %12704 = vmatmul.mubr.msk.bf16.gmra.mrb[60].mxu1 %vm18845_vm9, %v15448_v6  ;;  %vm18850_vm2 = vmmov %vm18849_vm3 }
 0x216   : > { %12709 = vmatprep.mubr.msk.bf16.mxu1 %vm18846_vm8, %v2358_v44  ;;  %vm18851_vm1 = vmmov %vm18850_vm2 }
 0x217   : > { %vm18852_vm15 = vmmov %vm18851_vm1 }
 0x218   : > { %vm18853_vm9 = vmmov %vm18851_vm1 }
 0x219   : > { %vm18854_vm8 = vmmov %vm18851_vm1 }
 0x21a   : > { %vm18855_vm0 = vmmov %vm18851_vm1 }
 0x21d   : > { %12710 = vmatmul.mubr.msk.bf16.vlgmr.msra.gmra.mrb[32].mxu1 %vm18848_vm5, %v2359_v14  ;;  %vm18856_vm5 = vmmov %vm18855_vm0 }
 0x21e   : > { %12742 = vmatpush3.bf16.msra.mxu1 %v2895_v18  ;;  %12713 = vmatprep.mubr.msk.bf16.mxu1 %vm18849_vm3, %v15455_v30  ;;  %vm18857_vm3 = vmmov %vm18855_vm0 }
 0x21f   : > { %12775 = vmatprep.subr.bf16.mxu1 %v14321_v56 }
 0x225   : > { %12714 = vmatmul.mubr.msk.bf16.gmra.mrb[36].mxu1 %vm18850_vm2, %v15463_v27  ;;  %vm18858_vm2 = vmmov %vm18855_vm0 }
 0x226   : > { %12717 = vmatprep.mubr.msk.bf16.mxu1 %vm18851_vm1, %v15465_v47  ;;  %vm18859_vm1 = vmmov %vm18855_vm0 }
 0x22d   : > { %12718 = vmatmul.mubr.msk.bf16.gmra.mrb[40].mxu1 %vm18852_vm15, %v15471_v19  ;;  %vm18860_vm15 = vmmov %vm18855_vm0 }
 0x22e   : > { %12721 = vmatprep.mubr.msk.bf16.mxu1 %vm18853_vm9, %v15473_v63  ;;  %vm18861_vm9 = vmmov %vm18855_vm0 }
 0x235   : > { %12722 = vmatmul.mubr.msk.bf16.gmra.mrb[44].mxu1 %vm18854_vm8, %v15479_v3  ;;  %vm18862_vm8 = vmmov %vm18855_vm0 }
 0x236   : > { %12725 = vmatprep.mubr.msk.bf16.mxu1 %vm18855_vm0, %v15481_v28 }
 0x23d   : > { %12726 = vmatmul.mubr.msk.bf16.gmra.mrb[48].mxu1 %vm18856_vm5, %v15487_v16  ;;  %vm18863_vm5 = vmmov %vm18855_vm0 }
 0x23e   : > { %12729 = vmatprep.mubr.msk.bf16.mxu1 %vm18857_vm3, %v15489_v52  ;;  %vm18864_vm3 = vmmov %vm18855_vm0 }
 0x245   : > { %12730 = vmatmul.mubr.msk.bf16.gmra.mrb[52].mxu1 %vm18858_vm2, %v15495_v5  ;;  %vm18865_vm2 = vcmask 1041408  }
 0x246   : > { %12733 = vmatprep.mubr.msk.bf16.mxu1 %vm18859_vm1, %v15497_v26  ;;  %vm18866_vm1 = vmmov %vm18855_vm0 }
 0x24d   : > { %12734 = vmatmul.mubr.msk.bf16.gmra.mrb[56].mxu1 %vm18860_vm15, %v15503_v31  ;;  %vm18867_vm15 = vmmov %vm18855_vm0 }
 0x24e   : > { %12737 = vmatprep.mubr.msk.bf16.mxu1 %vm18861_vm9, %v15505_v22  ;;  %vm18868_vm9 = vmmov %vm18855_vm0 }
 0x255   : > { %12738 = vmatmul.mubr.msk.bf16.gmra.mrb[60].mxu1 %vm18862_vm8, %v15511_v10  ;;  %vm18869_vm8 = vmmov %vm18855_vm0 }
 0x256   : > { %12743 = vmatprep.mubr.msk.bf16.mxu1 %vm18855_vm0, %v2359_v14 }
 0x25d   : > { %12744 = vmatmul.mubr.msk.bf16.vlgmr.msra.gmra.mrb[32].mxu1 %vm18863_vm5, %v15455_v30  ;;  %vm18870_vm5 = vmmov %vm18855_vm0 }
 0x25e   : > { %12776 = vmatpush3.bf16.msra.mxu1 %v14321_v56  ;;  %12747 = vmatprep.mubr.msk.bf16.mxu1 %vm18864_vm3, %v15463_v27  ;;  %vm18871_vm3 = vmmov %vm18855_vm0 }
 0x25f   : > { %12777 = vmatprep.subr.bf16.mxu1 %v14322_v17 }
 0x262   : > { %12778 = vmatpush3.bf16.msra.mxu1 %v14322_v17 }
 0x263   : > { %14295 = vmatprep.subr.msk.bf16.mxu1 %vm18865_vm2, %v11643_v13  ;;  %vm18872_vm2 = vmmov %vm18855_vm0 }
 0x265   : > { %12748 = vmatmul.mubr.msk.bf16.gmra.mrb[36].mxu1 %vm18866_vm1, %v15465_v47  ;;  %vm18873_vm1 = vmmov %vm18855_vm0 }
 0x266   : > { %12751 = vmatprep.mubr.msk.bf16.mxu1 %vm18867_vm15, %v15471_v19  ;;  %vm18874_vm15 = vmmov %vm18855_vm0 }
 0x26d   : > { %12752 = vmatmul.mubr.msk.bf16.gmra.mrb[40].mxu1 %vm18868_vm9, %v15473_v63  ;;  %vm18875_vm9 = vmmov %vm18855_vm0 }
 0x26e   : > { %12755 = vmatprep.mubr.msk.bf16.mxu1 %vm18869_vm8, %v15479_v3  ;;  %vm18876_vm8 = vmmov %vm18855_vm0 }
 0x275   : > { %12756 = vmatmul.mubr.msk.bf16.gmra.mrb[44].mxu1 %vm18855_vm0, %v15481_v28 }
 0x276   : > { %12759 = vmatprep.mubr.msk.bf16.mxu1 %vm18870_vm5, %v15487_v16  ;;  %vm18877_vm5 = vcmask 261120  }
 0x27d   : > { %12760 = vmatmul.mubr.msk.bf16.gmra.mrb[48].mxu1 %vm18871_vm3, %v15489_v52  ;;  %vm18878_vm3 = vcmask 1041408  }
 0x27e   : > { %12763 = vmatprep.mubr.msk.bf16.mxu1 %vm18872_vm2, %v15495_v5  ;;  %v3431_v38 = vsel %vm18878_vm3, %v11643_v13, 0  ;;  %vm18879_vm2 = vmmov %vm18877_vm5 }
 0x285   : > { %12764 = vmatmul.mubr.msk.bf16.gmra.mrb[52].mxu1 %vm18873_vm1, %v15497_v26  ;;  %vm18880_vm1 = vmmov %vm18879_vm2 }
 0x286   : > { %12767 = vmatprep.mubr.msk.bf16.mxu1 %vm18874_vm15, %v15503_v31  ;;  %vm18881_vm15 = vmmov %vm18880_vm1 }
 0x28d   : > { %12768 = vmatmul.mubr.msk.bf16.gmra.mrb[56].mxu1 %vm18875_vm9, %v15505_v22  ;;  %vm18882_vm9 = vmmov %vm18880_vm1 }
 0x28e   : > { %12771 = vmatprep.mubr.msk.bf16.mxu1 %vm18876_vm8, %v15511_v10  ;;  %vm18883_vm8 = vmmov %vm18880_vm1 }
 0x295   : > { %12772 = vmatmul.mubr.msk.bf16.gmra.mrb[60].mxu1 %vm18855_vm0, %v2843_v49  ;;  %vm18884_vm0 = vmmov %vm18880_vm1 }
 0x296   : > { %12779 = vmatprep.mubr.msk.bf16.mxu1 %vm18877_vm5, %v15022_v50  ;;  %vm18885_vm5 = vmmov %vm18884_vm0  ;;  %v3105_v50 = vld [vmem:[#allocation3 + $0x80] sm:$0xff] }
 0x297   : > { %vm18886_vm3 = vmmov %vm18884_vm0 }
 0x29d   : > { %12780 = vmatmul.mubr.msk.bf16.vlgmr.msra.gmra.mrb[32].mxu1 %vm18879_vm2, %v15063_v33  ;;  %vm18887_vm2 = vmmov %vm18884_vm0  ;;  %v14324_v33 = vld [vmem:[%s18588_s6 + $0x28] sm:$0xff]  }
 0x29e   : > { %12812 = vmatpush3.bf16.msra.mxu1 %v3431_v38  ;;  %12783 = vmatprep.mubr.msk.bf16.mxu1 %vm18880_vm1, %v15103_v54  ;;  %vm18888_vm1 = vmmov %vm18884_vm0 }
 0x29f   : > { %12845 = vmatprep.subr.bf16.mxu1 %v14323_v61 }
 0x2a5   : > { %12784 = vmatmul.mubr.msk.bf16.gmra.mrb[36].mxu1 %vm18881_vm15, %v15127_v59  ;;  %vm18889_vm15 = vmmov %vm18884_vm0 }
 0x2a6   : > { %12787 = vmatprep.mubr.msk.bf16.mxu1 %vm18882_vm9, %v15166_v42  ;;  %vm18890_vm9 = vmmov %vm18884_vm0 }
 0x2ad   : > { %12788 = vmatmul.mubr.msk.bf16.gmra.mrb[40].mxu1 %vm18883_vm8, %v15190_v36  ;;  %vm18891_vm8 = vmmov %vm18884_vm0 }
 0x2ae   : > { %12791 = vmatprep.mubr.msk.bf16.mxu1 %vm18884_vm0, %v15229_v39 }
 0x2b5   : > { %12792 = vmatmul.mubr.msk.bf16.gmra.mrb[44].mxu1 %vm18885_vm5, %v15255_v41  ;;  %vm18892_vm5 = vmmov %vm18884_vm0 }
 0x2b6   : > { %12795 = vmatprep.mubr.msk.bf16.mxu1 %vm18886_vm3, %v15294_v60  ;;  %vm18893_vm3 = vcmask 31744  }
 0x2bd   : > { %12796 = vmatmul.mubr.msk.bf16.gmra.mrb[48].mxu1 %vm18887_vm2, %v15335_v37  ;;  %vm18894_vm2 = vmmov %vm18893_vm3 }
 0x2be   : > { %12799 = vmatprep.mubr.msk.bf16.mxu1 %vm18888_vm1, %v15364_v58  ;;  %vm18895_vm1 = vmmov %vm18894_vm2 }
 0x2c5   : > { %12800 = vmatmul.mubr.msk.bf16.gmra.mrb[52].mxu1 %vm18889_vm15, %v15411_v51  ;;  %vm18896_vm15 = vmmov %vm18895_vm1 }
 0x2c6   : > { %12803 = vmatprep.mubr.msk.bf16.mxu1 %vm18890_vm9, %v15435_v62  ;;  %vm18897_vm9 = vmmov %vm18895_vm1 }
 0x2cd   : > { %12804 = vmatmul.mubr.msk.bf16.gmra.mrb[56].mxu1 %vm18891_vm8, %v15444_v7  ;;  %vm18898_vm8 = vmmov %vm18895_vm1 }
 0x2ce   : > { %12807 = vmatprep.mubr.msk.bf16.mxu1 %vm18884_vm0, %v15448_v6  ;;  %vm18899_vm0 = vmmov %vm18895_vm1 }
 0x2d5   : > { %12808 = vmatmul.mubr.msk.bf16.gmra.mrb[60].mxu1 %vm18892_vm5, %v3105_v50  ;;  %vm18900_vm5 = vmmov %vm18899_vm0 }
 0x2d6   : > { %12813 = vmatprep.mubr.msk.bf16.mxu1 %vm18893_vm3, %v15455_v30  ;;  %vm18901_vm3 = vmmov %vm18899_vm0 }
 0x2dd   : > { %12814 = vmatmul.mubr.msk.bf16.vlgmr.msra.gmra.mrb[32].mxu1 %vm18894_vm2, %v15463_v27  ;;  %vm18902_vm2 = vmmov %vm18899_vm0 }
 0x2de   : > { %12846 = vmatpush3.bf16.msra.mxu1 %v14323_v61  ;;  %12817 = vmatprep.mubr.msk.bf16.mxu1 %vm18895_vm1, %v15465_v47  ;;  %vm18903_vm1 = vmmov %vm18899_vm0 }
 0x2df   : > { %12847 = vmatprep.subr.bf16.mxu1 %v14324_v33 }
 0x2e2   : > { %12848 = vmatpush3.bf16.msra.mxu1 %v14324_v33 }
 0x2e5   : > { %12818 = vmatmul.mubr.msk.bf16.gmra.mrb[36].mxu1 %vm18896_vm15, %v15471_v19  ;;  %vm18904_vm15 = vmmov %vm18899_vm0 }
 0x2e6   : > { %12821 = vmatprep.mubr.msk.bf16.mxu1 %vm18897_vm9, %v15473_v63  ;;  %vm18905_vm9 = vmmov %vm18899_vm0 }
 0x2ed   : > { %12822 = vmatmul.mubr.msk.bf16.gmra.mrb[40].mxu1 %vm18898_vm8, %v15479_v3  ;;  %vm18906_vm8 = vmmov %vm18899_vm0 }
 0x2ee   : > { %12825 = vmatprep.mubr.msk.bf16.mxu1 %vm18899_vm0, %v15481_v28 }
 0x2f5   : > { %12826 = vmatmul.mubr.msk.bf16.gmra.mrb[44].mxu1 %vm18900_vm5, %v15487_v16  ;;  %vm18907_vm5 = vmmov %vm18899_vm0 }
 0x2f6   : > { %12829 = vmatprep.mubr.msk.bf16.mxu1 %vm18901_vm3, %v15489_v52  ;;  %vm18908_vm3 = vcmask 261120  }
 0x2fd   : > { %12830 = vmatmul.mubr.msk.bf16.gmra.mrb[48].mxu1 %vm18902_vm2, %v15495_v5  ;;  %vm18909_vm2 = vmmov %vm18908_vm3 }
 0x2fe   : > { %12833 = vmatprep.mubr.msk.bf16.mxu1 %vm18903_vm1, %v15497_v26  ;;  %vm18910_vm1 = vmmov %vm18909_vm2 }
 0x305   : > { %12834 = vmatmul.mubr.msk.bf16.gmra.mrb[52].mxu1 %vm18904_vm15, %v15503_v31  ;;  %vm18911_vm15 = vmmov %vm18910_vm1 }
 0x306   : > { %12837 = vmatprep.mubr.msk.bf16.mxu1 %vm18905_vm9, %v15505_v22  ;;  %vm18912_vm9 = vmmov %vm18910_vm1 }
 0x30d   : > { %12838 = vmatmul.mubr.msk.bf16.gmra.mrb[56].mxu1 %vm18906_vm8, %v15511_v10  ;;  %vm18913_vm8 = vmmov %vm18910_vm1 }
 0x30e   : > { %12841 = vmatprep.mubr.msk.bf16.mxu1 %vm18899_vm0, %v2843_v49  ;;  %vm18914_vm0 = vmmov %vm18910_vm1 }
 0x315   : > { %12842 = vmatmul.mubr.msk.bf16.gmra.mrb[60].mxu1 %vm18907_vm5, %v3379_v12  ;;  %vm18915_vm5 = vmmov %vm18914_vm0 }
 0x316   : > { %12849 = vmatprep.mubr.msk.bf16.mxu1 %vm18908_vm3, %v3626_v25  ;;  %vm18916_vm3 = vmmov %vm18914_vm0 }
 0x31d   : > { %12850 = vmatmul.mubr.msk.bf16.vlgmr.msra.gmra.mrb[32].mxu1 %vm18909_vm2, %v15103_v54  ;;  %vm18917_vm2 = vmmov %vm18914_vm0  ;;  %v15648_v54 = vld [vmem:[#allocation3] sm:$0xff] }
 0x31e   : > { %12853 = vmatprep.mubr.msk.bf16.mxu1 %vm18910_vm1, %v15127_v59  ;;  %vm18918_vm1 = vmmov %vm18914_vm0 }
 0x325   : > { %12854 = vmatmul.mubr.msk.bf16.gmra.mrb[36].mxu1 %vm18911_vm15, %v15166_v42  ;;  %vm18919_vm15 = vmmov %vm18914_vm0 }
 0x326   : > { %12857 = vmatprep.mubr.msk.bf16.mxu1 %vm18912_vm9, %v15190_v36  ;;  %vm18920_vm9 = vmmov %vm18914_vm0 }
 0x32d   : > { %12858 = vmatmul.mubr.msk.bf16.gmra.mrb[40].mxu1 %vm18913_vm8, %v15229_v39  ;;  %vm18921_vm8 = vmmov %vm18914_vm0 }
 0x32e   : > { %12861 = vmatprep.mubr.msk.bf16.mxu1 %vm18914_vm0, %v15255_v41 }
 0x335   : > { %12862 = vmatmul.mubr.msk.bf16.gmra.mrb[44].mxu1 %vm18915_vm5, %v15294_v60  ;;  %vm18922_vm5 = vmmov %vm18914_vm0 }
 0x336   : > { %12865 = vmatprep.mubr.msk.bf16.mxu1 %vm18916_vm3, %v15335_v37  ;;  %vm18923_vm3 = vcmp.lt.s32.totalorder %v14630_v32, 1 }
 0x33d   : > { %12866 = vmatmul.mubr.msk.bf16.gmra.mrb[48].mxu1 %vm18917_vm2, %v15364_v58  ;;  %vm18924_vm2 = vmmov %vm18923_vm3 }
 0x33e   : > { %12869 = vmatprep.mubr.msk.bf16.mxu1 %vm18918_vm1, %v15411_v51  ;;  %vm18925_vm1 = vmmov %vm18924_vm2 }
 0x345   : > { %12870 = vmatmul.mubr.msk.bf16.gmra.mrb[52].mxu1 %vm18919_vm15, %v15435_v62  ;;  %vm18926_vm15 = vmmov %vm18925_vm1 }
 0x346   : > { %12873 = vmatprep.mubr.msk.bf16.mxu1 %vm18920_vm9, %v15444_v7  ;;  %vm18927_vm9 = vmmov %vm18925_vm1 }
 0x34d   : > { %12874 = vmatmul.mubr.msk.bf16.gmra.mrb[56].mxu1 %vm18921_vm8, %v15448_v6  ;;  %vm18928_vm8 = vmmov %vm18925_vm1 }
 0x34e   : > { %12877 = vmatprep.mubr.msk.bf16.mxu1 %vm18914_vm0, %v3105_v50  ;;  %vm18929_vm0 = vmmov %vm18925_vm1 }
 0x355   : > { %12878 = vmatmul.mubr.msk.bf16.gmra.mrb[60].mxu1 %vm18922_vm5, %v15648_v54  ;;  %vm18930_vm5 = vmmov %vm18929_vm0 }
 0x3f0   : > { %v12851_v59 = vpop.f32.mrb[32].mxu1 }
 0x3f1   : > { %4000 = vrot.lane.b32.xlu1 %v12851_v59, %s14393_s16  ;;  %v15653_v42 = vpop.f32.mrb[33].mxu1  ;;  %v3902_v60 = vrot.slane %v12851_v59, 7 }
 0x3f2   : > { %3996 = vrot.lane.b32.xlu0 %v15653_v42, %s14393_s16  ;;  %v12852_v36 = vpop.f32.mrb[34].mxu1  ;;  %v18678_v37 = vrot.slane %v15653_v42, 7 }
 0x3f3   : > { %v3903_v39 = vrot.slane %v12852_v36, 7  ;;  %v3744_v41 = vpop.f32.mrb[35].mxu1 }
 0x3f4   : > { %v3901_v58 = vrot.slane %v3744_v41, 7 }
 0x3f5   : > { %4192 = vrot.lane.b32.xlu1 %v12851_v59, %s14392_s30  ;;  %v15661_v51 = vsel %vm18923_vm3, %v3902_v60, %v3903_v39  ;;  %vm18931_vm3 = vmmov %vm18929_vm0 }
 0x3f6   : > { %4194 = vrot.lane.b32.xlu0 %v12852_v36, %s14392_s30  ;;  %v15666_v62 = vsel %vm18924_vm2, %v3901_v58, %v3902_v60  ;;  %v15672_v35 = vsel %vm18925_vm1, %v18678_v37, %v3901_v58  ;;  %vm18932_vm2 = vmmov %vm18929_vm0 }
 0x3f7   : > { %vm18933_vm1 = vmmov %vm18929_vm0 }
 0x3f8   : > { %v12855_v43 = vpop.f32.mrb[36].mxu1 }
 0x3f9   : > { %4188 = vrot.lane.b32.xlu1 %v15653_v42, %s14392_s30  ;;  %v3757_v9 = vpop.f32.mrb[37].mxu1  ;;  %v3906_v6 = vrot.slane %v12855_v43, 7 }
 0x3fa   : > { %v3904_v7 = vrot.slane %v3757_v9, 7  ;;  %3998 = vrot.lane.b32.xlu0 %v3744_v41, %s14393_s16  ;;  %v12856_v44 = vpop.f32.mrb[38].mxu1 }
 0x3fb   : > { %v3907_v14 = vrot.slane %v12856_v44, 7  ;;  %v3760_v18 = vpop.f32.mrb[39].mxu1 }
 0x3fc   : > { %v3905_v30 = vrot.slane %v3760_v18, 7  ;;  %v15679_v56 = vsel %vm18926_vm15, %v3903_v39, %v3904_v7  ;;  %vm18934_vm15 = vmmov %vm18929_vm0 }
 0x3fd   : > { %4002 = vrot.lane.b32.xlu1 %v12852_v36, %s14393_s16  ;;  %v15684_v27 = vsel %vm18927_vm9, %v3906_v6, %v3907_v14  ;;  %vm18935_vm9 = vmmov %vm18929_vm0 }
 0x3fe   : > { %4190 = vrot.lane.b32.xlu0 %v3744_v41, %s14392_s30  ;;  %v15689_v47 = vsel %vm18928_vm8, %v3905_v30, %v3906_v6  ;;  %v15693_v19 = vsel %vm18929_vm0, %v3904_v7, %v3905_v30  ;;  %vm18936_vm8 = vmmov %vm18929_vm0 }
 0x400   : > { %v12859_v63 = vpop.f32.mrb[40].mxu1 }
 0x401   : > { %4200 = vrot.lane.b32.xlu1 %v12855_v43, %s14392_s30  ;;  %v3773_v3 = vpop.f32.mrb[41].mxu1  ;;  %v3910_v52 = vrot.slane %v12859_v63, 7 }
 0x402   : > { %v3908_v28 = vrot.slane %v3773_v3, 7  ;;  %4008 = vrot.lane.b32.xlu0 %v12855_v43, %s14393_s16  ;;  %v12860_v16 = vpop.f32.mrb[42].mxu1 }
 0x403   : > { %v3911_v5 = vrot.slane %v12860_v16, 7  ;;  %v3776_v26 = vpop.f32.mrb[43].mxu1 }
 0x404   : > { %v3909_v31 = vrot.slane %v3776_v26, 7  ;;  %v15699_v22 = vsel %vm18930_vm5, %v3907_v14, %v3908_v28  ;;  %vm18937_vm5 = vmmov %vm18929_vm0 }
 0x405   : > { %4196 = vrot.lane.b32.xlu1 %v3757_v9, %s14392_s30  ;;  %v15704_v10 = vsel %vm18931_vm3, %v3910_v52, %v3911_v5  ;;  %vm18938_vm3 = vmmov %vm18929_vm0 }
 0x406   : > { %4004 = vrot.lane.b32.xlu0 %v3757_v9, %s14393_s16  ;;  %v15709_v17 = vsel %vm18932_vm2, %v3909_v31, %v3910_v52  ;;  %v15713_v13 = vsel %vm18933_vm1, %v3908_v28, %v3909_v31  ;;  %vm18939_vm2 = vmmov %vm18929_vm0 }
 0x407   : > { %vm18940_vm1 = vmmov %vm18929_vm0 }
 0x408   : > { %v12863_v49 = vpop.f32.mrb[44].mxu1 }
 0x409   : > { %4010 = vrot.lane.b32.xlu1 %v12856_v44, %s14393_s16  ;;  %v3789_v38 = vpop.f32.mrb[45].mxu1  ;;  %v3914_v33 = vrot.slane %v12863_v49, 7 }
 0x40a   : > { %v3912_v61 = vrot.slane %v3789_v38, 7  ;;  %4202 = vrot.lane.b32.xlu0 %v12856_v44, %s14392_s30  ;;  %v12864_v50 = vpop.f32.mrb[46].mxu1 }
 0x40b   : > { %v3915_v12 = vrot.slane %v12864_v50, 7  ;;  %v15717_v25 = vpop.f32.mrb[47].mxu1 }
 0x40c   : > { %v3913_v59 = vrot.slane %v15717_v25, 7  ;;  %v15722_v36 = vsel %vm18934_vm15, %v3911_v5, %v3912_v61  ;;  %vm18941_vm15 = vmmov %vm18929_vm0 }
 0x40d   : > { %4006 = vrot.lane.b32.xlu1 %v3760_v18, %s14393_s16  ;;  %v15727_v60 = vsel %vm18935_vm9, %v3914_v33, %v3915_v12  ;;  %vm18942_vm9 = vmmov %vm18929_vm0 }
 0x40e   : > { %4198 = vrot.lane.b32.xlu0 %v3760_v18, %s14392_s30  ;;  %v15732_v39 = vsel %vm18936_vm8, %v3913_v59, %v3914_v33  ;;  %v15736_v41 = vsel %vm18929_vm0, %v3912_v61, %v3913_v59  ;;  %vm18944_vm8 = vmmov %vm18929_vm0 }
 0x410   : > { %v15738_v58 = vpop.f32.mrb[48].mxu1 }
 0x411   : > { %4208 = vrot.lane.b32.xlu1 %v12859_v63, %s14392_s30  ;;  %v15741_v43 = vpop.f32.mrb[49].mxu1  ;;  %v3918_v44 = vrot.slane %v15738_v58, 7 }
 0x412   : > { %v3916_v9 = vrot.slane %v15741_v43, 7  ;;  %4016 = vrot.lane.b32.xlu0 %v12859_v63, %s14393_s16  ;;  %v15745_v7 = vpop.f32.mrb[50].mxu1 }
 0x413   : > { %v3919_v6 = vrot.slane %v15745_v7, 7  ;;  %v15749_v14 = vpop.f32.mrb[51].mxu1 }
 0x414   : > { %v3917_v18 = vrot.slane %v15749_v14, 7  ;;  %v15754_v30 = vsel %vm18937_vm5, %v3915_v12, %v3916_v9  ;;  %vm18945_vm5 = vmmov %vm18929_vm0 }
 0x415   : > { %4204 = vrot.lane.b32.xlu1 %v3773_v3, %s14392_s30  ;;  %v15759_v28 = vsel %vm18938_vm3, %v3918_v44, %v3919_v6  ;;  %vm18947_vm3 = vmmov %vm18929_vm0 }
 0x416   : > { %4012 = vrot.lane.b32.xlu0 %v3773_v3, %s14393_s16  ;;  %v15764_v63 = vsel %vm18939_vm2, %v3917_v18, %v3918_v44  ;;  %v15768_v52 = vsel %vm18940_vm1, %v3916_v9, %v3917_v18  ;;  %vm18949_vm2 = vmmov %vm18929_vm0 }
 0x417   : > { %vm18951_vm1 = vmmov %vm18929_vm0 }
 0x418   : > { %v12871_v5 = vpop.f32.mrb[52].mxu1 }
 0x419   : > { %4018 = vrot.lane.b32.xlu1 %v12860_v16, %s14393_s16  ;;  %v3821_v31 = vpop.f32.mrb[53].mxu1  ;;  %v3922_v12 = vrot.slane %v12871_v5, 7 }
 0x41a   : > { %v3920_v61 = vrot.slane %v3821_v31, 7  ;;  %4210 = vrot.lane.b32.xlu0 %v12860_v16, %s14392_s30  ;;  %v12872_v33 = vpop.f32.mrb[54].mxu1 }
 0x41b   : > { %v3923_v59 = vrot.slane %v12872_v33, 7  ;;  %v3824_v37 = vpop.f32.mrb[55].mxu1 }
 0x41c   : > { %v3921_v3 = vrot.slane %v3824_v37, 7  ;;  %v15774_v44 = vsel %vm18941_vm15, %v3919_v6, %v3920_v61  ;;  %vm18954_vm15 = vmmov %vm18929_vm0 }
 0x41d   : > { %4014 = vrot.lane.b32.xlu1 %v3776_v26, %s14393_s16  ;;  %v15779_v9 = vsel %vm18942_vm9, %v3922_v12, %v3923_v59  ;;  %vm18956_vm9 = vmmov %vm18929_vm0 }
 0x41e   : > { %18943 = vst [vmem:[#allocation26_spill] sm:$0xff] %v15779_v9  ;;  %4206 = vrot.lane.b32.xlu0 %v3776_v26, %s14392_s30  ;;  %v15784_v16 = vsel %vm18944_vm8, %v3921_v3, %v3922_v12  ;;  %v15788_v18 = vsel %vm18929_vm0, %v3920_v61, %v3921_v3  ;;  %vm18957_vm8 = vmmov %vm18929_vm0 }
 0x420   : > { %v12875_v48 = vpop.f32.mrb[56].mxu1 }
 0x421   : > { %4216 = vrot.lane.b32.xlu1 %v12863_v49, %s14392_s30  ;;  %v3837_v6 = vpop.f32.mrb[57].mxu1  ;;  %v3926_v1 = vrot.slane %v12875_v48, 7 }
 0x422   : > { %v3924_v11 = vrot.slane %v3837_v6, 7  ;;  %4024 = vrot.lane.b32.xlu0 %v12863_v49, %s14393_s16  ;;  %v12876_v55 = vpop.f32.mrb[58].mxu1 }
 0x423   : > { %v3927_v24 = vrot.slane %v12876_v55, 7  ;;  %v3840_v45 = vpop.f32.mrb[59].mxu1 }
 0x424   : > { %v3925_v26 = vrot.slane %v3840_v45, 7  ;;  %v15794_v12 = vsel %vm18945_vm5, %v3923_v59, %v3924_v11  ;;  %vm18958_vm5 = vmmov %vm18929_vm0 }
 0x425   : > { %18946 = vst [vmem:[#allocation27_spill] sm:$0xff] %v15794_v12  ;;  %4212 = vrot.lane.b32.xlu1 %v3789_v38, %s14392_s30  ;;  %v15799_v61 = vsel %vm18947_vm3, %v3926_v1, %v3927_v24  ;;  %vm18959_vm3 = vcmp.lt.s32.totalorder %v14630_v32, 7 }
 0x426   : > { %18948 = vst [vmem:[#allocation28_spill] sm:$0xff] %v15799_v61  ;;  %4020 = vrot.lane.b32.xlu0 %v3789_v38, %s14393_s16  ;;  %v15804_v49 = vsel %vm18949_vm2, %v3925_v26, %v3926_v1  ;;  %v15808_v3 = vsel %vm18951_vm1, %v3924_v11, %v3925_v26  ;;  %v18955_v26 = vrot.slane %v15653_v42, 7  ;;  %vm18960_vm2 = vmmov %vm18959_vm3  ;;  %vm18696_vm1 = vcmask 523264  }
 0x427   : > { %18950 = vst [vmem:[#allocation29_spill] sm:$0xff] %v15804_v49  ;;  %18952 = vst [vmem:[#allocation30_spill] sm:$0xff] %v15808_v3  ;;  %12889 = vmatprep.mubr.msk.bf16.mxu0 %vm18696_vm1, %v15648_v54 }
 0x428   : > { %v15810_v23 = vpop.f32.mrb[60].mxu1 }
 0x429   : > { %4026 = vrot.lane.b32.xlu1 %v12864_v50, %s14393_s16  ;;  %v3853_v59 = vpop.f32.mrb[61].mxu1  ;;  %v3930_v38 = vrot.slane %v15810_v23, 7 }
 0x42a   : > { %v3928_v12 = vrot.slane %v3853_v59, 7  ;;  %4218 = vrot.lane.b32.xlu0 %v12864_v50, %s14392_s30  ;;  %v15814_v9 = vpop.f32.mrb[62].mxu1 }
 0x42b   : > { %18953 = vst [vmem:[#allocation31_spill] sm:$0xff] %v15814_v9  ;;  %v3931_v61 = vrot.slane %v15814_v9, 7  ;;  %v3856_v1 = vpop.f32.mrb[63].mxu1 }
 0x42c   : > { %v3929_v49 = vrot.slane %v3856_v1, 7  ;;  %v15820_v11 = vsel %vm18954_vm15, %v3927_v24, %v3928_v12  ;;  %vm18961_vm15 = vmmov %vm18960_vm2 }
 0x42d   : > { %4022 = vrot.lane.b32.xlu1 %v15717_v25, %s14393_s16  ;;  %v3963_v50 = vsel %vm18956_vm9, %v3931_v61, %v18955_v26  ;;  %v15830_v3 = vsel %vm18957_vm8, %v3930_v38, %v3931_v61 }
 0x42e   : > { %4214 = vrot.lane.b32.xlu0 %v15717_v25, %s14392_s30  ;;  %v15836_v9 = vsel %vm18929_vm0, %v3928_v12, %v3929_v49  ;;  %v15840_v24 = vsel %vm18958_vm5, %v3929_v49, %v3930_v38  ;;  %v14328_v38 = vld [vmem:[%s18589_s7 + $0x18] sm:$0xff]   ;;  %vm18962_vm0 = vmmov %vm18960_vm2 }
 0x431   : > { %4224 = vrot.lane.b32.xlu1 %v15738_v58, %s14392_s30 }
 0x432   : > { %4032 = vrot.lane.b32.xlu0 %v15738_v58, %s14393_s16 }
 0x435   : > { %4220 = vrot.lane.b32.xlu1 %v15741_v43, %s14392_s30 }
 0x436   : > { %4028 = vrot.lane.b32.xlu0 %v15741_v43, %s14393_s16 }
 0x439   : > { %4034 = vrot.lane.b32.xlu1 %v15745_v7, %s14393_s16 }
 0x43a   : > { %4226 = vrot.lane.b32.xlu0 %v15745_v7, %s14392_s30 }
 0x43d   : > { %4030 = vrot.lane.b32.xlu1 %v15749_v14, %s14393_s16 }
 0x43e   : > { %4222 = vrot.lane.b32.xlu0 %v15749_v14, %s14392_s30 }
 0x441   : > { %4232 = vrot.lane.b32.xlu1 %v12871_v5, %s14392_s30 }
 0x442   : > { %4040 = vrot.lane.b32.xlu0 %v12871_v5, %s14393_s16  ;;  %v4156_v5 = vsel %vm14933_vm4, %v3963_v50, 0.0 }
 0x445   : > { %4228 = vrot.lane.b32.xlu1 %v3821_v31, %s14392_s30 }
 0x446   : > { %4036 = vrot.lane.b32.xlu0 %v3821_v31, %s14393_s16 }
 0x449   : > { %4042 = vrot.lane.b32.xlu1 %v12872_v33, %s14393_s16 }
 0x44a   : > { %4234 = vrot.lane.b32.xlu0 %v12872_v33, %s14392_s30 }
 0x44d   : > { %4038 = vrot.lane.b32.xlu1 %v3824_v37, %s14393_s16 }
 0x44e   : > { %4230 = vrot.lane.b32.xlu0 %v3824_v37, %s14392_s30 }
 0x451   : > { %4236 = vrot.lane.b32.xlu1 %v3837_v6, %s14392_s30 }
 0x452   : > { %4048 = vrot.lane.b32.xlu0 %v12875_v48, %s14393_s16 }
 0x455   : > { %4050 = vrot.lane.b32.xlu1 %v12876_v55, %s14393_s16 }
 0x456   : > { %4044 = vrot.lane.b32.xlu0 %v3837_v6, %s14393_s16  ;;  %v15894_v6 = vld [vmem:[%s18593_s11] ss:$0 sm:$0xff] }
 0x459   : > { %4046 = vrot.lane.b32.xlu1 %v3840_v45, %s14393_s16 }
 0x45a   : > { %4242 = vrot.lane.b32.xlu0 %v12876_v55, %s14392_s30  ;;  %v14325_v55 = vld [vmem:[%s18589_s7] sm:$0xff]  }
 0x45b   : > { %12881 = vmatprep.subr.bf16.mxu0 %v14325_v55 }
 0x45c   : > { %12882 = vmatpush3.bf16.msra.mxu0 %v14325_v55 }
 0x45d   : > { %4240 = vrot.lane.b32.xlu1 %v12875_v48, %s14392_s30 }
 0x45e   : > { %4238 = vrot.lane.b32.xlu0 %v3840_v45, %s14392_s30  ;;  %v14326_v45 = vld [vmem:[%s18589_s7 + $0x8] sm:$0xff]  }
 0x45f   : > { %12883 = vmatprep.subr.bf16.mxu0 %v14326_v45 }
 0x460   : > { %12884 = vmatpush3.bf16.msra.mxu0 %v14326_v45 }
 0x461   : > { %4054 = vrot.lane.b32.xlu1 %v3856_v1, %s14393_s16 }
 0x462   : > { %4056 = vrot.lane.b32.xlu0 %v15810_v23, %s14393_s16 }
 0x463   : > { %v4001_v42 = vpop.permute.xlu1 %4000 }
 0x464   : > { %v15877_v37 = vpop.permute.xlu0 %3996  ;;  %v4094_v7 = vrot.slane %v4001_v42, 1 }
 0x465   : > { %4244 = vrot.lane.b32.xlu1 %v3853_v59, %s14392_s30  ;;  %v18695_v14 = vrot.slane %v15877_v37, 1 }
 0x466   : > { %4052 = vrot.lane.b32.xlu0 %v3853_v59, %s14393_s16  ;;  %v14327_v59 = vld [vmem:[%s18589_s7 + $0x10] sm:$0xff]  }
 0x467   : > { %v4193_v25 = vpop.permute.xlu1 %4192  ;;  %12885 = vmatprep.subr.bf16.mxu0 %v14327_v59 }
 0x468   : > { %v4195_v48 = vpop.permute.xlu0 %4194  ;;  %12886 = vmatpush3.bf16.msra.mxu0 %v14327_v59 }
 0x469   : > { %12887 = vmatprep.subr.bf16.mxu0 %v14328_v38 }
 0x46a   : > { %4246 = vrot.lane.b32.xlu0 %v3856_v1, %s14392_s30 }
 0x46b   : > { %v4189_v58 = vpop.permute.xlu1 %4188 }
 0x46c   : > { %v3999_v43 = vpop.permute.xlu0 %3998  ;;  %v4284_v33 = vadd.f32 %v4189_v58, %v4156_v5  ;;  %v4158_v5 = vsel %vm14964_vm7, %v15666_v62, 0.0  ;;  %12888 = vmatpush3.bf16.msra.mxu0 %v14328_v38  ;;  %v4287_v62 = vadd.f32 %v4195_v48, %v15661_v51 }
 0x46d   : > { %v4093_v31 = vrot.slane %v3999_v43, 1 }
 0x46f   : > { %v4154_v12 = vsel %vm18959_vm3, %v18695_v14, %v4093_v31  ;;  %v4003_v61 = vpop.permute.xlu1 %4002  ;;  %v4153_v49 = vsel %vm18960_vm2, %v4093_v31, %v4094_v7  ;;  %vm18963_vm2 = vmmov %vm18962_vm0 }
 0x470   : > { %v4348_v1 = vadd.f32 %v4284_v33, %v4154_v12  ;;  %v4095_v26 = vrot.slane %v4003_v61, 1  ;;  %v4191_v50 = vpop.permute.xlu0 %4190  ;;  %v4317_v45 = vsel %vm14960_vm6, %v4153_v49, 0.0  ;;  %v4286_v33 = vadd.f32 %v4193_v25, %v4158_v5 }
 0x471   : > { %v4285_v42 = vadd.f32 %v4191_v50, %v15672_v35 }
 0x472   : > { %v4387_v55 = vadd.f32 %v15894_v6, %v4348_v1  ;;  %v4152_v31 = vsel %vm18961_vm15, %v4094_v7, %v4095_v26  ;;  %vm18964_vm15 = vmmov %vm18962_vm0 }
 0x473   : > { %v4349_v58 = vadd.f32 %v4317_v45, %v4285_v42  ;;  %v4201_v43 = vpop.permute.xlu1 %4200  ;;  %v4350_v61 = vadd.f32 %v4286_v33, %v4152_v31 }
 0x474   : > { %v4009_v54 = vpop.permute.xlu0 %4008  ;;  %v4451_v12 = vmul.f32 0.2, %v4387_v55  ;;  %vm4419_vm9 = vcmp.ge.f32.partialorder %v4387_v55, 0.0 }
 0x475   : > { %v4388_v35 = vadd.f32 %v15894_v6, %v4349_v58  ;;  %v4389_v7 = vadd.f32 %v15894_v6, %v4350_v61 }
 0x476   : > { %v4483_v42 = vsel %vm4419_vm9, %v4387_v55, %v4451_v12  ;;  %v4160_v55 = vsel %vm14997_vm11, %v15679_v56, 0.0  ;;  %vm18967_vm9 = vmmov %vm18962_vm0 }
 0x477   : > { %vm4420_vm8 = vcmp.ge.f32.partialorder %v4388_v35, 0.0  ;;  %v4452_v49 = vmul.f32 0.2, %v4388_v35  ;;  %v4197_v59 = vpop.permute.xlu1 %4196  ;;  %v4453_v33 = vmul.f32 0.2, %v4389_v7  ;;  %vm4421_vm5 = vcmp.ge.f32.partialorder %v4389_v7, 0.0 }
 0x478   : > { %v4005_v1 = vpop.permute.xlu0 %4004 }
 0x479   : > { %v4096_v50 = vrot.slane %v4005_v1, 1  ;;  %v4484_v45 = vsel %vm4420_vm8, %v4388_v35, %v4452_v49  ;;  %v4098_v35 = vrot.slane %v4009_v54, 1  ;;  %v4288_v49 = vadd.f32 %v4197_v59, %v4160_v55 }
 0x47a   : > { %v4515_v14 = vpack.c.bf16 %v4484_v45, %v4483_v42  ;;  %v4162_v59 = vsel %vm15002_vm13, %v15689_v47, 0.0 }
 0x47b   : > { %v4151_v25 = vsel %vm18962_vm0, %v4095_v26, %v4096_v50  ;;  %v4011_v58 = vpop.permute.xlu1 %4010 }
 0x47c   : > { %v4319_v38 = vsel %vm14984_vm10, %v4151_v25, 0.0  ;;  %v4203_v5 = vpop.permute.xlu0 %4202  ;;  %4547 = vrot.lane.b32.xlu1 %v4515_v14, %s14394_s22  ;;  %v4099_v12 = vrot.slane %v4011_v58, 1  ;;  %v4485_v58 = vsel %vm4421_vm5, %v4389_v7, %v4453_v33  ;;  %vm18968_vm5 = vmmov %vm18963_vm2 }
 0x47d   : > { %v4351_v31 = vadd.f32 %v4319_v38, %v4287_v62  ;;  %v11364_v62 = vld [vmem:[%s14516_s29 + $0x28] sm:$0xff] }
 0x47f   : > { %v4390_v51 = vadd.f32 %v15894_v6, %v4351_v31  ;;  %v4007_v48 = vpop.permute.xlu1 %4006 }
 0x480   : > { %v4097_v26 = vrot.slane %v4007_v48, 1  ;;  %v4199_v61 = vpop.permute.xlu0 %4198 }
 0x481   : > { %v4289_v1 = vadd.f32 %v4199_v61, %v15693_v19  ;;  %vm4422_vm3 = vcmp.ge.f32.partialorder %v4390_v51, 0.0  ;;  %v4454_v42 = vmul.f32 0.2, %v4390_v51  ;;  %v4148_v19 = vsel %vm18967_vm9, %v4098_v35, %v4099_v12  ;;  %vm18970_vm9 = vmmov %vm18968_vm5 }
 0x482   : > { %v4150_v14 = vsel %vm18963_vm2, %v4096_v50, %v4097_v26  ;;  %v4149_v56 = vsel %vm18964_vm15, %v4097_v26, %v4098_v35  ;;  %v4290_v61 = vadd.f32 %v4201_v43, %v4162_v59  ;;  %v4291_v43 = vadd.f32 %v4203_v5, %v15684_v27 }
 0x483   : > { %v4352_v45 = vadd.f32 %v4288_v49, %v4150_v14  ;;  %v4321_v25 = vsel %vm15009_vm14, %v4149_v56, 0.0  ;;  %v4209_v54 = vpop.permute.xlu1 %4208  ;;  %v4486_v38 = vsel %vm4422_vm3, %v4390_v51, %v4454_v42  ;;  %vm18969_vm3 = vnez %v18736_v57 }
 0x484   : > { %v4353_v55 = vadd.f32 %v4321_v25, %v4289_v1  ;;  %v4017_v48 = vpop.permute.xlu0 %4016  ;;  %v4516_v50 = vpack.c.bf16 %v4486_v38, %v4485_v58  ;;  %v4354_v14 = vadd.f32 %v4290_v61, %v4148_v19 }
 0x485   : > { %v4391_v26 = vadd.f32 %v15894_v6, %v4352_v45  ;;  %v4102_v5 = vrot.slane %v4017_v48, 1 }
 0x486   : > { %v4392_v49 = vadd.f32 %v15894_v6, %v4353_v55  ;;  %4549 = vrot.lane.b32.xlu0 %v4516_v50, %s14394_s22  ;;  %v4393_v1 = vadd.f32 %v15894_v6, %v4354_v14  ;;  %v4164_v55 = vsel %vm18969_vm3, %v15699_v22, 0.0  ;;  %vm19081_vm3 = vcmask 1041408  }
 0x487   : > { %v4205_v7 = vpop.permute.xlu1 %4204  ;;  %vm4423_vm8 = vcmp.ge.f32.partialorder %v4391_v26, 0.0  ;;  %v4455_v51 = vmul.f32 0.2, %v4391_v26 }
 0x488   : > { %vm4424_vm0 = vcmp.ge.f32.partialorder %v4392_v49, 0.0  ;;  %v4456_v33 = vmul.f32 0.2, %v4392_v49  ;;  %v4013_v47 = vpop.permute.xlu0 %4012  ;;  %v4457_v27 = vmul.f32 0.2, %v4393_v1  ;;  %vm4425_vm2 = vcmp.ge.f32.partialorder %v4393_v1, 0.0 }
 0x489   : > { %v4100_v42 = vrot.slane %v4013_v47, 1  ;;  %v4487_v56 = vsel %vm4423_vm8, %v4391_v26, %v4455_v51  ;;  %v4292_v14 = vadd.f32 %v4205_v7, %v4164_v55  ;;  %vm18971_vm8 = vmmov %vm18968_vm5 }
 0x48a   : > { %v4488_v35 = vsel %vm4424_vm0, %v4392_v49, %v4456_v33  ;;  %vm18976_vm1 = vmmov %vm18971_vm8 }
 0x48b   : > { %v4147_v45 = vsel %vm18968_vm5, %v4099_v12, %v4100_v42  ;;  %v4019_v25 = vpop.permute.xlu1 %4018  ;;  %v4517_v58 = vpack.c.bf16 %v4488_v35, %v4487_v56  ;;  %v18972_v35 = vld [vmem:[#allocation8_spill] sm:$0xff] }
 0x48c   : > { %v4323_v38 = vsel %vm15051_vm12, %v4147_v45, 0.0  ;;  %v4211_v59 = vpop.permute.xlu0 %4210  ;;  %v4103_v26 = vrot.slane %v4019_v25, 1  ;;  %vm18973_vm0 = vnez %v18972_v35  ;;  %v4489_v45 = vsel %vm4425_vm2, %v4393_v1, %v4457_v27 }
 0x48d   : > { %v4355_v19 = vadd.f32 %v4323_v38, %v4291_v43  ;;  %4551 = vrot.lane.b32.xlu1 %v4517_v58, %s14394_s22  ;;  %v18974_v58 = vld [vmem:[#allocation7_spill] sm:$0xff] }
 0x48e   : > { %vm18975_vm5 = vnez %v18974_v58 }
 0x48f   : > { %v4394_v50 = vadd.f32 %v15894_v6, %v4355_v19  ;;  %v4015_v61 = vpop.permute.xlu1 %4014  ;;  %v4166_v7 = vsel %vm18975_vm5, %v15709_v17, 0.0 }
 0x490   : > { %v4101_v12 = vrot.slane %v4015_v61, 1  ;;  %v4207_v49 = vpop.permute.xlu0 %4206  ;;  %v4294_v55 = vadd.f32 %v4209_v54, %v4166_v7  ;;  %v4295_v54 = vadd.f32 %v4211_v59, %v15704_v10 }
 0x491   : > { %v4293_v51 = vadd.f32 %v4207_v49, %v15713_v13  ;;  %vm4426_vm15 = vcmp.ge.f32.partialorder %v4394_v50, 0.0  ;;  %v4458_v33 = vmul.f32 0.2, %v4394_v50  ;;  %v4144_v13 = vsel %vm18976_vm1, %v4102_v5, %v4103_v26 }
 0x492   : > { %v4146_v47 = vsel %vm18970_vm9, %v4100_v42, %v4101_v12  ;;  %v4145_v22 = vsel %vm18971_vm8, %v4101_v12, %v4102_v5  ;;  %v4358_v49 = vadd.f32 %v4294_v55, %v4144_v13  ;;  %vm18977_vm9 = vnez %v18744_v46 }
 0x493   : > { %v4356_v56 = vadd.f32 %v4292_v14, %v4146_v47  ;;  %v4325_v43 = vsel %vm18973_vm0, %v4145_v22, 0.0  ;;  %v4217_v48 = vpop.permute.xlu1 %4216  ;;  %v4490_v25 = vsel %vm4426_vm15, %v4394_v50, %v4458_v33  ;;  %vm18978_vm8 = vnez %v18746_v4  ;;  %vm18984_vm0 = vmmov %vm18976_vm1 }
 0x494   : > { %v4357_v38 = vadd.f32 %v4325_v43, %v4293_v51  ;;  %v4025_v19 = vpop.permute.xlu0 %4024  ;;  %v4518_v42 = vpack.c.bf16 %v4490_v25, %v4489_v45  ;;  %v4397_v51 = vadd.f32 %v15894_v6, %v4358_v49  ;;  %v4168_v7 = vsel %vm18978_vm8, %v15722_v36, 0.0 }
 0x495   : > { %v4395_v61 = vadd.f32 %v15894_v6, %v4356_v56  ;;  %v4106_v59 = vrot.slane %v4025_v19, 1 }
 0x496   : > { %v4396_v12 = vadd.f32 %v15894_v6, %v4357_v38  ;;  %4553 = vrot.lane.b32.xlu0 %v4518_v42, %s14394_s22  ;;  %v4461_v10 = vmul.f32 0.2, %v4397_v51 }
 0x497   : > { %v4213_v1 = vpop.permute.xlu1 %4212  ;;  %vm4427_vm2 = vcmp.ge.f32.partialorder %v4395_v61, 0.0  ;;  %v4459_v50 = vmul.f32 0.2, %v4395_v61 }
 0x498   : > { %vm4428_vm15 = vcmp.ge.f32.partialorder %v4396_v12, 0.0  ;;  %v4460_v27 = vmul.f32 0.2, %v4396_v12  ;;  %v4021_v17 = vpop.permute.xlu0 %4020 }
 0x499   : > { %v4104_v14 = vrot.slane %v4021_v17, 1  ;;  %v4491_v33 = vsel %vm4427_vm2, %v4395_v61, %v4459_v50  ;;  %vm4429_vm2 = vcmp.ge.f32.partialorder %v4397_v51, 0.0  ;;  %v4296_v61 = vadd.f32 %v4213_v1, %v4168_v7  ;;  %v18980_v17 = vld [vmem:[#allocation10_spill] sm:$0xff] }
 0x49a   : > { %v4492_v5 = vsel %vm4428_vm15, %v4396_v12, %v4460_v27  ;;  %vm18981_vm8 = vnez %v18980_v17 }
 0x49b   : > { %v4143_v47 = vsel %vm18976_vm1, %v4103_v26, %v4104_v14  ;;  %v4027_v22 = vpop.permute.xlu1 %4026  ;;  %v4519_v56 = vpack.c.bf16 %v4492_v5, %v4491_v33  ;;  %v4493_v5 = vsel %vm4429_vm2, %v4397_v51, %v4461_v10 }
 0x49c   : > { %v4327_v43 = vsel %vm18977_vm9, %v4143_v47, 0.0  ;;  %v4219_v45 = vpop.permute.xlu0 %4218  ;;  %v4107_v42 = vrot.slane %v4027_v22, 1  ;;  %vm18979_vm9 = vmmov %vm18976_vm1  ;;  %v18982_v47 = vld [vmem:[#allocation9_spill] sm:$0xff] }
 0x49d   : > { %v4359_v25 = vadd.f32 %v4327_v43, %v4295_v54  ;;  %4555 = vrot.lane.b32.xlu1 %v4519_v56, %s14394_s22  ;;  %vm18983_vm5 = vnez %v18982_v47 }
 0x49e   : > { %v4170_v1 = vsel %vm18983_vm5, %v15732_v39, 0.0 }
 0x49f   : > { %v4398_v13 = vadd.f32 %v15894_v6, %v4359_v25  ;;  %v4023_v38 = vpop.permute.xlu1 %4022  ;;  %v4298_v43 = vadd.f32 %v4217_v48, %v4170_v1 }
 0x4a0   : > { %v4105_v26 = vrot.slane %v4023_v38, 1  ;;  %v4215_v55 = vpop.permute.xlu0 %4214 }
 0x4a1   : > { %v4297_v12 = vadd.f32 %v4215_v55, %v15736_v41  ;;  %vm4430_vm15 = vcmp.ge.f32.partialorder %v4398_v13, 0.0  ;;  %v4462_v49 = vmul.f32 0.2, %v4398_v13  ;;  %v4140_v41 = vsel %vm18984_vm0, %v4106_v59, %v4107_v42 }
 0x4a2   : > { %v4142_v50 = vsel %vm18976_vm1, %v4104_v14, %v4105_v26  ;;  %v4141_v36 = vsel %vm18979_vm9, %v4105_v26, %v4106_v59  ;;  %v4362_v38 = vadd.f32 %v4298_v43, %v4140_v41  ;;  %v16001_v59 = vld [vmem:[%s18585_s3] sm:$0x3]  ;;  %vm18985_vm0 = vcmask 1041408  }
 0x4a3   : > { %v4360_v27 = vadd.f32 %v4296_v61, %v4142_v50  ;;  %v4329_v33 = vsel %vm18981_vm8, %v4141_v36, 0.0  ;;  %v4225_v19 = vpop.permute.xlu1 %4224  ;;  %v4494_v54 = vsel %vm4430_vm15, %v4398_v13, %v4462_v49  ;;  %14296 = vmatprep.subr.msk.bf16.mxu0 %vm18985_vm0, %v16001_v59  ;;  %vm18986_vm15 = vmmov %vm18976_vm1  ;;  %vm18987_vm1 = vnez %v18759_v20 }
 0x4a4   : > { %v4361_v22 = vadd.f32 %v4329_v33, %v4297_v12  ;;  %v4033_v56 = vpop.permute.xlu0 %4032  ;;  %v4520_v14 = vpack.c.bf16 %v4494_v54, %v4493_v5  ;;  %v4401_v61 = vadd.f32 %v15894_v6, %v4362_v38  ;;  %v4299_v12 = vadd.f32 %v4219_v45, %v15727_v60 }
 0x4a5   : > { %v4399_v25 = vadd.f32 %v15894_v6, %v4360_v27  ;;  %v4110_v45 = vrot.slane %v4033_v56, 1 }
 0x4a6   : > { %v4400_v7 = vadd.f32 %v15894_v6, %v4361_v22  ;;  %4557 = vrot.lane.b32.xlu0 %v4520_v14, %s14394_s22  ;;  %v4465_v60 = vmul.f32 0.2, %v4401_v61 }
 0x4a7   : > { %v4221_v51 = vpop.permute.xlu1 %4220  ;;  %vm4431_vm9 = vcmp.ge.f32.partialorder %v4399_v25, 0.0  ;;  %v4463_v13 = vmul.f32 0.2, %v4399_v25 }
 0x4a8   : > { %vm4432_vm2 = vcmp.ge.f32.partialorder %v4400_v7, 0.0  ;;  %v4464_v10 = vmul.f32 0.2, %v4400_v7  ;;  %v4029_v39 = vpop.permute.xlu0 %4028 }
 0x4a9   : > { %v4108_v26 = vrot.slane %v4029_v39, 1  ;;  %v4495_v55 = vsel %vm4431_vm9, %v4399_v25, %v4463_v13  ;;  %vm18988_vm9 = vnez %v18762_v40 }
 0x4aa   : > { %v4496_v48 = vsel %vm4432_vm2, %v4400_v7, %v4464_v10  ;;  %v4172_v54 = vsel %vm18988_vm9, %v15754_v30, 0.0  ;;  %vm4433_vm2 = vcmp.ge.f32.partialorder %v4401_v61, 0.0  ;;  %v18990_v10 = vld [vmem:[#allocation12_spill] sm:$0xff] }
 0x4ab   : > { %v4139_v49 = vsel %vm18986_vm15, %v4107_v42, %v4108_v26  ;;  %v4035_v50 = vpop.permute.xlu1 %4034  ;;  %v4521_v36 = vpack.c.bf16 %v4496_v48, %v4495_v55  ;;  %v4300_v43 = vadd.f32 %v4221_v51, %v4172_v54  ;;  %vm18991_vm9 = vnez %v18990_v10 }
 0x4ac   : > { %v4331_v27 = vsel %vm18987_vm1, %v4139_v49, 0.0  ;;  %v4227_v33 = vpop.permute.xlu0 %4226  ;;  %v4111_v22 = vrot.slane %v4035_v50, 1  ;;  %vm18989_vm1 = vmmov %vm18986_vm15  ;;  %v4497_v55 = vsel %vm4433_vm2, %v4401_v61, %v4465_v60 }
 0x4ad   : > { %v4363_v5 = vadd.f32 %v4331_v27, %v4299_v12  ;;  %4559 = vrot.lane.b32.xlu1 %v4521_v36, %s14394_s22  ;;  %v18992_v12 = vld [vmem:[#allocation11_spill] sm:$0xff]  ;;  %vm18994_vm8 = vmmov %vm18989_vm1 }
 0x4ae   : > { %vm18993_vm5 = vnez %v18992_v12 }
 0x4af   : > { %v4402_v1 = vadd.f32 %v15894_v6, %v4363_v5  ;;  %v4031_v41 = vpop.permute.xlu1 %4030  ;;  %v4174_v51 = vsel %vm18993_vm5, %v15764_v63, 0.0  ;;  %vm19001_vm5 = vnez %v18780_v53 }
 0x4b0   : > { %v4109_v42 = vrot.slane %v4031_v41, 1  ;;  %v4223_v14 = vpop.permute.xlu0 %4222  ;;  %v4302_v36 = vadd.f32 %v4225_v19, %v4174_v51  ;;  %v4303_v19 = vadd.f32 %v4227_v33, %v15759_v28 }
 0x4b1   : > { %v4301_v25 = vadd.f32 %v4223_v14, %v15768_v52  ;;  %vm4434_vm0 = vcmp.ge.f32.partialorder %v4402_v1, 0.0  ;;  %v4466_v7 = vmul.f32 0.2, %v4402_v1  ;;  %v4136_v52 = vsel %vm18994_vm8, %v4110_v45, %v4111_v22 }
 0x4b2   : > { %v4138_v38 = vsel %vm18986_vm15, %v4108_v26, %v4109_v42  ;;  %v4137_v30 = vsel %vm18989_vm1, %v4109_v42, %v4110_v45  ;;  %v4366_v54 = vadd.f32 %v4302_v36, %v4136_v52 }
 0x4b3   : > { %v4364_v13 = vadd.f32 %v4300_v43, %v4138_v38  ;;  %v4333_v39 = vsel %vm18991_vm9, %v4137_v30, 0.0  ;;  %v4233_v56 = vpop.permute.xlu1 %4232  ;;  %v4498_v48 = vsel %vm4434_vm0, %v4402_v1, %v4466_v7  ;;  %v18995_v38 = vld [vmem:[#allocation13_spill] sm:$0xff] }
 0x4b4   : > { %v4365_v49 = vadd.f32 %v4333_v39, %v4301_v25  ;;  %v4041_v50 = vpop.permute.xlu0 %4040  ;;  %v4522_v26 = vpack.c.bf16 %v4498_v48, %v4497_v55  ;;  %v4405_v14 = vadd.f32 %v15894_v6, %v4366_v54  ;;  %vm18996_vm0 = vnez %v18995_v38  ;;  %v18997_v55 = vld [vmem:[#allocation15_spill] sm:$0xff] }
 0x4b5   : > { %v4403_v27 = vadd.f32 %v15894_v6, %v4364_v13  ;;  %vm18998_vm15 = vnez %v18997_v55  ;;  %v4114_v33 = vrot.slane %v4041_v50, 1 }
 0x4b6   : > { %v4404_v5 = vadd.f32 %v15894_v6, %v4365_v49  ;;  %4561 = vrot.lane.b32.xlu0 %v4522_v26, %s14394_s22  ;;  %v4176_v48 = vsel %vm18998_vm15, %v15774_v44, 0.0  ;;  %v4469_v28 = vmul.f32 0.2, %v4405_v14  ;;  %vm19000_vm15 = vnez %v18787_v29 }
 0x4b7   : > { %v4229_v61 = vpop.permute.xlu1 %4228  ;;  %vm4435_vm1 = vcmp.ge.f32.partialorder %v4403_v27, 0.0  ;;  %v4467_v1 = vmul.f32 0.2, %v4403_v27 }
 0x4b8   : > { %vm4436_vm2 = vcmp.ge.f32.partialorder %v4404_v5, 0.0  ;;  %v4468_v41 = vmul.f32 0.2, %v4404_v5  ;;  %v4037_v63 = vpop.permute.xlu0 %4036  ;;  %v4304_v36 = vadd.f32 %v4229_v61, %v4176_v48  ;;  %v4178_v61 = vsel %vm19001_vm5, %v15784_v16, 0.0 }
 0x4b9   : > { %v4112_v60 = vrot.slane %v4037_v63, 1  ;;  %v4499_v42 = vsel %vm4435_vm1, %v4403_v27, %v4467_v1  ;;  %vm4437_vm1 = vcmp.ge.f32.partialorder %v4405_v14, 0.0 }
 0x4ba   : > { %v4500_v45 = vsel %vm4436_vm2, %v4404_v5, %v4468_v41  ;;  %v4501_v63 = vsel %vm4437_vm1, %v4405_v14, %v4469_v28 }
 0x4bb   : > { %v4135_v43 = vsel %vm18994_vm8, %v4111_v22, %v4112_v60  ;;  %v4043_v25 = vpop.permute.xlu1 %4042  ;;  %v4523_v7 = vpack.c.bf16 %v4500_v45, %v4499_v42 }
 0x4bc   : > { %v4335_v30 = vsel %vm18996_vm0, %v4135_v43, 0.0  ;;  %v4235_v13 = vpop.permute.xlu0 %4234  ;;  %v4115_v49 = vrot.slane %v4043_v25, 1  ;;  %vm18999_vm0 = vmmov %vm18994_vm8  ;;  %v4306_v43 = vadd.f32 %v4233_v56, %v4178_v61  ;;  %v19003_v56 = vld [vmem:[#allocation26_spill] sm:$0xff] }
 0x4bd   : > { %v4367_v39 = vadd.f32 %v4335_v30, %v4303_v19  ;;  %4563 = vrot.lane.b32.xlu1 %v4523_v7, %s14394_s22  ;;  %vm19002_vm9 = vmmov %vm18999_vm0 }
 0x4bf   : > { %v4406_v51 = vadd.f32 %v15894_v6, %v4367_v39  ;;  %v4039_v52 = vpop.permute.xlu1 %4038 }
 0x4c0   : > { %v4113_v22 = vrot.slane %v4039_v52, 1  ;;  %v4231_v26 = vpop.permute.xlu0 %4230 }
 0x4c1   : > { %v4305_v27 = vadd.f32 %v4231_v26, %v15788_v18  ;;  %vm4438_vm2 = vcmp.ge.f32.partialorder %v4406_v51, 0.0  ;;  %v4470_v5 = vmul.f32 0.2, %v4406_v51  ;;  %v4132_v18 = vsel %vm19002_vm9, %v4114_v33, %v4115_v49  ;;  %vm19004_vm9 = vmmov %vm18994_vm8 }
 0x4c2   : > { %v4134_v54 = vsel %vm18994_vm8, %v4112_v60, %v4113_v22  ;;  %v4133_v44 = vsel %vm18999_vm0, %v4113_v22, %v4114_v33  ;;  %v4370_v30 = vadd.f32 %v4306_v43, %v4132_v18  ;;  %v4307_v22 = vadd.f32 %v4235_v13, %v19003_v56 }
 0x4c3   : > { %v4368_v1 = vadd.f32 %v4304_v36, %v4134_v54  ;;  %v4337_v41 = vsel %vm19000_vm15, %v4133_v44, 0.0  ;;  %v4237_v50 = vpop.permute.xlu1 %4236  ;;  %v4502_v42 = vsel %vm4438_vm2, %v4406_v51, %v4470_v5  ;;  %v19005_v5 = vld [vmem:[#allocation27_spill] sm:$0xff]  ;;  %v19006_v54 = vld [vmem:[#allocation17_spill] sm:$0xff] }
 0x4c4   : > { %v4369_v45 = vadd.f32 %v4337_v41, %v4305_v27  ;;  %v4049_v19 = vpop.permute.xlu0 %4048  ;;  %v4524_v60 = vpack.c.bf16 %v4502_v42, %v4501_v63  ;;  %v4409_v33 = vadd.f32 %v15894_v6, %v4370_v30  ;;  %vm19007_vm2 = vnez %v19006_v54 }
 0x4c5   : > { %v4407_v25 = vadd.f32 %v15894_v6, %v4368_v1  ;;  %v4180_v44 = vsel %vm19007_vm2, %v19005_v5, 0.0  ;;  %v19008_v1 = vld [vmem:[#allocation18_spill] sm:$0xff]  ;;  %v4118_v18 = vrot.slane %v4049_v19, 1 }
 0x4c6   : > { %v4408_v7 = vadd.f32 %v15894_v6, %v4369_v45  ;;  %4565 = vrot.lane.b32.xlu0 %v4524_v60, %s14394_s22  ;;  %vm19009_vm8 = vnez %v19008_v1  ;;  %v4308_v61 = vadd.f32 %v4237_v50, %v4180_v44 }
 0x4c7   : > { %v16057_v14 = vpop.permute.xlu1 %4050  ;;  %vm4439_vm0 = vcmp.ge.f32.partialorder %v4407_v25, 0.0  ;;  %v4471_v39 = vmul.f32 0.2, %v4407_v25 }
 0x4c8   : > { %vm4440_vm1 = vcmp.ge.f32.partialorder %v4408_v7, 0.0  ;;  %v4472_v16 = vmul.f32 0.2, %v4408_v7  ;;  %v4045_v48 = vpop.permute.xlu0 %4044  ;;  %v4119_v30 = vrot.slane %v16057_v14, 1 }
 0x4c9   : > { %v4116_v51 = vrot.slane %v4045_v48, 1  ;;  %v4503_v52 = vsel %vm4439_vm0, %v4407_v25, %v4471_v39  ;;  %vm19010_vm0 = vmmov %vm19004_vm9  ;;  %v19012_v39 = vld [vmem:[#allocation29_spill] sm:$0xff] }
 0x4ca   : > { %v4504_v28 = vsel %vm4440_vm1, %v4408_v7, %v4472_v16  ;;  %vm19011_vm1 = vmmov %vm19010_vm0  ;;  %v4473_v7 = vmul.f32 0.2, %v4409_v33  ;;  %v19013_v16 = vld [vmem:[#allocation19_spill] sm:$0xff] }
 0x4cb   : > { %v4131_v26 = vsel %vm19004_vm9, %v4115_v49, %v4116_v51  ;;  %v4047_v36 = vpop.permute.xlu1 %4046  ;;  %v4525_v27 = vpack.c.bf16 %v4504_v28, %v4503_v52  ;;  %vm19014_vm9 = vnez %v19013_v16  ;;  %v19015_v52 = vld [vmem:[#allocation30_spill] sm:$0xff] }
 0x4cc   : > { %v4339_v41 = vsel %vm19009_vm8, %v4131_v26, 0.0  ;;  %v4117_v63 = vrot.slane %v4047_v36, 1  ;;  %v4243_v42 = vpop.permute.xlu0 %4242  ;;  %v4182_v50 = vsel %vm19014_vm9, %v19012_v39, 0.0  ;;  %vm4441_vm8 = vcmp.ge.f32.partialorder %v4409_v33, 0.0 }
 0x4cd   : > { %v4371_v45 = vadd.f32 %v4339_v41, %v4307_v22  ;;  %4567 = vrot.lane.b32.xlu1 %v4525_v27, %s14394_s22  ;;  %v19016_v22 = vld [vmem:[#allocation20_spill] sm:$0xff]  ;;  %v4505_v5 = vsel %vm4441_vm8, %v4409_v33, %v4473_v7  ;;  %v19018_v7 = vld [vmem:[#allocation21_spill] sm:$0xff] }
 0x4ce   : > { %v4130_v13 = vsel %vm19010_vm0, %v4116_v51, %v4117_v63  ;;  %v4129_v25 = vsel %vm19011_vm1, %v4117_v63, %v4118_v18  ;;  %vm19017_vm2 = vnez %v19016_v22  ;;  %v4128_v63 = vsel %vm19011_vm1, %v4118_v18, %v4119_v30 }
 0x4cf   : > { %v4410_v49 = vadd.f32 %v15894_v6, %v4371_v45  ;;  %v4372_v60 = vadd.f32 %v4308_v61, %v4130_v13  ;;  %v4241_v43 = vpop.permute.xlu1 %4240  ;;  %v4341_v26 = vsel %vm19017_vm2, %v4129_v25, 0.0  ;;  %vm19019_vm8 = vnez %v19018_v7 }
 0x4d0   : > { %v4239_v19 = vpop.permute.xlu0 %4238  ;;  %v4310_v56 = vadd.f32 %v4241_v43, %v4182_v50  ;;  %v4184_v39 = vsel %vm19019_vm8, %v15820_v11, 0.0 }
 0x4d1   : > { %v4411_v48 = vadd.f32 %v15894_v6, %v4372_v60  ;;  %v4309_v51 = vadd.f32 %v4239_v19, %v19015_v52  ;;  %vm4442_vm0 = vcmp.ge.f32.partialorder %v4410_v49, 0.0  ;;  %v4474_v28 = vmul.f32 0.2, %v4410_v49  ;;  %v19020_v52 = vld [vmem:[#allocation28_spill] sm:$0xff] }
 0x4d2   : > { %v4374_v13 = vadd.f32 %v4310_v56, %v4128_v63 }
 0x4d3   : > { %v4373_v36 = vadd.f32 %v4341_v26, %v4309_v51  ;;  %v4055_v27 = vpop.permute.xlu1 %4054  ;;  %v4506_v14 = vsel %vm4442_vm0, %v4410_v49, %v4474_v28  ;;  %v4475_v45 = vmul.f32 0.2, %v4411_v48  ;;  %vm4443_vm9 = vcmp.ge.f32.partialorder %v4411_v48, 0.0  ;;  %vm19021_vm0 = vmmov %vm19011_vm1 }
 0x4d4   : > { %v16082_v44 = vpop.permute.xlu0 %4056  ;;  %v4526_v41 = vpack.c.bf16 %v4506_v14, %v4505_v5  ;;  %v4121_v43 = vrot.slane %v4055_v27, 1  ;;  %v4311_v51 = vadd.f32 %v4243_v42, %v19020_v52  ;;  %v4413_v26 = vadd.f32 %v15894_v6, %v4374_v13  ;;  %vm19022_vm1 = vmmov %vm19021_vm0  ;;  %v19024_v5 = vld [vmem:[#allocation22_spill] sm:$0xff] }
 0x4d5   : > { %v4412_v61 = vadd.f32 %v15894_v6, %v4373_v36  ;;  %v4122_v25 = vrot.slane %v16082_v44, 1  ;;  %v4507_v18 = vsel %vm4443_vm9, %v4411_v48, %v4475_v45  ;;  %vm19023_vm2 = vmmov %vm19021_vm0  ;;  %vm19025_vm9 = vnez %v19024_v5  ;;  %v19026_v45 = vld [vmem:[#allocation24_spill] sm:$0xff]  ;;  %v19047_v44 = vld [vmem:[#allocation25_spill] sm:$0xff] }
 0x4d6   : > { %4569 = vrot.lane.b32.xlu0 %v4526_v41, %s14394_s22  ;;  %v4477_v13 = vmul.f32 0.2, %v4413_v26 }
 0x4d7   : > { %vm4444_vm5 = vcmp.ge.f32.partialorder %v4412_v61, 0.0  ;;  %v4476_v60 = vmul.f32 0.2, %v4412_v61  ;;  %v4245_v33 = vpop.permute.xlu1 %4244  ;;  %v4125_v11 = vsel %vm19023_vm2, %v4121_v43, %v4122_v25  ;;  %vm4445_vm2 = vcmp.ge.f32.partialorder %v4413_v26, 0.0 }
 0x4d8   : > { %v4053_v49 = vpop.permute.xlu0 %4052  ;;  %v4312_v28 = vadd.f32 %v4245_v33, %v4184_v39 }
 0x4d9   : > { %v4120_v50 = vrot.slane %v4053_v49, 1  ;;  %v4508_v19 = vsel %vm4444_vm5, %v4412_v61, %v4476_v60  ;;  %vm19027_vm5 = vnez %v19026_v45  ;;  %v14333_v45 = vld [vmem:[%s18589_s7 + $0x40] sm:$0xff]  }
 0x4da   : > { %v4527_v56 = vpack.c.bf16 %v4508_v19, %v4507_v18  ;;  %v4509_v18 = vsel %vm4445_vm2, %v4413_v26, %v4477_v13  ;;  %vm19030_vm2 = vcmask 523264  }
 0x4db   : > { %v4126_v36 = vsel %vm19021_vm0, %v4120_v50, %v4121_v43  ;;  %v4127_v27 = vsel %vm19022_vm1, %v4119_v30, %v4120_v50  ;;  %v4345_v30 = vsel %vm19027_vm5, %v4125_v11, 0.0  ;;  %vm18697_vm5 = vcmask 523520   ;;  %v16127_v11 = vld [vmem:[%s18585_s3 + $0x2] sm:$0x3] }
 0x4dc   : > { %v4343_v48 = vsel %vm19025_vm9, %v4127_v27, 0.0  ;;  %v4376_v14 = vadd.f32 %v4312_v28, %v4126_v36  ;;  %v4247_v42 = vpop.permute.xlu0 %4246  ;;  %4571 = vrot.lane.b32.xlu1 %v4527_v56, %s14394_s22  ;;  %v19028_v56 = vld [vmem:[#allocation31_spill] sm:$0xff] }
 0x4dd   : > { %v4375_v41 = vadd.f32 %v4343_v48, %v4311_v51  ;;  %v4313_v63 = vadd.f32 %v4247_v42, %v15836_v9 }
 0x4de   : > { %v4415_v61 = vadd.f32 %v15894_v6, %v4376_v14 }
 0x4df   : > { %v4414_v60 = vadd.f32 %v15894_v6, %v4375_v41  ;;  %v4377_v33 = vadd.f32 %v4345_v30, %v4313_v63 }
 0x4e0   : > { %v4479_v39 = vmul.f32 0.2, %v4415_v61  ;;  %vm4447_vm1 = vcmp.ge.f32.partialorder %v4415_v61, 0.0 }
 0x4e1   : > { %v4416_v43 = vadd.f32 %v15894_v6, %v4377_v33  ;;  %vm4446_vm0 = vcmp.ge.f32.partialorder %v4414_v60, 0.0  ;;  %v4478_v49 = vmul.f32 0.2, %v4414_v60 }
 0x4e2   : > { %v4511_v52 = vsel %vm4447_vm1, %v4415_v61, %v4479_v39  ;;  %vm19032_vm1 = vmmov %vm19030_vm2 }
 0x4e3   : > { %vm4448_vm9 = vcmp.ge.f32.partialorder %v4416_v43, 0.0  ;;  %v4480_v50 = vmul.f32 0.2, %v4416_v43  ;;  %v4510_v9 = vsel %vm4446_vm0, %v4414_v60, %v4478_v49 }
 0x4e4   : > { %v4528_v19 = vpack.c.bf16 %v4510_v9, %v4509_v18 }
 0x4e5   : > { %v4512_v51 = vsel %vm4448_vm9, %v4416_v43, %v4480_v50  ;;  %vm19029_vm9 = vcmask 1041408  }
 0x4e6   : > { %4573 = vrot.lane.b32.xlu0 %v4528_v19, %s14394_s22  ;;  %v4529_v28 = vpack.c.bf16 %v4512_v51, %v4511_v52  ;;  %v4936_v36 = vsel %vm19029_vm9, %v16001_v59, 0  ;;  %vm19031_vm0 = vmmov %vm19029_vm9 }
 0x4e7   : > { %vm19033_vm9 = vmmov %vm19032_vm1 }
 0x4e8   : > { %4575 = vrot.lane.b32.xlu1 %v4529_v28, %s14394_s22 }
 0x4ea   : > { %4058 = vrot.lane.b32.xlu0 %v19028_v56, %s14393_s16 }
 0x4ec   : > { %4248 = vrot.lane.b32.xlu1 %v15810_v23, %s14392_s30 }
 0x4ee   : > { %4250 = vrot.lane.b32.xlu0 %v19028_v56, %s14392_s30  ;;  %v4548_v26 = vpop.permute.xlu1 %4547 }
 0x4ef   : > { %4596 = vst.msk [vmem:[#allocation3 + $0x8] sm:$0xff] %vm18697_vm5, %v4548_v26 }
 0x4f6   : > { %v16122_v27 = vld [vmem:[#allocation3 + $0x8] sm:$0xff] }
 0x4f7   : > { %12890 = vmatmul.mubr.msk.bf16.vlgmr.msra.gmra.mrb[32].mxu0 %vm19030_vm2, %v16122_v27  ;;  %vm19034_vm2 = vmmov %vm19032_vm1 }
 0x4f8   : > { %v4550_v23 = vpop.permute.xlu0 %4549  ;;  %12922 = vmatpush3.bf16.msra.mxu0 %v4936_v36 }
 0x4f9   : > { %4597 = vst.msk [vmem:[#allocation3 + $0x10] sm:$0xff] %vm18697_vm5, %v4550_v23  ;;  %14297 = vmatprep.subr.msk.bf16.mxu0 %vm19031_vm0, %v16127_v11  ;;  %vm19035_vm0 = vmmov %vm19032_vm1 }
 0x4ff   : > { %v4552_v48 = vpop.permute.xlu1 %4551 }
 0x500   : > { %4598 = vst.msk [vmem:[#allocation3 + $0x18] sm:$0xff] %vm18697_vm5, %v4552_v48  ;;  %v16135_v59 = vld [vmem:[#allocation3 + $0x10] sm:$0xff] }
 0x501   : > { %12893 = vmatprep.mubr.msk.bf16.mxu0 %vm19032_vm1, %v16135_v59  ;;  %vm19036_vm1 = vmmov %vm19035_vm0 }
 0x507   : > { %v16139_v14 = vld [vmem:[#allocation3 + $0x18] sm:$0xff] }
 0x508   : > { %v4554_v42 = vpop.permute.xlu0 %4553  ;;  %12894 = vmatmul.mubr.msk.bf16.gmra.mrb[36].mxu0 %vm19033_vm9, %v16139_v14  ;;  %vm19037_vm9 = vmmov %vm19035_vm0 }
 0x509   : > { %4599 = vst.msk [vmem:[#allocation3 + $0x20] sm:$0xff] %vm18697_vm5, %v4554_v42 }
 0x50f   : > { %v4556_v41 = vpop.permute.xlu1 %4555 }
 0x510   : > { %4600 = vst.msk [vmem:[#allocation3 + $0x28] sm:$0xff] %vm18697_vm5, %v4556_v41  ;;  %v16145_v63 = vld [vmem:[#allocation3 + $0x20] sm:$0xff] }
 0x511   : > { %12897 = vmatprep.mubr.msk.bf16.mxu0 %vm19034_vm2, %v16145_v63  ;;  %vm19038_vm2 = vmmov %vm19035_vm0 }
 0x517   : > { %v16149_v61 = vld [vmem:[#allocation3 + $0x28] sm:$0xff] }
 0x518   : > { %v4558_v30 = vpop.permute.xlu0 %4557  ;;  %12898 = vmatmul.mubr.msk.bf16.gmra.mrb[40].mxu0 %vm19035_vm0, %v16149_v61 }
 0x519   : > { %4601 = vst.msk [vmem:[#allocation3 + $0x30] sm:$0xff] %vm18697_vm5, %v4558_v30  ;;  %v19042_v30 = vld [vmem:[#allocation23_spill] sm:$0xff] }
 0x51f   : > { %v4560_v13 = vpop.permute.xlu1 %4559 }
 0x520   : > { %4602 = vst.msk [vmem:[#allocation3 + $0x38] sm:$0xff] %vm18697_vm5, %v4560_v13  ;;  %v16155_v60 = vld [vmem:[#allocation3 + $0x30] sm:$0xff] }
 0x521   : > { %12901 = vmatprep.mubr.msk.bf16.mxu0 %vm19036_vm1, %v16155_v60  ;;  %vm19039_vm1 = vmmov %vm19035_vm0 }
 0x527   : > { %v16159_v33 = vld [vmem:[#allocation3 + $0x38] sm:$0xff] }
 0x528   : > { %v4562_v43 = vpop.permute.xlu0 %4561  ;;  %12902 = vmatmul.mubr.msk.bf16.gmra.mrb[44].mxu0 %vm19037_vm9, %v16159_v33  ;;  %vm19040_vm9 = vmmov %vm19035_vm0 }
 0x529   : > { %4603 = vst.msk [vmem:[#allocation3 + $0x40] sm:$0xff] %vm18697_vm5, %v4562_v43 }
 0x52f   : > { %v4564_v49 = vpop.permute.xlu1 %4563 }
 0x530   : > { %4604 = vst.msk [vmem:[#allocation3 + $0x48] sm:$0xff] %vm18697_vm5, %v4564_v49  ;;  %v16165_v39 = vld [vmem:[#allocation3 + $0x40] sm:$0xff] }
 0x531   : > { %12905 = vmatprep.mubr.msk.bf16.mxu0 %vm19038_vm2, %v16165_v39  ;;  %vm19041_vm2 = vmmov %vm19035_vm0 }
 0x537   : > { %v16169_v50 = vld [vmem:[#allocation3 + $0x48] sm:$0xff] }
 0x538   : > { %v4566_v18 = vpop.permute.xlu0 %4565  ;;  %12906 = vmatmul.mubr.msk.bf16.gmra.mrb[48].mxu0 %vm19035_vm0, %v16169_v50 }
 0x539   : > { %4605 = vst.msk [vmem:[#allocation3 + $0x50] sm:$0xff] %vm18697_vm5, %v4566_v18  ;;  %v19045_v18 = vrot.slane %v15877_v37, 1 }
 0x53f   : > { %v4568_v9 = vpop.permute.xlu1 %4567 }
 0x540   : > { %4606 = vst.msk [vmem:[#allocation3 + $0x58] sm:$0xff] %vm18697_vm5, %v4568_v9  ;;  %v16175_v19 = vld [vmem:[#allocation3 + $0x50] sm:$0xff] }
 0x541   : > { %12909 = vmatprep.mubr.msk.bf16.mxu0 %vm19039_vm1, %v16175_v19  ;;  %vm19043_vm1 = vnez %v19042_v30  ;;  %v14331_v30 = vld [vmem:[%s18589_s7 + $0x30] sm:$0xff]  }
 0x542   : > { %v4186_v13 = vsel %vm19043_vm1, %v15840_v24, 0.0  ;;  %v4612_v24 = vld [vmem:[#allocation2] sm:$0xff] }
 0x547   : > { %v16179_v52 = vld [vmem:[#allocation3 + $0x58] sm:$0xff] }
 0x548   : > { %v4570_v51 = vpop.permute.xlu0 %4569  ;;  %12910 = vmatmul.mubr.msk.bf16.gmra.mrb[52].mxu0 %vm19040_vm9, %v16179_v52  ;;  %vm19044_vm9 = vcmp.lt.s32.totalorder %v14630_v32, 7 }
 0x549   : > { %4607 = vst.msk [vmem:[#allocation3 + $0x60] sm:$0xff] %vm18697_vm5, %v4570_v51 }
 0x54e   : > { %v4572_v28 = vpop.permute.xlu1 %4571 }
 0x54f   : > { %4608 = vst.msk [vmem:[#allocation3 + $0x68] sm:$0xff] %vm18697_vm5, %v4572_v28 }
 0x550   : > { %v16185_v56 = vld [vmem:[#allocation3 + $0x60] sm:$0xff] }
 0x551   : > { %12913 = vmatprep.mubr.msk.bf16.mxu0 %vm19041_vm2, %v16185_v56  ;;  %vm19046_vm2 = vmmov %vm19044_vm9 }
 0x556   : > { %v16189_v26 = vld [vmem:[#allocation3 + $0x68] sm:$0xff] }
 0x557   : > { %12914 = vmatmul.mubr.msk.bf16.gmra.mrb[56].mxu0 %vm19035_vm0, %v16189_v26 }
 0x558   : > { %v4574_v36 = vpop.permute.xlu0 %4573 }
 0x559   : > { %4609 = vst.msk [vmem:[#allocation3 + $0x70] sm:$0xff] %vm18697_vm5, %v4574_v36 }
 0x55a   : > { %v4576_v23 = vpop.permute.xlu1 %4575 }
 0x55b   : > { %4610 = vst.msk [vmem:[#allocation3 + $0x78] sm:$0xff] %vm18697_vm5, %v4576_v23  ;;  %vm19048_vm5 = vnez %v19047_v44  ;;  %v14330_v44 = vld [vmem:[%s18589_s7 + $0x28] sm:$0xff]  }
 0x55c   : > { %v4059_v48 = vpop.permute.xlu0 %4058 }
 0x55d   : > { %v4123_v42 = vrot.slane %v4059_v48, 1 }
 0x55e   : > { %v4249_v41 = vpop.permute.xlu1 %4248 }
 0x55f   : > { %v4124_v43 = vsel %vm19044_vm9, %v4122_v25, %v4123_v42  ;;  %v4314_v49 = vadd.f32 %v4249_v41, %v4186_v13  ;;  %v4155_v9 = vsel %vm19046_vm2, %v4123_v42, %v19045_v18  ;;  %vm19049_vm9 = vmmov %vm19035_vm0  ;;  %vm19050_vm2 = vcmask 31744  }
 0x560   : > { %v4251_v51 = vpop.permute.xlu0 %4250  ;;  %v16206_v28 = vld [vmem:[#allocation3 + $0x70] sm:$0xff]  ;;  %v4347_v48 = vsel %vm19048_vm5, %v4155_v9, 0.0 }
 0x561   : > { %v4378_v36 = vadd.f32 %v4314_v49, %v4124_v43  ;;  %v4315_v23 = vadd.f32 %v4251_v51, %v15830_v3  ;;  %12917 = vmatprep.mubr.msk.bf16.mxu0 %vm19035_vm0, %v16206_v28  ;;  %v4613_v43 = vld [vmem:[#allocation2 + $0x8] sm:$0xff]  ;;  %vm19051_vm0 = vcmask 1041408   ;;  %v14329_v51 = vld [vmem:[%s18589_s7 + $0x20] sm:$0xff]  }
 0x562   : > { %v16213_v25 = vld [vmem:[#allocation3 + $0x78] sm:$0xff]  ;;  %v5166_v49 = vsel %vm19051_vm0, %v16127_v11, 0  ;;  %v16233_v11 = vld [vmem:[#allocation2 + $0x20] sm:$0xff] }
 0x563   : > { %v4417_v37 = vadd.f32 %v15894_v6, %v4378_v36  ;;  %v4379_v41 = vadd.f32 %v4347_v48, %v4315_v23  ;;  %12918 = vmatmul.mubr.msk.bf16.gmra.mrb[60].mxu0 %vm19049_vm9, %v16213_v25  ;;  %v16225_v23 = vld [vmem:[#allocation2 + $0x10] sm:$0xff]  ;;  %vm19052_vm9 = vmmov %vm19050_vm2 }
 0x564   : > { %12923 = vmatprep.mubr.msk.bf16.mxu0 %vm19050_vm2, %v4612_v24  ;;  %v16239_v24 = vld [vmem:[#allocation2 + $0x28] sm:$0xff]  ;;  %v16241_v48 = vld [vmem:[#allocation2 + $0x30] sm:$0xff] }
 0x565   : > { %v4481_v42 = vmul.f32 0.2, %v4417_v37  ;;  %v4418_v3 = vadd.f32 %v15894_v6, %v4379_v41  ;;  %vm4449_vm1 = vcmp.ge.f32.partialorder %v4417_v37, 0.0  ;;  %v16231_v6 = vld [vmem:[#allocation2 + $0x18] sm:$0xff]  ;;  %v16249_v41 = vld [vmem:[#allocation2 + $0x40] sm:$0xff] }
 0x567   : > { %vm4450_vm8 = vcmp.ge.f32.partialorder %v4418_v3, 0.0  ;;  %v4482_v13 = vmul.f32 0.2, %v4418_v3  ;;  %v4513_v18 = vsel %vm4449_vm1, %v4417_v37, %v4481_v42  ;;  %vm19054_vm1 = vmmov %vm19050_vm2  ;;  %v16247_v37 = vld [vmem:[#allocation2 + $0x38] sm:$0xff]  ;;  %v16255_v42 = vld [vmem:[#allocation2 + $0x48] sm:$0xff] }
 0x568   : > { %vm19055_vm0 = vmmov %vm19054_vm1 }
 0x569   : > { %v4514_v9 = vsel %vm4450_vm8, %v4418_v3, %v4482_v13  ;;  %vm19053_vm8 = vmmov %vm19050_vm2  ;;  %v16257_v3 = vld [vmem:[#allocation2 + $0x50] sm:$0xff]  ;;  %v16263_v13 = vld [vmem:[#allocation2 + $0x58] sm:$0xff] }
 0x56a   : > { %v4530_v36 = vpack.c.bf16 %v4514_v9, %v4513_v18  ;;  %v16271_v18 = vld [vmem:[#allocation2 + $0x68] sm:$0xff]  ;;  %v16273_v9 = vld [vmem:[#allocation2 + $0x70] sm:$0xff]  ;;  %vm19064_vm5 = vmmov %vm19055_vm0 }
 0x56b   : > { %12924 = vmatmul.mubr.msk.bf16.vlgmr.msra.gmra.mrb[32].mxu0 %vm19052_vm9, %v4613_v43  ;;  %vm19056_vm9 = vmmov %vm19055_vm0 }
 0x56c   : > { %12956 = vmatpush3.bf16.msra.mxu0 %v5166_v49  ;;  %4577 = vrot.lane.b32.xlu1 %v4530_v36, %s14394_s22  ;;  %v16265_v49 = vld [vmem:[#allocation2 + $0x60] sm:$0xff]  ;;  %v16279_v36 = vld [vmem:[#allocation2 + $0x78] sm:$0xff]  ;;  %vm19074_vm15 = vmmov %vm19055_vm0 }
 0x56d   : > { %12927 = vmatprep.mubr.msk.bf16.mxu0 %vm19050_vm2, %v16225_v23  ;;  %12989 = vmatprep.subr.bf16.mxu0 %v14329_v51  ;;  %vm19057_vm2 = vmmov %vm19055_vm0 }
 0x573   : > { %12928 = vmatmul.mubr.msk.bf16.gmra.mrb[36].mxu0 %vm19053_vm8, %v16231_v6  ;;  %vm19058_vm8 = vmmov %vm19055_vm0 }
 0x574   : > { %12931 = vmatprep.mubr.msk.bf16.mxu0 %vm19054_vm1, %v16233_v11  ;;  %vm19059_vm1 = vmmov %vm19055_vm0 }
 0x57b   : > { %12932 = vmatmul.mubr.msk.bf16.gmra.mrb[40].mxu0 %vm19055_vm0, %v16239_v24 }
 0x57c   : > { %12935 = vmatprep.mubr.msk.bf16.mxu0 %vm19056_vm9, %v16241_v48  ;;  %vm19060_vm9 = vmmov %vm19055_vm0 }
 0x583   : > { %12936 = vmatmul.mubr.msk.bf16.gmra.mrb[44].mxu0 %vm19057_vm2, %v16247_v37  ;;  %vm19061_vm2 = vmmov %vm19055_vm0 }
 0x584   : > { %12939 = vmatprep.mubr.msk.bf16.mxu0 %vm19058_vm8, %v16249_v41  ;;  %vm19062_vm8 = vmmov %vm19055_vm0 }
 0x58b   : > { %12940 = vmatmul.mubr.msk.bf16.gmra.mrb[48].mxu0 %vm19059_vm1, %v16255_v42  ;;  %vm19063_vm1 = vmmov %vm19055_vm0 }
 0x58c   : > { %12943 = vmatprep.mubr.msk.bf16.mxu0 %vm19055_vm0, %v16257_v3 }
 0x593   : > { %12944 = vmatmul.mubr.msk.bf16.gmra.mrb[52].mxu0 %vm19060_vm9, %v16263_v13  ;;  %vm19065_vm9 = vmmov %vm19055_vm0 }
 0x594   : > { %12947 = vmatprep.mubr.msk.bf16.mxu0 %vm19061_vm2, %v16265_v49  ;;  %vm19066_vm2 = vmmov %vm19055_vm0 }
 0x59b   : > { %12948 = vmatmul.mubr.msk.bf16.gmra.mrb[56].mxu0 %vm19062_vm8, %v16271_v18  ;;  %vm19068_vm8 = vmmov %vm19055_vm0 }
 0x59c   : > { %12951 = vmatprep.mubr.msk.bf16.mxu0 %vm19063_vm1, %v16273_v9  ;;  %vm19069_vm1 = vcmask 1041408  }
 0x5a3   : > { %12952 = vmatmul.mubr.msk.bf16.gmra.mrb[60].mxu0 %vm19055_vm0, %v16279_v36 }
 0x5a4   : > { %12957 = vmatprep.mubr.msk.bf16.mxu0 %vm19064_vm5, %v4613_v43  ;;  %v14332_v43 = vld [vmem:[%s18589_s7 + $0x38] sm:$0xff]   ;;  %vm19067_vm5 = vmmov %vm19055_vm0 }
 0x5ab   : > { %12958 = vmatmul.mubr.msk.bf16.vlgmr.msra.gmra.mrb[32].mxu0 %vm19065_vm9, %v16225_v23  ;;  %vm19070_vm9 = vmmov %vm19055_vm0 }
 0x5ac   : > { %12990 = vmatpush3.bf16.msra.mxu0 %v14329_v51  ;;  %12961 = vmatprep.mubr.msk.bf16.mxu0 %vm19066_vm2, %v16231_v6  ;;  %v11764_v51 = vld [vmem:[%s18585_s3 + $0x4] sm:$0x3]  ;;  %vm19071_vm2 = vmmov %vm19055_vm0 }
 0x5ad   : > { %12991 = vmatprep.subr.bf16.mxu0 %v14330_v44 }
 0x5b0   : > { %12992 = vmatpush3.bf16.msra.mxu0 %v14330_v44  ;;  %v5114_v44 = vld [vmem:[#allocation2 + $0x80] sm:$0xff] }
 0x5b1   : > { %12993 = vmatprep.subr.bf16.mxu0 %v14331_v30 }
 0x5b3   : > { %12962 = vmatmul.mubr.msk.bf16.gmra.mrb[36].mxu0 %vm19067_vm5, %v16233_v11  ;;  %vm19072_vm5 = vmmov %vm19055_vm0 }
 0x5b4   : > { %12965 = vmatprep.mubr.msk.bf16.mxu0 %vm19068_vm8, %v16239_v24  ;;  %12994 = vmatpush3.bf16.msra.mxu0 %v14331_v30  ;;  %vm19073_vm8 = vmmov %vm19055_vm0 }
 0x5b5   : > { %12995 = vmatprep.subr.bf16.mxu0 %v14332_v43 }
 0x5b8   : > { %12996 = vmatpush3.bf16.msra.mxu0 %v14332_v43  ;;  %v5718_v43 = vsel %vm19081_vm3, %v11764_v51, 0 }
 0x5b9   : > { %14298 = vmatprep.subr.msk.bf16.mxu0 %vm19069_vm1, %v11764_v51  ;;  %vm19075_vm1 = vmmov %vm19055_vm0  ;;  %v14334_v51 = vld [vmem:[%s18589_s7 + $0x48] sm:$0xff]  }
 0x5bb   : > { %12966 = vmatmul.mubr.msk.bf16.gmra.mrb[40].mxu0 %vm19055_vm0, %v16241_v48 }
 0x5bc   : > { %12969 = vmatprep.mubr.msk.bf16.mxu0 %vm19070_vm9, %v16247_v37  ;;  %vm19076_vm9 = vmmov %vm19055_vm0 }
 0x5c3   : > { %12970 = vmatmul.mubr.msk.bf16.gmra.mrb[44].mxu0 %vm19071_vm2, %v16249_v41  ;;  %vm19077_vm2 = vmmov %vm19055_vm0 }
 0x5c4   : > { %12973 = vmatprep.mubr.msk.bf16.mxu0 %vm19072_vm5, %v16255_v42  ;;  %vm19078_vm5 = vcmask 523520  }
 0x5cb   : > { %12974 = vmatmul.mubr.msk.bf16.gmra.mrb[48].mxu0 %vm19073_vm8, %v16257_v3  ;;  %vm19079_vm8 = vmmov %vm19055_vm0 }
 0x5cc   : > { %12977 = vmatprep.mubr.msk.bf16.mxu0 %vm19074_vm15, %v16263_v13  ;;  %vm19080_vm15 = vcmask 523264  }
 0x5d3   : > { %12978 = vmatmul.mubr.msk.bf16.gmra.mrb[52].mxu0 %vm19075_vm1, %v16265_v49  ;;  %vm19082_vm1 = vmmov %vm19080_vm15 }
 0x5d4   : > { %12981 = vmatprep.mubr.msk.bf16.mxu0 %vm19055_vm0, %v16271_v18  ;;  %vm19083_vm0 = vmmov %vm19082_vm1 }
 0x5d5   : > { %vm19086_vm3 = vmmov %vm19083_vm0 }
 0x5db   : > { %12982 = vmatmul.mubr.msk.bf16.gmra.mrb[56].mxu0 %vm19076_vm9, %v16273_v9  ;;  %vm19084_vm9 = vmmov %vm19083_vm0 }
 0x5dc   : > { %12985 = vmatprep.mubr.msk.bf16.mxu0 %vm19077_vm2, %v16279_v36  ;;  %vm19085_vm2 = vmmov %vm19083_vm0 }
 0x5de   : > { %v4578_v30 = vpop.permute.xlu1 %4577 }
 0x5df   : > { %4611 = vst.msk [vmem:[#allocation3 + $0x80] sm:$0xff] %vm19078_vm5, %v4578_v30  ;;  %vm19087_vm5 = vmmov %vm19083_vm0  ;;  %v14335_v30 = vld [vmem:[%s18589_s7 + $0x50] sm:$0xff]  }
 0x5e3   : > { %12986 = vmatmul.mubr.msk.bf16.gmra.mrb[60].mxu0 %vm19079_vm8, %v5114_v44  ;;  %vm19088_vm8 = vmmov %vm19083_vm0 }
 0x5e4   : > { %12997 = vmatprep.mubr.msk.bf16.mxu0 %vm19080_vm15, %v16122_v27  ;;  %vm19089_vm15 = vmmov %vm19083_vm0 }
 0x5e6   : > { %v5376_v27 = vld [vmem:[#allocation3 + $0x80] sm:$0xff] }
 0x5eb   : > { %12998 = vmatmul.mubr.msk.bf16.vlgmr.msra.gmra.mrb[32].mxu0 %vm19082_vm1, %v16135_v59  ;;  %vm19090_vm1 = vmmov %vm19083_vm0 }
 0x5ec   : > { %13030 = vmatpush3.bf16.msra.mxu0 %v5718_v43  ;;  %13001 = vmatprep.mubr.msk.bf16.mxu0 %vm19083_vm0, %v16139_v14 }
 0x5ed   : > { %13063 = vmatprep.subr.bf16.mxu0 %v14333_v45 }
 0x5f3   : > { %13002 = vmatmul.mubr.msk.bf16.gmra.mrb[36].mxu0 %vm19084_vm9, %v16145_v63  ;;  %vm19091_vm9 = vmmov %vm19083_vm0 }
 0x5f4   : > { %13005 = vmatprep.mubr.msk.bf16.mxu0 %vm19085_vm2, %v16149_v61  ;;  %vm19092_vm2 = vmmov %vm19083_vm0 }
 0x5fb   : > { %13006 = vmatmul.mubr.msk.bf16.gmra.mrb[40].mxu0 %vm19086_vm3, %v16155_v60  ;;  %vm19093_vm3 = vmmov %vm19083_vm0 }
 0x5fc   : > { %13009 = vmatprep.mubr.msk.bf16.mxu0 %vm19087_vm5, %v16159_v33  ;;  %vm19094_vm5 = vmmov %vm19083_vm0 }
 0x603   : > { %13010 = vmatmul.mubr.msk.bf16.gmra.mrb[44].mxu0 %vm19088_vm8, %v16165_v39  ;;  %vm19095_vm8 = vmmov %vm19083_vm0 }
 0x604   : > { %13013 = vmatprep.mubr.msk.bf16.mxu0 %vm19089_vm15, %v16169_v50  ;;  %vm19096_vm15 = vcmask 31744  }
 0x60b   : > { %13014 = vmatmul.mubr.msk.bf16.gmra.mrb[48].mxu0 %vm19090_vm1, %v16175_v19  ;;  %vm19097_vm1 = vmmov %vm19096_vm15 }
 0x60c   : > { %13017 = vmatprep.mubr.msk.bf16.mxu0 %vm19083_vm0, %v16179_v52  ;;  %vm19098_vm0 = vmmov %vm19097_vm1 }
 0x613   : > { %13018 = vmatmul.mubr.msk.bf16.gmra.mrb[52].mxu0 %vm19091_vm9, %v16185_v56  ;;  %vm19099_vm9 = vmmov %vm19098_vm0 }
 0x614   : > { %13021 = vmatprep.mubr.msk.bf16.mxu0 %vm19092_vm2, %v16189_v26  ;;  %vm19100_vm2 = vmmov %vm19098_vm0 }
 0x61b   : > { %13022 = vmatmul.mubr.msk.bf16.gmra.mrb[56].mxu0 %vm19093_vm3, %v16206_v28  ;;  %vm19101_vm3 = vmmov %vm19098_vm0 }
 0x61c   : > { %13025 = vmatprep.mubr.msk.bf16.mxu0 %vm19094_vm5, %v16213_v25  ;;  %vm19102_vm5 = vmmov %vm19098_vm0 }
 0x623   : > { %13026 = vmatmul.mubr.msk.bf16.gmra.mrb[60].mxu0 %vm19095_vm8, %v5376_v27  ;;  %vm19103_vm8 = vmmov %vm19098_vm0 }
 0x624   : > { %13031 = vmatprep.mubr.msk.bf16.mxu0 %vm19096_vm15, %v16225_v23  ;;  %v14336_v23 = vld [vmem:[%s18589_s7 + $0x58] sm:$0xff]   ;;  %vm19104_vm15 = vmmov %vm19098_vm0 }
 0x62b   : > { %13032 = vmatmul.mubr.msk.bf16.vlgmr.msra.gmra.mrb[32].mxu0 %vm19097_vm1, %v16231_v6  ;;  %vm19105_vm1 = vmmov %vm19098_vm0 }
 0x62c   : > { %13064 = vmatpush3.bf16.msra.mxu0 %v14333_v45  ;;  %13035 = vmatprep.mubr.msk.bf16.mxu0 %vm19098_vm0, %v16233_v11  ;;  %v5666_v45 = vld [vmem:[#allocation2 + $0x88] sm:$0xff] }
 0x62d   : > { %13065 = vmatprep.subr.bf16.mxu0 %v14334_v51 }
 0x630   : > { %13066 = vmatpush3.bf16.msra.mxu0 %v14334_v51 }
 0x631   : > { %13067 = vmatprep.subr.bf16.mxu0 %v14335_v30 }
 0x633   : > { %13036 = vmatmul.mubr.msk.bf16.gmra.mrb[36].mxu0 %vm19099_vm9, %v16239_v24  ;;  %vm19106_vm9 = vmmov %vm19098_vm0 }
 0x634   : > { %13039 = vmatprep.mubr.msk.bf16.mxu0 %vm19100_vm2, %v16241_v48  ;;  %13068 = vmatpush3.bf16.msra.mxu0 %v14335_v30  ;;  %vm19107_vm2 = vmmov %vm19098_vm0 }
 0x635   : > { %13069 = vmatprep.subr.bf16.mxu0 %v14336_v23 }
 0x638   : > { %13070 = vmatpush3.bf16.msra.mxu0 %v14336_v23 }
 0x63b   : > { %13040 = vmatmul.mubr.msk.bf16.gmra.mrb[40].mxu0 %vm19101_vm3, %v16247_v37  ;;  %vm19108_vm3 = vmmov %vm19098_vm0 }
 0x63c   : > { %13043 = vmatprep.mubr.msk.bf16.mxu0 %vm19102_vm5, %v16249_v41  ;;  %vm19109_vm5 = vmmov %vm19098_vm0 }
 0x643   : > { %13044 = vmatmul.mubr.msk.bf16.gmra.mrb[44].mxu0 %vm19103_vm8, %v16255_v42  ;;  %vm19110_vm8 = vmmov %vm19098_vm0 }
 0x644   : > { %13047 = vmatprep.mubr.msk.bf16.mxu0 %vm19104_vm15, %v16257_v3  ;;  %vm19111_vm15 = vcmask 523264  }
 0x64b   : > { %13048 = vmatmul.mubr.msk.bf16.gmra.mrb[48].mxu0 %vm19105_vm1, %v16263_v13  ;;  %vm19112_vm1 = vmmov %vm19111_vm15 }
 0x64c   : > { %13051 = vmatprep.mubr.msk.bf16.mxu0 %vm19098_vm0, %v16265_v49  ;;  %vm19113_vm0 = vmmov %vm19112_vm1 }
 0x653   : > { %13052 = vmatmul.mubr.msk.bf16.gmra.mrb[52].mxu0 %vm19106_vm9, %v16271_v18  ;;  %vm19114_vm9 = vmmov %vm19113_vm0 }
 0x654   : > { %13055 = vmatprep.mubr.msk.bf16.mxu0 %vm19107_vm2, %v16273_v9  ;;  %vm19115_vm2 = vmmov %vm19113_vm0 }
 0x65b   : > { %13056 = vmatmul.mubr.msk.bf16.gmra.mrb[56].mxu0 %vm19108_vm3, %v16279_v36  ;;  %vm19116_vm3 = vmmov %vm19113_vm0 }
 0x65c   : > { %13059 = vmatprep.mubr.msk.bf16.mxu0 %vm19109_vm5, %v5114_v44  ;;  %vm19117_vm5 = vmmov %vm19113_vm0 }
 0x663   : > { %13060 = vmatmul.mubr.msk.bf16.gmra.mrb[60].mxu0 %vm19110_vm8, %v5666_v45  ;;  %vm19118_vm8 = vmmov %vm19113_vm0 }
 0x664   : > { %13071 = vmatprep.mubr.msk.bf16.mxu0 %vm19111_vm15, %v16135_v59  ;;  %vm19119_vm15 = vmmov %vm19113_vm0  ;;  %v16430_v59 = vld [vmem:[#allocation3] sm:$0xff] }
 0x66b   : > { %13072 = vmatmul.mubr.msk.bf16.vlgmr.msra.gmra.mrb[32].mxu0 %vm19112_vm1, %v16139_v14  ;;  %vm19120_vm1 = vmmov %vm19113_vm0 }
 0x66c   : > { %13075 = vmatprep.mubr.msk.bf16.mxu0 %vm19113_vm0, %v16145_v63 }
 0x673   : > { %13076 = vmatmul.mubr.msk.bf16.gmra.mrb[36].mxu0 %vm19114_vm9, %v16149_v61  ;;  %vm19121_vm9 = vmmov %vm19113_vm0 }
 0x674   : > { %13079 = vmatprep.mubr.msk.bf16.mxu0 %vm19115_vm2, %v16155_v60  ;;  %vm19122_vm2 = vmmov %vm19113_vm0 }
 0x67b   : > { %13080 = vmatmul.mubr.msk.bf16.gmra.mrb[40].mxu0 %vm19116_vm3, %v16159_v33  ;;  %vm19123_vm3 = vmmov %vm19113_vm0 }
 0x67c   : > { %13083 = vmatprep.mubr.msk.bf16.mxu0 %vm19117_vm5, %v16165_v39  ;;  %vm19124_vm5 = vmmov %vm19113_vm0 }
 0x683   : > { %13084 = vmatmul.mubr.msk.bf16.gmra.mrb[44].mxu0 %vm19118_vm8, %v16169_v50  ;;  %vm19125_vm8 = vmmov %vm19113_vm0 }
 0x684   : > { %13087 = vmatprep.mubr.msk.bf16.mxu0 %vm19119_vm15, %v16175_v19  ;;  %vm19126_vm15 = vcmp.lt.s32.totalorder %v14630_v32, 1 }
 0x68b   : > { %13088 = vmatmul.mubr.msk.bf16.gmra.mrb[48].mxu0 %vm19120_vm1, %v16179_v52  ;;  %vm19127_vm1 = vmmov %vm19126_vm15 }
 0x68c   : > { %13091 = vmatprep.mubr.msk.bf16.mxu0 %vm19113_vm0, %v16185_v56  ;;  %vm19128_vm0 = vmmov %vm19127_vm1 }
 0x693   : > { %13092 = vmatmul.mubr.msk.bf16.gmra.mrb[52].mxu0 %vm19121_vm9, %v16189_v26  ;;  %vm19129_vm9 = vmmov %vm19128_vm0 }
 0x694   : > { %13095 = vmatprep.mubr.msk.bf16.mxu0 %vm19122_vm2, %v16206_v28  ;;  %vm19130_vm2 = vmmov %vm19128_vm0 }
 0x69b   : > { %13096 = vmatmul.mubr.msk.bf16.gmra.mrb[56].mxu0 %vm19123_vm3, %v16213_v25  ;;  %vm19131_vm3 = vmmov %vm19128_vm0 }
 0x69c   : > { %13099 = vmatprep.mubr.msk.bf16.mxu0 %vm19124_vm5, %v5376_v27  ;;  %vm19132_vm5 = vmmov %vm19128_vm0 }
 0x6a3   : > { %13100 = vmatmul.mubr.msk.bf16.gmra.mrb[60].mxu0 %vm19125_vm8, %v16430_v59  ;;  %vm19133_vm8 = vmmov %vm19128_vm0 }
 0x6a4   : > { %13353 = vmatprep.mubr.bf16.mxu0 %v16430_v59 }
 0x73e   : > { %v13073_v14 = vpop.f32.mrb[32].mxu0 }
 0x73f   : > { %6303 = vrot.lane.b32.xlu1 %v13073_v14, %s14393_s16  ;;  %v16436_v63 = vpop.f32.mrb[33].mxu0  ;;  %v6205_v60 = vrot.slane %v13073_v14, 7 }
 0x740   : > { %6299 = vrot.lane.b32.xlu0 %v16436_v63, %s14393_s16  ;;  %v13074_v61 = vpop.f32.mrb[34].mxu0  ;;  %v18698_v50 = vrot.slane %v16436_v63, 7 }
 0x741   : > { %v6206_v33 = vrot.slane %v13074_v61, 7  ;;  %v6047_v39 = vpop.f32.mrb[35].mxu0 }
 0x742   : > { %v6204_v19 = vrot.slane %v6047_v39, 7 }
 0x743   : > { %6495 = vrot.lane.b32.xlu1 %v13073_v14, %s14392_s30  ;;  %v16444_v52 = vsel %vm19126_vm15, %v6205_v60, %v6206_v33  ;;  %vm19134_vm15 = vmmov %vm19128_vm0 }
 0x744   : > { %6497 = vrot.lane.b32.xlu0 %v13074_v61, %s14392_s30  ;;  %v16449_v56 = vsel %vm19127_vm1, %v6204_v19, %v6205_v60  ;;  %v16455_v26 = vsel %vm19128_vm0, %v18698_v50, %v6204_v19  ;;  %vm19135_vm1 = vmmov %vm19128_vm0 }
 0x746   : > { %v13077_v28 = vpop.f32.mrb[36].mxu0 }
 0x747   : > { %6491 = vrot.lane.b32.xlu1 %v16436_v63, %s14392_s30  ;;  %v6060_v25 = vpop.f32.mrb[37].mxu0  ;;  %v6209_v24 = vrot.slane %v13077_v28, 7 }
 0x748   : > { %v6207_v6 = vrot.slane %v6060_v25, 7  ;;  %6301 = vrot.lane.b32.xlu0 %v6047_v39, %s14393_s16  ;;  %v13078_v11 = vpop.f32.mrb[38].mxu0 }
 0x749   : > { %v6210_v48 = vrot.slane %v13078_v11, 7  ;;  %v6063_v37 = vpop.f32.mrb[39].mxu0 }
 0x74a   : > { %v6208_v41 = vrot.slane %v6063_v37, 7  ;;  %v16462_v42 = vsel %vm19129_vm9, %v6206_v33, %v6207_v6  ;;  %vm19136_vm9 = vmmov %vm19128_vm0 }
 0x74b   : > { %6305 = vrot.lane.b32.xlu1 %v13074_v61, %s14393_s16  ;;  %v16467_v3 = vsel %vm19130_vm2, %v6209_v24, %v6210_v48  ;;  %vm19137_vm2 = vmmov %vm19128_vm0 }
 0x74c   : > { %6493 = vrot.lane.b32.xlu0 %v6047_v39, %s14392_s30  ;;  %v16472_v13 = vsel %vm19131_vm3, %v6208_v41, %v6209_v24  ;;  %v16476_v49 = vsel %vm19132_vm5, %v6207_v6, %v6208_v41  ;;  %vm19138_vm3 = vmmov %vm19128_vm0 }
 0x74d   : > { %vm19139_vm5 = vmmov %vm19128_vm0 }
 0x74e   : > { %v13081_v18 = vpop.f32.mrb[40].mxu0 }
 0x74f   : > { %6503 = vrot.lane.b32.xlu1 %v13077_v28, %s14392_s30  ;;  %v6076_v9 = vpop.f32.mrb[41].mxu0  ;;  %v6213_v43 = vrot.slane %v13081_v18, 7 }
 0x750   : > { %v6211_v36 = vrot.slane %v6076_v9, 7  ;;  %6311 = vrot.lane.b32.xlu0 %v13077_v28, %s14393_s16  ;;  %v13082_v44 = vpop.f32.mrb[42].mxu0 }
 0x751   : > { %v6214_v27 = vrot.slane %v13082_v44, 7  ;;  %v6079_v51 = vpop.f32.mrb[43].mxu0 }
 0x752   : > { %v6212_v30 = vrot.slane %v6079_v51, 7  ;;  %v16482_v23 = vsel %vm19133_vm8, %v6210_v48, %v6211_v36  ;;  %vm19140_vm8 = vmmov %vm19128_vm0 }
 0x753   : > { %6499 = vrot.lane.b32.xlu1 %v6060_v25, %s14392_s30  ;;  %v16487_v45 = vsel %vm19134_vm15, %v6213_v43, %v6214_v27  ;;  %vm19141_vm15 = vmmov %vm19128_vm0 }
 0x754   : > { %6307 = vrot.lane.b32.xlu0 %v6060_v25, %s14393_s16  ;;  %v16492_v14 = vsel %vm19135_vm1, %v6212_v30, %v6213_v43  ;;  %v16496_v61 = vsel %vm19128_vm0, %v6211_v36, %v6212_v30  ;;  %vm19143_vm1 = vmmov %vm19128_vm0 }
 0x756   : > { %v13085_v60 = vpop.f32.mrb[44].mxu0 }
 0x757   : > { %6313 = vrot.lane.b32.xlu1 %v13078_v11, %s14393_s16  ;;  %v6092_v33 = vpop.f32.mrb[45].mxu0  ;;  %v6217_v28 = vrot.slane %v13085_v60, 7 }
 0x758   : > { %v6215_v39 = vrot.slane %v6092_v33, 7  ;;  %6505 = vrot.lane.b32.xlu0 %v13078_v11, %s14392_s30  ;;  %v13086_v19 = vpop.f32.mrb[46].mxu0 }
 0x759   : > { %v6218_v6 = vrot.slane %v13086_v19, 7  ;;  %v16500_v24 = vpop.f32.mrb[47].mxu0 }
 0x75a   : > { %v6216_v25 = vrot.slane %v16500_v24, 7  ;;  %v16505_v48 = vsel %vm19136_vm9, %v6214_v27, %v6215_v39  ;;  %vm19145_vm9 = vmmov %vm19128_vm0 }
 0x75b   : > { %6309 = vrot.lane.b32.xlu1 %v6063_v37, %s14393_s16  ;;  %v16510_v41 = vsel %vm19137_vm2, %v6217_v28, %v6218_v6  ;;  %vm19147_vm2 = vmmov %vm19128_vm0 }
 0x75c   : > { %6501 = vrot.lane.b32.xlu0 %v6063_v37, %s14392_s30  ;;  %v16515_v11 = vsel %vm19138_vm3, %v6216_v25, %v6217_v28  ;;  %v16519_v36 = vsel %vm19139_vm5, %v6215_v39, %v6216_v25  ;;  %vm19149_vm3 = vmmov %vm19128_vm0 }
 0x75d   : > { %vm19151_vm5 = vmmov %vm19128_vm0 }
 0x75e   : > { %v16521_v43 = vpop.f32.mrb[48].mxu0 }
 0x75f   : > { %6511 = vrot.lane.b32.xlu1 %v13081_v18, %s14392_s30  ;;  %v16524_v27 = vpop.f32.mrb[49].mxu0  ;;  %v6221_v37 = vrot.slane %v16521_v43, 7 }
 0x760   : > { %v6219_v30 = vrot.slane %v16524_v27, 7  ;;  %6319 = vrot.lane.b32.xlu0 %v13081_v18, %s14393_s16  ;;  %v16528_v50 = vpop.f32.mrb[50].mxu0 }
 0x761   : > { %v6222_v28 = vrot.slane %v16528_v50, 7  ;;  %v16532_v5 = vpop.f32.mrb[51].mxu0 }
 0x762   : > { %v6220_v39 = vrot.slane %v16532_v5, 7  ;;  %v16537_v25 = vsel %vm19140_vm8, %v6218_v6, %v6219_v30  ;;  %vm19153_vm8 = vmmov %vm19128_vm0 }
 0x763   : > { %6507 = vrot.lane.b32.xlu1 %v6076_v9, %s14392_s30  ;;  %v16542_v7 = vsel %vm19141_vm15, %v6221_v37, %v6222_v28  ;;  %vm19155_vm15 = vmmov %vm19128_vm0 }
 0x764   : > { %19142 = vst [vmem:[#allocation6_spill] sm:$0xff] %v16542_v7  ;;  %6315 = vrot.lane.b32.xlu0 %v6076_v9, %s14393_s16  ;;  %v16547_v18 = vsel %vm19143_vm1, %v6220_v39, %v6221_v37  ;;  %v16551_v22 = vsel %vm19128_vm0, %v6219_v30, %v6220_v39  ;;  %vm19157_vm1 = vmmov %vm19128_vm0 }
 0x765   : > { %19144 = vst [vmem:[#allocation5_spill] sm:$0xff] %v16547_v18 }
 0x766   : > { %v13093_v16 = vpop.f32.mrb[52].mxu0 }
 0x767   : > { %6321 = vrot.lane.b32.xlu1 %v13082_v44, %s14393_s16  ;;  %v6124_v6 = vpop.f32.mrb[53].mxu0  ;;  %v6225_v53 = vrot.slane %v13093_v16, 7 }
 0x768   : > { %v6223_v1 = vrot.slane %v6124_v6, 7  ;;  %6513 = vrot.lane.b32.xlu0 %v13082_v44, %s14392_s30  ;;  %v13094_v54 = vpop.f32.mrb[54].mxu0 }
 0x769   : > { %v6226_v29 = vrot.slane %v13094_v54, 7  ;;  %v6127_v55 = vpop.f32.mrb[55].mxu0 }
 0x76a   : > { %v6224_v9 = vrot.slane %v6127_v55, 7  ;;  %v16557_v37 = vsel %vm19145_vm9, %v6222_v28, %v6223_v1  ;;  %vm19161_vm9 = vmmov %vm19128_vm0 }
 0x76b   : > { %19146 = vst [vmem:[#allocation8_spill] sm:$0xff] %v16557_v37  ;;  %6317 = vrot.lane.b32.xlu1 %v6079_v51, %s14393_s16  ;;  %v16562_v30 = vsel %vm19147_vm2, %v6225_v53, %v6226_v29  ;;  %vm19163_vm2 = vmmov %vm19128_vm0 }
 0x76c   : > { %19148 = vst [vmem:[#allocation7_spill] sm:$0xff] %v16562_v30  ;;  %6509 = vrot.lane.b32.xlu0 %v6079_v51, %s14392_s30  ;;  %v16567_v44 = vsel %vm19149_vm3, %v6224_v9, %v6225_v53  ;;  %v16571_v39 = vsel %vm19151_vm5, %v6223_v1, %v6224_v9  ;;  %vm19164_vm3 = vmmov %vm19128_vm0 }
 0x76d   : > { %19150 = vst [vmem:[#allocation10_spill] sm:$0xff] %v16567_v44  ;;  %19152 = vst [vmem:[#allocation9_spill] sm:$0xff] %v16571_v39 }
 0x76e   : > { %v13097_v38 = vpop.f32.mrb[56].mxu0  ;;  %vm19165_vm5 = vmmov %vm19128_vm0 }
 0x76f   : > { %6519 = vrot.lane.b32.xlu1 %v13085_v60, %s14392_s30  ;;  %v6140_v28 = vpop.f32.mrb[57].mxu0  ;;  %v6229_v12 = vrot.slane %v13097_v38, 7 }
 0x770   : > { %v6227_v37 = vrot.slane %v6140_v28, 7  ;;  %6327 = vrot.lane.b32.xlu0 %v13085_v60, %s14393_s16  ;;  %v13098_v7 = vpop.f32.mrb[58].mxu0 }
 0x771   : > { %v6230_v30 = vrot.slane %v13098_v7, 7  ;;  %v6143_v18 = vpop.f32.mrb[59].mxu0 }
 0x772   : > { %v6228_v51 = vrot.slane %v6143_v18, 7  ;;  %v16577_v53 = vsel %vm19153_vm8, %v6226_v29, %v6227_v37  ;;  %vm19166_vm8 = vmmov %vm19128_vm0 }
 0x773   : > { %19154 = vst [vmem:[#allocation26_spill] sm:$0xff] %v16577_v53  ;;  %6515 = vrot.lane.b32.xlu1 %v6092_v33, %s14392_s30  ;;  %v16582_v1 = vsel %vm19155_vm15, %v6229_v12, %v6230_v30  ;;  %vm19167_vm15 = vcmp.lt.s32.totalorder %v14630_v32, 7 }
 0x774   : > { %19156 = vst [vmem:[#allocation27_spill] sm:$0xff] %v16582_v1  ;;  %6323 = vrot.lane.b32.xlu0 %v6092_v33, %s14393_s16  ;;  %v16587_v60 = vsel %vm19157_vm1, %v6228_v51, %v6229_v12  ;;  %v16591_v9 = vsel %vm19128_vm0, %v6227_v37, %v6228_v51  ;;  %v19162_v51 = vrot.slane %v16436_v63, 7  ;;  %vm19168_vm1 = vmmov %vm19167_vm15  ;;  %vm18706_vm0 = vcmask 785408  }
 0x775   : > { %19158 = vst [vmem:[#allocation29_spill] sm:$0xff] %v16587_v60  ;;  %19159 = vst [vmem:[#allocation30_spill] sm:$0xff] %v16591_v9  ;;  %13115 = vmatprep.mubr.msk.bf16.mxu1 %vm18706_vm0, %v16430_v59 }
 0x776   : > { %v16593_v44 = vpop.f32.mrb[60].mxu0 }
 0x777   : > { %6329 = vrot.lane.b32.xlu1 %v13086_v19, %s14393_s16  ;;  %v6156_v29 = vpop.f32.mrb[61].mxu0  ;;  %v6233_v33 = vrot.slane %v16593_v44, 7 }
 0x778   : > { %v6231_v53 = vrot.slane %v6156_v29, 7  ;;  %6521 = vrot.lane.b32.xlu0 %v13086_v19, %s14392_s30  ;;  %v16597_v39 = vpop.f32.mrb[62].mxu0 }
 0x779   : > { %19160 = vst [vmem:[#allocation28_spill] sm:$0xff] %v16597_v39  ;;  %v6234_v1 = vrot.slane %v16597_v39, 7  ;;  %v6159_v12 = vpop.f32.mrb[63].mxu0 }
 0x77a   : > { %v6232_v60 = vrot.slane %v6159_v12, 7  ;;  %v16603_v37 = vsel %vm19161_vm9, %v6230_v30, %v6231_v53  ;;  %vm19169_vm9 = vmmov %vm19168_vm1 }
 0x77b   : > { %6325 = vrot.lane.b32.xlu1 %v16500_v24, %s14393_s16  ;;  %v6266_v19 = vsel %vm19163_vm2, %v6234_v1, %v19162_v51  ;;  %v16613_v9 = vsel %vm19164_vm3, %v6233_v33, %v6234_v1  ;;  %v16683_v1 = vld [vmem:[%s18594_s12] ss:$0 sm:$0xff]  ;;  %v14342_v51 = vld [vmem:[%s18590_s8 + $0x28] sm:$0xff]  }
 0x77c   : > { %6517 = vrot.lane.b32.xlu0 %v16500_v24, %s14392_s30  ;;  %v16619_v39 = vsel %vm19165_vm5, %v6231_v53, %v6232_v60  ;;  %v16623_v30 = vsel %vm19166_vm8, %v6232_v60, %v6233_v33  ;;  %vm19170_vm5 = vmmov %vm19168_vm1 }
 0x77f   : > { %6527 = vrot.lane.b32.xlu1 %v16521_v43, %s14392_s30 }
 0x780   : > { %6335 = vrot.lane.b32.xlu0 %v16521_v43, %s14393_s16 }
 0x783   : > { %6523 = vrot.lane.b32.xlu1 %v16524_v27, %s14392_s30 }
 0x784   : > { %6331 = vrot.lane.b32.xlu0 %v16524_v27, %s14393_s16 }
 0x787   : > { %6337 = vrot.lane.b32.xlu1 %v16528_v50, %s14393_s16 }
 0x788   : > { %6529 = vrot.lane.b32.xlu0 %v16528_v50, %s14392_s30  ;;  %v14340_v50 = vld [vmem:[%s18590_s8 + $0x18] sm:$0xff]  }
 0x78b   : > { %6333 = vrot.lane.b32.xlu1 %v16532_v5, %s14393_s16 }
 0x78c   : > { %6525 = vrot.lane.b32.xlu0 %v16532_v5, %s14392_s30 }
 0x78f   : > { %6535 = vrot.lane.b32.xlu1 %v13093_v16, %s14392_s30 }
 0x790   : > { %6343 = vrot.lane.b32.xlu0 %v13093_v16, %s14393_s16  ;;  %v14338_v16 = vld [vmem:[%s18590_s8 + $0x8] sm:$0xff]  }
 0x793   : > { %6531 = vrot.lane.b32.xlu1 %v6124_v6, %s14392_s30 }
 0x794   : > { %6339 = vrot.lane.b32.xlu0 %v6124_v6, %s14393_s16  ;;  %v6459_v6 = vsel %vm14933_vm4, %v6266_v19, 0.0 }
 0x797   : > { %6345 = vrot.lane.b32.xlu1 %v13094_v54, %s14393_s16 }
 0x798   : > { %6537 = vrot.lane.b32.xlu0 %v13094_v54, %s14392_s30 }
 0x79b   : > { %6341 = vrot.lane.b32.xlu1 %v6127_v55, %s14393_s16 }
 0x79c   : > { %6533 = vrot.lane.b32.xlu0 %v6127_v55, %s14392_s30  ;;  %v14337_v55 = vld [vmem:[%s18590_s8] sm:$0xff]  }
 0x79d   : > { %13103 = vmatprep.subr.bf16.mxu1 %v14337_v55 }
 0x79e   : > { %13104 = vmatpush3.bf16.msra.mxu1 %v14337_v55 }
 0x79f   : > { %6539 = vrot.lane.b32.xlu1 %v6140_v28, %s14392_s30  ;;  %13105 = vmatprep.subr.bf16.mxu1 %v14338_v16 }
 0x7a0   : > { %6351 = vrot.lane.b32.xlu0 %v13097_v38, %s14393_s16 }
 0x7a2   : > { %13106 = vmatpush3.bf16.msra.mxu1 %v14338_v16 }
 0x7a3   : > { %6353 = vrot.lane.b32.xlu1 %v13098_v7, %s14393_s16 }
 0x7a4   : > { %6347 = vrot.lane.b32.xlu0 %v6140_v28, %s14393_s16 }
 0x7a7   : > { %6349 = vrot.lane.b32.xlu1 %v6143_v18, %s14393_s16 }
 0x7a8   : > { %6545 = vrot.lane.b32.xlu0 %v13098_v7, %s14392_s30 }
 0x7ab   : > { %6543 = vrot.lane.b32.xlu1 %v13097_v38, %s14392_s30  ;;  %v14339_v38 = vld [vmem:[%s18590_s8 + $0x10] sm:$0xff]  }
 0x7ac   : > { %6541 = vrot.lane.b32.xlu0 %v6143_v18, %s14392_s30  ;;  %13107 = vmatprep.subr.bf16.mxu1 %v14339_v38 }
 0x7ad   : > { %13108 = vmatpush3.bf16.msra.mxu1 %v14339_v38 }
 0x7ae   : > { %13109 = vmatprep.subr.bf16.mxu1 %v14340_v50 }
 0x7af   : > { %6357 = vrot.lane.b32.xlu1 %v6159_v12, %s14393_s16 }
 0x7b0   : > { %6359 = vrot.lane.b32.xlu0 %v16593_v44, %s14393_s16 }
 0x7b1   : > { %v6304_v54 = vpop.permute.xlu1 %6303  ;;  %13110 = vmatpush3.bf16.msra.mxu1 %v14340_v50 }
 0x7b2   : > { %v16666_v7 = vpop.permute.xlu0 %6299  ;;  %v6397_v27 = vrot.slane %v6304_v54, 1 }
 0x7b3   : > { %6547 = vrot.lane.b32.xlu1 %v6156_v29, %s14392_s30  ;;  %v18705_v18 = vrot.slane %v16666_v7, 1 }
 0x7b4   : > { %6355 = vrot.lane.b32.xlu0 %v6156_v29, %s14393_s16 }
 0x7b5   : > { %v6496_v5 = vpop.permute.xlu1 %6495 }
 0x7b6   : > { %v6498_v63 = vpop.permute.xlu0 %6497 }
 0x7b8   : > { %6549 = vrot.lane.b32.xlu0 %v6159_v12, %s14392_s30  ;;  %v14341_v12 = vld [vmem:[%s18590_s8 + $0x20] sm:$0xff]  }
 0x7b9   : > { %v6492_v24 = vpop.permute.xlu1 %6491  ;;  %13111 = vmatprep.subr.bf16.mxu1 %v14341_v12 }
 0x7ba   : > { %v6302_v43 = vpop.permute.xlu0 %6301  ;;  %v6587_v53 = vadd.f32 %v6492_v24, %v6459_v6  ;;  %13112 = vmatpush3.bf16.msra.mxu1 %v14341_v12  ;;  %v6461_v6 = vsel %vm14964_vm7, %v16449_v56, 0.0  ;;  %v6590_v56 = vadd.f32 %v6498_v63, %v16444_v52 }
 0x7bb   : > { %v6396_v28 = vrot.slane %v6302_v43, 1  ;;  %13113 = vmatprep.subr.bf16.mxu1 %v14342_v51 }
 0x7bd   : > { %v6457_v60 = vsel %vm19167_vm15, %v18705_v18, %v6396_v28  ;;  %v6306_v29 = vpop.permute.xlu1 %6305  ;;  %v6456_v33 = vsel %vm19168_vm1, %v6396_v28, %v6397_v27 }
 0x7be   : > { %v6651_v19 = vadd.f32 %v6587_v53, %v6457_v60  ;;  %v6398_v55 = vrot.slane %v6306_v29, 1  ;;  %v6494_v54 = vpop.permute.xlu0 %6493  ;;  %v6620_v50 = vsel %vm14960_vm6, %v6456_v33, 0.0  ;;  %v6589_v53 = vadd.f32 %v6496_v5, %v6461_v6  ;;  %13114 = vmatpush3.bf16.msra.mxu1 %v14342_v51 }
 0x7bf   : > { %v6588_v16 = vadd.f32 %v6494_v54, %v16455_v26 }
 0x7c0   : > { %v6690_v38 = vadd.f32 %v16683_v1, %v6651_v19  ;;  %v6455_v28 = vsel %vm19169_vm9, %v6397_v27, %v6398_v55  ;;  %vm19171_vm9 = vmmov %vm19168_vm1 }
 0x7c1   : > { %v6652_v24 = vadd.f32 %v6620_v50, %v6588_v16  ;;  %v6504_v43 = vpop.permute.xlu1 %6503  ;;  %v6653_v29 = vadd.f32 %v6589_v53, %v6455_v28 }
 0x7c2   : > { %v6312_v59 = vpop.permute.xlu0 %6311  ;;  %v6754_v60 = vmul.f32 0.2, %v6690_v38  ;;  %vm6722_vm2 = vcmp.ge.f32.partialorder %v6690_v38, 0.0 }
 0x7c3   : > { %v6691_v26 = vadd.f32 %v16683_v1, %v6652_v24  ;;  %v6692_v27 = vadd.f32 %v16683_v1, %v6653_v29 }
 0x7c4   : > { %v6786_v16 = vsel %vm6722_vm2, %v6690_v38, %v6754_v60  ;;  %v6463_v38 = vsel %vm14997_vm11, %v16462_v42, 0.0  ;;  %vm19172_vm2 = vmmov %vm19168_vm1 }
 0x7c5   : > { %vm6723_vm3 = vcmp.ge.f32.partialorder %v6691_v26, 0.0  ;;  %v6755_v33 = vmul.f32 0.2, %v6691_v26  ;;  %v6500_v12 = vpop.permute.xlu1 %6499  ;;  %v6756_v63 = vmul.f32 0.2, %v6692_v27  ;;  %vm6724_vm8 = vcmp.ge.f32.partialorder %v6692_v27, 0.0  ;;  %vm19178_vm0 = vmmov %vm19172_vm2 }
 0x7c6   : > { %v6308_v19 = vpop.permute.xlu0 %6307 }
 0x7c7   : > { %v6399_v54 = vrot.slane %v6308_v19, 1  ;;  %v6787_v50 = vsel %vm6723_vm3, %v6691_v26, %v6755_v33  ;;  %v6401_v26 = vrot.slane %v6312_v59, 1  ;;  %v6591_v33 = vadd.f32 %v6500_v12, %v6463_v38 }
 0x7c8   : > { %v6818_v18 = vpack.c.bf16 %v6787_v50, %v6786_v16  ;;  %v6465_v12 = vsel %vm15002_vm13, %v16472_v13, 0.0 }
 0x7c9   : > { %v6454_v5 = vsel %vm19170_vm5, %v6398_v55, %v6399_v54  ;;  %v6314_v24 = vpop.permute.xlu1 %6313  ;;  %v6593_v38 = vadd.f32 %v6504_v43, %v6465_v12 }
 0x7ca   : > { %v6622_v51 = vsel %vm14984_vm10, %v6454_v5, 0.0  ;;  %v6506_v6 = vpop.permute.xlu0 %6505  ;;  %6850 = vrot.lane.b32.xlu1 %v6818_v18, %s14393_s16  ;;  %v6402_v60 = vrot.slane %v6314_v24, 1  ;;  %v6788_v5 = vsel %vm6724_vm8, %v6692_v27, %v6756_v63  ;;  %vm19173_vm8 = vmmov %vm19168_vm1 }
 0x7cb   : > { %v6654_v28 = vadd.f32 %v6622_v51, %v6590_v56  ;;  %v6594_v43 = vadd.f32 %v6506_v6, %v16467_v3 }
 0x7cd   : > { %v6693_v53 = vadd.f32 %v16683_v1, %v6654_v28  ;;  %v6310_v52 = vpop.permute.xlu1 %6309 }
 0x7ce   : > { %v6400_v29 = vrot.slane %v6310_v52, 1  ;;  %v6502_v55 = vpop.permute.xlu0 %6501 }
 0x7cf   : > { %v6592_v19 = vadd.f32 %v6502_v55, %v16476_v49  ;;  %vm6725_vm15 = vcmp.ge.f32.partialorder %v6693_v53, 0.0  ;;  %v6757_v16 = vmul.f32 0.2, %v6693_v53  ;;  %v6451_v49 = vsel %vm19172_vm2, %v6401_v26, %v6402_v60 }
 0x7d0   : > { %v6453_v18 = vsel %vm19168_vm1, %v6399_v54, %v6400_v29  ;;  %v6452_v42 = vsel %vm19171_vm9, %v6400_v29, %v6401_v26  ;;  %v6657_v55 = vadd.f32 %v6593_v38, %v6451_v49 }
 0x7d1   : > { %v6655_v50 = vadd.f32 %v6591_v33, %v6453_v18  ;;  %v6624_v56 = vsel %vm15009_vm14, %v6452_v42, 0.0  ;;  %v6512_v59 = vpop.permute.xlu1 %6511  ;;  %v6789_v24 = vsel %vm6725_vm15, %v6693_v53, %v6757_v16  ;;  %vm19174_vm15 = vnez %v18736_v57 }
 0x7d2   : > { %v6656_v51 = vadd.f32 %v6624_v56, %v6592_v19  ;;  %v6320_v28 = vpop.permute.xlu0 %6319  ;;  %v6819_v54 = vpack.c.bf16 %v6789_v24, %v6788_v5  ;;  %v6696_v19 = vadd.f32 %v16683_v1, %v6657_v55  ;;  %v6467_v12 = vsel %vm19174_vm15, %v16482_v23, 0.0 }
 0x7d3   : > { %v6694_v52 = vadd.f32 %v16683_v1, %v6655_v50  ;;  %v6405_v6 = vrot.slane %v6320_v28, 1  ;;  %vm19285_vm15 = vcmask 1041408  }
 0x7d4   : > { %v6695_v29 = vadd.f32 %v16683_v1, %v6656_v51  ;;  %6852 = vrot.lane.b32.xlu0 %v6819_v54, %s14393_s16  ;;  %v6760_v3 = vmul.f32 0.2, %v6696_v19  ;;  %vm6728_vm1 = vcmp.ge.f32.partialorder %v6696_v19, 0.0 }
 0x7d5   : > { %v6508_v27 = vpop.permute.xlu1 %6507  ;;  %vm6726_vm3 = vcmp.ge.f32.partialorder %v6694_v52, 0.0  ;;  %v6758_v53 = vmul.f32 0.2, %v6694_v52 }
 0x7d6   : > { %vm6727_vm5 = vcmp.ge.f32.partialorder %v6695_v29, 0.0  ;;  %v6759_v63 = vmul.f32 0.2, %v6695_v29  ;;  %v6316_v13 = vpop.permute.xlu0 %6315 }
 0x7d7   : > { %v6403_v33 = vrot.slane %v6316_v13, 1  ;;  %v6790_v16 = vsel %vm6726_vm3, %v6694_v52, %v6758_v53  ;;  %v6595_v52 = vadd.f32 %v6508_v27, %v6467_v12  ;;  %vm19175_vm3 = vmmov %vm19172_vm2 }
 0x7d8   : > { %v6791_v26 = vsel %vm6727_vm5, %v6695_v29, %v6759_v63  ;;  %vm19176_vm5 = vnez %v18972_v35 }
 0x7d9   : > { %v6450_v18 = vsel %vm19173_vm8, %v6402_v60, %v6403_v33  ;;  %v6322_v42 = vpop.permute.xlu1 %6321  ;;  %v6820_v50 = vpack.c.bf16 %v6791_v26, %v6790_v16  ;;  %v6792_v16 = vsel %vm6728_vm1, %v6696_v19, %v6760_v3  ;;  %vm19177_vm8 = vnez %v18974_v58 }
 0x7da   : > { %v6626_v56 = vsel %vm15051_vm12, %v6450_v18, 0.0  ;;  %v6514_v5 = vpop.permute.xlu0 %6513  ;;  %v6406_v54 = vrot.slane %v6322_v42, 1  ;;  %v6469_v27 = vsel %vm19177_vm8, %v16492_v14, 0.0  ;;  %vm19183_vm8 = vnez %v18982_v47 }
 0x7db   : > { %v6658_v24 = vadd.f32 %v6626_v56, %v6594_v43  ;;  %6854 = vrot.lane.b32.xlu1 %v6820_v50, %s14393_s16  ;;  %v6597_v42 = vadd.f32 %v6512_v59, %v6469_v27  ;;  %v6598_v59 = vadd.f32 %v6514_v5, %v16487_v45 }
 0x7dd   : > { %v6697_v49 = vadd.f32 %v16683_v1, %v6658_v24  ;;  %v6318_v51 = vpop.permute.xlu1 %6317 }
 0x7de   : > { %v6404_v60 = vrot.slane %v6318_v51, 1  ;;  %v6510_v38 = vpop.permute.xlu0 %6509 }
 0x7df   : > { %v6596_v29 = vadd.f32 %v6510_v38, %v16496_v61  ;;  %vm6729_vm9 = vcmp.ge.f32.partialorder %v6697_v49, 0.0  ;;  %v6761_v55 = vmul.f32 0.2, %v6697_v49  ;;  %v6447_v61 = vsel %vm19178_vm0, %v6405_v6, %v6406_v54 }
 0x7e0   : > { %v6449_v53 = vsel %vm19172_vm2, %v6403_v33, %v6404_v60  ;;  %v6448_v23 = vsel %vm19175_vm3, %v6404_v60, %v6405_v6  ;;  %v6661_v24 = vadd.f32 %v6597_v42, %v6447_v61  ;;  %vm19179_vm2 = vnez %v18744_v46 }
 0x7e1   : > { %v6659_v63 = vadd.f32 %v6595_v52, %v6449_v53  ;;  %v6628_v13 = vsel %vm19176_vm5, %v6448_v23, 0.0  ;;  %v6520_v28 = vpop.permute.xlu1 %6519  ;;  %v6793_v26 = vsel %vm6729_vm9, %v6697_v49, %v6761_v55  ;;  %vm19180_vm3 = vnez %v18746_v4  ;;  %vm19184_vm5 = vmmov %vm19178_vm0 }
 0x7e2   : > { %v6660_v43 = vadd.f32 %v6628_v13, %v6596_v29  ;;  %v6328_v18 = vpop.permute.xlu0 %6327  ;;  %v6821_v33 = vpack.c.bf16 %v6793_v26, %v6792_v16  ;;  %v6700_v60 = vadd.f32 %v16683_v1, %v6661_v24 }
 0x7e3   : > { %v6698_v50 = vadd.f32 %v16683_v1, %v6659_v63  ;;  %v6471_v63 = vsel %vm19180_vm3, %v16505_v48, 0.0  ;;  %v6409_v5 = vrot.slane %v6328_v18, 1  ;;  %vm19182_vm3 = vnez %v18980_v17 }
 0x7e4   : > { %v6699_v56 = vadd.f32 %v16683_v1, %v6660_v43  ;;  %6856 = vrot.lane.b32.xlu0 %v6821_v33, %s14393_s16  ;;  %v6764_v45 = vmul.f32 0.2, %v6700_v60 }
 0x7e5   : > { %v6516_v19 = vpop.permute.xlu1 %6515  ;;  %vm6730_vm1 = vcmp.ge.f32.partialorder %v6698_v50, 0.0  ;;  %v6762_v12 = vmul.f32 0.2, %v6698_v50 }
 0x7e6   : > { %vm6731_vm9 = vcmp.ge.f32.partialorder %v6699_v56, 0.0  ;;  %v6763_v49 = vmul.f32 0.2, %v6699_v56  ;;  %v6324_v14 = vpop.permute.xlu0 %6323  ;;  %v6599_v61 = vadd.f32 %v6516_v19, %v6471_v63  ;;  %v6473_v19 = vsel %vm19183_vm8, %v16515_v11, 0.0  ;;  %v16790_v63 = vld [vmem:[%s18586_s4] sm:$0x3] }
 0x7e7   : > { %v6407_v51 = vrot.slane %v6324_v14, 1  ;;  %v6794_v3 = vsel %vm6730_vm1, %v6698_v50, %v6762_v12  ;;  %vm6732_vm1 = vcmp.ge.f32.partialorder %v6700_v60, 0.0 }
 0x7e8   : > { %v6795_v6 = vsel %vm6731_vm9, %v6699_v56, %v6763_v49  ;;  %v6796_v24 = vsel %vm6732_vm1, %v6700_v60, %v6764_v45 }
 0x7e9   : > { %v6446_v38 = vsel %vm19178_vm0, %v6406_v54, %v6407_v51  ;;  %v6330_v52 = vpop.permute.xlu1 %6329  ;;  %v6822_v29 = vpack.c.bf16 %v6795_v6, %v6794_v3  ;;  %v6601_v3 = vadd.f32 %v6520_v28, %v6473_v19 }
 0x7ea   : > { %v6630_v55 = vsel %vm19179_vm2, %v6446_v38, 0.0  ;;  %v6522_v53 = vpop.permute.xlu0 %6521  ;;  %v6410_v26 = vrot.slane %v6330_v52, 1  ;;  %vm19181_vm2 = vmmov %vm19178_vm0 }
 0x7eb   : > { %v6662_v23 = vadd.f32 %v6630_v55, %v6598_v59  ;;  %6858 = vrot.lane.b32.xlu1 %v6822_v29, %s14393_s16 }
 0x7ed   : > { %v6701_v13 = vadd.f32 %v16683_v1, %v6662_v23  ;;  %v6326_v16 = vpop.permute.xlu1 %6325 }
 0x7ee   : > { %v6408_v54 = vrot.slane %v6326_v16, 1  ;;  %v6518_v27 = vpop.permute.xlu0 %6517  ;;  %v6602_v16 = vadd.f32 %v6522_v53, %v16510_v41 }
 0x7ef   : > { %v6600_v43 = vadd.f32 %v6518_v27, %v16519_v36  ;;  %vm6733_vm9 = vcmp.ge.f32.partialorder %v6701_v13, 0.0  ;;  %v6765_v33 = vmul.f32 0.2, %v6701_v13  ;;  %v6443_v36 = vsel %vm19184_vm5, %v6409_v5, %v6410_v26 }
 0x7f0   : > { %v6445_v42 = vsel %vm19178_vm0, %v6407_v51, %v6408_v54  ;;  %v6444_v48 = vsel %vm19181_vm2, %v6408_v54, %v6409_v5  ;;  %v6665_v38 = vadd.f32 %v6601_v3, %v6443_v36  ;;  %vm19185_vm5 = vcmask 1041408  }
 0x7f1   : > { %v6663_v50 = vadd.f32 %v6599_v61, %v6445_v42  ;;  %v6632_v56 = vsel %vm19182_vm3, %v6444_v48, 0.0  ;;  %v6528_v18 = vpop.permute.xlu1 %6527  ;;  %v6797_v12 = vsel %vm6733_vm9, %v6701_v13, %v6765_v33  ;;  %14299 = vmatprep.subr.msk.bf16.mxu1 %vm19185_vm5, %v16790_v63  ;;  %vm19186_vm9 = vmmov %vm19178_vm0  ;;  %vm19187_vm0 = vnez %v18759_v20 }
 0x7f2   : > { %v6664_v49 = vadd.f32 %v6632_v56, %v6600_v43  ;;  %v6336_v14 = vpop.permute.xlu0 %6335  ;;  %v6823_v51 = vpack.c.bf16 %v6797_v12, %v6796_v24  ;;  %v6704_v13 = vadd.f32 %v16683_v1, %v6665_v38  ;;  %v19192_v38 = vld [vmem:[#allocation11_spill] sm:$0xff] }
 0x7f3   : > { %v6702_v6 = vadd.f32 %v16683_v1, %v6663_v50  ;;  %v6413_v53 = vrot.slane %v6336_v14, 1  ;;  %vm19193_vm8 = vnez %v19192_v38 }
 0x7f4   : > { %v6703_v59 = vadd.f32 %v16683_v1, %v6664_v49  ;;  %6860 = vrot.lane.b32.xlu0 %v6823_v51, %s14393_s16  ;;  %v6768_v41 = vmul.f32 0.2, %v6704_v13 }
 0x7f5   : > { %v6524_v60 = vpop.permute.xlu1 %6523  ;;  %vm6734_vm2 = vcmp.ge.f32.partialorder %v6702_v6, 0.0  ;;  %v6766_v52 = vmul.f32 0.2, %v6702_v6 }
 0x7f6   : > { %vm6735_vm1 = vcmp.ge.f32.partialorder %v6703_v59, 0.0  ;;  %v6767_v29 = vmul.f32 0.2, %v6703_v59  ;;  %v6332_v11 = vpop.permute.xlu0 %6331 }
 0x7f7   : > { %v6411_v55 = vrot.slane %v6332_v11, 1  ;;  %v6798_v23 = vsel %vm6734_vm2, %v6702_v6, %v6766_v52  ;;  %vm19188_vm2 = vnez %v18762_v40 }
 0x7f8   : > { %v6799_v28 = vsel %vm6735_vm1, %v6703_v59, %v6767_v29  ;;  %v6475_v33 = vsel %vm19188_vm2, %v16537_v25, 0.0  ;;  %vm6736_vm1 = vcmp.ge.f32.partialorder %v6704_v13, 0.0  ;;  %vm19190_vm2 = vnez %v18990_v10  ;;  %v19191_v59 = vld [vmem:[#allocation5_spill] sm:$0xff] }
 0x7f9   : > { %v6442_v45 = vsel %vm19186_vm9, %v6410_v26, %v6411_v55  ;;  %v6338_v5 = vpop.permute.xlu1 %6337  ;;  %v6824_v54 = vpack.c.bf16 %v6799_v28, %v6798_v23  ;;  %v6603_v24 = vadd.f32 %v6524_v60, %v6475_v33  ;;  %v6800_v3 = vsel %vm6736_vm1, %v6704_v13, %v6768_v41 }
 0x7fa   : > { %v6634_v27 = vsel %vm19187_vm0, %v6442_v45, 0.0  ;;  %v6530_v61 = vpop.permute.xlu0 %6529  ;;  %v6414_v50 = vrot.slane %v6338_v5, 1  ;;  %vm19189_vm0 = vmmov %vm19186_vm9  ;;  %v6477_v60 = vsel %vm19193_vm8, %v19191_v59, 0.0 }
 0x7fb   : > { %v6666_v43 = vadd.f32 %v6634_v27, %v6602_v16  ;;  %6862 = vrot.lane.b32.xlu1 %v6824_v54, %s14393_s16  ;;  %vm19194_vm3 = vmmov %vm19189_vm0 }
 0x7fd   : > { %v6705_v42 = vadd.f32 %v16683_v1, %v6666_v43  ;;  %v6334_v48 = vpop.permute.xlu1 %6333 }
 0x7fe   : > { %v6412_v26 = vrot.slane %v6334_v48, 1  ;;  %v6526_v56 = vpop.permute.xlu0 %6525  ;;  %v19195_v48 = vld [vmem:[#allocation6_spill] sm:$0xff] }
 0x7ff   : > { %v6604_v12 = vadd.f32 %v6526_v56, %v16551_v22  ;;  %vm6737_vm5 = vcmp.ge.f32.partialorder %v6705_v42, 0.0  ;;  %v6769_v19 = vmul.f32 0.2, %v6705_v42  ;;  %v6439_v22 = vsel %vm19194_vm3, %v6413_v53, %v6414_v50  ;;  %v19196_v56 = vld [vmem:[#allocation13_spill] sm:$0xff] }
 0x800   : > { %v6441_v36 = vsel %vm19186_vm9, %v6411_v55, %v6412_v26  ;;  %v6440_v25 = vsel %vm19189_vm0, %v6412_v26, %v6413_v53  ;;  %v6605_v55 = vadd.f32 %v6528_v18, %v6477_v60  ;;  %v6606_v18 = vadd.f32 %v6530_v61, %v19195_v48  ;;  %v19206_v48 = vld [vmem:[#allocation14_spill] sm:$0xff] }
 0x801   : > { %v6667_v49 = vadd.f32 %v6603_v24, %v6441_v36  ;;  %v6636_v51 = vsel %vm19190_vm2, %v6440_v25, 0.0  ;;  %v6536_v14 = vpop.permute.xlu1 %6535  ;;  %v6801_v6 = vsel %vm6737_vm5, %v6705_v42, %v6769_v19  ;;  %vm19197_vm5 = vnez %v19196_v56  ;;  %v19198_v36 = vld [vmem:[#allocation8_spill] sm:$0xff]  ;;  %v19199_v25 = vld [vmem:[#allocation15_spill] sm:$0xff]  ;;  %vm19208_vm2 = vmmov %vm19194_vm3 }
 0x802   : > { %v6668_v52 = vadd.f32 %v6636_v51, %v6604_v12  ;;  %v6344_v29 = vpop.permute.xlu0 %6343  ;;  %v6825_v11 = vpack.c.bf16 %v6801_v6, %v6800_v3  ;;  %v6669_v16 = vadd.f32 %v6605_v55, %v6439_v22  ;;  %vm19200_vm9 = vnez %v19199_v25 }
 0x803   : > { %v6706_v23 = vadd.f32 %v16683_v1, %v6667_v49  ;;  %v6479_v49 = vsel %vm19200_vm9, %v19198_v36, 0.0  ;;  %v6417_v6 = vrot.slane %v6344_v29, 1  ;;  %vm19207_vm8 = vnez %v19206_v48 }
 0x804   : > { %v6707_v28 = vadd.f32 %v16683_v1, %v6668_v52  ;;  %6864 = vrot.lane.b32.xlu0 %v6825_v11, %s14393_s16  ;;  %v6708_v42 = vadd.f32 %v16683_v1, %v6669_v16  ;;  %v19201_v52 = vld [vmem:[#allocation9_spill] sm:$0xff] }
 0x805   : > { %v6532_v13 = vpop.permute.xlu1 %6531  ;;  %vm6738_vm0 = vcmp.ge.f32.partialorder %v6706_v23, 0.0  ;;  %v6770_v45 = vmul.f32 0.2, %v6706_v23 }
 0x806   : > { %vm6739_vm1 = vcmp.ge.f32.partialorder %v6707_v28, 0.0  ;;  %v6771_v5 = vmul.f32 0.2, %v6707_v28  ;;  %v6340_v54 = vpop.permute.xlu0 %6339  ;;  %v6772_v61 = vmul.f32 0.2, %v6708_v42  ;;  %v6607_v22 = vadd.f32 %v6532_v13, %v6479_v49 }
 0x807   : > { %v6415_v27 = vrot.slane %v6340_v54, 1  ;;  %v6802_v43 = vsel %vm6738_vm0, %v6706_v23, %v6770_v45  ;;  %vm6740_vm0 = vcmp.ge.f32.partialorder %v6708_v42, 0.0  ;;  %v19203_v45 = vld [vmem:[#allocation16_spill] sm:$0xff] }
 0x808   : > { %v6803_v33 = vsel %vm6739_vm1, %v6707_v28, %v6771_v5  ;;  %vm19204_vm9 = vnez %v19203_v45  ;;  %v6804_v54 = vsel %vm6740_vm0, %v6708_v42, %v6772_v61 }
 0x809   : > { %v6438_v41 = vsel %vm19194_vm3, %v6414_v50, %v6415_v27  ;;  %v6346_v53 = vpop.permute.xlu1 %6345  ;;  %v6826_v26 = vpack.c.bf16 %v6803_v33, %v6802_v43  ;;  %v19205_v33 = vld [vmem:[#allocation10_spill] sm:$0xff] }
 0x80a   : > { %v6638_v24 = vsel %vm19197_vm5, %v6438_v41, 0.0  ;;  %v6538_v12 = vpop.permute.xlu0 %6537  ;;  %v6418_v59 = vrot.slane %v6346_v53, 1  ;;  %vm19202_vm5 = vmmov %vm19194_vm3  ;;  %v6481_v13 = vsel %vm19207_vm8, %v19205_v33, 0.0 }
 0x80b   : > { %v6670_v19 = vadd.f32 %v6638_v24, %v6606_v18  ;;  %6866 = vrot.lane.b32.xlu1 %v6826_v26, %s14393_s16  ;;  %v6609_v26 = vadd.f32 %v6536_v14, %v6481_v13  ;;  %v19209_v14 = vld [vmem:[#allocation7_spill] sm:$0xff] }
 0x80c   : > { %v6435_v18 = vsel %vm19208_vm2, %v6417_v6, %v6418_v59 }
 0x80d   : > { %v6709_v51 = vadd.f32 %v16683_v1, %v6670_v19  ;;  %v6342_v3 = vpop.permute.xlu1 %6341  ;;  %v6673_v36 = vadd.f32 %v6609_v26, %v6435_v18 }
 0x80e   : > { %v6416_v50 = vrot.slane %v6342_v3, 1  ;;  %v6534_v60 = vpop.permute.xlu0 %6533 }
 0x80f   : > { %v6608_v11 = vadd.f32 %v6534_v60, %v19201_v52  ;;  %vm6741_vm1 = vcmp.ge.f32.partialorder %v6709_v51, 0.0  ;;  %v6773_v55 = vmul.f32 0.2, %v6709_v51  ;;  %v6712_v60 = vadd.f32 %v16683_v1, %v6673_v36 }
 0x810   : > { %v6437_v23 = vsel %vm19194_vm3, %v6415_v27, %v6416_v50  ;;  %v6436_v28 = vsel %vm19202_vm5, %v6416_v50, %v6417_v6 }
 0x811   : > { %v6671_v16 = vadd.f32 %v6607_v22, %v6437_v23  ;;  %v6640_v5 = vsel %vm19204_vm9, %v6436_v28, 0.0  ;;  %v6540_v29 = vpop.permute.xlu1 %6539  ;;  %v6805_v43 = vsel %vm6741_vm1, %v6709_v51, %v6773_v55  ;;  %v6610_v22 = vadd.f32 %v6538_v12, %v19209_v14  ;;  %v19210_v23 = vld [vmem:[#allocation26_spill] sm:$0xff]  ;;  %v19211_v28 = vld [vmem:[#allocation17_spill] sm:$0xff] }
 0x812   : > { %v6672_v41 = vadd.f32 %v6640_v5, %v6608_v11  ;;  %v6352_v53 = vpop.permute.xlu0 %6351  ;;  %v6827_v27 = vpack.c.bf16 %v6805_v43, %v6804_v54  ;;  %vm19212_vm1 = vnez %v19211_v28  ;;  %v19213_v5 = vld [vmem:[#allocation18_spill] sm:$0xff] }
 0x813   : > { %v6710_v24 = vadd.f32 %v16683_v1, %v6671_v16  ;;  %v6483_v16 = vsel %vm19212_vm1, %v19210_v23, 0.0  ;;  %vm19214_vm3 = vnez %v19213_v5  ;;  %v6421_v18 = vrot.slane %v6352_v53, 1 }
 0x814   : > { %v6711_v19 = vadd.f32 %v16683_v1, %v6672_v41  ;;  %6868 = vrot.lane.b32.xlu0 %v6827_v27, %s14393_s16  ;;  %v6611_v13 = vadd.f32 %v6540_v29, %v6483_v16 }
 0x815   : > { %v16846_v42 = vpop.permute.xlu1 %6353  ;;  %vm6742_vm5 = vcmp.ge.f32.partialorder %v6710_v24, 0.0  ;;  %v6774_v49 = vmul.f32 0.2, %v6710_v24 }
 0x816   : > { %vm6743_vm0 = vcmp.ge.f32.partialorder %v6711_v19, 0.0  ;;  %v6775_v51 = vmul.f32 0.2, %v6711_v19  ;;  %v6348_v3 = vpop.permute.xlu0 %6347  ;;  %v6422_v36 = vrot.slane %v16846_v42, 1 }
 0x817   : > { %v6419_v61 = vrot.slane %v6348_v3, 1  ;;  %v6806_v6 = vsel %vm6742_vm5, %v6710_v24, %v6774_v49  ;;  %vm19215_vm5 = vmmov %vm19208_vm2  ;;  %v19217_v49 = vld [vmem:[#allocation29_spill] sm:$0xff] }
 0x818   : > { %v6807_v50 = vsel %vm6743_vm0, %v6711_v19, %v6775_v51  ;;  %vm19216_vm0 = vmmov %vm19208_vm2  ;;  %v6776_v19 = vmul.f32 0.2, %v6712_v60  ;;  %v19218_v51 = vld [vmem:[#allocation19_spill] sm:$0xff] }
 0x819   : > { %v6434_v52 = vsel %vm19208_vm2, %v6418_v59, %v6419_v61  ;;  %v6350_v11 = vpop.permute.xlu1 %6349  ;;  %v6828_v55 = vpack.c.bf16 %v6807_v50, %v6806_v6  ;;  %vm19219_vm2 = vnez %v19218_v51  ;;  %v19220_v6 = vld [vmem:[#allocation30_spill] sm:$0xff] }
 0x81a   : > { %v6642_v54 = vsel %vm19214_vm3, %v6434_v52, 0.0  ;;  %v6420_v43 = vrot.slane %v6350_v11, 1  ;;  %v6546_v33 = vpop.permute.xlu0 %6545  ;;  %v6485_v29 = vsel %vm19219_vm2, %v19217_v49, 0.0  ;;  %vm6744_vm3 = vcmp.ge.f32.partialorder %v6712_v60, 0.0 }
 0x81b   : > { %v6674_v41 = vadd.f32 %v6642_v54, %v6610_v22  ;;  %6870 = vrot.lane.b32.xlu1 %v6828_v55, %s14393_s16  ;;  %v19221_v22 = vld [vmem:[#allocation20_spill] sm:$0xff]  ;;  %v6808_v23 = vsel %vm6744_vm3, %v6712_v60, %v6776_v19  ;;  %v19223_v19 = vld [vmem:[#allocation21_spill] sm:$0xff] }
 0x81c   : > { %v6433_v12 = vsel %vm19215_vm5, %v6419_v61, %v6420_v43  ;;  %v6432_v24 = vsel %vm19216_vm0, %v6420_v43, %v6421_v18  ;;  %vm19222_vm1 = vnez %v19221_v22  ;;  %v6431_v43 = vsel %vm19216_vm0, %v6421_v18, %v6422_v36 }
 0x81d   : > { %v6713_v59 = vadd.f32 %v16683_v1, %v6674_v41  ;;  %v6675_v27 = vadd.f32 %v6611_v13, %v6433_v12  ;;  %v6544_v26 = vpop.permute.xlu1 %6543  ;;  %v6644_v52 = vsel %vm19222_vm1, %v6432_v24, 0.0  ;;  %vm19224_vm3 = vnez %v19223_v19  ;;  %vm19227_vm1 = vmmov %vm19216_vm0 }
 0x81e   : > { %v6542_v53 = vpop.permute.xlu0 %6541  ;;  %v6613_v14 = vadd.f32 %v6544_v26, %v6485_v29  ;;  %v6487_v49 = vsel %vm19224_vm3, %v16603_v37, 0.0 }
 0x81f   : > { %v6714_v3 = vadd.f32 %v16683_v1, %v6675_v27  ;;  %v6612_v61 = vadd.f32 %v6542_v53, %v19220_v6  ;;  %vm6745_vm5 = vcmp.ge.f32.partialorder %v6713_v59, 0.0  ;;  %v6777_v50 = vmul.f32 0.2, %v6713_v59  ;;  %v19225_v6 = vld [vmem:[#allocation27_spill] sm:$0xff] }
 0x820   : > { %v6677_v12 = vadd.f32 %v6613_v14, %v6431_v43 }
 0x821   : > { %v6676_v11 = vadd.f32 %v6644_v52, %v6612_v61  ;;  %v6358_v55 = vpop.permute.xlu1 %6357  ;;  %v6809_v42 = vsel %vm6745_vm5, %v6713_v59, %v6777_v50  ;;  %v6778_v41 = vmul.f32 0.2, %v6714_v3  ;;  %vm6746_vm2 = vcmp.ge.f32.partialorder %v6714_v3, 0.0  ;;  %vm19226_vm5 = vmmov %vm19216_vm0 }
 0x822   : > { %v16871_v16 = vpop.permute.xlu0 %6359  ;;  %v6829_v54 = vpack.c.bf16 %v6809_v42, %v6808_v23  ;;  %v6424_v26 = vrot.slane %v6358_v55, 1  ;;  %v6614_v61 = vadd.f32 %v6546_v33, %v19225_v6  ;;  %v6716_v52 = vadd.f32 %v16683_v1, %v6677_v12  ;;  %v19228_v23 = vld [vmem:[#allocation22_spill] sm:$0xff] }
 0x823   : > { %v6715_v13 = vadd.f32 %v16683_v1, %v6676_v11  ;;  %v6425_v24 = vrot.slane %v16871_v16, 1  ;;  %v6810_v18 = vsel %vm6746_vm2, %v6714_v3, %v6778_v41  ;;  %vm19229_vm2 = vnez %v19228_v23  ;;  %v19230_v41 = vld [vmem:[#allocation24_spill] sm:$0xff]  ;;  %v19251_v16 = vld [vmem:[#allocation25_spill] sm:$0xff] }
 0x824   : > { %6872 = vrot.lane.b32.xlu0 %v6829_v54, %s14393_s16  ;;  %v6780_v12 = vmul.f32 0.2, %v6716_v52 }
 0x825   : > { %vm6747_vm8 = vcmp.ge.f32.partialorder %v6715_v13, 0.0  ;;  %v6779_v27 = vmul.f32 0.2, %v6715_v13  ;;  %v6548_v60 = vpop.permute.xlu1 %6547  ;;  %v6428_v37 = vsel %vm19227_vm1, %v6424_v26, %v6425_v24  ;;  %vm6748_vm1 = vcmp.ge.f32.partialorder %v6716_v52, 0.0 }
 0x826   : > { %v6356_v59 = vpop.permute.xlu0 %6355  ;;  %v6615_v50 = vadd.f32 %v6548_v60, %v6487_v49 }
 0x827   : > { %v6423_v29 = vrot.slane %v6356_v59, 1  ;;  %v6811_v53 = vsel %vm6747_vm8, %v6715_v13, %v6779_v27  ;;  %vm19231_vm8 = vnez %v19230_v41  ;;  %v14349_v41 = vld [vmem:[%s18590_s8 + $0x60] sm:$0xff]  }
 0x828   : > { %v6830_v14 = vpack.c.bf16 %v6811_v53, %v6810_v18  ;;  %v6812_v18 = vsel %vm6748_vm1, %v6716_v52, %v6780_v12  ;;  %vm19234_vm1 = vcmask 785408  }
 0x829   : > { %v6429_v11 = vsel %vm19226_vm5, %v6423_v29, %v6424_v26  ;;  %v6430_v55 = vsel %vm19216_vm0, %v6422_v36, %v6423_v29  ;;  %v6648_v36 = vsel %vm19231_vm8, %v6428_v37, 0.0  ;;  %vm18707_vm8 = vcmask 785920   ;;  %v16916_v37 = vld [vmem:[%s18586_s4 + $0x2] sm:$0x3] }
 0x82a   : > { %v6646_v3 = vsel %vm19229_vm2, %v6430_v55, 0.0  ;;  %v6679_v42 = vadd.f32 %v6615_v50, %v6429_v11  ;;  %v6550_v33 = vpop.permute.xlu0 %6549  ;;  %6874 = vrot.lane.b32.xlu1 %v6830_v14, %s14393_s16  ;;  %v19232_v14 = vld [vmem:[#allocation28_spill] sm:$0xff] }
 0x82b   : > { %v6678_v54 = vadd.f32 %v6646_v3, %v6614_v61  ;;  %v6616_v43 = vadd.f32 %v6550_v33, %v16619_v39 }
 0x82c   : > { %v6718_v13 = vadd.f32 %v16683_v1, %v6679_v42 }
 0x82d   : > { %v6717_v27 = vadd.f32 %v16683_v1, %v6678_v54  ;;  %v6680_v60 = vadd.f32 %v6648_v36, %v6616_v43 }
 0x82e   : > { %v6782_v49 = vmul.f32 0.2, %v6718_v13  ;;  %vm6750_vm0 = vcmp.ge.f32.partialorder %v6718_v13, 0.0 }
 0x82f   : > { %v6719_v26 = vadd.f32 %v16683_v1, %v6680_v60  ;;  %vm6749_vm5 = vcmp.ge.f32.partialorder %v6717_v27, 0.0  ;;  %v6781_v59 = vmul.f32 0.2, %v6717_v27 }
 0x830   : > { %v6814_v6 = vsel %vm6750_vm0, %v6718_v13, %v6782_v49  ;;  %vm19236_vm0 = vmmov %vm19234_vm1 }
 0x831   : > { %vm6751_vm2 = vcmp.ge.f32.partialorder %v6719_v26, 0.0  ;;  %v6783_v29 = vmul.f32 0.2, %v6719_v26  ;;  %v6813_v39 = vsel %vm6749_vm5, %v6717_v27, %v6781_v59 }
 0x832   : > { %v6831_v53 = vpack.c.bf16 %v6813_v39, %v6812_v18 }
 0x833   : > { %v6815_v61 = vsel %vm6751_vm2, %v6719_v26, %v6783_v29  ;;  %vm19233_vm2 = vcmask 1041408  }
 0x834   : > { %6876 = vrot.lane.b32.xlu0 %v6831_v53, %s14393_s16  ;;  %v6832_v50 = vpack.c.bf16 %v6815_v61, %v6814_v6  ;;  %v7255_v11 = vsel %vm19233_vm2, %v16790_v63, 0  ;;  %vm19235_vm5 = vmmov %vm19233_vm2 }
 0x835   : > { %vm19237_vm2 = vmmov %vm19236_vm0 }
 0x836   : > { %6878 = vrot.lane.b32.xlu1 %v6832_v50, %s14393_s16 }
 0x838   : > { %6361 = vrot.lane.b32.xlu0 %v19232_v14, %s14393_s16 }
 0x83a   : > { %6551 = vrot.lane.b32.xlu1 %v16593_v44, %s14392_s30 }
 0x83c   : > { %6553 = vrot.lane.b32.xlu0 %v19232_v14, %s14392_s30  ;;  %v6851_v52 = vpop.permute.xlu1 %6850 }
 0x83d   : > { %6899 = vst.msk [vmem:[#allocation3 + $0x8] sm:$0xff] %vm18707_vm8, %v6851_v52 }
 0x844   : > { %v16911_v55 = vld [vmem:[#allocation3 + $0x8] sm:$0xff] }
 0x845   : > { %13116 = vmatmul.mubr.msk.bf16.vlgmr.msra.gmra.mrb[64].mxu1 %vm19234_vm1, %v16911_v55  ;;  %vm19238_vm1 = vmmov %vm19236_vm0 }
 0x846   : > { %v6853_v44 = vpop.permute.xlu0 %6852  ;;  %13148 = vmatpush3.bf16.msra.mxu1 %v7255_v11 }
 0x847   : > { %6900 = vst.msk [vmem:[#allocation3 + $0x10] sm:$0xff] %vm18707_vm8, %v6853_v44  ;;  %14300 = vmatprep.subr.msk.bf16.mxu1 %vm19235_vm5, %v16916_v37  ;;  %vm19239_vm5 = vmmov %vm19236_vm0 }
 0x84d   : > { %v6855_v3 = vpop.permute.xlu1 %6854 }
 0x84e   : > { %6901 = vst.msk [vmem:[#allocation3 + $0x18] sm:$0xff] %vm18707_vm8, %v6855_v3  ;;  %v16924_v63 = vld [vmem:[#allocation3 + $0x10] sm:$0xff] }
 0x84f   : > { %13119 = vmatprep.mubr.msk.bf16.mxu1 %vm19236_vm0, %v16924_v63 }
 0x855   : > { %v16928_v42 = vld [vmem:[#allocation3 + $0x18] sm:$0xff] }
 0x856   : > { %v6857_v33 = vpop.permute.xlu0 %6856  ;;  %13120 = vmatmul.mubr.msk.bf16.gmra.mrb[68].mxu1 %vm19237_vm2, %v16928_v42  ;;  %vm19240_vm2 = vmmov %vm19236_vm0 }
 0x857   : > { %6902 = vst.msk [vmem:[#allocation3 + $0x20] sm:$0xff] %vm18707_vm8, %v6857_v33 }
 0x85d   : > { %v6859_v54 = vpop.permute.xlu1 %6858 }
 0x85e   : > { %6903 = vst.msk [vmem:[#allocation3 + $0x28] sm:$0xff] %vm18707_vm8, %v6859_v54  ;;  %v16934_v43 = vld [vmem:[#allocation3 + $0x20] sm:$0xff] }
 0x85f   : > { %13123 = vmatprep.mubr.msk.bf16.mxu1 %vm19238_vm1, %v16934_v43  ;;  %vm19241_vm1 = vmmov %vm19236_vm0 }
 0x865   : > { %v16938_v13 = vld [vmem:[#allocation3 + $0x28] sm:$0xff] }
 0x866   : > { %v6861_v36 = vpop.permute.xlu0 %6860  ;;  %13124 = vmatmul.mubr.msk.bf16.gmra.mrb[72].mxu1 %vm19239_vm5, %v16938_v13  ;;  %vm19242_vm5 = vmmov %vm19236_vm0 }
 0x867   : > { %6904 = vst.msk [vmem:[#allocation3 + $0x30] sm:$0xff] %vm18707_vm8, %v6861_v36  ;;  %v19246_v36 = vld [vmem:[#allocation23_spill] sm:$0xff] }
 0x86d   : > { %v6863_v12 = vpop.permute.xlu1 %6862 }
 0x86e   : > { %6905 = vst.msk [vmem:[#allocation3 + $0x38] sm:$0xff] %vm18707_vm8, %v6863_v12  ;;  %v16944_v27 = vld [vmem:[#allocation3 + $0x30] sm:$0xff] }
 0x86f   : > { %13127 = vmatprep.mubr.msk.bf16.mxu1 %vm19236_vm0, %v16944_v27 }
 0x875   : > { %v16948_v60 = vld [vmem:[#allocation3 + $0x38] sm:$0xff] }
 0x876   : > { %v6865_v26 = vpop.permute.xlu0 %6864  ;;  %13128 = vmatmul.mubr.msk.bf16.gmra.mrb[76].mxu1 %vm19240_vm2, %v16948_v60  ;;  %vm19243_vm2 = vmmov %vm19236_vm0 }
 0x877   : > { %6906 = vst.msk [vmem:[#allocation3 + $0x40] sm:$0xff] %vm18707_vm8, %v6865_v26 }
 0x87d   : > { %v6867_v59 = vpop.permute.xlu1 %6866 }
 0x87e   : > { %6907 = vst.msk [vmem:[#allocation3 + $0x48] sm:$0xff] %vm18707_vm8, %v6867_v59  ;;  %v16954_v49 = vld [vmem:[#allocation3 + $0x40] sm:$0xff] }
 0x87f   : > { %13131 = vmatprep.mubr.msk.bf16.mxu1 %vm19241_vm1, %v16954_v49  ;;  %vm19244_vm1 = vmmov %vm19236_vm0 }
 0x885   : > { %v16958_v29 = vld [vmem:[#allocation3 + $0x48] sm:$0xff] }
 0x886   : > { %v6869_v18 = vpop.permute.xlu0 %6868  ;;  %13132 = vmatmul.mubr.msk.bf16.gmra.mrb[80].mxu1 %vm19242_vm5, %v16958_v29  ;;  %vm19245_vm5 = vmmov %vm19236_vm0 }
 0x887   : > { %6908 = vst.msk [vmem:[#allocation3 + $0x50] sm:$0xff] %vm18707_vm8, %v6869_v18  ;;  %v19249_v18 = vrot.slane %v16666_v7, 1 }
 0x88d   : > { %v6871_v39 = vpop.permute.xlu1 %6870 }
 0x88e   : > { %6909 = vst.msk [vmem:[#allocation3 + $0x58] sm:$0xff] %vm18707_vm8, %v6871_v39  ;;  %v16964_v53 = vld [vmem:[#allocation3 + $0x50] sm:$0xff] }
 0x88f   : > { %13135 = vmatprep.mubr.msk.bf16.mxu1 %vm19236_vm0, %v16964_v53  ;;  %vm19247_vm0 = vnez %v19246_v36  ;;  %v14345_v36 = vld [vmem:[%s18590_s8 + $0x40] sm:$0xff]  }
 0x890   : > { %v6489_v12 = vsel %vm19247_vm0, %v16623_v30, 0.0  ;;  %v6915_v30 = vld [vmem:[#allocation2] sm:$0xff] }
 0x895   : > { %v16968_v6 = vld [vmem:[#allocation3 + $0x58] sm:$0xff] }
 0x896   : > { %v6873_v61 = vpop.permute.xlu0 %6872  ;;  %13136 = vmatmul.mubr.msk.bf16.gmra.mrb[84].mxu1 %vm19243_vm2, %v16968_v6  ;;  %vm19248_vm2 = vcmp.lt.s32.totalorder %v14630_v32, 7 }
 0x897   : > { %6910 = vst.msk [vmem:[#allocation3 + $0x60] sm:$0xff] %vm18707_vm8, %v6873_v61 }
 0x89c   : > { %v6875_v50 = vpop.permute.xlu1 %6874 }
 0x89d   : > { %6911 = vst.msk [vmem:[#allocation3 + $0x68] sm:$0xff] %vm18707_vm8, %v6875_v50 }
 0x89e   : > { %v16974_v14 = vld [vmem:[#allocation3 + $0x60] sm:$0xff] }
 0x89f   : > { %13139 = vmatprep.mubr.msk.bf16.mxu1 %vm19244_vm1, %v16974_v14  ;;  %vm19250_vm1 = vmmov %vm19248_vm2 }
 0x8a4   : > { %v16978_v52 = vld [vmem:[#allocation3 + $0x68] sm:$0xff] }
 0x8a5   : > { %13140 = vmatmul.mubr.msk.bf16.gmra.mrb[88].mxu1 %vm19245_vm5, %v16978_v52 }
 0x8a6   : > { %v6877_v11 = vpop.permute.xlu0 %6876 }
 0x8a7   : > { %6912 = vst.msk [vmem:[#allocation3 + $0x70] sm:$0xff] %vm18707_vm8, %v6877_v11 }
 0x8a8   : > { %v6879_v44 = vpop.permute.xlu1 %6878 }
 0x8a9   : > { %6913 = vst.msk [vmem:[#allocation3 + $0x78] sm:$0xff] %vm18707_vm8, %v6879_v44  ;;  %vm19252_vm8 = vnez %v19251_v16  ;;  %v14344_v16 = vld [vmem:[%s18590_s8 + $0x38] sm:$0xff]  }
 0x8aa   : > { %v6362_v3 = vpop.permute.xlu0 %6361 }
 0x8ab   : > { %v6426_v33 = vrot.slane %v6362_v3, 1 }
 0x8ac   : > { %v6552_v54 = vpop.permute.xlu1 %6551 }
 0x8ad   : > { %v6427_v26 = vsel %vm19248_vm2, %v6425_v24, %v6426_v33  ;;  %v6617_v59 = vadd.f32 %v6552_v54, %v6489_v12  ;;  %v6458_v39 = vsel %vm19250_vm1, %v6426_v33, %v19249_v18  ;;  %vm19253_vm2 = vmmov %vm19245_vm5  ;;  %vm19254_vm1 = vcmask 31744  }
 0x8ae   : > { %v6554_v61 = vpop.permute.xlu0 %6553  ;;  %v16995_v50 = vld [vmem:[#allocation3 + $0x70] sm:$0xff]  ;;  %v6650_v3 = vsel %vm19252_vm8, %v6458_v39, 0.0 }
 0x8af   : > { %v6681_v11 = vadd.f32 %v6617_v59, %v6427_v26  ;;  %v6618_v44 = vadd.f32 %v6554_v61, %v16613_v9  ;;  %13143 = vmatprep.mubr.msk.bf16.mxu1 %vm19245_vm5, %v16995_v50  ;;  %v6916_v26 = vld [vmem:[#allocation2 + $0x8] sm:$0xff]  ;;  %vm19255_vm5 = vcmask 1041408   ;;  %v14343_v61 = vld [vmem:[%s18590_s8 + $0x30] sm:$0xff]  }
 0x8b0   : > { %v17002_v24 = vld [vmem:[#allocation3 + $0x78] sm:$0xff]  ;;  %v7485_v59 = vsel %vm19255_vm5, %v16916_v37, 0  ;;  %v17022_v37 = vld [vmem:[#allocation2 + $0x20] sm:$0xff] }
 0x8b1   : > { %v6720_v7 = vadd.f32 %v16683_v1, %v6681_v11  ;;  %v6682_v54 = vadd.f32 %v6650_v3, %v6618_v44  ;;  %13144 = vmatmul.mubr.msk.bf16.gmra.mrb[92].mxu1 %vm19253_vm2, %v17002_v24  ;;  %v17014_v44 = vld [vmem:[#allocation2 + $0x10] sm:$0xff]  ;;  %vm19256_vm2 = vmmov %vm19254_vm1 }
 0x8b2   : > { %13149 = vmatprep.mubr.msk.bf16.mxu1 %vm19254_vm1, %v6915_v30  ;;  %v17028_v30 = vld [vmem:[#allocation2 + $0x28] sm:$0xff]  ;;  %v17030_v3 = vld [vmem:[#allocation2 + $0x30] sm:$0xff] }
 0x8b3   : > { %v6784_v33 = vmul.f32 0.2, %v6720_v7  ;;  %v6721_v9 = vadd.f32 %v16683_v1, %v6682_v54  ;;  %vm6752_vm0 = vcmp.ge.f32.partialorder %v6720_v7, 0.0  ;;  %v17020_v1 = vld [vmem:[#allocation2 + $0x18] sm:$0xff]  ;;  %v17038_v54 = vld [vmem:[#allocation2 + $0x40] sm:$0xff] }
 0x8b5   : > { %vm6753_vm3 = vcmp.ge.f32.partialorder %v6721_v9, 0.0  ;;  %v6785_v12 = vmul.f32 0.2, %v6721_v9  ;;  %v6816_v18 = vsel %vm6752_vm0, %v6720_v7, %v6784_v33  ;;  %vm19258_vm0 = vmmov %vm19254_vm1  ;;  %v17036_v7 = vld [vmem:[#allocation2 + $0x38] sm:$0xff]  ;;  %v17044_v33 = vld [vmem:[#allocation2 + $0x48] sm:$0xff] }
 0x8b6   : > { %vm19259_vm5 = vmmov %vm19258_vm0 }
 0x8b7   : > { %v6817_v39 = vsel %vm6753_vm3, %v6721_v9, %v6785_v12  ;;  %vm19257_vm3 = vmmov %vm19254_vm1  ;;  %v17046_v9 = vld [vmem:[#allocation2 + $0x50] sm:$0xff]  ;;  %v17052_v12 = vld [vmem:[#allocation2 + $0x58] sm:$0xff] }
 0x8b8   : > { %v6833_v11 = vpack.c.bf16 %v6817_v39, %v6816_v18  ;;  %v17060_v18 = vld [vmem:[#allocation2 + $0x68] sm:$0xff]  ;;  %v17062_v39 = vld [vmem:[#allocation2 + $0x70] sm:$0xff]  ;;  %vm19268_vm8 = vmmov %vm19258_vm0 }
 0x8b9   : > { %13150 = vmatmul.mubr.msk.bf16.vlgmr.msra.gmra.mrb[64].mxu1 %vm19256_vm2, %v6916_v26  ;;  %vm19260_vm2 = vmmov %vm19258_vm0 }
 0x8ba   : > { %13182 = vmatpush3.bf16.msra.mxu1 %v7485_v59  ;;  %6880 = vrot.lane.b32.xlu1 %v6833_v11, %s14393_s16  ;;  %v17054_v59 = vld [vmem:[#allocation2 + $0x60] sm:$0xff]  ;;  %v17068_v11 = vld [vmem:[#allocation2 + $0x78] sm:$0xff]  ;;  %vm19279_vm9 = vmmov %vm19258_vm0 }
 0x8bb   : > { %13153 = vmatprep.mubr.msk.bf16.mxu1 %vm19254_vm1, %v17014_v44  ;;  %13215 = vmatprep.subr.bf16.mxu1 %v14343_v61  ;;  %vm19261_vm1 = vmmov %vm19258_vm0 }
 0x8c1   : > { %13154 = vmatmul.mubr.msk.bf16.gmra.mrb[68].mxu1 %vm19257_vm3, %v17020_v1  ;;  %vm19262_vm3 = vmmov %vm19258_vm0 }
 0x8c2   : > { %13157 = vmatprep.mubr.msk.bf16.mxu1 %vm19258_vm0, %v17022_v37 }
 0x8c9   : > { %13158 = vmatmul.mubr.msk.bf16.gmra.mrb[72].mxu1 %vm19259_vm5, %v17028_v30  ;;  %vm19263_vm5 = vmmov %vm19258_vm0 }
 0x8ca   : > { %13161 = vmatprep.mubr.msk.bf16.mxu1 %vm19260_vm2, %v17030_v3  ;;  %vm19264_vm2 = vmmov %vm19258_vm0 }
 0x8d1   : > { %13162 = vmatmul.mubr.msk.bf16.gmra.mrb[76].mxu1 %vm19261_vm1, %v17036_v7  ;;  %vm19265_vm1 = vmmov %vm19258_vm0 }
 0x8d2   : > { %13165 = vmatprep.mubr.msk.bf16.mxu1 %vm19262_vm3, %v17038_v54  ;;  %vm19266_vm3 = vmmov %vm19258_vm0 }
 0x8d9   : > { %13166 = vmatmul.mubr.msk.bf16.gmra.mrb[80].mxu1 %vm19258_vm0, %v17044_v33 }
 0x8da   : > { %13169 = vmatprep.mubr.msk.bf16.mxu1 %vm19263_vm5, %v17046_v9  ;;  %vm19267_vm5 = vmmov %vm19258_vm0 }
 0x8e1   : > { %13170 = vmatmul.mubr.msk.bf16.gmra.mrb[84].mxu1 %vm19264_vm2, %v17052_v12  ;;  %vm19269_vm2 = vmmov %vm19258_vm0 }
 0x8e2   : > { %13173 = vmatprep.mubr.msk.bf16.mxu1 %vm19265_vm1, %v17054_v59  ;;  %vm19270_vm1 = vmmov %vm19258_vm0 }
 0x8e9   : > { %13174 = vmatmul.mubr.msk.bf16.gmra.mrb[88].mxu1 %vm19266_vm3, %v17060_v18  ;;  %vm19272_vm3 = vmmov %vm19258_vm0 }
 0x8ea   : > { %13177 = vmatprep.mubr.msk.bf16.mxu1 %vm19258_vm0, %v17062_v39 }
 0x8f1   : > { %13178 = vmatmul.mubr.msk.bf16.gmra.mrb[92].mxu1 %vm19267_vm5, %v17068_v11  ;;  %vm19273_vm5 = vmmov %vm19258_vm0 }
 0x8f2   : > { %13183 = vmatprep.mubr.msk.bf16.mxu1 %vm19268_vm8, %v6916_v26  ;;  %v14346_v26 = vld [vmem:[%s18590_s8 + $0x48] sm:$0xff]   ;;  %vm19271_vm8 = vmmov %vm19258_vm0 }
 0x8f9   : > { %13184 = vmatmul.mubr.msk.bf16.vlgmr.msra.gmra.mrb[64].mxu1 %vm19269_vm2, %v17014_v44  ;;  %vm19274_vm2 = vcmask 1041408  }
 0x8fa   : > { %13216 = vmatpush3.bf16.msra.mxu1 %v14343_v61  ;;  %13187 = vmatprep.mubr.msk.bf16.mxu1 %vm19270_vm1, %v17020_v1  ;;  %v14347_v61 = vld [vmem:[%s18590_s8 + $0x50] sm:$0xff]   ;;  %vm19275_vm1 = vmmov %vm19258_vm0 }
 0x8fb   : > { %13217 = vmatprep.subr.bf16.mxu1 %v14344_v16 }
 0x8fe   : > { %13218 = vmatpush3.bf16.msra.mxu1 %v14344_v16  ;;  %v14348_v16 = vld [vmem:[%s18590_s8 + $0x58] sm:$0xff]  }
 0x8ff   : > { %13219 = vmatprep.subr.bf16.mxu1 %v14345_v36 }
 0x901   : > { %13188 = vmatmul.mubr.msk.bf16.gmra.mrb[68].mxu1 %vm19271_vm8, %v17022_v37  ;;  %vm19276_vm8 = vmmov %vm19258_vm0 }
 0x902   : > { %13191 = vmatprep.mubr.msk.bf16.mxu1 %vm19272_vm3, %v17028_v30  ;;  %13220 = vmatpush3.bf16.msra.mxu1 %v14345_v36  ;;  %v11899_v36 = vld [vmem:[%s18586_s4 + $0x4] sm:$0x3]  ;;  %vm19277_vm3 = vmmov %vm19258_vm0 }
 0x903   : > { %13221 = vmatprep.subr.bf16.mxu1 %v14346_v26 }
 0x906   : > { %13222 = vmatpush3.bf16.msra.mxu1 %v14346_v26 }
 0x907   : > { %13223 = vmatprep.subr.bf16.mxu1 %v14347_v61 }
 0x909   : > { %13192 = vmatmul.mubr.msk.bf16.gmra.mrb[72].mxu1 %vm19258_vm0, %v17030_v3 }
 0x90a   : > { %13195 = vmatprep.mubr.msk.bf16.mxu1 %vm19273_vm5, %v17036_v7  ;;  %13224 = vmatpush3.bf16.msra.mxu1 %v14347_v61  ;;  %vm19278_vm5 = vmmov %vm19258_vm0  ;;  %v7433_v61 = vld [vmem:[#allocation2 + $0x80] sm:$0xff] }
 0x90b   : > { %13225 = vmatprep.subr.bf16.mxu1 %v14348_v16 }
 0x90e   : > { %13226 = vmatpush3.bf16.msra.mxu1 %v14348_v16  ;;  %v8053_v16 = vsel %vm19285_vm15, %v11899_v36, 0 }
 0x90f   : > { %14301 = vmatprep.subr.msk.bf16.mxu1 %vm19274_vm2, %v11899_v36  ;;  %vm19280_vm2 = vmmov %vm19258_vm0  ;;  %v14350_v36 = vld [vmem:[%s18590_s8 + $0x68] sm:$0xff]  }
 0x911   : > { %13196 = vmatmul.mubr.msk.bf16.gmra.mrb[76].mxu1 %vm19275_vm1, %v17038_v54  ;;  %vm19281_vm1 = vmmov %vm19258_vm0 }
 0x912   : > { %13199 = vmatprep.mubr.msk.bf16.mxu1 %vm19276_vm8, %v17044_v33  ;;  %vm19282_vm8 = vcmask 785920  }
 0x919   : > { %13200 = vmatmul.mubr.msk.bf16.gmra.mrb[80].mxu1 %vm19277_vm3, %v17046_v9  ;;  %vm19283_vm3 = vmmov %vm19258_vm0 }
 0x91a   : > { %13203 = vmatprep.mubr.msk.bf16.mxu1 %vm19258_vm0, %v17052_v12  ;;  %vm19284_vm0 = vcmask 785408  }
 0x91b   : > { %vm19290_vm15 = vmmov %vm19284_vm0 }
 0x921   : > { %13204 = vmatmul.mubr.msk.bf16.gmra.mrb[84].mxu1 %vm19278_vm5, %v17054_v59  ;;  %vm19287_vm5 = vmmov %vm19284_vm0 }
 0x922   : > { %13207 = vmatprep.mubr.msk.bf16.mxu1 %vm19279_vm9, %v17060_v18  ;;  %vm19286_vm9 = vmmov %vm19284_vm0 }
 0x929   : > { %13208 = vmatmul.mubr.msk.bf16.gmra.mrb[88].mxu1 %vm19280_vm2, %v17062_v39  ;;  %vm19288_vm2 = vmmov %vm19284_vm0 }
 0x92a   : > { %13211 = vmatprep.mubr.msk.bf16.mxu1 %vm19281_vm1, %v17068_v11  ;;  %vm19289_vm1 = vmmov %vm19284_vm0 }
 0x92c   : > { %v6881_v26 = vpop.permute.xlu1 %6880 }
 0x92d   : > { %6914 = vst.msk [vmem:[#allocation3 + $0x80] sm:$0xff] %vm19282_vm8, %v6881_v26  ;;  %vm19291_vm8 = vmmov %vm19284_vm0  ;;  %v14351_v26 = vld [vmem:[%s18590_s8 + $0x70] sm:$0xff]  }
 0x931   : > { %13212 = vmatmul.mubr.msk.bf16.gmra.mrb[92].mxu1 %vm19283_vm3, %v7433_v61  ;;  %vm19292_vm3 = vmmov %vm19284_vm0 }
 0x932   : > { %13227 = vmatprep.mubr.msk.bf16.mxu1 %vm19284_vm0, %v16911_v55 }
 0x934   : > { %v7695_v55 = vld [vmem:[#allocation3 + $0x80] sm:$0xff] }
 0x939   : > { %13228 = vmatmul.mubr.msk.bf16.vlgmr.msra.gmra.mrb[64].mxu1 %vm19286_vm9, %v16924_v63  ;;  %vm19293_vm9 = vmmov %vm19284_vm0 }
 0x93a   : > { %13260 = vmatpush3.bf16.msra.mxu1 %v8053_v16  ;;  %13231 = vmatprep.mubr.msk.bf16.mxu1 %vm19287_vm5, %v16928_v42  ;;  %vm19294_vm5 = vmmov %vm19284_vm0 }
 0x93b   : > { %13293 = vmatprep.subr.bf16.mxu1 %v14349_v41 }
 0x941   : > { %13232 = vmatmul.mubr.msk.bf16.gmra.mrb[68].mxu1 %vm19288_vm2, %v16934_v43  ;;  %vm19295_vm2 = vmmov %vm19284_vm0 }
 0x942   : > { %13235 = vmatprep.mubr.msk.bf16.mxu1 %vm19289_vm1, %v16938_v13  ;;  %vm19296_vm1 = vmmov %vm19284_vm0 }
 0x949   : > { %13236 = vmatmul.mubr.msk.bf16.gmra.mrb[72].mxu1 %vm19290_vm15, %v16944_v27  ;;  %vm19297_vm15 = vmmov %vm19284_vm0 }
 0x94a   : > { %13239 = vmatprep.mubr.msk.bf16.mxu1 %vm19291_vm8, %v16948_v60  ;;  %vm19298_vm8 = vmmov %vm19284_vm0 }
 0x951   : > { %13240 = vmatmul.mubr.msk.bf16.gmra.mrb[76].mxu1 %vm19292_vm3, %v16954_v49  ;;  %vm19299_vm3 = vmmov %vm19284_vm0 }
 0x952   : > { %13243 = vmatprep.mubr.msk.bf16.mxu1 %vm19284_vm0, %v16958_v29  ;;  %vm19300_vm0 = vcmask 31744  }
 0x959   : > { %13244 = vmatmul.mubr.msk.bf16.gmra.mrb[80].mxu1 %vm19293_vm9, %v16964_v53  ;;  %vm19301_vm9 = vmmov %vm19300_vm0 }
 0x95a   : > { %13247 = vmatprep.mubr.msk.bf16.mxu1 %vm19294_vm5, %v16968_v6  ;;  %vm19302_vm5 = vmmov %vm19300_vm0 }
 0x961   : > { %13248 = vmatmul.mubr.msk.bf16.gmra.mrb[84].mxu1 %vm19295_vm2, %v16974_v14  ;;  %vm19303_vm2 = vmmov %vm19300_vm0 }
 0x962   : > { %13251 = vmatprep.mubr.msk.bf16.mxu1 %vm19296_vm1, %v16978_v52  ;;  %vm19304_vm1 = vmmov %vm19300_vm0 }
 0x969   : > { %13252 = vmatmul.mubr.msk.bf16.gmra.mrb[88].mxu1 %vm19297_vm15, %v16995_v50  ;;  %vm19305_vm15 = vmmov %vm19300_vm0 }
 0x96a   : > { %13255 = vmatprep.mubr.msk.bf16.mxu1 %vm19298_vm8, %v17002_v24  ;;  %vm19306_vm8 = vmmov %vm19300_vm0 }
 0x971   : > { %13256 = vmatmul.mubr.msk.bf16.gmra.mrb[92].mxu1 %vm19299_vm3, %v7695_v55  ;;  %vm19307_vm3 = vmmov %vm19300_vm0 }
 0x972   : > { %13261 = vmatprep.mubr.msk.bf16.mxu1 %vm19300_vm0, %v17014_v44  ;;  %v14352_v44 = vld [vmem:[%s18590_s8 + $0x78] sm:$0xff]  }
 0x979   : > { %13262 = vmatmul.mubr.msk.bf16.vlgmr.msra.gmra.mrb[64].mxu1 %vm19301_vm9, %v17020_v1  ;;  %v14354_v1 = vld [vmem:[%s18590_s8 + $0x88] sm:$0xff]   ;;  %vm19308_vm9 = vmmov %vm19300_vm0 }
 0x97a   : > { %13294 = vmatpush3.bf16.msra.mxu1 %v14349_v41  ;;  %13265 = vmatprep.mubr.msk.bf16.mxu1 %vm19302_vm5, %v17022_v37  ;;  %v14353_v41 = vld [vmem:[%s18590_s8 + $0x80] sm:$0xff]   ;;  %vm19309_vm5 = vmmov %vm19300_vm0  ;;  %v8001_v37 = vld [vmem:[#allocation2 + $0x88] sm:$0xff] }
 0x97b   : > { %13295 = vmatprep.subr.bf16.mxu1 %v14350_v36 }
 0x97e   : > { %13296 = vmatpush3.bf16.msra.mxu1 %v14350_v36 }
 0x97f   : > { %13297 = vmatprep.subr.bf16.mxu1 %v14351_v26 }
 0x981   : > { %13266 = vmatmul.mubr.msk.bf16.gmra.mrb[68].mxu1 %vm19303_vm2, %v17028_v30  ;;  %vm19310_vm2 = vmmov %vm19300_vm0 }
 0x982   : > { %13269 = vmatprep.mubr.msk.bf16.mxu1 %vm19304_vm1, %v17030_v3  ;;  %13298 = vmatpush3.bf16.msra.mxu1 %v14351_v26  ;;  %vm19311_vm1 = vmmov %vm19300_vm0 }
 0x983   : > { %13299 = vmatprep.subr.bf16.mxu1 %v14352_v44 }
 0x986   : > { %13300 = vmatpush3.bf16.msra.mxu1 %v14352_v44 }
 0x987   : > { %13301 = vmatprep.subr.bf16.mxu1 %v14353_v41 }
 0x989   : > { %13270 = vmatmul.mubr.msk.bf16.gmra.mrb[72].mxu1 %vm19305_vm15, %v17036_v7  ;;  %vm19312_vm15 = vmmov %vm19300_vm0 }
 0x98a   : > { %13273 = vmatprep.mubr.msk.bf16.mxu1 %vm19306_vm8, %v17038_v54  ;;  %13302 = vmatpush3.bf16.msra.mxu1 %v14353_v41  ;;  %vm19313_vm8 = vmmov %vm19300_vm0 }
 0x98b   : > { %13303 = vmatprep.subr.bf16.mxu1 %v14354_v1 }
 0x98e   : > { %13304 = vmatpush3.bf16.msra.mxu1 %v14354_v1 }
 0x991   : > { %13274 = vmatmul.mubr.msk.bf16.gmra.mrb[76].mxu1 %vm19307_vm3, %v17044_v33  ;;  %vm19314_vm3 = vmmov %vm19300_vm0 }
 0x992   : > { %13277 = vmatprep.mubr.msk.bf16.mxu1 %vm19300_vm0, %v17046_v9  ;;  %vm19315_vm0 = vcmask 785408  }
 0x999   : > { %13278 = vmatmul.mubr.msk.bf16.gmra.mrb[80].mxu1 %vm19308_vm9, %v17052_v12  ;;  %vm19316_vm9 = vmmov %vm19315_vm0 }
 0x99a   : > { %13281 = vmatprep.mubr.msk.bf16.mxu1 %vm19309_vm5, %v17054_v59  ;;  %vm19317_vm5 = vmmov %vm19315_vm0 }
 0x9a1   : > { %13282 = vmatmul.mubr.msk.bf16.gmra.mrb[84].mxu1 %vm19310_vm2, %v17060_v18  ;;  %vm19318_vm2 = vmmov %vm19315_vm0 }
 0x9a2   : > { %13285 = vmatprep.mubr.msk.bf16.mxu1 %vm19311_vm1, %v17062_v39  ;;  %vm19319_vm1 = vmmov %vm19315_vm0 }
 0x9a9   : > { %13286 = vmatmul.mubr.msk.bf16.gmra.mrb[88].mxu1 %vm19312_vm15, %v17068_v11  ;;  %vm19320_vm15 = vmmov %vm19315_vm0 }
 0x9aa   : > { %13289 = vmatprep.mubr.msk.bf16.mxu1 %vm19313_vm8, %v7433_v61  ;;  %vm19321_vm8 = vmmov %vm19315_vm0 }
 0x9b1   : > { %13290 = vmatmul.mubr.msk.bf16.gmra.mrb[92].mxu1 %vm19314_vm3, %v8001_v37  ;;  %vm19322_vm3 = vmmov %vm19315_vm0 }
 0x9b2   : > { %13305 = vmatprep.mubr.msk.bf16.mxu1 %vm19315_vm0, %v16924_v63  ;;  %v14381_v63 = vld [vmem:[#allocation3] sm:$0xff] }
 0x9b9   : > { %13306 = vmatmul.mubr.msk.bf16.vlgmr.msra.gmra.mrb[64].mxu1 %vm19316_vm9, %v16928_v42  ;;  %vm19323_vm9 = vmmov %vm19315_vm0 }
 0x9ba   : > { %13309 = vmatprep.mubr.msk.bf16.mxu1 %vm19317_vm5, %v16934_v43  ;;  %vm19324_vm5 = vmmov %vm19315_vm0 }
 0x9c1   : > { %13310 = vmatmul.mubr.msk.bf16.gmra.mrb[68].mxu1 %vm19318_vm2, %v16938_v13  ;;  %vm19325_vm2 = vmmov %vm19315_vm0 }
 0x9c2   : > { %13313 = vmatprep.mubr.msk.bf16.mxu1 %vm19319_vm1, %v16944_v27  ;;  %vm19326_vm1 = vmmov %vm19315_vm0 }
 0x9c9   : > { %13314 = vmatmul.mubr.msk.bf16.gmra.mrb[72].mxu1 %vm19320_vm15, %v16948_v60  ;;  %vm19327_vm15 = vmmov %vm19315_vm0 }
 0x9ca   : > { %13317 = vmatprep.mubr.msk.bf16.mxu1 %vm19321_vm8, %v16954_v49  ;;  %vm19328_vm8 = vmmov %vm19315_vm0 }
 0x9d1   : > { %13318 = vmatmul.mubr.msk.bf16.gmra.mrb[76].mxu1 %vm19322_vm3, %v16958_v29  ;;  %vm19329_vm3 = vmmov %vm19315_vm0 }
 0x9d2   : > { %13321 = vmatprep.mubr.msk.bf16.mxu1 %vm19315_vm0, %v16964_v53  ;;  %vm19330_vm0 = vcmp.lt.s32.totalorder %v14630_v32, 1 }
 0x9d9   : > { %13322 = vmatmul.mubr.msk.bf16.gmra.mrb[80].mxu1 %vm19323_vm9, %v16968_v6  ;;  %vm19331_vm9 = vmmov %vm19330_vm0 }
 0x9da   : > { %13325 = vmatprep.mubr.msk.bf16.mxu1 %vm19324_vm5, %v16974_v14  ;;  %vm19332_vm5 = vmmov %vm19330_vm0 }
 0x9e1   : > { %13326 = vmatmul.mubr.msk.bf16.gmra.mrb[84].mxu1 %vm19325_vm2, %v16978_v52  ;;  %vm19333_vm2 = vmmov %vm19330_vm0 }
 0x9e2   : > { %13329 = vmatprep.mubr.msk.bf16.mxu1 %vm19326_vm1, %v16995_v50  ;;  %vm19334_vm1 = vmmov %vm19330_vm0 }
 0x9e9   : > { %13330 = vmatmul.mubr.msk.bf16.gmra.mrb[88].mxu1 %vm19327_vm15, %v17002_v24  ;;  %vm19335_vm15 = vmmov %vm19330_vm0 }
 0x9ea   : > { %13333 = vmatprep.mubr.msk.bf16.mxu1 %vm19328_vm8, %v7695_v55  ;;  %vm19336_vm8 = vmmov %vm19330_vm0 }
 0x9f1   : > { %13334 = vmatmul.mubr.msk.bf16.gmra.mrb[92].mxu1 %vm19329_vm3, %v14381_v63  ;;  %vm19337_vm3 = vmmov %vm19330_vm0 }
 0xa8c   : > { %v13307_v42 = vpop.f32.mrb[64].mxu1 }
 0xa8d   : > { %8654 = vrot.lane.b32.xlu1 %v13307_v42, %s14393_s16  ;;  %v17233_v43 = vpop.f32.mrb[65].mxu1  ;;  %v8556_v27 = vrot.slane %v13307_v42, 7 }
 0xa8e   : > { %8650 = vrot.lane.b32.xlu0 %v17233_v43, %s14393_s16  ;;  %v13308_v13 = vpop.f32.mrb[66].mxu1  ;;  %v18708_v29 = vrot.slane %v17233_v43, 7 }
 0xa8f   : > { %v8557_v60 = vrot.slane %v13308_v13, 7  ;;  %v8398_v49 = vpop.f32.mrb[67].mxu1 }
 0xa90   : > { %v8555_v53 = vrot.slane %v8398_v49, 7 }
 0xa91   : > { %8846 = vrot.lane.b32.xlu1 %v13307_v42, %s14392_s30  ;;  %v17241_v6 = vsel %vm19330_vm0, %v8556_v27, %v8557_v60 }
 0xa92   : > { %8848 = vrot.lane.b32.xlu0 %v13308_v13, %s14392_s30  ;;  %v17246_v14 = vsel %vm19331_vm9, %v8555_v53, %v8556_v27  ;;  %v17252_v52 = vsel %vm19332_vm5, %v18708_v29, %v8555_v53  ;;  %vm19338_vm9 = vmmov %vm19330_vm0 }
 0xa93   : > { %vm19339_vm5 = vmmov %vm19330_vm0 }
 0xa94   : > { %v13311_v50 = vpop.f32.mrb[68].mxu1 }
 0xa95   : > { %8842 = vrot.lane.b32.xlu1 %v17233_v43, %s14392_s30  ;;  %v8411_v24 = vpop.f32.mrb[69].mxu1  ;;  %v8560_v7 = vrot.slane %v13311_v50, 7 }
 0xa96   : > { %v8558_v30 = vrot.slane %v8411_v24, 7  ;;  %8652 = vrot.lane.b32.xlu0 %v8398_v49, %s14393_s16  ;;  %v13312_v3 = vpop.f32.mrb[70].mxu1 }
 0xa97   : > { %v8561_v54 = vrot.slane %v13312_v3, 7  ;;  %v8414_v33 = vpop.f32.mrb[71].mxu1 }
 0xa98   : > { %v8559_v9 = vrot.slane %v8414_v33, 7  ;;  %v17259_v12 = vsel %vm19333_vm2, %v8557_v60, %v8558_v30  ;;  %vm19340_vm2 = vmmov %vm19330_vm0 }
 0xa99   : > { %8656 = vrot.lane.b32.xlu1 %v13308_v13, %s14393_s16  ;;  %v17264_v59 = vsel %vm19334_vm1, %v8560_v7, %v8561_v54  ;;  %vm19341_vm1 = vmmov %vm19330_vm0 }
 0xa9a   : > { %8844 = vrot.lane.b32.xlu0 %v8398_v49, %s14392_s30  ;;  %v17269_v18 = vsel %vm19335_vm15, %v8559_v9, %v8560_v7  ;;  %v17273_v39 = vsel %vm19336_vm8, %v8558_v30, %v8559_v9  ;;  %vm19342_vm15 = vmmov %vm19330_vm0 }
 0xa9b   : > { %vm19343_vm8 = vmmov %vm19330_vm0 }
 0xa9c   : > { %v13315_v11 = vpop.f32.mrb[72].mxu1 }
 0xa9d   : > { %8854 = vrot.lane.b32.xlu1 %v13311_v50, %s14392_s30  ;;  %v8427_v61 = vpop.f32.mrb[73].mxu1  ;;  %v8564_v36 = vrot.slane %v13315_v11, 7 }
 0xa9e   : > { %v8562_v16 = vrot.slane %v8427_v61, 7  ;;  %8662 = vrot.lane.b32.xlu0 %v13311_v50, %s14393_s16  ;;  %v13316_v55 = vpop.f32.mrb[74].mxu1 }
 0xa9f   : > { %v8565_v26 = vrot.slane %v13316_v55, 7  ;;  %v8430_v44 = vpop.f32.mrb[75].mxu1 }
 0xaa0   : > { %v8563_v41 = vrot.slane %v8430_v44, 7  ;;  %v17279_v1 = vsel %vm19337_vm3, %v8561_v54, %v8562_v16  ;;  %vm19344_vm3 = vmmov %vm19330_vm0 }
 0xaa1   : > { %8850 = vrot.lane.b32.xlu1 %v8411_v24, %s14392_s30  ;;  %v17284_v37 = vsel %vm19330_vm0, %v8564_v36, %v8565_v26 }
 0xaa2   : > { %8658 = vrot.lane.b32.xlu0 %v8411_v24, %s14393_s16  ;;  %v17289_v63 = vsel %vm19338_vm9, %v8563_v41, %v8564_v36  ;;  %v17293_v42 = vsel %vm19339_vm5, %v8562_v16, %v8563_v41  ;;  %vm19346_vm9 = vmmov %vm19330_vm0 }
 0xaa3   : > { %vm19347_vm5 = vmmov %vm19330_vm0 }
 0xaa4   : > { %v13319_v13 = vpop.f32.mrb[76].mxu1 }
 0xaa5   : > { %8664 = vrot.lane.b32.xlu1 %v13312_v3, %s14393_s16  ;;  %v8443_v27 = vpop.f32.mrb[77].mxu1  ;;  %v8568_v53 = vrot.slane %v13319_v13, 7 }
 0xaa6   : > { %v8566_v60 = vrot.slane %v8443_v27, 7  ;;  %8856 = vrot.lane.b32.xlu0 %v13312_v3, %s14392_s30  ;;  %v13320_v49 = vpop.f32.mrb[78].mxu1 }
 0xaa7   : > { %v8569_v50 = vrot.slane %v13320_v49, 7  ;;  %v17297_v30 = vpop.f32.mrb[79].mxu1 }
 0xaa8   : > { %v8567_v24 = vrot.slane %v17297_v30, 7  ;;  %v17302_v7 = vsel %vm19340_vm2, %v8565_v26, %v8566_v60  ;;  %vm19348_vm2 = vmmov %vm19330_vm0 }
 0xaa9   : > { %8660 = vrot.lane.b32.xlu1 %v8414_v33, %s14393_s16  ;;  %v17307_v54 = vsel %vm19341_vm1, %v8568_v53, %v8569_v50  ;;  %vm19350_vm1 = vmmov %vm19330_vm0 }
 0xaaa   : > { %8852 = vrot.lane.b32.xlu0 %v8414_v33, %s14392_s30  ;;  %v17312_v3 = vsel %vm19342_vm15, %v8567_v24, %v8568_v53  ;;  %v17316_v9 = vsel %vm19343_vm8, %v8566_v60, %v8567_v24  ;;  %vm19352_vm15 = vmmov %vm19330_vm0 }
 0xaab   : > { %vm19354_vm8 = vmmov %vm19330_vm0 }
 0xaac   : > { %v17318_v16 = vpop.f32.mrb[80].mxu1 }
 0xaad   : > { %8862 = vrot.lane.b32.xlu1 %v13315_v11, %s14392_s30  ;;  %v17321_v36 = vpop.f32.mrb[81].mxu1  ;;  %v8572_v33 = vrot.slane %v17318_v16, 7 }
 0xaae   : > { %v8570_v26 = vrot.slane %v17321_v36, 7  ;;  %8670 = vrot.lane.b32.xlu0 %v13315_v11, %s14393_s16  ;;  %v17325_v41 = vpop.f32.mrb[82].mxu1 }
 0xaaf   : > { %v8573_v53 = vrot.slane %v17325_v41, 7  ;;  %v17329_v29 = vpop.f32.mrb[83].mxu1 }
 0xab0   : > { %v8571_v60 = vrot.slane %v17329_v29, 7  ;;  %v17334_v24 = vsel %vm19344_vm3, %v8569_v50, %v8570_v26  ;;  %vm19356_vm3 = vmmov %vm19330_vm0 }
 0xab1   : > { %8858 = vrot.lane.b32.xlu1 %v8427_v61, %s14392_s30  ;;  %v17339_v23 = vsel %vm19330_vm0, %v8572_v33, %v8573_v53 }
 0xab2   : > { %19345 = vst [vmem:[#allocation31_spill] sm:$0xff] %v17339_v23  ;;  %8666 = vrot.lane.b32.xlu0 %v8427_v61, %s14393_s16  ;;  %v17344_v11 = vsel %vm19346_vm9, %v8571_v60, %v8572_v33  ;;  %v17348_v19 = vsel %vm19347_vm5, %v8570_v26, %v8571_v60  ;;  %vm19359_vm9 = vmmov %vm19330_vm0 }
 0xab3   : > { %vm19361_vm5 = vmmov %vm19330_vm0 }
 0xab4   : > { %v13327_v22 = vpop.f32.mrb[84].mxu1 }
 0xab5   : > { %8672 = vrot.lane.b32.xlu1 %v13316_v55, %s14393_s16  ;;  %v8475_v50 = vpop.f32.mrb[85].mxu1  ;;  %v8576_v28 = vrot.slane %v13327_v22, 7 }
 0xab6   : > { %v8574_v51 = vrot.slane %v8475_v50, 7  ;;  %8864 = vrot.lane.b32.xlu0 %v13316_v55, %s14392_s30  ;;  %v13328_v5 = vpop.f32.mrb[86].mxu1 }
 0xab7   : > { %v8577_v48 = vrot.slane %v13328_v5, 7  ;;  %v8478_v45 = vpop.f32.mrb[87].mxu1 }
 0xab8   : > { %v8575_v61 = vrot.slane %v8478_v45, 7  ;;  %v17354_v33 = vsel %vm19348_vm2, %v8573_v53, %v8574_v51  ;;  %vm19364_vm2 = vmmov %vm19330_vm0 }
 0xab9   : > { %19349 = vst [vmem:[#allocation5_spill] sm:$0xff] %v17354_v33  ;;  %8668 = vrot.lane.b32.xlu1 %v8430_v44, %s14393_s16  ;;  %v17359_v26 = vsel %vm19350_vm1, %v8576_v28, %v8577_v48  ;;  %vm19366_vm1 = vmmov %vm19330_vm0 }
 0xaba   : > { %19351 = vst [vmem:[#allocation6_spill] sm:$0xff] %v17359_v26  ;;  %8860 = vrot.lane.b32.xlu0 %v8430_v44, %s14392_s30  ;;  %v17364_v55 = vsel %vm19352_vm15, %v8575_v61, %v8576_v28  ;;  %v17368_v60 = vsel %vm19354_vm8, %v8574_v51, %v8575_v61  ;;  %vm19367_vm15 = vmmov %vm19330_vm0 }
 0xabb   : > { %19353 = vst [vmem:[#allocation8_spill] sm:$0xff] %v17364_v55  ;;  %19355 = vst [vmem:[#allocation9_spill] sm:$0xff] %v17368_v60 }
 0xabc   : > { %v13331_v25 = vpop.f32.mrb[88].mxu1  ;;  %vm19368_vm8 = vmmov %vm19330_vm0 }
 0xabd   : > { %8870 = vrot.lane.b32.xlu1 %v13319_v13, %s14392_s30  ;;  %v8491_v53 = vpop.f32.mrb[89].mxu1  ;;  %v8580_v23 = vrot.slane %v13331_v25, 7 }
 0xabe   : > { %v8578_v33 = vrot.slane %v8491_v53, 7  ;;  %8678 = vrot.lane.b32.xlu0 %v13319_v13, %s14393_s16  ;;  %v13332_v56 = vpop.f32.mrb[90].mxu1 }
 0xabf   : > { %v8581_v26 = vrot.slane %v13332_v56, 7  ;;  %v8494_v38 = vpop.f32.mrb[91].mxu1 }
 0xac0   : > { %v8579_v44 = vrot.slane %v8494_v38, 7  ;;  %v17374_v28 = vsel %vm19356_vm3, %v8577_v48, %v8578_v33  ;;  %vm19369_vm3 = vmmov %vm19330_vm0 }
 0xac1   : > { %19357 = vst [vmem:[#allocation10_spill] sm:$0xff] %v17374_v28  ;;  %8866 = vrot.lane.b32.xlu1 %v8443_v27, %s14392_s30  ;;  %v17379_v51 = vsel %vm19330_vm0, %v8580_v23, %v8581_v26  ;;  %vm19370_vm0 = vcmp.lt.s32.totalorder %v14630_v32, 7 }
 0xac2   : > { %19358 = vst [vmem:[#allocation7_spill] sm:$0xff] %v17379_v51  ;;  %8674 = vrot.lane.b32.xlu0 %v8443_v27, %s14393_s16  ;;  %v17384_v13 = vsel %vm19359_vm9, %v8579_v44, %v8580_v23  ;;  %v17388_v61 = vsel %vm19361_vm5, %v8578_v33, %v8579_v44  ;;  %v19365_v44 = vrot.slane %v17233_v43, 7  ;;  %vm19371_vm9 = vmmov %vm19370_vm0 }
 0xac3   : > { %19360 = vst [vmem:[#allocation26_spill] sm:$0xff] %v17384_v13  ;;  %19362 = vst [vmem:[#allocation29_spill] sm:$0xff] %v17388_v61 }
 0xac4   : > { %v17390_v55 = vpop.f32.mrb[92].mxu1  ;;  %vm19372_vm5 = vmmov %vm19370_vm0 }
 0xac5   : > { %8680 = vrot.lane.b32.xlu1 %v13320_v49, %s14393_s16  ;;  %v8507_v48 = vpop.f32.mrb[93].mxu1  ;;  %v8584_v27 = vrot.slane %v17390_v55, 7 }
 0xac6   : > { %v8582_v28 = vrot.slane %v8507_v48, 7  ;;  %8872 = vrot.lane.b32.xlu0 %v13320_v49, %s14392_s30  ;;  %v17394_v60 = vpop.f32.mrb[94].mxu1 }
 0xac7   : > { %19363 = vst [vmem:[#allocation30_spill] sm:$0xff] %v17394_v60  ;;  %v8585_v51 = vrot.slane %v17394_v60, 7  ;;  %v8510_v23 = vpop.f32.mrb[95].mxu1 }
 0xac8   : > { %v8583_v13 = vrot.slane %v8510_v23, 7  ;;  %v17400_v33 = vsel %vm19364_vm2, %v8581_v26, %v8582_v28 }
 0xac9   : > { %8676 = vrot.lane.b32.xlu1 %v17297_v30, %s14393_s16  ;;  %v8617_v49 = vsel %vm19366_vm1, %v8585_v51, %v19365_v44  ;;  %v17410_v61 = vsel %vm19367_vm15, %v8584_v27, %v8585_v51  ;;  %vm19373_vm15 = vmmov %vm19370_vm0 }
 0xaca   : > { %8868 = vrot.lane.b32.xlu0 %v17297_v30, %s14392_s30  ;;  %v17416_v60 = vsel %vm19368_vm8, %v8582_v28, %v8583_v13  ;;  %v17420_v26 = vsel %vm19369_vm3, %v8583_v13, %v8584_v27  ;;  %v8810_v28 = vsel %vm14933_vm4, %v8617_v49, 0.0  ;;  %v14361_v49 = vld [vmem:[%s18591_s9 + $0x30] sm:$0xff]  }
 0xacd   : > { %8878 = vrot.lane.b32.xlu1 %v17318_v16, %s14392_s30 }
 0xace   : > { %8686 = vrot.lane.b32.xlu0 %v17318_v16, %s14393_s16  ;;  %v14360_v16 = vld [vmem:[%s18591_s9 + $0x28] sm:$0xff]  }
 0xad1   : > { %8874 = vrot.lane.b32.xlu1 %v17321_v36, %s14392_s30 }
 0xad2   : > { %8682 = vrot.lane.b32.xlu0 %v17321_v36, %s14393_s16 }
 0xad5   : > { %8688 = vrot.lane.b32.xlu1 %v17325_v41, %s14393_s16 }
 0xad6   : > { %8880 = vrot.lane.b32.xlu0 %v17325_v41, %s14392_s30 }
 0xad9   : > { %8684 = vrot.lane.b32.xlu1 %v17329_v29, %s14393_s16 }
 0xada   : > { %8876 = vrot.lane.b32.xlu0 %v17329_v29, %s14392_s30 }
 0xadd   : > { %8886 = vrot.lane.b32.xlu1 %v13327_v22, %s14392_s30 }
 0xade   : > { %8694 = vrot.lane.b32.xlu0 %v13327_v22, %s14393_s16  ;;  %v14355_v22 = vld [vmem:[%s18591_s9] sm:$0xff]  }
 0xadf   : > { %13337 = vmatprep.subr.bf16.mxu0 %v14355_v22 }
 0xae0   : > { %13338 = vmatpush3.bf16.msra.mxu0 %v14355_v22  ;;  %v14362_v22 = vld [vmem:[%s18591_s9 + $0x38] sm:$0xff]  }
 0xae1   : > { %8882 = vrot.lane.b32.xlu1 %v8475_v50, %s14392_s30 }
 0xae2   : > { %8690 = vrot.lane.b32.xlu0 %v8475_v50, %s14393_s16 }
 0xae5   : > { %8696 = vrot.lane.b32.xlu1 %v13328_v5, %s14393_s16 }
 0xae6   : > { %8888 = vrot.lane.b32.xlu0 %v13328_v5, %s14392_s30  ;;  %v14357_v5 = vld [vmem:[%s18591_s9 + $0x10] sm:$0xff]  }
 0xae9   : > { %8692 = vrot.lane.b32.xlu1 %v8478_v45, %s14393_s16 }
 0xaea   : > { %8884 = vrot.lane.b32.xlu0 %v8478_v45, %s14392_s30  ;;  %v14356_v45 = vld [vmem:[%s18591_s9 + $0x8] sm:$0xff]  }
 0xaeb   : > { %13339 = vmatprep.subr.bf16.mxu0 %v14356_v45 }
 0xaec   : > { %13340 = vmatpush3.bf16.msra.mxu0 %v14356_v45 }
 0xaed   : > { %8890 = vrot.lane.b32.xlu1 %v8491_v53, %s14392_s30  ;;  %13341 = vmatprep.subr.bf16.mxu0 %v14357_v5 }
 0xaee   : > { %8702 = vrot.lane.b32.xlu0 %v13331_v25, %s14393_s16 }
 0xaf0   : > { %13342 = vmatpush3.bf16.msra.mxu0 %v14357_v5 }
 0xaf1   : > { %8704 = vrot.lane.b32.xlu1 %v13332_v56, %s14393_s16 }
 0xaf2   : > { %8698 = vrot.lane.b32.xlu0 %v8491_v53, %s14393_s16 }
 0xaf5   : > { %8700 = vrot.lane.b32.xlu1 %v8494_v38, %s14393_s16 }
 0xaf6   : > { %8896 = vrot.lane.b32.xlu0 %v13332_v56, %s14392_s30 }
 0xaf9   : > { %8894 = vrot.lane.b32.xlu1 %v13331_v25, %s14392_s30  ;;  %v14358_v25 = vld [vmem:[%s18591_s9 + $0x18] sm:$0xff]  }
 0xafa   : > { %8892 = vrot.lane.b32.xlu0 %v8494_v38, %s14392_s30  ;;  %13343 = vmatprep.subr.bf16.mxu0 %v14358_v25  ;;  %v14359_v38 = vld [vmem:[%s18591_s9 + $0x20] sm:$0xff]  }
 0xafb   : > { %13344 = vmatpush3.bf16.msra.mxu0 %v14358_v25 }
 0xafc   : > { %13345 = vmatprep.subr.bf16.mxu0 %v14359_v38 }
 0xafd   : > { %8708 = vrot.lane.b32.xlu1 %v8510_v23, %s14393_s16 }
 0xafe   : > { %8710 = vrot.lane.b32.xlu0 %v17390_v55, %s14393_s16 }
 0xaff   : > { %v8655_v56 = vpop.permute.xlu1 %8654  ;;  %13346 = vmatpush3.bf16.msra.mxu0 %v14359_v38 }
 0xb00   : > { %v17469_v43 = vpop.permute.xlu0 %8650  ;;  %13347 = vmatprep.subr.bf16.mxu0 %v14360_v16  ;;  %v8748_v50 = vrot.slane %v8655_v56, 1 }
 0xb01   : > { %8898 = vrot.lane.b32.xlu1 %v8507_v48, %s14392_s30  ;;  %v18711_v53 = vrot.slane %v17469_v43, 1 }
 0xb02   : > { %8706 = vrot.lane.b32.xlu0 %v8507_v48, %s14393_s16  ;;  %v17486_v48 = vld [vmem:[%s18595_s13] ss:$0 sm:$0xff] }
 0xb03   : > { %v8847_v29 = vpop.permute.xlu1 %8846  ;;  %13348 = vmatpush3.bf16.msra.mxu0 %v14360_v16 }
 0xb04   : > { %v8849_v30 = vpop.permute.xlu0 %8848  ;;  %13349 = vmatprep.subr.bf16.mxu0 %v14361_v49 }
 0xb06   : > { %8900 = vrot.lane.b32.xlu0 %v8510_v23, %s14392_s30 }
 0xb07   : > { %v8843_v36 = vpop.permute.xlu1 %8842  ;;  %13350 = vmatpush3.bf16.msra.mxu0 %v14361_v49 }
 0xb08   : > { %v8653_v41 = vpop.permute.xlu0 %8652  ;;  %v8938_v13 = vadd.f32 %v8843_v36, %v8810_v28  ;;  %13351 = vmatprep.subr.bf16.mxu0 %v14362_v22  ;;  %v8812_v28 = vsel %vm14964_vm7, %v17246_v14, 0.0  ;;  %v8941_v14 = vadd.f32 %v8849_v30, %v17241_v6 }
 0xb09   : > { %v8747_v51 = vrot.slane %v8653_v41, 1 }
 0xb0b   : > { %v8808_v27 = vsel %vm19370_vm0, %v18711_v53, %v8747_v51  ;;  %v8657_v23 = vpop.permute.xlu1 %8656  ;;  %v8807_v44 = vsel %vm19371_vm9, %v8747_v51, %v8748_v50  ;;  %13352 = vmatpush3.bf16.msra.mxu0 %v14362_v22  ;;  %vm19374_vm9 = vmmov %vm19370_vm0 }
 0xb0c   : > { %v9002_v45 = vadd.f32 %v8938_v13, %v8808_v27  ;;  %v8749_v5 = vrot.slane %v8657_v23, 1  ;;  %v8845_v56 = vpop.permute.xlu0 %8844  ;;  %v8971_v16 = vsel %vm14960_vm6, %v8807_v44, 0.0  ;;  %v8940_v27 = vadd.f32 %v8847_v29, %v8812_v28 }
 0xb0d   : > { %v8939_v25 = vadd.f32 %v8845_v56, %v17252_v52 }
 0xb0e   : > { %v9041_v38 = vadd.f32 %v17486_v48, %v9002_v45  ;;  %v8806_v51 = vsel %vm19372_vm5, %v8748_v50, %v8749_v5  ;;  %vm19375_vm5 = vmmov %vm19370_vm0 }
 0xb0f   : > { %v9003_v36 = vadd.f32 %v8971_v16, %v8939_v25  ;;  %v8855_v41 = vpop.permute.xlu1 %8854  ;;  %v9004_v45 = vadd.f32 %v8940_v27, %v8806_v51 }
 0xb10   : > { %v8663_v13 = vpop.permute.xlu0 %8662  ;;  %v9105_v23 = vmul.f32 0.2, %v9041_v38  ;;  %vm9073_vm2 = vcmp.ge.f32.partialorder %v9041_v38, 0.0 }
 0xb11   : > { %v9042_v52 = vadd.f32 %v17486_v48, %v9003_v36  ;;  %v9043_v50 = vadd.f32 %v17486_v48, %v9004_v45  ;;  %v8752_v27 = vrot.slane %v8663_v13, 1 }
 0xb12   : > { %v9137_v16 = vsel %vm9073_vm2, %v9041_v38, %v9105_v23  ;;  %v8814_v38 = vsel %vm14997_vm11, %v17259_v12, 0.0 }
 0xb13   : > { %vm9074_vm1 = vcmp.ge.f32.partialorder %v9042_v52, 0.0  ;;  %v9106_v44 = vmul.f32 0.2, %v9042_v52  ;;  %v8851_v49 = vpop.permute.xlu1 %8850  ;;  %v9107_v30 = vmul.f32 0.2, %v9043_v50  ;;  %vm9075_vm8 = vcmp.ge.f32.partialorder %v9043_v50, 0.0 }
 0xb14   : > { %v8659_v56 = vpop.permute.xlu0 %8658  ;;  %v8942_v45 = vadd.f32 %v8851_v49, %v8814_v38  ;;  %v8816_v49 = vsel %vm15002_vm13, %v17269_v18, 0.0 }
 0xb15   : > { %v8750_v25 = vrot.slane %v8659_v56, 1  ;;  %v9138_v53 = vsel %vm9074_vm1, %v9042_v52, %v9106_v44  ;;  %v8944_v38 = vadd.f32 %v8855_v41, %v8816_v49 }
 0xb16   : > { %v9169_v8 = vpack.c.bf16 %v9138_v53, %v9137_v16 }
 0xb17   : > { %v8805_v29 = vsel %vm19373_vm15, %v8749_v5, %v8750_v25  ;;  %v8665_v36 = vpop.permute.xlu1 %8664  ;;  %vm19376_vm15 = vmmov %vm19370_vm0 }
 0xb18   : > { %v8973_v22 = vsel %vm14984_vm10, %v8805_v29, 0.0  ;;  %v8857_v28 = vpop.permute.xlu0 %8856  ;;  %9201 = vrot.lane.b32.xlu1 %v9169_v8, %s14392_s30  ;;  %v8753_v52 = vrot.slane %v8665_v36, 1  ;;  %v9139_v29 = vsel %vm9075_vm8, %v9043_v50, %v9107_v30  ;;  %vm19377_vm8 = vnez %v18736_v57 }
 0xb19   : > { %v9005_v51 = vadd.f32 %v8973_v22, %v8941_v14  ;;  %v8945_v41 = vadd.f32 %v8857_v28, %v17264_v59  ;;  %v8818_v49 = vsel %vm19377_vm8, %v17279_v1, 0.0 }
 0xb1b   : > { %v9044_v53 = vadd.f32 %v17486_v48, %v9005_v51  ;;  %v8661_v6 = vpop.permute.xlu1 %8660 }
 0xb1c   : > { %v8751_v23 = vrot.slane %v8661_v6, 1  ;;  %v8853_v5 = vpop.permute.xlu0 %8852 }
 0xb1d   : > { %v8943_v44 = vadd.f32 %v8853_v5, %v17273_v39  ;;  %vm9076_vm3 = vcmp.ge.f32.partialorder %v9044_v53, 0.0  ;;  %v9108_v56 = vmul.f32 0.2, %v9044_v53  ;;  %v8802_v39 = vsel %vm19375_vm5, %v8752_v27, %v8753_v52 }
 0xb1e   : > { %v8804_v8 = vsel %vm19370_vm0, %v8750_v25, %v8751_v23  ;;  %v8803_v12 = vsel %vm19374_vm9, %v8751_v23, %v8752_v27  ;;  %v9008_v5 = vadd.f32 %v8944_v38, %v8802_v39  ;;  %vm19378_vm9 = vmmov %vm19375_vm5 }
 0xb1f   : > { %v9006_v16 = vadd.f32 %v8942_v45, %v8804_v8  ;;  %v8975_v14 = vsel %vm15009_vm14, %v8803_v12, 0.0  ;;  %v8863_v13 = vpop.permute.xlu1 %8862  ;;  %v9140_v36 = vsel %vm9076_vm3, %v9044_v53, %v9108_v56 }
 0xb20   : > { %v9007_v22 = vadd.f32 %v8975_v14, %v8943_v44  ;;  %v8671_v51 = vpop.permute.xlu0 %8670  ;;  %v9170_v25 = vpack.c.bf16 %v9140_v36, %v9139_v29  ;;  %v9047_v44 = vadd.f32 %v17486_v48, %v9008_v5 }
 0xb21   : > { %v9045_v6 = vadd.f32 %v17486_v48, %v9006_v16  ;;  %v8756_v28 = vrot.slane %v8671_v51, 1 }
 0xb22   : > { %v9046_v23 = vadd.f32 %v17486_v48, %v9007_v22  ;;  %9203 = vrot.lane.b32.xlu0 %v9170_v25, %s14392_s30  ;;  %v9111_v59 = vmul.f32 0.2, %v9047_v44  ;;  %vm9079_vm3 = vcmp.ge.f32.partialorder %v9047_v44, 0.0 }
 0xb23   : > { %v8859_v50 = vpop.permute.xlu1 %8858  ;;  %vm9077_vm2 = vcmp.ge.f32.partialorder %v9045_v6, 0.0  ;;  %v9109_v53 = vmul.f32 0.2, %v9045_v6 }
 0xb24   : > { %vm9078_vm1 = vcmp.ge.f32.partialorder %v9046_v23, 0.0  ;;  %v9110_v30 = vmul.f32 0.2, %v9046_v23  ;;  %v8667_v18 = vpop.permute.xlu0 %8666 }
 0xb25   : > { %v8754_v45 = vrot.slane %v8667_v18, 1  ;;  %v9141_v56 = vsel %vm9077_vm2, %v9045_v6, %v9109_v53  ;;  %v8946_v6 = vadd.f32 %v8859_v50, %v8818_v49  ;;  %vm19379_vm2 = vnez %v18972_v35 }
 0xb26   : > { %v9142_v27 = vsel %vm9078_vm1, %v9046_v23, %v9110_v30  ;;  %vm19380_vm1 = vnez %v18974_v58 }
 0xb27   : > { %v8801_v8 = vsel %vm19376_vm15, %v8753_v52, %v8754_v45  ;;  %v8673_v12 = vpop.permute.xlu1 %8672  ;;  %v9171_v16 = vpack.c.bf16 %v9142_v27, %v9141_v56  ;;  %v9143_v56 = vsel %vm9079_vm3, %v9047_v44, %v9111_v59  ;;  %v8820_v50 = vsel %vm19380_vm1, %v17289_v63, 0.0  ;;  %vm19381_vm15 = vmmov %vm19375_vm5 }
 0xb28   : > { %v8977_v14 = vsel %vm15051_vm12, %v8801_v8, 0.0  ;;  %v8865_v29 = vpop.permute.xlu0 %8864  ;;  %v8757_v25 = vrot.slane %v8673_v12, 1  ;;  %v8948_v12 = vadd.f32 %v8863_v13, %v8820_v50 }
 0xb29   : > { %v9009_v36 = vadd.f32 %v8977_v14, %v8945_v41  ;;  %9205 = vrot.lane.b32.xlu1 %v9171_v16, %s14392_s30  ;;  %v8949_v13 = vadd.f32 %v8865_v29, %v17284_v37 }
 0xb2b   : > { %v9048_v39 = vadd.f32 %v17486_v48, %v9009_v36  ;;  %v8669_v22 = vpop.permute.xlu1 %8668 }
 0xb2c   : > { %v8755_v52 = vrot.slane %v8669_v22, 1  ;;  %v8861_v38 = vpop.permute.xlu0 %8860 }
 0xb2d   : > { %v8947_v23 = vadd.f32 %v8861_v38, %v17293_v42  ;;  %vm9080_vm0 = vcmp.ge.f32.partialorder %v9048_v39, 0.0  ;;  %v9112_v5 = vmul.f32 0.2, %v9048_v39  ;;  %v8798_v42 = vsel %vm19381_vm15, %v8756_v28, %v8757_v25 }
 0xb2e   : > { %v8800_v53 = vsel %vm19378_vm9, %v8754_v45, %v8755_v52  ;;  %v8799_v1 = vsel %vm19375_vm5, %v8755_v52, %v8756_v28  ;;  %v9012_v36 = vadd.f32 %v8948_v12, %v8798_v42  ;;  %vm19382_vm9 = vmmov %vm19375_vm5  ;;  %vm19383_vm5 = vnez %v18744_v46 }
 0xb2f   : > { %v9010_v30 = vadd.f32 %v8946_v6, %v8800_v53  ;;  %v8979_v18 = vsel %vm19379_vm2, %v8799_v1, 0.0  ;;  %v8871_v51 = vpop.permute.xlu1 %8870  ;;  %v9144_v27 = vsel %vm9080_vm0, %v9048_v39, %v9112_v5  ;;  %vm19384_vm15 = vnez %v18746_v4 }
 0xb30   : > { %v9011_v41 = vadd.f32 %v8979_v18, %v8947_v23  ;;  %v8679_v8 = vpop.permute.xlu0 %8678  ;;  %v9172_v45 = vpack.c.bf16 %v9144_v27, %v9143_v56  ;;  %v9051_v52 = vadd.f32 %v17486_v48, %v9012_v36  ;;  %vm19387_vm2 = vnez %v18982_v47 }
 0xb31   : > { %v9049_v16 = vadd.f32 %v17486_v48, %v9010_v30  ;;  %v8822_v30 = vsel %vm19384_vm15, %v17302_v7, 0.0  ;;  %v8760_v29 = vrot.slane %v8679_v8, 1  ;;  %vm19386_vm15 = vnez %v18980_v17 }
 0xb32   : > { %v9050_v14 = vadd.f32 %v17486_v48, %v9011_v41  ;;  %9207 = vrot.lane.b32.xlu0 %v9172_v45, %s14392_s30  ;;  %v9115_v37 = vmul.f32 0.2, %v9051_v52 }
 0xb33   : > { %v8867_v44 = vpop.permute.xlu1 %8866  ;;  %vm9081_vm3 = vcmp.ge.f32.partialorder %v9049_v16, 0.0  ;;  %v9113_v49 = vmul.f32 0.2, %v9049_v16 }
 0xb34   : > { %vm9082_vm0 = vcmp.ge.f32.partialorder %v9050_v14, 0.0  ;;  %v9114_v39 = vmul.f32 0.2, %v9050_v14  ;;  %v8675_v63 = vpop.permute.xlu0 %8674  ;;  %v8950_v42 = vadd.f32 %v8867_v44, %v8822_v30  ;;  %v8824_v44 = vsel %vm19387_vm2, %v17312_v3, 0.0  ;;  %v17591_v30 = vld [vmem:[%s18587_s5] sm:$0x3] }
 0xb35   : > { %v8758_v22 = vrot.slane %v8675_v63, 1  ;;  %v9145_v59 = vsel %vm9081_vm3, %v9049_v16, %v9113_v49  ;;  %vm9083_vm3 = vcmp.ge.f32.partialorder %v9051_v52, 0.0 }
 0xb36   : > { %v9146_v28 = vsel %vm9082_vm0, %v9050_v14, %v9114_v39  ;;  %v9147_v36 = vsel %vm9083_vm3, %v9051_v52, %v9115_v37 }
 0xb37   : > { %v8797_v38 = vsel %vm19382_vm9, %v8757_v25, %v8758_v22  ;;  %v8681_v6 = vpop.permute.xlu1 %8680  ;;  %v9173_v23 = vpack.c.bf16 %v9146_v28, %v9145_v59  ;;  %v8952_v59 = vadd.f32 %v8871_v51, %v8824_v44 }
 0xb38   : > { %v8981_v5 = vsel %vm19383_vm5, %v8797_v38, 0.0  ;;  %v8873_v53 = vpop.permute.xlu0 %8872  ;;  %v8761_v27 = vrot.slane %v8681_v6, 1  ;;  %vm19385_vm5 = vmmov %vm19382_vm9 }
 0xb39   : > { %v9013_v1 = vadd.f32 %v8981_v5, %v8949_v13  ;;  %9209 = vrot.lane.b32.xlu1 %v9173_v23, %s14392_s30  ;;  %vm19388_vm8 = vmmov %vm19385_vm5 }
 0xb3b   : > { %v9052_v18 = vadd.f32 %v17486_v48, %v9013_v1  ;;  %v8677_v56 = vpop.permute.xlu1 %8676 }
 0xb3c   : > { %v8759_v25 = vrot.slane %v8677_v56, 1  ;;  %v8869_v50 = vpop.permute.xlu0 %8868  ;;  %v8953_v56 = vadd.f32 %v8873_v53, %v17307_v54 }
 0xb3d   : > { %v8951_v41 = vadd.f32 %v8869_v50, %v17316_v9  ;;  %vm9084_vm0 = vcmp.ge.f32.partialorder %v9052_v18, 0.0  ;;  %v9116_v45 = vmul.f32 0.2, %v9052_v18  ;;  %v8794_v9 = vsel %vm19388_vm8, %v8760_v29, %v8761_v27 }
 0xb3e   : > { %v8796_v12 = vsel %vm19382_vm9, %v8758_v22, %v8759_v25  ;;  %v8795_v7 = vsel %vm19385_vm5, %v8759_v25, %v8760_v29  ;;  %v9016_v38 = vadd.f32 %v8952_v59, %v8794_v9  ;;  %vm19389_vm8 = vcmask 1041408  }
 0xb3f   : > { %v9014_v16 = vadd.f32 %v8950_v42, %v8796_v12  ;;  %v8983_v14 = vsel %vm19386_vm15, %v8795_v7, 0.0  ;;  %v8879_v8 = vpop.permute.xlu1 %8878  ;;  %v9148_v49 = vsel %vm9084_vm0, %v9052_v18, %v9116_v45  ;;  %14302 = vmatprep.subr.msk.bf16.mxu0 %vm19389_vm8, %v17591_v30  ;;  %vm19390_vm0 = vmmov %vm19382_vm9  ;;  %vm19391_vm9 = vnez %v18759_v20 }
 0xb40   : > { %v9015_v39 = vadd.f32 %v8983_v14, %v8951_v41  ;;  %v8687_v63 = vpop.permute.xlu0 %8686  ;;  %v9174_v22 = vpack.c.bf16 %v9148_v49, %v9147_v36  ;;  %v9055_v18 = vadd.f32 %v17486_v48, %v9016_v38  ;;  %vm19397_vm2 = vmmov %vm19390_vm0 }
 0xb41   : > { %v9053_v28 = vadd.f32 %v17486_v48, %v9014_v16  ;;  %v8764_v53 = vrot.slane %v8687_v63, 1 }
 0xb42   : > { %v9054_v13 = vadd.f32 %v17486_v48, %v9015_v39  ;;  %9211 = vrot.lane.b32.xlu0 %v9174_v22, %s14392_s30  ;;  %v9119_v54 = vmul.f32 0.2, %v9055_v18 }
 0xb43   : > { %v8875_v52 = vpop.permute.xlu1 %8874  ;;  %vm9085_vm5 = vcmp.ge.f32.partialorder %v9053_v28, 0.0  ;;  %v9117_v6 = vmul.f32 0.2, %v9053_v28 }
 0xb44   : > { %vm9086_vm3 = vcmp.ge.f32.partialorder %v9054_v13, 0.0  ;;  %v9118_v23 = vmul.f32 0.2, %v9054_v13  ;;  %v8683_v3 = vpop.permute.xlu0 %8682 }
 0xb45   : > { %v8762_v5 = vrot.slane %v8683_v3, 1  ;;  %v9149_v1 = vsel %vm9085_vm5, %v9053_v28, %v9117_v6  ;;  %vm19392_vm5 = vnez %v18762_v40 }
 0xb46   : > { %v9150_v51 = vsel %vm9086_vm3, %v9054_v13, %v9118_v23  ;;  %v8826_v45 = vsel %vm19392_vm5, %v17334_v24, 0.0  ;;  %vm9087_vm3 = vcmp.ge.f32.partialorder %v9055_v18, 0.0  ;;  %vm19394_vm5 = vnez %v18990_v10  ;;  %v19395_v13 = vld [vmem:[#allocation11_spill] sm:$0xff] }
 0xb47   : > { %v8793_v37 = vsel %vm19390_vm0, %v8761_v27, %v8762_v5  ;;  %v8689_v29 = vpop.permute.xlu1 %8688  ;;  %v9175_v25 = vpack.c.bf16 %v9150_v51, %v9149_v1  ;;  %v8954_v36 = vadd.f32 %v8875_v52, %v8826_v45  ;;  %v9151_v59 = vsel %vm9087_vm3, %v9055_v18, %v9119_v54  ;;  %v19398_v45 = vld [vmem:[#allocation31_spill] sm:$0xff] }
 0xb48   : > { %v8985_v50 = vsel %vm19391_vm9, %v8793_v37, 0.0  ;;  %v8881_v42 = vpop.permute.xlu0 %8880  ;;  %v8765_v16 = vrot.slane %v8689_v29, 1  ;;  %vm19393_vm9 = vmmov %vm19390_vm0  ;;  %vm19396_vm15 = vnez %v19395_v13 }
 0xb49   : > { %v9017_v41 = vadd.f32 %v8985_v50, %v8953_v56  ;;  %9213 = vrot.lane.b32.xlu1 %v9175_v25, %s14392_s30  ;;  %v8828_v38 = vsel %vm19396_vm15, %v17344_v11, 0.0 }
 0xb4a   : > { %v8956_v3 = vadd.f32 %v8879_v8, %v8828_v38  ;;  %v8957_v8 = vadd.f32 %v8881_v42, %v19398_v45 }
 0xb4b   : > { %v9056_v12 = vadd.f32 %v17486_v48, %v9017_v41  ;;  %v8685_v7 = vpop.permute.xlu1 %8684 }
 0xb4c   : > { %v8763_v27 = vrot.slane %v8685_v7, 1  ;;  %v8877_v14 = vpop.permute.xlu0 %8876 }
 0xb4d   : > { %v8955_v49 = vadd.f32 %v8877_v14, %v17348_v19  ;;  %vm9088_vm8 = vcmp.ge.f32.partialorder %v9056_v12, 0.0  ;;  %v9120_v44 = vmul.f32 0.2, %v9056_v12  ;;  %v8790_v19 = vsel %vm19397_vm2, %v8764_v53, %v8765_v16  ;;  %vm19399_vm2 = vmmov %vm19390_vm0 }
 0xb4e   : > { %v8792_v9 = vsel %vm19390_vm0, %v8762_v5, %v8763_v27  ;;  %v8791_v24 = vsel %vm19393_vm9, %v8763_v27, %v8764_v53  ;;  %v9020_v51 = vadd.f32 %v8956_v3, %v8790_v19  ;;  %v19400_v53 = vld [vmem:[#allocation13_spill] sm:$0xff]  ;;  %vm19412_vm15 = vmmov %vm19399_vm2 }
 0xb4f   : > { %v9018_v39 = vadd.f32 %v8954_v36, %v8792_v9  ;;  %v8987_v22 = vsel %vm19394_vm5, %v8791_v24, 0.0  ;;  %v8887_v63 = vpop.permute.xlu1 %8886  ;;  %v9152_v28 = vsel %vm9088_vm8, %v9056_v12, %v9120_v44  ;;  %vm19401_vm8 = vnez %v19400_v53  ;;  %v19403_v44 = vld [vmem:[#allocation15_spill] sm:$0xff]  ;;  %v19405_v19 = vld [vmem:[#allocation9_spill] sm:$0xff] }
 0xb50   : > { %v9019_v52 = vadd.f32 %v8987_v22, %v8955_v49  ;;  %v8695_v6 = vpop.permute.xlu0 %8694  ;;  %v9176_v23 = vpack.c.bf16 %v9152_v28, %v9151_v59  ;;  %v9059_v41 = vadd.f32 %v17486_v48, %v9020_v51  ;;  %v19402_v49 = vld [vmem:[#allocation5_spill] sm:$0xff]  ;;  %vm19404_vm0 = vnez %v19403_v44  ;;  %v19407_v51 = vld [vmem:[#allocation16_spill] sm:$0xff] }
 0xb51   : > { %v9057_v5 = vadd.f32 %v17486_v48, %v9018_v39  ;;  %v8830_v9 = vsel %vm19404_vm0, %v19402_v49, 0.0  ;;  %v8768_v22 = vrot.slane %v8695_v6, 1  ;;  %vm19408_vm0 = vnez %v19407_v51 }
 0xb52   : > { %v9058_v1 = vadd.f32 %v17486_v48, %v9019_v52  ;;  %9215 = vrot.lane.b32.xlu0 %v9176_v23, %s14392_s30  ;;  %v9123_v42 = vmul.f32 0.2, %v9059_v41 }
 0xb53   : > { %v8883_v18 = vpop.permute.xlu1 %8882  ;;  %vm9089_vm9 = vcmp.ge.f32.partialorder %v9057_v5, 0.0  ;;  %v9121_v56 = vmul.f32 0.2, %v9057_v5 }
 0xb54   : > { %vm9090_vm3 = vcmp.ge.f32.partialorder %v9058_v1, 0.0  ;;  %v9122_v37 = vmul.f32 0.2, %v9058_v1  ;;  %v8691_v11 = vpop.permute.xlu0 %8690  ;;  %v8958_v38 = vadd.f32 %v8883_v18, %v8830_v9 }
 0xb55   : > { %v8766_v29 = vrot.slane %v8691_v11, 1  ;;  %v9153_v25 = vsel %vm9089_vm9, %v9057_v5, %v9121_v56  ;;  %vm9091_vm9 = vcmp.ge.f32.partialorder %v9059_v41, 0.0 }
 0xb56   : > { %v9154_v50 = vsel %vm9090_vm3, %v9058_v1, %v9122_v37  ;;  %v9155_v37 = vsel %vm9091_vm9, %v9059_v41, %v9123_v42 }
 0xb57   : > { %v8789_v12 = vsel %vm19399_vm2, %v8765_v16, %v8766_v29  ;;  %v8697_v7 = vpop.permute.xlu1 %8696  ;;  %v9177_v54 = vpack.c.bf16 %v9154_v50, %v9153_v25  ;;  %v19409_v25 = vld [vmem:[#allocation8_spill] sm:$0xff]  ;;  %v19410_v50 = vld [vmem:[#allocation14_spill] sm:$0xff] }
 0xb58   : > { %v8989_v27 = vsel %vm19401_vm8, %v8789_v12, 0.0  ;;  %v8889_v14 = vpop.permute.xlu0 %8888  ;;  %v8769_v59 = vrot.slane %v8697_v7, 1  ;;  %vm19406_vm8 = vmmov %vm19399_vm2  ;;  %vm19411_vm5 = vnez %v19410_v50 }
 0xb59   : > { %v9021_v36 = vadd.f32 %v8989_v27, %v8957_v8  ;;  %9217 = vrot.lane.b32.xlu1 %v9177_v54, %s14392_s30  ;;  %v8832_v18 = vsel %vm19411_vm5, %v19409_v25, 0.0 }
 0xb5a   : > { %v8786_v45 = vsel %vm19412_vm15, %v8768_v22, %v8769_v59  ;;  %v8960_v7 = vadd.f32 %v8887_v63, %v8832_v18  ;;  %v19413_v63 = vld [vmem:[#allocation6_spill] sm:$0xff]  ;;  %vm19414_vm15 = vmmov %vm19399_vm2 }
 0xb5b   : > { %v9060_v24 = vadd.f32 %v17486_v48, %v9021_v36  ;;  %v8693_v39 = vpop.permute.xlu1 %8692 }
 0xb5c   : > { %v8767_v16 = vrot.slane %v8693_v39, 1  ;;  %v8885_v28 = vpop.permute.xlu0 %8884  ;;  %v9024_v36 = vadd.f32 %v8960_v7, %v8786_v45 }
 0xb5d   : > { %v8959_v52 = vadd.f32 %v8885_v28, %v19405_v19  ;;  %vm9092_vm3 = vcmp.ge.f32.partialorder %v9060_v24, 0.0  ;;  %v9124_v23 = vmul.f32 0.2, %v9060_v24  ;;  %v8961_v28 = vadd.f32 %v8889_v14, %v19413_v63  ;;  %v19426_v63 = vld [vmem:[#allocation20_spill] sm:$0xff] }
 0xb5e   : > { %v8788_v3 = vsel %vm19399_vm2, %v8766_v29, %v8767_v16  ;;  %v8787_v5 = vsel %vm19406_vm8, %v8767_v16, %v8768_v22  ;;  %v9063_v16 = vadd.f32 %v17486_v48, %v9024_v36  ;;  %v19422_v36 = vld [vmem:[#allocation26_spill] sm:$0xff] }
 0xb5f   : > { %v9022_v1 = vadd.f32 %v8958_v38, %v8788_v3  ;;  %v8991_v56 = vsel %vm19408_vm0, %v8787_v5, 0.0  ;;  %v8891_v6 = vpop.permute.xlu1 %8890  ;;  %v9156_v11 = vsel %vm9092_vm3, %v9060_v24, %v9124_v23  ;;  %v19415_v23 = vld [vmem:[#allocation10_spill] sm:$0xff]  ;;  %v19416_v3 = vld [vmem:[#allocation17_spill] sm:$0xff] }
 0xb60   : > { %v9023_v8 = vadd.f32 %v8991_v56, %v8959_v52  ;;  %v8703_v12 = vpop.permute.xlu0 %8702  ;;  %v9178_v29 = vpack.c.bf16 %v9156_v11, %v9155_v37  ;;  %vm19417_vm3 = vnez %v19416_v3 }
 0xb61   : > { %v9061_v54 = vadd.f32 %v17486_v48, %v9022_v1  ;;  %v8834_v5 = vsel %vm19417_vm3, %v19415_v23, 0.0  ;;  %v19418_v1 = vld [vmem:[#allocation18_spill] sm:$0xff]  ;;  %v8772_v18 = vrot.slane %v8703_v12, 1  ;;  %vm9095_vm3 = vcmp.ge.f32.partialorder %v9063_v16, 0.0 }
 0xb62   : > { %v9062_v27 = vadd.f32 %v17486_v48, %v9023_v8  ;;  %9219 = vrot.lane.b32.xlu0 %v9178_v29, %s14392_s30  ;;  %vm19419_vm2 = vnez %v19418_v1  ;;  %v8962_v25 = vadd.f32 %v8891_v6, %v8834_v5 }
 0xb63   : > { %v9125_v41 = vmul.f32 0.2, %v9061_v54  ;;  %v17647_v49 = vpop.permute.xlu1 %8704  ;;  %vm9093_vm8 = vcmp.ge.f32.partialorder %v9061_v54, 0.0 }
 0xb64   : > { %vm9094_vm9 = vcmp.ge.f32.partialorder %v9062_v27, 0.0  ;;  %v9126_v9 = vmul.f32 0.2, %v9062_v27  ;;  %v8699_v24 = vpop.permute.xlu0 %8698 }
 0xb65   : > { %v8770_v39 = vrot.slane %v8699_v24, 1  ;;  %v9157_v42 = vsel %vm9093_vm8, %v9061_v54, %v9125_v41  ;;  %vm19420_vm8 = vmmov %vm19414_vm15  ;;  %v9127_v54 = vmul.f32 0.2, %v9063_v16  ;;  %v19423_v41 = vld [vmem:[#allocation19_spill] sm:$0xff]  ;;  %v19425_v24 = vld [vmem:[#allocation29_spill] sm:$0xff] }
 0xb66   : > { %v9158_v22 = vsel %vm9094_vm9, %v9062_v27, %v9126_v9  ;;  %vm19421_vm9 = vmmov %vm19420_vm8  ;;  %v8773_v27 = vrot.slane %v17647_v49, 1 }
 0xb67   : > { %v8785_v38 = vsel %vm19414_vm15, %v8769_v59, %v8770_v39  ;;  %v8701_v19 = vpop.permute.xlu1 %8700  ;;  %v9179_v52 = vpack.c.bf16 %v9158_v22, %v9157_v42  ;;  %vm19424_vm15 = vnez %v19423_v41 }
 0xb68   : > { %v8993_v56 = vsel %vm19419_vm2, %v8785_v38, 0.0  ;;  %v8771_v37 = vrot.slane %v8701_v19, 1  ;;  %v8897_v11 = vpop.permute.xlu0 %8896  ;;  %v8836_v6 = vsel %vm19424_vm15, %v19422_v36, 0.0  ;;  %vm19427_vm2 = vnez %v19426_v63 }
 0xb69   : > { %v9025_v45 = vadd.f32 %v8993_v56, %v8961_v28  ;;  %9221 = vrot.lane.b32.xlu1 %v9179_v52, %s14392_s30  ;;  %v9159_v52 = vsel %vm9095_vm3, %v9063_v16, %v9127_v54 }
 0xb6a   : > { %v8784_v14 = vsel %vm19420_vm8, %v8770_v39, %v8771_v37  ;;  %v8783_v7 = vsel %vm19421_vm9, %v8771_v37, %v8772_v18  ;;  %v8782_v37 = vsel %vm19421_vm9, %v8772_v18, %v8773_v27 }
 0xb6b   : > { %v9064_v59 = vadd.f32 %v17486_v48, %v9025_v45  ;;  %v9026_v8 = vadd.f32 %v8962_v25, %v8784_v14  ;;  %v8895_v29 = vpop.permute.xlu1 %8894  ;;  %v8995_v28 = vsel %vm19427_vm2, %v8783_v7, 0.0  ;;  %v19428_v7 = vld [vmem:[#allocation21_spill] sm:$0xff] }
 0xb6c   : > { %v8893_v12 = vpop.permute.xlu0 %8892  ;;  %v8964_v22 = vadd.f32 %v8895_v29, %v8836_v6  ;;  %vm19429_vm3 = vnez %v19428_v7 }
 0xb6d   : > { %v9065_v9 = vadd.f32 %v17486_v48, %v9026_v8  ;;  %v8963_v39 = vadd.f32 %v8893_v12, %v19425_v24  ;;  %vm9096_vm8 = vcmp.ge.f32.partialorder %v9064_v59, 0.0  ;;  %v9128_v42 = vmul.f32 0.2, %v9064_v59  ;;  %v19430_v12 = vld [vmem:[#allocation7_spill] sm:$0xff] }
 0xb6e   : > { %v9028_v45 = vadd.f32 %v8964_v22, %v8782_v37  ;;  %v8838_v54 = vsel %vm19429_vm3, %v17400_v33, 0.0  ;;  %v8965_v24 = vadd.f32 %v8897_v11, %v19430_v12  ;;  %v19436_v37 = vld [vmem:[#allocation24_spill] sm:$0xff] }
 0xb6f   : > { %v9027_v38 = vadd.f32 %v8995_v28, %v8963_v39  ;;  %v8709_v19 = vpop.permute.xlu1 %8708  ;;  %v9160_v49 = vsel %vm9096_vm8, %v9064_v59, %v9128_v42  ;;  %v9129_v56 = vmul.f32 0.2, %v9065_v9  ;;  %vm9097_vm15 = vcmp.ge.f32.partialorder %v9065_v9, 0.0  ;;  %vm19431_vm8 = vmmov %vm19421_vm9 }
 0xb70   : > { %v17672_v23 = vpop.permute.xlu0 %8710  ;;  %v9180_v5 = vpack.c.bf16 %v9160_v49, %v9159_v52  ;;  %v8775_v8 = vrot.slane %v8709_v19, 1  ;;  %v9067_v22 = vadd.f32 %v17486_v48, %v9028_v45  ;;  %vm19432_vm9 = vmmov %vm19431_vm8  ;;  %v19434_v19 = vld [vmem:[#allocation22_spill] sm:$0xff] }
 0xb71   : > { %v9066_v25 = vadd.f32 %v17486_v48, %v9027_v38  ;;  %v8776_v29 = vrot.slane %v17672_v23, 1  ;;  %v9161_v6 = vsel %vm9097_vm15, %v9065_v9, %v9129_v56  ;;  %vm19433_vm2 = vmmov %vm19431_vm8  ;;  %vm19435_vm15 = vnez %v19434_v19 }
 0xb72   : > { %9223 = vrot.lane.b32.xlu0 %v9180_v5, %s14392_s30 }
 0xb73   : > { %vm9098_vm0 = vcmp.ge.f32.partialorder %v9066_v25, 0.0  ;;  %v9130_v14 = vmul.f32 0.2, %v9066_v25  ;;  %v8899_v16 = vpop.permute.xlu1 %8898  ;;  %v8779_v33 = vsel %vm19433_vm2, %v8775_v8, %v8776_v29  ;;  %vm9099_vm2 = vcmp.ge.f32.partialorder %v9067_v22, 0.0 }
 0xb74   : > { %v8707_v59 = vpop.permute.xlu0 %8706  ;;  %v8966_v39 = vadd.f32 %v8899_v16, %v8838_v54 }
 0xb75   : > { %v8774_v36 = vrot.slane %v8707_v59, 1  ;;  %v9162_v18 = vsel %vm9098_vm0, %v9066_v25, %v9130_v14  ;;  %vm19437_vm0 = vnez %v19436_v37  ;;  %v9131_v25 = vmul.f32 0.2, %v9067_v22 }
 0xb76   : > { %v9181_v42 = vpack.c.bf16 %v9162_v18, %v9161_v6 }
 0xb77   : > { %v8780_v28 = vsel %vm19431_vm8, %v8774_v36, %v8775_v8  ;;  %v8781_v38 = vsel %vm19432_vm9, %v8773_v27, %v8774_v36  ;;  %v8999_v27 = vsel %vm19437_vm0, %v8779_v33, 0.0  ;;  %v9163_v36 = vsel %vm9099_vm2, %v9067_v22, %v9131_v25 }
 0xb78   : > { %v8997_v9 = vsel %vm19435_vm15, %v8781_v38, 0.0  ;;  %v9030_v52 = vadd.f32 %v8966_v39, %v8780_v28  ;;  %v8901_v11 = vpop.permute.xlu0 %8900  ;;  %9225 = vrot.lane.b32.xlu1 %v9181_v42, %s14392_s30  ;;  %v19438_v39 = vld [vmem:[#allocation30_spill] sm:$0xff]  ;;  %vm18713_vm0 = vcmask 1048320   ;;  %v17717_v38 = vld [vmem:[%s18587_s5 + $0x2] sm:$0x3] }
 0xb79   : > { %v9029_v49 = vadd.f32 %v8997_v9, %v8965_v24  ;;  %v8967_v5 = vadd.f32 %v8901_v11, %v17416_v60 }
 0xb7a   : > { %v9069_v56 = vadd.f32 %v17486_v48, %v9030_v52 }
 0xb7b   : > { %v9068_v45 = vadd.f32 %v17486_v48, %v9029_v49  ;;  %v9031_v14 = vadd.f32 %v8999_v27, %v8967_v5 }
 0xb7c   : > { %v9133_v8 = vmul.f32 0.2, %v9069_v56  ;;  %vm9101_vm9 = vcmp.ge.f32.partialorder %v9069_v56, 0.0 }
 0xb7d   : > { %v9070_v16 = vadd.f32 %v17486_v48, %v9031_v14  ;;  %vm9100_vm8 = vcmp.ge.f32.partialorder %v9068_v45, 0.0  ;;  %v9132_v59 = vmul.f32 0.2, %v9068_v45 }
 0xb7e   : > { %v9165_v18 = vsel %vm9101_vm9, %v9069_v56, %v9133_v8  ;;  %vm19443_vm9 = vcmp.lt.s32.totalorder %v14630_v32, 7 }
 0xb7f   : > { %vm9102_vm3 = vcmp.ge.f32.partialorder %v9070_v16, 0.0  ;;  %v9134_v54 = vmul.f32 0.2, %v9070_v16  ;;  %v9164_v60 = vsel %vm9100_vm8, %v9068_v45, %v9132_v59 }
 0xb80   : > { %v9182_v6 = vpack.c.bf16 %v9164_v60, %v9163_v36 }
 0xb81   : > { %v9166_v12 = vsel %vm9102_vm3, %v9070_v16, %v9134_v54  ;;  %vm19439_vm3 = vcmask 1041408  }
 0xb82   : > { %9227 = vrot.lane.b32.xlu0 %v9182_v6, %s14392_s30  ;;  %v9183_v24 = vpack.c.bf16 %v9166_v12, %v9165_v18  ;;  %v9573_v22 = vsel %vm19439_vm3, %v17591_v30, 0  ;;  %vm19440_vm2 = vmmov %vm19439_vm3 }
 0xb83   : > { %vm19445_vm3 = vmmov %vm19443_vm9 }
 0xb84   : > { %9229 = vrot.lane.b32.xlu1 %v9183_v24, %s14392_s30 }
 0xb86   : > { %8712 = vrot.lane.b32.xlu0 %v19438_v39, %s14393_s16 }
 0xb88   : > { %8902 = vrot.lane.b32.xlu1 %v17390_v55, %s14392_s30 }
 0xb8a   : > { %8904 = vrot.lane.b32.xlu0 %v19438_v39, %s14392_s30  ;;  %v9202_v42 = vpop.permute.xlu1 %9201 }
 0xb8b   : > { %9250 = vst.msk [vmem:[#allocation3 + $0x8] sm:$0xff] %vm18713_vm0, %v9202_v42 }
 0xb92   : > { %v17712_v28 = vld [vmem:[#allocation3 + $0x8] sm:$0xff] }
 0xb93   : > { %13354 = vmatmul.mubr.bf16.vlgmr.msra.gmra.mrb[64].mxu0 %v17712_v28 }
 0xb94   : > { %v9204_v55 = vpop.permute.xlu0 %9203  ;;  %13386 = vmatpush3.bf16.msra.mxu0 %v9573_v22 }
 0xb95   : > { %9251 = vst.msk [vmem:[#allocation3 + $0x10] sm:$0xff] %vm18713_vm0, %v9204_v55  ;;  %14303 = vmatprep.subr.msk.bf16.mxu0 %vm19440_vm2, %v17717_v38 }
 0xb9b   : > { %v9206_v33 = vpop.permute.xlu1 %9205 }
 0xb9c   : > { %9252 = vst.msk [vmem:[#allocation3 + $0x18] sm:$0xff] %vm18713_vm0, %v9206_v33  ;;  %v17724_v30 = vld [vmem:[#allocation3 + $0x10] sm:$0xff] }
 0xb9d   : > { %13357 = vmatprep.mubr.bf16.mxu0 %v17724_v30 }
 0xba3   : > { %v17727_v9 = vld [vmem:[#allocation3 + $0x18] sm:$0xff] }
 0xba4   : > { %v9208_v52 = vpop.permute.xlu0 %9207  ;;  %13358 = vmatmul.mubr.bf16.gmra.mrb[68].mxu0 %v17727_v9 }
 0xba5   : > { %9253 = vst.msk [vmem:[#allocation3 + $0x20] sm:$0xff] %vm18713_vm0, %v9208_v52 }
 0xbab   : > { %v9210_v11 = vpop.permute.xlu1 %9209 }
 0xbac   : > { %9254 = vst.msk [vmem:[#allocation3 + $0x28] sm:$0xff] %vm18713_vm0, %v9210_v11  ;;  %v17732_v49 = vld [vmem:[#allocation3 + $0x20] sm:$0xff]  ;;  %v19441_v11 = vld [vmem:[#allocation23_spill] sm:$0xff] }
 0xbad   : > { %13361 = vmatprep.mubr.bf16.mxu0 %v17732_v49  ;;  %vm19442_vm8 = vnez %v19441_v11  ;;  %v14371_v11 = vld [vmem:[%s18591_s9 + $0x80] sm:$0xff]  }
 0xbb3   : > { %v17735_v5 = vld [vmem:[#allocation3 + $0x28] sm:$0xff] }
 0xbb4   : > { %v9212_v56 = vpop.permute.xlu0 %9211  ;;  %13362 = vmatmul.mubr.bf16.gmra.mrb[72].mxu0 %v17735_v5 }
 0xbb5   : > { %9255 = vst.msk [vmem:[#allocation3 + $0x30] sm:$0xff] %vm18713_vm0, %v9212_v56  ;;  %v8840_v56 = vsel %vm19442_vm8, %v17420_v26, 0.0  ;;  %v9266_v26 = vld [vmem:[#allocation2] sm:$0xff]  ;;  %vm19449_vm8 = vcmask 1041408  }
 0xbbb   : > { %v9214_v27 = vpop.permute.xlu1 %9213 }
 0xbbc   : > { %9256 = vst.msk [vmem:[#allocation3 + $0x38] sm:$0xff] %vm18713_vm0, %v9214_v27  ;;  %v17740_v25 = vld [vmem:[#allocation3 + $0x30] sm:$0xff] }
 0xbbd   : > { %13365 = vmatprep.mubr.bf16.mxu0 %v17740_v25 }
 0xbc3   : > { %v17743_v45 = vld [vmem:[#allocation3 + $0x38] sm:$0xff] }
 0xbc4   : > { %v9216_v14 = vpop.permute.xlu0 %9215  ;;  %13366 = vmatmul.mubr.bf16.gmra.mrb[76].mxu0 %v17743_v45 }
 0xbc5   : > { %9257 = vst.msk [vmem:[#allocation3 + $0x40] sm:$0xff] %vm18713_vm0, %v9216_v14 }
 0xbcb   : > { %v9218_v8 = vpop.permute.xlu1 %9217 }
 0xbcc   : > { %9258 = vst.msk [vmem:[#allocation3 + $0x48] sm:$0xff] %vm18713_vm0, %v9218_v8  ;;  %v17748_v16 = vld [vmem:[#allocation3 + $0x40] sm:$0xff]  ;;  %v19444_v8 = vrot.slane %v17469_v43, 1 }
 0xbcd   : > { %13369 = vmatprep.mubr.bf16.mxu0 %v17748_v16 }
 0xbd3   : > { %v17751_v59 = vld [vmem:[#allocation3 + $0x48] sm:$0xff] }
 0xbd4   : > { %v9220_v54 = vpop.permute.xlu0 %9219  ;;  %13370 = vmatmul.mubr.bf16.gmra.mrb[80].mxu0 %v17751_v59 }
 0xbd5   : > { %9259 = vst.msk [vmem:[#allocation3 + $0x50] sm:$0xff] %vm18713_vm0, %v9220_v54 }
 0xbdb   : > { %v9222_v36 = vpop.permute.xlu1 %9221 }
 0xbdc   : > { %9260 = vst.msk [vmem:[#allocation3 + $0x58] sm:$0xff] %vm18713_vm0, %v9222_v36  ;;  %v17756_v60 = vld [vmem:[#allocation3 + $0x50] sm:$0xff] }
 0xbdd   : > { %13373 = vmatprep.mubr.bf16.mxu0 %v17756_v60 }
 0xbe3   : > { %v17759_v6 = vld [vmem:[#allocation3 + $0x58] sm:$0xff] }
 0xbe4   : > { %v9224_v18 = vpop.permute.xlu0 %9223  ;;  %13374 = vmatmul.mubr.bf16.gmra.mrb[84].mxu0 %v17759_v6 }
 0xbe5   : > { %9261 = vst.msk [vmem:[#allocation3 + $0x60] sm:$0xff] %vm18713_vm0, %v9224_v18 }
 0xbea   : > { %v9226_v12 = vpop.permute.xlu1 %9225 }
 0xbeb   : > { %9262 = vst.msk [vmem:[#allocation3 + $0x68] sm:$0xff] %vm18713_vm0, %v9226_v12 }
 0xbec   : > { %v17764_v24 = vld [vmem:[#allocation3 + $0x60] sm:$0xff] }
 0xbed   : > { %13377 = vmatprep.mubr.bf16.mxu0 %v17764_v24 }
 0xbf2   : > { %v17767_v39 = vld [vmem:[#allocation3 + $0x68] sm:$0xff] }
 0xbf3   : > { %13378 = vmatmul.mubr.bf16.gmra.mrb[88].mxu0 %v17767_v39 }
 0xbf4   : > { %v9228_v42 = vpop.permute.xlu0 %9227 }
 0xbf5   : > { %9263 = vst.msk [vmem:[#allocation3 + $0x70] sm:$0xff] %vm18713_vm0, %v9228_v42 }
 0xbf6   : > { %v9230_v22 = vpop.permute.xlu1 %9229 }
 0xbf7   : > { %9264 = vst.msk [vmem:[#allocation3 + $0x78] sm:$0xff] %vm18713_vm0, %v9230_v22  ;;  %v19446_v22 = vld [vmem:[#allocation25_spill] sm:$0xff] }
 0xbf8   : > { %v8713_v55 = vpop.permute.xlu0 %8712  ;;  %vm19447_vm2 = vnez %v19446_v22  ;;  %v14365_v22 = vld [vmem:[%s18591_s9 + $0x50] sm:$0xff]  }
 0xbf9   : > { %v8777_v33 = vrot.slane %v8713_v55, 1 }
 0xbfa   : > { %v8903_v52 = vpop.permute.xlu1 %8902 }
 0xbfb   : > { %v8778_v27 = vsel %vm19443_vm9, %v8776_v29, %v8777_v33  ;;  %v8968_v14 = vadd.f32 %v8903_v52, %v8840_v56  ;;  %v8809_v54 = vsel %vm19445_vm3, %v8777_v33, %v19444_v8  ;;  %vm19448_vm9 = vcmask 31744   ;;  %v9267_v56 = vld [vmem:[#allocation2 + $0x8] sm:$0xff] }
 0xbfc   : > { %v8905_v36 = vpop.permute.xlu0 %8904  ;;  %v17783_v18 = vld [vmem:[#allocation3 + $0x70] sm:$0xff]  ;;  %v9001_v23 = vsel %vm19447_vm2, %v8809_v54, 0.0  ;;  %vm19450_vm2 = vmmov %vm19448_vm9 }
 0xbfd   : > { %v9032_v12 = vadd.f32 %v8968_v14, %v8778_v27  ;;  %v8969_v42 = vadd.f32 %v8905_v36, %v17410_v61  ;;  %13381 = vmatprep.mubr.bf16.mxu0 %v17783_v18  ;;  %v9803_v27 = vsel %vm19449_vm8, %v17717_v38, 0  ;;  %v14363_v54 = vld [vmem:[%s18591_s9 + $0x40] sm:$0xff]  }
 0xbfe   : > { %v17789_v55 = vld [vmem:[#allocation3 + $0x78] sm:$0xff]  ;;  %v17808_v38 = vld [vmem:[#allocation2 + $0x20] sm:$0xff] }
 0xbff   : > { %v9071_v29 = vadd.f32 %v17486_v48, %v9032_v12  ;;  %v9033_v43 = vadd.f32 %v9001_v23, %v8969_v42  ;;  %13382 = vmatmul.mubr.bf16.gmra.mrb[92].mxu0 %v17789_v55  ;;  %v17800_v12 = vld [vmem:[#allocation2 + $0x10] sm:$0xff]  ;;  %v17814_v42 = vld [vmem:[#allocation2 + $0x28] sm:$0xff]  ;;  %v17822_v23 = vld [vmem:[#allocation2 + $0x38] sm:$0xff] }
 0xc00   : > { %13387 = vmatprep.mubr.msk.bf16.mxu0 %vm19448_vm9, %v9266_v26  ;;  %v17816_v26 = vld [vmem:[#allocation2 + $0x30] sm:$0xff] }
 0xc01   : > { %v9135_v33 = vmul.f32 0.2, %v9071_v29  ;;  %v9072_v52 = vadd.f32 %v17486_v48, %v9033_v43  ;;  %vm9103_vm3 = vcmp.ge.f32.partialorder %v9071_v29, 0.0  ;;  %v17806_v48 = vld [vmem:[#allocation2 + $0x18] sm:$0xff]  ;;  %v17830_v43 = vld [vmem:[#allocation2 + $0x48] sm:$0xff] }
 0xc03   : > { %vm9104_vm0 = vcmp.ge.f32.partialorder %v9072_v52, 0.0  ;;  %v9136_v61 = vmul.f32 0.2, %v9072_v52  ;;  %v9167_v14 = vsel %vm9103_vm3, %v9071_v29, %v9135_v33  ;;  %v17824_v29 = vld [vmem:[#allocation2 + $0x40] sm:$0xff]  ;;  %v17832_v33 = vld [vmem:[#allocation2 + $0x50] sm:$0xff] }
 0xc05   : > { %v9168_v8 = vsel %vm9104_vm0, %v9072_v52, %v9136_v61  ;;  %vm19451_vm0 = vmmov %vm19450_vm2  ;;  %v17838_v52 = vld [vmem:[#allocation2 + $0x58] sm:$0xff]  ;;  %v17840_v61 = vld [vmem:[#allocation2 + $0x60] sm:$0xff] }
 0xc06   : > { %v9184_v36 = vpack.c.bf16 %v9168_v8, %v9167_v14  ;;  %vm19452_vm8 = vmmov %vm19451_vm0  ;;  %v17848_v14 = vld [vmem:[#allocation2 + $0x70] sm:$0xff]  ;;  %v17854_v8 = vld [vmem:[#allocation2 + $0x78] sm:$0xff] }
 0xc07   : > { %13388 = vmatmul.mubr.msk.bf16.vlgmr.msra.gmra.mrb[64].mxu0 %vm19448_vm9, %v9267_v56  ;;  %vm19453_vm3 = vmmov %vm19451_vm0 }
 0xc08   : > { %13420 = vmatpush3.bf16.msra.mxu0 %v9803_v27  ;;  %9231 = vrot.lane.b32.xlu1 %v9184_v36, %s14392_s30  ;;  %vm19455_vm9 = vmmov %vm19451_vm0  ;;  %v17846_v27 = vld [vmem:[#allocation2 + $0x68] sm:$0xff]  ;;  %s14396_s30 = smov 124  }
 0xc09   : > { %13391 = vmatprep.mubr.msk.bf16.mxu0 %vm19450_vm2, %v17800_v12  ;;  %13453 = vmatprep.subr.bf16.mxu0 %v14363_v54  ;;  %vm19454_vm2 = vmmov %vm19451_vm0  ;;  %v14364_v36 = vld [vmem:[%s18591_s9 + $0x48] sm:$0xff]  }
 0xc0a   : > { %vm19462_vm15 = vmmov %vm19451_vm0 }
 0xc0b   : > { %vm19475_vm5 = vmmov %vm19451_vm0 }
 0xc0f   : > { %13392 = vmatmul.mubr.msk.bf16.gmra.mrb[68].mxu0 %vm19451_vm0, %v17806_v48 }
 0xc10   : > { %13395 = vmatprep.mubr.msk.bf16.mxu0 %vm19452_vm8, %v17808_v38  ;;  %vm19456_vm8 = vmmov %vm19451_vm0 }
 0xc17   : > { %13396 = vmatmul.mubr.msk.bf16.gmra.mrb[72].mxu0 %vm19453_vm3, %v17814_v42  ;;  %vm19457_vm3 = vmmov %vm19451_vm0 }
 0xc18   : > { %13399 = vmatprep.mubr.msk.bf16.mxu0 %vm19454_vm2, %v17816_v26  ;;  %vm19458_vm2 = vmmov %vm19451_vm0 }
 0xc1f   : > { %13400 = vmatmul.mubr.msk.bf16.gmra.mrb[76].mxu0 %vm19455_vm9, %v17822_v23  ;;  %vm19459_vm9 = vmmov %vm19451_vm0 }
 0xc20   : > { %13403 = vmatprep.mubr.msk.bf16.mxu0 %vm19451_vm0, %v17824_v29 }
 0xc27   : > { %13404 = vmatmul.mubr.msk.bf16.gmra.mrb[80].mxu0 %vm19456_vm8, %v17830_v43  ;;  %vm19460_vm8 = vmmov %vm19451_vm0 }
 0xc28   : > { %13407 = vmatprep.mubr.msk.bf16.mxu0 %vm19457_vm3, %v17832_v33  ;;  %vm19461_vm3 = vmmov %vm19451_vm0 }
 0xc2f   : > { %13408 = vmatmul.mubr.msk.bf16.gmra.mrb[84].mxu0 %vm19458_vm2, %v17838_v52  ;;  %vm19463_vm2 = vmmov %vm19451_vm0 }
 0xc30   : > { %13411 = vmatprep.mubr.msk.bf16.mxu0 %vm19459_vm9, %v17840_v61  ;;  %vm19464_vm9 = vmmov %vm19451_vm0 }
 0xc37   : > { %13412 = vmatmul.mubr.msk.bf16.gmra.mrb[88].mxu0 %vm19451_vm0, %v17846_v27 }
 0xc38   : > { %13415 = vmatprep.mubr.msk.bf16.mxu0 %vm19460_vm8, %v17848_v14  ;;  %vm19466_vm8 = vmmov %vm19451_vm0 }
 0xc3f   : > { %13416 = vmatmul.mubr.msk.bf16.gmra.mrb[92].mxu0 %vm19461_vm3, %v17854_v8  ;;  %vm19467_vm3 = vmmov %vm19451_vm0 }
 0xc40   : > { %13421 = vmatprep.mubr.msk.bf16.mxu0 %vm19462_vm15, %v9267_v56  ;;  %v14366_v56 = vld [vmem:[%s18591_s9 + $0x58] sm:$0xff]   ;;  %vm19465_vm15 = vmmov %vm19451_vm0 }
 0xc47   : > { %13422 = vmatmul.mubr.msk.bf16.vlgmr.msra.gmra.mrb[64].mxu0 %vm19463_vm2, %v17800_v12  ;;  %vm19468_vm2 = vmmov %vm19451_vm0 }
 0xc48   : > { %13454 = vmatpush3.bf16.msra.mxu0 %v14363_v54  ;;  %13425 = vmatprep.mubr.msk.bf16.mxu0 %vm19464_vm9, %v17806_v48  ;;  %v14367_v54 = vld [vmem:[%s18591_s9 + $0x60] sm:$0xff]   ;;  %vm19469_vm9 = vmmov %vm19451_vm0 }
 0xc49   : > { %13455 = vmatprep.subr.bf16.mxu0 %v14364_v36 }
 0xc4c   : > { %13456 = vmatpush3.bf16.msra.mxu0 %v14364_v36  ;;  %v14368_v36 = vld [vmem:[%s18591_s9 + $0x68] sm:$0xff]  }
 0xc4d   : > { %13457 = vmatprep.subr.bf16.mxu0 %v14365_v22 }
 0xc4f   : > { %13426 = vmatmul.mubr.msk.bf16.gmra.mrb[68].mxu0 %vm19465_vm15, %v17808_v38  ;;  %vm19470_vm15 = vcmask 1041408  }
 0xc50   : > { %13429 = vmatprep.mubr.msk.bf16.mxu0 %vm19451_vm0, %v17814_v42  ;;  %13458 = vmatpush3.bf16.msra.mxu0 %v14365_v22  ;;  %v14369_v22 = vld [vmem:[%s18591_s9 + $0x70] sm:$0xff]  }
 0xc51   : > { %13459 = vmatprep.subr.bf16.mxu0 %v14366_v56 }
 0xc54   : > { %13460 = vmatpush3.bf16.msra.mxu0 %v14366_v56  ;;  %v14370_v56 = vld [vmem:[%s18591_s9 + $0x78] sm:$0xff]  }
 0xc55   : > { %13461 = vmatprep.subr.bf16.mxu0 %v14367_v54 }
 0xc57   : > { %13430 = vmatmul.mubr.msk.bf16.gmra.mrb[72].mxu0 %vm19466_vm8, %v17816_v26  ;;  %vm19471_vm8 = vmmov %vm19451_vm0 }
 0xc58   : > { %13433 = vmatprep.mubr.msk.bf16.mxu0 %vm19467_vm3, %v17822_v23  ;;  %13462 = vmatpush3.bf16.msra.mxu0 %v14367_v54  ;;  %v12016_v54 = vld [vmem:[%s18587_s5 + $0x4] sm:$0x3]  ;;  %vm19472_vm3 = vmmov %vm19451_vm0 }
 0xc59   : > { %13463 = vmatprep.subr.bf16.mxu0 %v14368_v36 }
 0xc5c   : > { %13464 = vmatpush3.bf16.msra.mxu0 %v14368_v36 }
 0xc5d   : > { %13465 = vmatprep.subr.bf16.mxu0 %v14369_v22 }
 0xc5f   : > { %13434 = vmatmul.mubr.msk.bf16.gmra.mrb[76].mxu0 %vm19468_vm2, %v17824_v29  ;;  %vm19473_vm2 = vmmov %vm19451_vm0 }
 0xc60   : > { %13437 = vmatprep.mubr.msk.bf16.mxu0 %vm19469_vm9, %v17830_v43  ;;  %13466 = vmatpush3.bf16.msra.mxu0 %v14369_v22  ;;  %vm19474_vm9 = vmmov %vm19451_vm0  ;;  %v9751_v22 = vld [vmem:[#allocation2 + $0x80] sm:$0xff] }
 0xc61   : > { %13467 = vmatprep.subr.bf16.mxu0 %v14370_v56 }
 0xc64   : > { %13468 = vmatpush3.bf16.msra.mxu0 %v14370_v56 }
 0xc65   : > { %14304 = vmatprep.subr.msk.bf16.mxu0 %vm19470_vm15, %v12016_v54  ;;  %vm19476_vm15 = vcmask 1048320  }
 0xc67   : > { %13438 = vmatmul.mubr.msk.bf16.gmra.mrb[80].mxu0 %vm19451_vm0, %v17832_v33 }
 0xc68   : > { %13441 = vmatprep.mubr.msk.bf16.mxu0 %vm19471_vm8, %v17838_v52  ;;  %vm19477_vm8 = vcmask 1041408  }
 0xc69   : > { %v10339_v56 = vsel %vm19477_vm8, %v12016_v54, 0  ;;  %v14372_v54 = vld [vmem:[%s18591_s9 + $0x88] sm:$0xff]   ;;  %vm19483_vm8 = vmmov %vm19451_vm0 }
 0xc6f   : > { %13442 = vmatmul.mubr.msk.bf16.gmra.mrb[84].mxu0 %vm19472_vm3, %v17840_v61  ;;  %vm19479_vm3 = vmmov %vm19451_vm0 }
 0xc70   : > { %13445 = vmatprep.mubr.msk.bf16.mxu0 %vm19473_vm2, %v17846_v27  ;;  %vm19480_vm2 = vmmov %vm19451_vm0 }
 0xc77   : > { %13446 = vmatmul.mubr.msk.bf16.gmra.mrb[88].mxu0 %vm19474_vm9, %v17848_v14  ;;  %vm19481_vm9 = vmmov %vm19451_vm0 }
 0xc78   : > { %13449 = vmatprep.mubr.msk.bf16.mxu0 %vm19475_vm5, %v17854_v8  ;;  %vm19478_vm5 = vmmov %vm19451_vm0 }
 0xc7a   : > { %v9232_v36 = vpop.permute.xlu1 %9231 }
 0xc7b   : > { %9265 = vst.msk [vmem:[#allocation3 + $0x80] sm:$0xff] %vm19476_vm15, %v9232_v36  ;;  %v14373_v36 = vld [vmem:[%s18591_s9 + $0x90] sm:$0xff]   ;;  %vm19482_vm15 = vmmov %vm19451_vm0 }
 0xc7f   : > { %13450 = vmatmul.mubr.msk.bf16.gmra.mrb[92].mxu0 %vm19451_vm0, %v9751_v22 }
 0xc80   : > { %13469 = vmatprep.mubr.bf16.mxu0 %v17712_v28 }
 0xc82   : > { %v10013_v28 = vld [vmem:[#allocation3 + $0x80] sm:$0xff] }
 0xc87   : > { %13470 = vmatmul.mubr.bf16.vlgmr.msra.gmra.mrb[64].mxu0 %v17724_v30 }
 0xc88   : > { %13502 = vmatpush3.bf16.msra.mxu0 %v10339_v56  ;;  %13473 = vmatprep.mubr.bf16.mxu0 %v17727_v9 }
 0xc89   : > { %13535 = vmatprep.subr.bf16.mxu0 %v14371_v11 }
 0xc8f   : > { %13474 = vmatmul.mubr.bf16.gmra.mrb[68].mxu0 %v17732_v49 }
 0xc90   : > { %13477 = vmatprep.mubr.bf16.mxu0 %v17735_v5 }
 0xc97   : > { %13478 = vmatmul.mubr.bf16.gmra.mrb[72].mxu0 %v17740_v25 }
 0xc98   : > { %13481 = vmatprep.mubr.bf16.mxu0 %v17743_v45 }
 0xc9f   : > { %13482 = vmatmul.mubr.bf16.gmra.mrb[76].mxu0 %v17748_v16 }
 0xca0   : > { %13485 = vmatprep.mubr.bf16.mxu0 %v17751_v59 }
 0xca7   : > { %13486 = vmatmul.mubr.bf16.gmra.mrb[80].mxu0 %v17756_v60 }
 0xca8   : > { %13489 = vmatprep.mubr.bf16.mxu0 %v17759_v6 }
 0xcaf   : > { %13490 = vmatmul.mubr.bf16.gmra.mrb[84].mxu0 %v17764_v24 }
 0xcb0   : > { %13493 = vmatprep.mubr.bf16.mxu0 %v17767_v39 }
 0xcb7   : > { %13494 = vmatmul.mubr.bf16.gmra.mrb[88].mxu0 %v17783_v18 }
 0xcb8   : > { %13497 = vmatprep.mubr.bf16.mxu0 %v17789_v55 }
 0xcbf   : > { %13498 = vmatmul.mubr.bf16.gmra.mrb[92].mxu0 %v10013_v28 }
 0xcc0   : > { %13503 = vmatprep.mubr.msk.bf16.mxu0 %vm19478_vm5, %v17800_v12  ;;  %v14374_v12 = vld [vmem:[%s18591_s9 + $0x98] sm:$0xff]   ;;  %vm19484_vm5 = vmmov %vm19451_vm0 }
 0xcc7   : > { %13504 = vmatmul.mubr.msk.bf16.vlgmr.msra.gmra.mrb[64].mxu0 %vm19479_vm3, %v17806_v48  ;;  %v14376_v48 = vld [vmem:[%s18591_s9 + $0xa8] sm:$0xff]   ;;  %vm19485_vm3 = vmmov %vm19451_vm0 }
 0xcc8   : > { %13536 = vmatpush3.bf16.msra.mxu0 %v14371_v11  ;;  %13507 = vmatprep.mubr.msk.bf16.mxu0 %vm19480_vm2, %v17808_v38  ;;  %v14375_v11 = vld [vmem:[%s18591_s9 + $0xa0] sm:$0xff]   ;;  %v14377_v38 = vld [vmem:[%s18591_s9 + $0xb0] sm:$0xff]   ;;  %vm19486_vm2 = vmmov %vm19451_vm0 }
 0xcc9   : > { %13537 = vmatprep.subr.bf16.mxu0 %v14372_v54 }
 0xccc   : > { %13538 = vmatpush3.bf16.msra.mxu0 %v14372_v54 }
 0xccd   : > { %13539 = vmatprep.subr.bf16.mxu0 %v14373_v36 }
 0xccf   : > { %13508 = vmatmul.mubr.msk.bf16.gmra.mrb[68].mxu0 %vm19481_vm9, %v17814_v42  ;;  %v14378_v42 = vld [vmem:[%s18591_s9 + $0xb8] sm:$0xff]   ;;  %vm19487_vm9 = vmmov %vm19451_vm0 }
 0xcd0   : > { %13511 = vmatprep.mubr.msk.bf16.mxu0 %vm19482_vm15, %v17816_v26  ;;  %13540 = vmatpush3.bf16.msra.mxu0 %v14373_v36  ;;  %vm19488_vm15 = vmmov %vm19451_vm0  ;;  %v10287_v26 = vld [vmem:[#allocation2 + $0x88] sm:$0xff] }
 0xcd1   : > { %13541 = vmatprep.subr.bf16.mxu0 %v14374_v12 }
 0xcd4   : > { %13542 = vmatpush3.bf16.msra.mxu0 %v14374_v12 }
 0xcd5   : > { %13543 = vmatprep.subr.bf16.mxu0 %v14375_v11 }
 0xcd7   : > { %13512 = vmatmul.mubr.msk.bf16.gmra.mrb[72].mxu0 %vm19451_vm0, %v17822_v23 }
 0xcd8   : > { %13515 = vmatprep.mubr.msk.bf16.mxu0 %vm19483_vm8, %v17824_v29  ;;  %13544 = vmatpush3.bf16.msra.mxu0 %v14375_v11  ;;  %vm19489_vm8 = vmmov %vm19451_vm0 }
 0xcd9   : > { %13545 = vmatprep.subr.bf16.mxu0 %v14376_v48 }
 0xcdc   : > { %13546 = vmatpush3.bf16.msra.mxu0 %v14376_v48 }
 0xcdd   : > { %13547 = vmatprep.subr.bf16.mxu0 %v14377_v38 }
 0xcdf   : > { %13516 = vmatmul.mubr.msk.bf16.gmra.mrb[76].mxu0 %vm19484_vm5, %v17830_v43  ;;  %vm19490_vm5 = vmmov %vm19451_vm0 }
 0xce0   : > { %13519 = vmatprep.mubr.msk.bf16.mxu0 %vm19485_vm3, %v17832_v33  ;;  %13548 = vmatpush3.bf16.msra.mxu0 %v14377_v38  ;;  %vm19491_vm3 = vmmov %vm19451_vm0 }
 0xce1   : > { %13549 = vmatprep.subr.bf16.mxu0 %v14378_v42 }
 0xce4   : > { %13550 = vmatpush3.bf16.msra.mxu0 %v14378_v42 }
 0xce7   : > { %13520 = vmatmul.mubr.msk.bf16.gmra.mrb[80].mxu0 %vm19486_vm2, %v17838_v52  ;;  %vm19492_vm2 = vcmp.lt.s32.totalorder %v14630_v32, 1 }
 0xce8   : > { %13523 = vmatprep.mubr.msk.bf16.mxu0 %vm19487_vm9, %v17840_v61  ;;  %vm19493_vm9 = vmmov %vm19492_vm2 }
 0xcef   : > { %13524 = vmatmul.mubr.msk.bf16.gmra.mrb[84].mxu0 %vm19488_vm15, %v17846_v27  ;;  %vm19494_vm15 = vmmov %vm19492_vm2 }
 0xcf0   : > { %13527 = vmatprep.mubr.msk.bf16.mxu0 %vm19451_vm0, %v17848_v14  ;;  %vm19495_vm0 = vmmov %vm19492_vm2 }
 0xcf7   : > { %13528 = vmatmul.mubr.msk.bf16.gmra.mrb[88].mxu0 %vm19489_vm8, %v17854_v8  ;;  %vm19496_vm8 = vmmov %vm19495_vm0 }
 0xcf8   : > { %13531 = vmatprep.mubr.msk.bf16.mxu0 %vm19490_vm5, %v9751_v22  ;;  %vm19497_vm5 = vmmov %vm19495_vm0 }
 0xcff   : > { %13532 = vmatmul.mubr.msk.bf16.gmra.mrb[92].mxu0 %vm19491_vm3, %v10287_v26  ;;  %vm19498_vm3 = vmmov %vm19495_vm0 }
 0xd00   : > { %13551 = vmatprep.mubr.bf16.mxu0 %v17724_v30  ;;  %v14382_v30 = vld [vmem:[#allocation3] sm:$0xff] }
 0xd07   : > { %13552 = vmatmul.mubr.bf16.vlgmr.msra.gmra.mrb[64].mxu0 %v17727_v9 }
 0xd08   : > { %13555 = vmatprep.mubr.bf16.mxu0 %v17732_v49 }
 0xd0f   : > { %13556 = vmatmul.mubr.bf16.gmra.mrb[68].mxu0 %v17735_v5 }
 0xd10   : > { %13559 = vmatprep.mubr.bf16.mxu0 %v17740_v25 }
 0xd17   : > { %13560 = vmatmul.mubr.bf16.gmra.mrb[72].mxu0 %v17743_v45 }
 0xd18   : > { %13563 = vmatprep.mubr.bf16.mxu0 %v17748_v16 }
 0xd1f   : > { %13564 = vmatmul.mubr.bf16.gmra.mrb[76].mxu0 %v17751_v59 }
 0xd20   : > { %13567 = vmatprep.mubr.bf16.mxu0 %v17756_v60 }
 0xd27   : > { %13568 = vmatmul.mubr.bf16.gmra.mrb[80].mxu0 %v17759_v6 }
 0xd28   : > { %13571 = vmatprep.mubr.bf16.mxu0 %v17764_v24 }
 0xd2f   : > { %13572 = vmatmul.mubr.bf16.gmra.mrb[84].mxu0 %v17767_v39 }
 0xd30   : > { %13575 = vmatprep.mubr.bf16.mxu0 %v17783_v18 }
 0xd37   : > { %13576 = vmatmul.mubr.bf16.gmra.mrb[88].mxu0 %v17789_v55 }
 0xd38   : > { %13579 = vmatprep.mubr.bf16.mxu0 %v10013_v28 }
 0xd3f   : > { %13580 = vmatmul.mubr.bf16.gmra.mrb[92].mxu0 %v14382_v30 }
 0xdda   : > { %v13553_v9 = vpop.f32.mrb[64].mxu0 }
 0xddb   : > { %10908 = vrot.lane.b32.xlu0 %v13553_v9, %s14395_s21  ;;  %v17999_v49 = vpop.f32.mrb[65].mxu0  ;;  %v10810_v25 = vrot.slane %v13553_v9, 7 }
 0xddc   : > { %v13554_v5 = vpop.f32.mrb[66].mxu0  ;;  %v18714_v59 = vrot.slane %v17999_v49, 7 }
 0xddd   : > { %v10811_v45 = vrot.slane %v13554_v5, 7  ;;  %10910 = vrot.lane.b32.xlu1 %v13554_v5, %s14395_s21  ;;  %v10652_v16 = vpop.f32.mrb[67].mxu0 }
 0xdde   : > { %v10809_v60 = vrot.slane %v10652_v16, 7 }
 0xddf   : > { %11100 = vrot.lane.b32.xlu0 %v13553_v9, %s14396_s30  ;;  %v18006_v6 = vsel %vm19492_vm2, %v10810_v25, %v10811_v45  ;;  %vm19499_vm2 = vmmov %vm19495_vm0 }
 0xde0   : > { %v18010_v24 = vsel %vm19493_vm9, %v10809_v60, %v10810_v25  ;;  %v18016_v39 = vsel %vm19494_vm15, %v18714_v59, %v10809_v60  ;;  %vm19500_vm9 = vmmov %vm19495_vm0 }
 0xde1   : > { %11102 = vrot.lane.b32.xlu1 %v13554_v5, %s14396_s30  ;;  %vm19501_vm15 = vmmov %vm19495_vm0 }
 0xde2   : > { %v13557_v18 = vpop.f32.mrb[68].mxu0 }
 0xde3   : > { %10904 = vrot.lane.b32.xlu0 %v17999_v49, %s14395_s21  ;;  %v10665_v55 = vpop.f32.mrb[69].mxu0  ;;  %v10814_v43 = vrot.slane %v13557_v18, 7 }
 0xde4   : > { %v10812_v23 = vrot.slane %v10665_v55, 7  ;;  %v13558_v29 = vpop.f32.mrb[70].mxu0 }
 0xde5   : > { %v10815_v33 = vrot.slane %v13558_v29, 7  ;;  %10906 = vrot.lane.b32.xlu1 %v10652_v16, %s14395_s21  ;;  %v10668_v52 = vpop.f32.mrb[71].mxu0 }
 0xde6   : > { %v10813_v61 = vrot.slane %v10668_v52, 7  ;;  %v18024_v27 = vsel %vm19495_vm0, %v10811_v45, %v10812_v23 }
 0xde7   : > { %11096 = vrot.lane.b32.xlu0 %v17999_v49, %s14396_s30  ;;  %v18030_v14 = vsel %vm19496_vm8, %v10814_v43, %v10815_v33  ;;  %vm19502_vm8 = vmmov %vm19495_vm0 }
 0xde8   : > { %v18034_v8 = vsel %vm19497_vm5, %v10813_v61, %v10814_v43  ;;  %v18038_v22 = vsel %vm19498_vm3, %v10812_v23, %v10813_v61  ;;  %vm19503_vm5 = vmmov %vm19495_vm0 }
 0xde9   : > { %11098 = vrot.lane.b32.xlu1 %v10652_v16, %s14396_s30  ;;  %vm19504_vm3 = vmmov %vm19495_vm0 }
 0xdea   : > { %v13561_v56 = vpop.f32.mrb[72].mxu0 }
 0xdeb   : > { %10916 = vrot.lane.b32.xlu0 %v13557_v18, %s14395_s21  ;;  %v10681_v28 = vpop.f32.mrb[73].mxu0  ;;  %v10818_v12 = vrot.slane %v13561_v56, 7 }
 0xdec   : > { %v10816_v54 = vrot.slane %v10681_v28, 7  ;;  %v13562_v36 = vpop.f32.mrb[74].mxu0 }
 0xded   : > { %v10819_v11 = vrot.slane %v13562_v36, 7  ;;  %10918 = vrot.lane.b32.xlu1 %v13558_v29, %s14395_s21  ;;  %v10684_v48 = vpop.f32.mrb[75].mxu0 }
 0xdee   : > { %v10817_v38 = vrot.slane %v10684_v48, 7  ;;  %v18045_v42 = vsel %vm19499_vm2, %v10815_v33, %v10816_v54  ;;  %vm19505_vm2 = vmmov %vm19495_vm0 }
 0xdef   : > { %11108 = vrot.lane.b32.xlu0 %v13557_v18, %s14396_s30  ;;  %v18050_v26 = vsel %vm19500_vm9, %v10818_v12, %v10819_v11  ;;  %vm19506_vm9 = vmmov %vm19495_vm0 }
 0xdf0   : > { %v18054_v30 = vsel %vm19501_vm15, %v10817_v38, %v10818_v12  ;;  %v18058_v9 = vsel %vm19495_vm0, %v10816_v54, %v10817_v38  ;;  %vm19507_vm15 = vmmov %vm19495_vm0 }
 0xdf1   : > { %11110 = vrot.lane.b32.xlu1 %v13558_v29, %s14396_s30 }
 0xdf2   : > { %v13565_v5 = vpop.f32.mrb[76].mxu0 }
 0xdf3   : > { %10912 = vrot.lane.b32.xlu0 %v10665_v55, %s14395_s21  ;;  %v18062_v25 = vpop.f32.mrb[77].mxu0  ;;  %v10822_v60 = vrot.slane %v13565_v5, 7 }
 0xdf4   : > { %v10820_v45 = vrot.slane %v18062_v25, 7  ;;  %v13566_v16 = vpop.f32.mrb[78].mxu0 }
 0xdf5   : > { %v10823_v18 = vrot.slane %v13566_v16, 7  ;;  %10914 = vrot.lane.b32.xlu1 %v10668_v52, %s14395_s21  ;;  %v18066_v23 = vpop.f32.mrb[79].mxu0 }
 0xdf6   : > { %v10821_v43 = vrot.slane %v18066_v23, 7  ;;  %v18071_v33 = vsel %vm19502_vm8, %v10819_v11, %v10820_v45  ;;  %vm19509_vm8 = vmmov %vm19495_vm0 }
 0xdf7   : > { %11104 = vrot.lane.b32.xlu0 %v10665_v55, %s14396_s30  ;;  %v18076_v29 = vsel %vm19503_vm5, %v10822_v60, %v10823_v18  ;;  %vm19511_vm5 = vmmov %vm19495_vm0 }
 0xdf8   : > { %v18080_v61 = vsel %vm19504_vm3, %v10821_v43, %v10822_v60  ;;  %v18084_v54 = vsel %vm19505_vm2, %v10820_v45, %v10821_v43  ;;  %vm19513_vm3 = vmmov %vm19495_vm0 }
 0xdf9   : > { %11106 = vrot.lane.b32.xlu1 %v10668_v52, %s14396_s30  ;;  %vm19515_vm2 = vmmov %vm19495_vm0 }
 0xdfa   : > { %v18087_v12 = vpop.f32.mrb[80].mxu0 }
 0xdfb   : > { %10924 = vrot.lane.b32.xlu0 %v13561_v56, %s14395_s21  ;;  %v18090_v11 = vpop.f32.mrb[81].mxu0  ;;  %v10826_v59 = vrot.slane %v18087_v12, 7 }
 0xdfc   : > { %v10824_v55 = vrot.slane %v18090_v11, 7  ;;  %v18093_v38 = vpop.f32.mrb[82].mxu0 }
 0xdfd   : > { %v10827_v60 = vrot.slane %v18093_v38, 7  ;;  %10926 = vrot.lane.b32.xlu1 %v13562_v36, %s14395_s21  ;;  %v18098_v45 = vpop.f32.mrb[83].mxu0 }
 0xdfe   : > { %v10825_v52 = vrot.slane %v18098_v45, 7  ;;  %v18103_v43 = vsel %vm19506_vm9, %v10823_v18, %v10824_v55  ;;  %vm19517_vm9 = vmmov %vm19495_vm0 }
 0xdff   : > { %11116 = vrot.lane.b32.xlu0 %v13561_v56, %s14396_s30  ;;  %v18108_v37 = vsel %vm19507_vm15, %v10826_v59, %v10827_v60  ;;  %vm19519_vm15 = vmmov %vm19495_vm0 }
 0xe00   : > { %19508 = vst [vmem:[#allocation27_spill] sm:$0xff] %v18108_v37  ;;  %v18112_v7 = vsel %vm19495_vm0, %v10825_v52, %v10826_v59  ;;  %v18116_v19 = vsel %vm19509_vm8, %v10824_v55, %v10825_v52  ;;  %vm19522_vm8 = vmmov %vm19495_vm0 }
 0xe01   : > { %19510 = vst [vmem:[#allocation28_spill] sm:$0xff] %v18116_v19  ;;  %11118 = vrot.lane.b32.xlu1 %v13562_v36, %s14396_s30 }
 0xe02   : > { %v13573_v63 = vpop.f32.mrb[84].mxu0 }
 0xe03   : > { %10920 = vrot.lane.b32.xlu0 %v10681_v28, %s14395_s21  ;;  %v10729_v18 = vpop.f32.mrb[85].mxu0  ;;  %v10830_v1 = vrot.slane %v13573_v63, 7 }
 0xe04   : > { %v10828_v3 = vrot.slane %v10729_v18, 7  ;;  %v13574_v56 = vpop.f32.mrb[86].mxu0 }
 0xe05   : > { %v10831_v41 = vrot.slane %v13574_v56, 7  ;;  %10922 = vrot.lane.b32.xlu1 %v10684_v48, %s14395_s21  ;;  %v10732_v51 = vpop.f32.mrb[87].mxu0 }
 0xe06   : > { %v10829_v44 = vrot.slane %v10732_v51, 7  ;;  %v18123_v59 = vsel %vm19511_vm5, %v10827_v60, %v10828_v3  ;;  %vm19524_vm5 = vmmov %vm19495_vm0 }
 0xe07   : > { %19512 = vst [vmem:[#allocation11_spill] sm:$0xff] %v18123_v59  ;;  %11112 = vrot.lane.b32.xlu0 %v10681_v28, %s14396_s30  ;;  %v18128_v36 = vsel %vm19513_vm3, %v10830_v1, %v10831_v41  ;;  %vm19526_vm3 = vmmov %vm19495_vm0 }
 0xe08   : > { %19514 = vst [vmem:[#allocation31_spill] sm:$0xff] %v18128_v36  ;;  %v18132_v55 = vsel %vm19515_vm2, %v10829_v44, %v10830_v1  ;;  %v18136_v52 = vsel %vm19517_vm9, %v10828_v3, %v10829_v44  ;;  %vm19528_vm2 = vmmov %vm19495_vm0 }
 0xe09   : > { %19516 = vst [vmem:[#allocation5_spill] sm:$0xff] %v18132_v55  ;;  %19518 = vst [vmem:[#allocation9_spill] sm:$0xff] %v18136_v52  ;;  %11114 = vrot.lane.b32.xlu1 %v10684_v48, %s14396_s30 }
 0xe0a   : > { %v13577_v53 = vpop.f32.mrb[88].mxu0  ;;  %vm19529_vm9 = vmmov %vm19495_vm0 }
 0xe0b   : > { %10932 = vrot.lane.b32.xlu0 %v13565_v5, %s14395_s21  ;;  %v10745_v60 = vpop.f32.mrb[89].mxu0  ;;  %v10834_v37 = vrot.slane %v13577_v53, 7 }
 0xe0c   : > { %v10832_v59 = vrot.slane %v10745_v60, 7  ;;  %v13578_v28 = vpop.f32.mrb[90].mxu0 }
 0xe0d   : > { %v10835_v50 = vrot.slane %v13578_v28, 7  ;;  %10934 = vrot.lane.b32.xlu1 %v13566_v16, %s14395_s21  ;;  %v10748_v36 = vpop.f32.mrb[91].mxu0 }
 0xe0e   : > { %v10833_v10 = vrot.slane %v10748_v36, 7  ;;  %v18143_v1 = vsel %vm19519_vm15, %v10831_v41, %v10832_v59  ;;  %vm19530_vm15 = vmmov %vm19495_vm0 }
 0xe0f   : > { %19520 = vst [vmem:[#allocation8_spill] sm:$0xff] %v18143_v1  ;;  %11124 = vrot.lane.b32.xlu0 %v13565_v5, %s14396_s30  ;;  %v18148_v44 = vsel %vm19495_vm0, %v10834_v37, %v10835_v50 }
 0xe10   : > { %19521 = vst [vmem:[#allocation6_spill] sm:$0xff] %v18148_v44  ;;  %v18152_v3 = vsel %vm19522_vm8, %v10833_v10, %v10834_v37  ;;  %v18156_v48 = vsel %vm19524_vm5, %v10832_v59, %v10833_v10  ;;  %vm19531_vm8 = vcmp.lt.s32.totalorder %v14630_v32, 7 }
 0xe11   : > { %19523 = vst [vmem:[#allocation10_spill] sm:$0xff] %v18152_v3  ;;  %19525 = vst [vmem:[#allocation26_spill] sm:$0xff] %v18156_v48  ;;  %11126 = vrot.lane.b32.xlu1 %v13566_v16, %s14396_s30  ;;  %v19527_v16 = vrot.slane %v17999_v49, 7 }
 0xe12   : > { %v13581_v52 = vpop.f32.mrb[92].mxu0 }
 0xe13   : > { %10928 = vrot.lane.b32.xlu0 %v18062_v25, %s14395_s21  ;;  %v10761_v41 = vpop.f32.mrb[93].mxu0  ;;  %v10838_v55 = vrot.slane %v13581_v52, 7 }
 0xe14   : > { %v10836_v5 = vrot.slane %v10761_v41, 7  ;;  %v18161_v1 = vpop.f32.mrb[94].mxu0 }
 0xe15   : > { %v10839_v44 = vrot.slane %v18161_v1, 7  ;;  %10930 = vrot.lane.b32.xlu1 %v18066_v23, %s14395_s21  ;;  %v10764_v37 = vpop.f32.mrb[95].mxu0 }
 0xe16   : > { %v10837_v3 = vrot.slane %v10764_v37, 7  ;;  %v18168_v10 = vsel %vm19526_vm3, %v10835_v50, %v10836_v5  ;;  %vm19534_vm3 = vcmask 31744  }
 0xe17   : > { %11120 = vrot.lane.b32.xlu0 %v18062_v25, %s14396_s30  ;;  %v10871_v59 = vsel %vm19528_vm2, %v10839_v44, %v19527_v16  ;;  %v18178_v48 = vsel %vm19529_vm9, %v10838_v55, %v10839_v44  ;;  %vm19538_vm2 = vmmov %vm19534_vm3 }
 0xe18   : > { %v18182_v19 = vsel %vm19530_vm15, %v10836_v5, %v10837_v3  ;;  %v18186_v50 = vsel %vm19495_vm0, %v10837_v3, %v10838_v55  ;;  %v11064_v3 = vsel %vm14933_vm4, %v10871_v59, 0.0  ;;  %vm19542_vm0 = vmmov %vm19538_vm2 }
 0xe19   : > { %11122 = vrot.lane.b32.xlu1 %v18066_v23, %s14396_s30  ;;  %v11066_v23 = vsel %vm14964_vm7, %v18010_v24, 0.0  ;;  %v11361_v24 = vld [vmem:[%s14516_s29 + $0x10] sm:$0xff]  ;;  %vm19532_vm7 = vmmov %vm19531_vm8 }
 0xe1a   : > { %vm19533_vm5 = vmmov %vm19532_vm7 }
 0xe1b   : > { %10940 = vrot.lane.b32.xlu0 %v18087_v12, %s14395_s21  ;;  %vm19536_vm4 = vmmov %vm19533_vm5 }
 0xe1c   : > { %vm19540_vm9 = vmmov %vm19536_vm4 }
 0xe1d   : > { %10942 = vrot.lane.b32.xlu1 %v18093_v38, %s14395_s21  ;;  %vm19541_vm15 = vmmov %vm19536_vm4 }
 0xe1f   : > { %11132 = vrot.lane.b32.xlu0 %v18087_v12, %s14396_s30 }
 0xe21   : > { %11134 = vrot.lane.b32.xlu1 %v18093_v38, %s14396_s30  ;;  %v18238_v38 = vld [vmem:[%s18596_s14] ss:$0 sm:$0xff] }
 0xe23   : > { %10936 = vrot.lane.b32.xlu0 %v18090_v11, %s14395_s21 }
 0xe25   : > { %10938 = vrot.lane.b32.xlu1 %v18098_v45, %s14395_s21 }
 0xe27   : > { %11128 = vrot.lane.b32.xlu0 %v18090_v11, %s14396_s30 }
 0xe29   : > { %11130 = vrot.lane.b32.xlu1 %v18098_v45, %s14396_s30 }
 0xe2b   : > { %10948 = vrot.lane.b32.xlu0 %v13573_v63, %s14395_s21 }
 0xe2d   : > { %10950 = vrot.lane.b32.xlu1 %v13574_v56, %s14395_s21 }
 0xe2f   : > { %11140 = vrot.lane.b32.xlu0 %v13573_v63, %s14396_s30 }
 0xe31   : > { %11142 = vrot.lane.b32.xlu1 %v13574_v56, %s14396_s30 }
 0xe33   : > { %10944 = vrot.lane.b32.xlu0 %v10729_v18, %s14395_s21 }
 0xe35   : > { %10946 = vrot.lane.b32.xlu1 %v10732_v51, %s14395_s21 }
 0xe37   : > { %11136 = vrot.lane.b32.xlu0 %v10729_v18, %s14396_s30 }
 0xe39   : > { %11138 = vrot.lane.b32.xlu1 %v10732_v51, %s14396_s30 }
 0xe3b   : > { %10956 = vrot.lane.b32.xlu0 %v13577_v53, %s14395_s21 }
 0xe3d   : > { %10958 = vrot.lane.b32.xlu1 %v13578_v28, %s14395_s21 }
 0xe3f   : > { %11148 = vrot.lane.b32.xlu0 %v13577_v53, %s14396_s30 }
 0xe41   : > { %11150 = vrot.lane.b32.xlu1 %v13578_v28, %s14396_s30 }
 0xe43   : > { %10952 = vrot.lane.b32.xlu0 %v10745_v60, %s14395_s21 }
 0xe45   : > { %10954 = vrot.lane.b32.xlu1 %v10748_v36, %s14395_s21 }
 0xe47   : > { %11144 = vrot.lane.b32.xlu0 %v10745_v60, %s14396_s30 }
 0xe49   : > { %11146 = vrot.lane.b32.xlu1 %v10748_v36, %s14396_s30 }
 0xe4b   : > { %10964 = vrot.lane.b32.xlu0 %v13581_v52, %s14395_s21 }
 0xe4d   : > { %v10909_v63 = vpop.permute.xlu0 %10908  ;;  %10966 = vrot.lane.b32.xlu1 %v18161_v1, %s14395_s21 }
 0xe4e   : > { %v11002_v53 = vrot.slane %v10909_v63, 1 }
 0xe4f   : > { %v18225_v51 = vpop.permute.xlu1 %10910  ;;  %10960 = vrot.lane.b32.xlu0 %v10761_v41, %s14395_s21 }
 0xe50   : > { %v11003_v49 = vrot.slane %v18225_v51, 1 }
 0xe51   : > { %v11101_v25 = vpop.permute.xlu0 %11100  ;;  %10962 = vrot.lane.b32.xlu1 %v10764_v37, %s14395_s21 }
 0xe52   : > { %v11060_v12 = vsel %vm19531_vm8, %v11002_v53, %v11003_v49  ;;  %v11194_v11 = vadd.f32 %v11101_v25, %v11066_v23  ;;  %vm19546_vm8 = vmmov %vm19542_vm0 }
 0xe53   : > { %v11103_v45 = vpop.permute.xlu1 %11102  ;;  %11152 = vrot.lane.b32.xlu0 %v10761_v41, %s14396_s30 }
 0xe54   : > { %v11258_v18 = vadd.f32 %v11194_v11, %v11060_v12  ;;  %v11359_v12 = vld [vmem:[%s14516_s29] sm:$0xff]  ;;  %v11195_v59 = vadd.f32 %v11103_v45, %v18006_v6 }
 0xe55   : > { %v18241_v56 = vpop.permute.xlu0 %10904  ;;  %11154 = vrot.lane.b32.xlu1 %v10764_v37, %s14396_s30 }
 0xe56   : > { %v11297_v15 = vadd.f32 %v18238_v38, %v11258_v18  ;;  %v11000_v60 = vrot.slane %v18241_v56, 1 }
 0xe57   : > { %v10907_v36 = vpop.permute.xlu1 %10906  ;;  %11156 = vrot.lane.b32.xlu0 %v13581_v52, %s14396_s30 }
 0xe58   : > { %v11329_v55 = vmul.f32 0.2, %v11297_v15  ;;  %v11001_v28 = vrot.slane %v10907_v36, 1 }
 0xe59   : > { %v11097_v44 = vpop.permute.xlu0 %11096  ;;  %11158 = vrot.lane.b32.xlu1 %v18161_v1, %s14396_s30 }
 0xe5a   : > { %v11393_v52 = vadd.f32 %v11361_v24, %v11329_v55  ;;  %v11062_v41 = vsel %vm19532_vm7, %v11000_v60, %v11001_v28  ;;  %v11192_v5 = vadd.f32 %v11097_v44, %v11064_v3  ;;  %v11061_v37 = vsel %vm19533_vm5, %v11001_v28, %v11002_v53 }
 0xe5b   : > { %v11099_v16 = vpop.permute.xlu1 %11098  ;;  %v11225_v1 = vsel %vm14960_vm6, %v11061_v37, 0.0  ;;  %v11070_v55 = vsel %vm15002_vm13, %v18034_v8, 0.0  ;;  %vm19537_vm6 = vmmov %vm19534_vm3  ;;  %v11365_v8 = vld [vmem:[%s14516_s29 + $0x30] sm:$0xff]  ;;  %vm19548_vm7 = vnez %v18736_v57 }
 0xe5c   : > { %11425 = vst.msk [vmem:[%s18253_s27 + $0x10] sm:$0xff] %vm19534_vm3, %v11393_v52  ;;  %v11256_v63 = vadd.f32 %v11192_v5, %v11062_v41  ;;  %v11193_v0 = vadd.f32 %v11099_v16, %v18016_v39  ;;  %v11360_v39 = vld [vmem:[%s14516_s29 + $0x8] sm:$0xff]  ;;  %vm19539_vm13 = vmmov %vm19536_vm4 }
 0xe5d   : > { %v10917_v51 = vpop.permute.xlu0 %10916 }
 0xe5e   : > { %v11295_v25 = vadd.f32 %v18238_v38, %v11256_v63  ;;  %v11257_v23 = vadd.f32 %v11225_v1, %v11193_v0  ;;  %v11006_v15 = vrot.slane %v10917_v51, 1 }
 0xe5f   : > { %v18272_v11 = vpop.permute.xlu1 %10918 }
 0xe60   : > { %v11327_v18 = vmul.f32 0.2, %v11295_v25  ;;  %v11296_v53 = vadd.f32 %v18238_v38, %v11257_v23  ;;  %v11007_v24 = vrot.slane %v18272_v11, 1 }
 0xe61   : > { %v11109_v36 = vpop.permute.xlu0 %11108 }
 0xe62   : > { %v11391_v28 = vadd.f32 %v11359_v12, %v11327_v18  ;;  %v11328_v44 = vmul.f32 0.2, %v11296_v53  ;;  %v11056_v3 = vsel %vm19536_vm4, %v11006_v15, %v11007_v24  ;;  %v11198_v52 = vadd.f32 %v11109_v36, %v11070_v55 }
 0xe63   : > { %v11111_v41 = vpop.permute.xlu1 %11110  ;;  %v11068_v18 = vsel %vm14997_vm11, %v18024_v27, 0.0  ;;  %v11362_v27 = vld [vmem:[%s14516_s29 + $0x18] sm:$0xff]  ;;  %vm19544_vm11 = vmmov %vm19536_vm4 }
 0xe64   : > { %11423 = vst.msk [vmem:[%s18253_s27] sm:$0xff] %vm19537_vm6, %v11391_v28  ;;  %v11392_v5 = vadd.f32 %v11360_v39, %v11328_v44  ;;  %v11262_v37 = vadd.f32 %v11198_v52, %v11056_v3  ;;  %vm19553_vm6 = vnez %v18982_v47 }
 0xe65   : > { %v10913_v16 = vpop.permute.xlu0 %10912 }
 0xe66   : > { %11424 = vst.msk [vmem:[%s18253_s27 + $0x8] sm:$0xff] %vm19538_vm2, %v11392_v5  ;;  %v11301_v63 = vadd.f32 %v18238_v38, %v11262_v37  ;;  %v11004_v31 = vrot.slane %v10913_v16, 1  ;;  %vm19554_vm2 = vmmov %vm19542_vm0 }
 0xe67   : > { %v10915_v0 = vpop.permute.xlu1 %10914 }
 0xe68   : > { %v11333_v1 = vmul.f32 0.2, %v11301_v63  ;;  %v11059_v51 = vsel %vm19539_vm13, %v11003_v49, %v11004_v31  ;;  %v11005_v25 = vrot.slane %v10915_v0, 1 }
 0xe69   : > { %v11227_v23 = vsel %vm14984_vm10, %v11059_v51, 0.0  ;;  %v11105_v12 = vpop.permute.xlu0 %11104  ;;  %vm19543_vm10 = vmmov %vm19542_vm0 }
 0xe6a   : > { %v11397_v53 = vadd.f32 %v11365_v8, %v11333_v1  ;;  %v11259_v39 = vadd.f32 %v11227_v23, %v11195_v59  ;;  %v11058_v6 = vsel %vm19540_vm9, %v11004_v31, %v11005_v25  ;;  %v11196_v45 = vadd.f32 %v11105_v12, %v11068_v18  ;;  %vm19556_vm9 = vmmov %vm19542_vm0 }
 0xe6b   : > { %v11057_v36 = vsel %vm19541_vm15, %v11005_v25, %v11006_v15  ;;  %v11107_v49 = vpop.permute.xlu1 %11106  ;;  %v11363_v15 = vld [vmem:[%s14516_s29 + $0x20] sm:$0xff]  ;;  %v11074_v59 = vsel %vm19380_vm1, %v18054_v30, 0.0  ;;  %vm19547_vm1 = vmmov %vm19536_vm4 }
 0xe6c   : > { %11429 = vst.msk [vmem:[%s18253_s27 + $0x30] sm:$0xff] %vm19542_vm0, %v11397_v53  ;;  %v11298_v34 = vadd.f32 %v18238_v38, %v11259_v39  ;;  %v11260_v55 = vadd.f32 %v11196_v45, %v11058_v6  ;;  %v11197_v2 = vadd.f32 %v11107_v49, %v18038_v22  ;;  %v11229_v28 = vsel %vm15009_vm14, %v11057_v36, 0.0  ;;  %vm19545_vm14 = vmmov %vm19542_vm0  ;;  %v11369_v6 = vld [vmem:[%s14516_s29 + $0x50] sm:$0xff] }
 0xe6d   : > { %v10925_v44 = vpop.permute.xlu0 %10924  ;;  %v11199_v36 = vadd.f32 %v11111_v41, %v18030_v14  ;;  %vm19549_vm5 = vmmov %vm19547_vm1 }
 0xe6e   : > { %v11330_v3 = vmul.f32 0.2, %v11298_v34  ;;  %v11299_v52 = vadd.f32 %v18238_v38, %v11260_v55  ;;  %v11261_v5 = vadd.f32 %v11229_v28, %v11197_v2  ;;  %v11010_v37 = vrot.slane %v10925_v44, 1  ;;  %vm19550_vm3 = vmmov %vm19547_vm1 }
 0xe6f   : > { %v18311_v16 = vpop.permute.xlu1 %10926  ;;  %v11072_v28 = vsel %vm19548_vm7, %v18045_v42, 0.0  ;;  %vm19551_vm4 = vmmov %vm19542_vm0  ;;  %v11366_v42 = vld [vmem:[%s14516_s29 + $0x38] sm:$0xff]  ;;  %vm19564_vm7 = vnez %v18980_v17  ;;  %v11372_v17 = vld [vmem:[%s14516_s29 + $0x68] sm:$0xff] }
 0xe70   : > { %v11394_v63 = vadd.f32 %v11362_v27, %v11330_v3  ;;  %v11331_v31 = vmul.f32 0.2, %v11299_v52  ;;  %v11300_v22 = vadd.f32 %v18238_v38, %v11261_v5  ;;  %v11011_v8 = vrot.slane %v18311_v16, 1  ;;  %vm19555_vm13 = vmmov %vm19547_vm1 }
 0xe71   : > { %v11117_v0 = vpop.permute.xlu0 %11116  ;;  %vm19557_vm15 = vmmov %vm19542_vm0 }
 0xe72   : > { %11426 = vst.msk [vmem:[%s18253_s27 + $0x18] sm:$0xff] %vm19543_vm10, %v11394_v63  ;;  %v11395_v1 = vadd.f32 %v11363_v15, %v11331_v31  ;;  %v11332_v51 = vmul.f32 0.2, %v11300_v22  ;;  %v11052_v25 = vsel %vm19544_vm11, %v11010_v37, %v11011_v8  ;;  %v11202_v23 = vadd.f32 %v11117_v0, %v11074_v59  ;;  %vm19558_vm0 = vmmov %vm19547_vm1 }
 0xe73   : > { %v11119_v12 = vpop.permute.xlu1 %11118  ;;  %vm19559_vm10 = vnez %v18744_v46  ;;  %vm19560_vm11 = vnez %v18746_v4 }
 0xe74   : > { %11427 = vst.msk [vmem:[%s18253_s27 + $0x20] sm:$0xff] %vm19545_vm14, %v11395_v1  ;;  %v11396_v18 = vadd.f32 %v11364_v62, %v11332_v51  ;;  %v11266_v53 = vadd.f32 %v11202_v23, %v11052_v25  ;;  %v11078_v23 = vsel %vm19553_vm6, %v18080_v61, 0.0  ;;  %vm19561_vm14 = vmmov %vm19558_vm0 }
 0xe75   : > { %v10921_v39 = vpop.permute.xlu0 %10920 }
 0xe76   : > { %11428 = vst.msk [vmem:[%s18253_s27 + $0x28] sm:$0xff] %vm19546_vm8, %v11396_v18  ;;  %v11305_v58 = vadd.f32 %v18238_v38, %v11266_v53  ;;  %v11008_v30 = vrot.slane %v10921_v39, 1  ;;  %vm19562_vm8 = vmmov %vm19558_vm0 }
 0xe77   : > { %v10923_v45 = vpop.permute.xlu1 %10922 }
 0xe78   : > { %v11337_v49 = vmul.f32 0.2, %v11305_v58  ;;  %v11055_v34 = vsel %vm19547_vm1, %v11007_v24, %v11008_v30  ;;  %v11009_v55 = vrot.slane %v10923_v45, 1  ;;  %vm19563_vm1 = vmmov %vm19554_vm2 }
 0xe79   : > { %v11231_v2 = vsel %vm15051_vm12, %v11055_v34, 0.0  ;;  %v11113_v27 = vpop.permute.xlu0 %11112  ;;  %vm19552_vm12 = vnez %v18972_v35  ;;  %v11368_v35 = vld [vmem:[%s14516_s29 + $0x48] sm:$0xff]  ;;  %vm19569_vm6 = vmmov %vm19563_vm1 }
 0xe7a   : > { %v11401_v44 = vadd.f32 %v11369_v6, %v11337_v49  ;;  %v11263_v3 = vadd.f32 %v11231_v2, %v11199_v36  ;;  %v11054_v14 = vsel %vm19549_vm5, %v11008_v30, %v11009_v55  ;;  %v11200_v11 = vadd.f32 %v11113_v27, %v11072_v28  ;;  %v11373_v49 = vld [vmem:[%s14516_s29 + $0x70] sm:$0xff] }
 0xe7b   : > { %v11053_v41 = vsel %vm19550_vm3, %v11009_v55, %v11010_v37  ;;  %v11115_v24 = vpop.permute.xlu1 %11114  ;;  %v11367_v37 = vld [vmem:[%s14516_s29 + $0x40] sm:$0xff]  ;;  %v11203_v55 = vadd.f32 %v11119_v12, %v18050_v26  ;;  %vm19565_vm5 = vnez %v19395_v13  ;;  %vm19566_vm3 = vmmov %vm19563_vm1 }
 0xe7c   : > { %11433 = vst.msk [vmem:[%s18253_s27 + $0x50] sm:$0xff] %vm19551_vm4, %v11401_v44  ;;  %v11302_v21 = vadd.f32 %v18238_v38, %v11263_v3  ;;  %v11264_v52 = vadd.f32 %v11200_v11, %v11054_v14  ;;  %v11201_v57 = vadd.f32 %v11115_v24, %v18058_v9  ;;  %v11233_v5 = vsel %vm19552_vm12, %v11053_v41, 0.0  ;;  %vm19567_vm4 = vmmov %vm19558_vm0 }
 0xe7d   : > { %v10933_v15 = vpop.permute.xlu0 %10932  ;;  %v11076_v14 = vsel %vm19560_vm11, %v18071_v33, 0.0  ;;  %v11370_v33 = vld [vmem:[%s14516_s29 + $0x58] sm:$0xff]  ;;  %vm19568_vm12 = vmmov %vm19563_vm1 }
 0xe7e   : > { %v11334_v63 = vmul.f32 0.2, %v11302_v21  ;;  %v11303_v31 = vadd.f32 %v18238_v38, %v11264_v52  ;;  %v11265_v22 = vadd.f32 %v11233_v5, %v11201_v57  ;;  %v11014_v62 = vrot.slane %v10933_v15, 1  ;;  %v11371_v15 = vld [vmem:[%s14516_s29 + $0x60] sm:$0xff] }
 0xe7f   : > { %v18354_v0 = vpop.permute.xlu1 %10934 }
 0xe80   : > { %v11398_v59 = vadd.f32 %v11366_v42, %v11334_v63  ;;  %v11335_v1 = vmul.f32 0.2, %v11303_v31  ;;  %v11304_v9 = vadd.f32 %v18238_v38, %v11265_v22  ;;  %v11015_v51 = vrot.slane %v18354_v0, 1 }
 0xe81   : > { %v11125_v25 = vpop.permute.xlu0 %11124 }
 0xe82   : > { %11430 = vst.msk [vmem:[%s18253_s27 + $0x38] sm:$0xff] %vm19554_vm2, %v11398_v59  ;;  %v11399_v18 = vadd.f32 %v11367_v37, %v11335_v1  ;;  %v11336_v53 = vmul.f32 0.2, %v11304_v9  ;;  %v11048_v39 = vsel %vm19555_vm13, %v11014_v62, %v11015_v51  ;;  %v11206_v58 = vadd.f32 %v11125_v25, %v11078_v23  ;;  %vm19570_vm2 = vmmov %vm19558_vm0 }
 0xe83   : > { %v11127_v30 = vpop.permute.xlu1 %11126  ;;  %v11082_v1 = vsel %vm19565_vm5, %v18112_v7, 0.0  ;;  %vm19571_vm13 = vnez %v18759_v20  ;;  %vm19584_vm5 = vmmov %vm19566_vm3 }
 0xe84   : > { %11431 = vst.msk [vmem:[%s18253_s27 + $0x40] sm:$0xff] %vm19556_vm9, %v11399_v18  ;;  %v11400_v6 = vadd.f32 %v11368_v35, %v11336_v53  ;;  %v11270_v45 = vadd.f32 %v11206_v58, %v11048_v39  ;;  %vm19572_vm9 = vnez %v18762_v40 }
 0xe85   : > { %v10929_v36 = vpop.permute.xlu0 %10928 }
 0xe86   : > { %11432 = vst.msk [vmem:[%s18253_s27 + $0x48] sm:$0xff] %vm19557_vm15, %v11400_v6  ;;  %v11309_v47 = vadd.f32 %v18238_v38, %v11270_v45  ;;  %v11012_v61 = vrot.slane %v10929_v36, 1  ;;  %v11377_v6 = vld [vmem:[%s14516_s29 + $0x90] sm:$0xff]  ;;  %v11207_v36 = vadd.f32 %v11127_v30, %v18076_v29  ;;  %vm19573_vm15 = vmmov %vm19558_vm0 }
 0xe87   : > { %v10931_v34 = vpop.permute.xlu1 %10930 }
 0xe88   : > { %v11341_v2 = vmul.f32 0.2, %v11309_v47  ;;  %v11051_v27 = vsel %vm19558_vm0, %v11011_v8, %v11012_v61  ;;  %v11013_v28 = vrot.slane %v10931_v34, 1 }
 0xe89   : > { %v11235_v44 = vsel %vm19559_vm10, %v11051_v27, 0.0  ;;  %v11121_v3 = vpop.permute.xlu0 %11120  ;;  %vm19574_vm10 = vmmov %vm19563_vm1 }
 0xe8a   : > { %v11405_v11 = vadd.f32 %v11373_v49, %v11341_v2  ;;  %v11267_v41 = vadd.f32 %v11235_v44, %v11203_v55  ;;  %v11050_v26 = vsel %vm19561_vm14, %v11012_v61, %v11013_v28  ;;  %v11204_v16 = vadd.f32 %v11121_v3, %v11076_v14  ;;  %v19575_v3 = vld [vmem:[#allocation28_spill] sm:$0xff] }
 0xe8b   : > { %v11049_v12 = vsel %vm19562_vm8, %v11013_v28, %v11014_v62  ;;  %v11123_v8 = vpop.permute.xlu1 %11122  ;;  %v11080_v2 = vsel %vm19572_vm9, %v18103_v43, 0.0  ;;  %v11374_v43 = vld [vmem:[%s14516_s29 + $0x78] sm:$0xff]  ;;  %v19576_v14 = vld [vmem:[#allocation12_spill] sm:$0xff]  ;;  %vm19581_vm8 = vmmov %vm19563_vm1 }
 0xe8c   : > { %11437 = vst.msk [vmem:[%s18253_s27 + $0x70] sm:$0xff] %vm19563_vm1, %v11405_v11  ;;  %v11306_v46 = vadd.f32 %v18238_v38, %v11267_v41  ;;  %v11268_v24 = vadd.f32 %v11204_v16, %v11050_v26  ;;  %v11205_v4 = vadd.f32 %v11123_v8, %v18084_v54  ;;  %v11237_v21 = vsel %vm19564_vm7, %v11049_v12, 0.0  ;;  %v11375_v8 = vld [vmem:[%s14516_s29 + $0x80] sm:$0xff]  ;;  %vm19582_vm1 = vmmov %vm19558_vm0 }
 0xe8d   : > { %v10941_v52 = vpop.permute.xlu0 %10940  ;;  %vm19577_vm11 = vnez %v19576_v14  ;;  %vm19583_vm7 = vmmov %vm19566_vm3 }
 0xe8e   : > { %v11338_v57 = vmul.f32 0.2, %v11306_v46  ;;  %v11307_v42 = vadd.f32 %v18238_v38, %v11268_v24  ;;  %v11269_v5 = vadd.f32 %v11237_v21, %v11205_v4  ;;  %v11018_v63 = vrot.slane %v10941_v52, 1 }
 0xe8f   : > { %v18397_v31 = vpop.permute.xlu1 %10942 }
 0xe90   : > { %v11402_v22 = vadd.f32 %v11370_v33, %v11338_v57  ;;  %v11339_v37 = vmul.f32 0.2, %v11307_v42  ;;  %v11308_v54 = vadd.f32 %v18238_v38, %v11269_v5  ;;  %v11019_v62 = vrot.slane %v18397_v31, 1  ;;  %v11376_v57 = vld [vmem:[%s14516_s29 + $0x88] sm:$0xff] }
 0xe91   : > { %v11133_v59 = vpop.permute.xlu0 %11132  ;;  %v19578_v5 = vld [vmem:[#allocation5_spill] sm:$0xff] }
 0xe92   : > { %11434 = vst.msk [vmem:[%s18253_s27 + $0x58] sm:$0xff] %vm19566_vm3, %v11402_v22  ;;  %v11403_v9 = vadd.f32 %v11371_v15, %v11339_v37  ;;  %v11340_v35 = vmul.f32 0.2, %v11308_v54  ;;  %v11044_v25 = vsel %vm19567_vm4, %v11018_v63, %v11019_v62  ;;  %v11210_v23 = vadd.f32 %v11133_v59, %v11082_v1  ;;  %v19579_v15 = vld [vmem:[#allocation14_spill] sm:$0xff]  ;;  %vm19586_vm3 = vmmov %vm19558_vm0 }
 0xe93   : > { %v11135_v18 = vpop.permute.xlu1 %11134  ;;  %vm19580_vm14 = vnez %v19579_v15 }
 0xe94   : > { %11435 = vst.msk [vmem:[%s18253_s27 + $0x60] sm:$0xff] %vm19568_vm12, %v11403_v9  ;;  %v11404_v53 = vadd.f32 %v11372_v17, %v11340_v35  ;;  %v11274_v39 = vadd.f32 %v11210_v23, %v11044_v25 }
 0xe95   : > { %v10937_v58 = vpop.permute.xlu0 %10936 }
 0xe96   : > { %11436 = vst.msk [vmem:[%s18253_s27 + $0x68] sm:$0xff] %vm19569_vm6, %v11404_v53  ;;  %v11313_v13 = vadd.f32 %v18238_v38, %v11274_v39  ;;  %v11016_v7 = vrot.slane %v10937_v58, 1  ;;  %v11381_v53 = vld [vmem:[%s14516_s29 + $0xb0] sm:$0xff]  ;;  %v19585_v58 = vld [vmem:[#allocation27_spill] sm:$0xff]  ;;  %vm19592_vm6 = vmmov %vm19558_vm0 }
 0xe97   : > { %v10939_v45 = vpop.permute.xlu1 %10938 }
 0xe98   : > { %v11345_v47 = vmul.f32 0.2, %v11313_v13  ;;  %v11047_v61 = vsel %vm19570_vm2, %v11015_v51, %v11016_v7  ;;  %v11017_v49 = vrot.slane %v10939_v45, 1  ;;  %v11211_v13 = vadd.f32 %v11135_v18, %v19585_v58  ;;  %vm19593_vm2 = vmmov %vm19558_vm0 }
 0xe99   : > { %v11239_v34 = vsel %vm19571_vm13, %v11047_v61, 0.0  ;;  %v11129_v55 = vpop.permute.xlu0 %11128  ;;  %vm19594_vm13 = vmmov %vm19584_vm5 }
 0xe9a   : > { %v11409_v27 = vadd.f32 %v11377_v6, %v11345_v47  ;;  %v11271_v28 = vadd.f32 %v11239_v34, %v11207_v36  ;;  %v11046_v29 = vsel %vm19573_vm15, %v11016_v7, %v11017_v49  ;;  %v11208_v0 = vadd.f32 %v11129_v55, %v11080_v2  ;;  %v19587_v36 = vld [vmem:[#allocation13_spill] sm:$0xff]  ;;  %v19590_v34 = vld [vmem:[#allocation15_spill] sm:$0xff] }
 0xe9b   : > { %v11045_v30 = vsel %vm19558_vm0, %v11017_v49, %v11018_v63  ;;  %v11131_v51 = vpop.permute.xlu1 %11130  ;;  %v11086_v63 = vsel %vm19580_vm14, %v19578_v5, 0.0  ;;  %vm19588_vm4 = vnez %v19587_v36  ;;  %v19589_v49 = vld [vmem:[#allocation11_spill] sm:$0xff]  ;;  %vm19591_vm12 = vnez %v19590_v34  ;;  %vm19601_vm0 = vmmov %vm19584_vm5 }
 0xe9c   : > { %11441 = vst.msk [vmem:[%s18253_s27 + $0x90] sm:$0xff] %vm19574_vm10, %v11409_v27  ;;  %v11310_v20 = vadd.f32 %v18238_v38, %v11271_v28  ;;  %v11272_v44 = vadd.f32 %v11208_v0, %v11046_v29  ;;  %v11209_v40 = vadd.f32 %v11131_v51, %v19575_v3  ;;  %v11241_v11 = vsel %vm19577_vm11, %v11045_v30, 0.0  ;;  %v19595_v30 = vld [vmem:[#allocation9_spill] sm:$0xff]  ;;  %vm19602_vm10 = vmmov %vm19582_vm1 }
 0xe9d   : > { %v10949_v41 = vpop.permute.xlu0 %10948  ;;  %v11084_v55 = vsel %vm19591_vm12, %v19589_v49, 0.0  ;;  %vm19603_vm11 = vmmov %vm19601_vm0  ;;  %v19610_v49 = vld [vmem:[#allocation17_spill] sm:$0xff] }
 0xe9e   : > { %v11342_v26 = vmul.f32 0.2, %v11310_v20  ;;  %v11311_v16 = vadd.f32 %v18238_v38, %v11272_v44  ;;  %v11273_v12 = vadd.f32 %v11241_v11, %v11209_v40  ;;  %v11022_v46 = vrot.slane %v10949_v41, 1  ;;  %v11378_v20 = vld [vmem:[%s14516_s29 + $0x98] sm:$0xff]  ;;  %v19596_v44 = vld [vmem:[#allocation16_spill] sm:$0xff]  ;;  %vm19604_vm14 = vmmov %vm19601_vm0 }
 0xe9f   : > { %v18440_v24 = vpop.permute.xlu1 %10950  ;;  %vm19597_vm9 = vnez %v19596_v44  ;;  %v11379_v41 = vld [vmem:[%s14516_s29 + $0xa0] sm:$0xff] }
 0xea0   : > { %v11406_v4 = vadd.f32 %v11374_v43, %v11342_v26  ;;  %v11343_v33 = vmul.f32 0.2, %v11311_v16  ;;  %v11312_v21 = vadd.f32 %v18238_v38, %v11273_v12  ;;  %v11023_v52 = vrot.slane %v18440_v24, 1 }
 0xea1   : > { %v11141_v42 = vpop.permute.xlu0 %11140 }
 0xea2   : > { %11438 = vst.msk [vmem:[%s18253_s27 + $0x78] sm:$0xff] %vm19581_vm8, %v11406_v4  ;;  %v11407_v22 = vadd.f32 %v11375_v8, %v11343_v33  ;;  %v11344_v37 = vmul.f32 0.2, %v11312_v21  ;;  %v11040_v54 = vsel %vm19582_vm1, %v11022_v46, %v11023_v52  ;;  %v11214_v17 = vadd.f32 %v11141_v42, %v11086_v63  ;;  %v11380_v33 = vld [vmem:[%s14516_s29 + $0xa8] sm:$0xff]  ;;  %v19599_v42 = vld [vmem:[#allocation19_spill] sm:$0xff]  ;;  %vm19606_vm8 = vmmov %vm19582_vm1 }
 0xea3   : > { %v11143_v59 = vpop.permute.xlu1 %11142  ;;  %vm19600_vm15 = vnez %v19599_v42 }
 0xea4   : > { %11439 = vst.msk [vmem:[%s18253_s27 + $0x80] sm:$0xff] %vm19583_vm7, %v11407_v22  ;;  %v11408_v1 = vadd.f32 %v11376_v57, %v11344_v37  ;;  %v11278_v9 = vadd.f32 %v11214_v17, %v11040_v54  ;;  %v19598_v57 = vld [vmem:[#allocation10_spill] sm:$0xff]  ;;  %vm19611_vm7 = vnez %v19610_v49 }
 0xea5   : > { %v10945_v35 = vpop.permute.xlu0 %10944  ;;  %v11090_v5 = vsel %vm19600_vm15, %v19598_v57, 0.0 }
 0xea6   : > { %11440 = vst.msk [vmem:[%s18253_s27 + $0x88] sm:$0xff] %vm19584_vm5, %v11408_v1  ;;  %v11317_v25 = vadd.f32 %v18238_v38, %v11278_v9  ;;  %v11020_v23 = vrot.slane %v10945_v35, 1  ;;  %vm19612_vm5 = vmmov %vm19593_vm2 }
 0xea7   : > { %v10947_v39 = vpop.permute.xlu1 %10946 }
 0xea8   : > { %v11349_v7 = vmul.f32 0.2, %v11317_v25  ;;  %v11043_v6 = vsel %vm19586_vm3, %v11019_v62, %v11020_v23  ;;  %v11021_v45 = vrot.slane %v10947_v39, 1  ;;  %v19605_v39 = vld [vmem:[#allocation31_spill] sm:$0xff]  ;;  %vm19613_vm3 = vmmov %vm19593_vm2 }
 0xea9   : > { %v11243_v47 = vsel %vm19588_vm4, %v11043_v6, 0.0  ;;  %v11137_v61 = vpop.permute.xlu0 %11136  ;;  %v11215_v58 = vadd.f32 %v11143_v59, %v19605_v39  ;;  %vm19614_vm4 = vmmov %vm19601_vm0 }
 0xeaa   : > { %v11413_v2 = vadd.f32 %v11381_v53, %v11349_v7  ;;  %v11275_v27 = vadd.f32 %v11243_v47, %v11211_v13  ;;  %v11042_v18 = vsel %vm19592_vm6, %v11020_v23, %v11021_v45  ;;  %v11212_v31 = vadd.f32 %v11137_v61, %v11084_v55  ;;  %v11385_v23 = vld [vmem:[%s14516_s29 + $0xd0] sm:$0xff]  ;;  %v19609_v61 = vld [vmem:[#allocation8_spill] sm:$0xff]  ;;  %vm19618_vm6 = vmmov %vm19601_vm0 }
 0xeab   : > { %v11041_v28 = vsel %vm19593_vm2, %v11021_v45, %v11022_v46  ;;  %v11139_v62 = vpop.permute.xlu1 %11138  ;;  %v19607_v45 = vld [vmem:[#allocation18_spill] sm:$0xff]  ;;  %v11088_v34 = vsel %vm19611_vm7, %v19609_v61, 0.0  ;;  %vm19620_vm2 = vmmov %vm19601_vm0 }
 0xeac   : > { %11445 = vst.msk [vmem:[%s18253_s27 + $0xb0] sm:$0xff] %vm19594_vm13, %v11413_v2  ;;  %v11314_v29 = vadd.f32 %v18238_v38, %v11275_v27  ;;  %v11276_v0 = vadd.f32 %v11212_v31, %v11042_v18  ;;  %v11213_v51 = vadd.f32 %v11139_v62, %v19595_v30  ;;  %v11245_v3 = vsel %vm19597_vm9, %v11041_v28, 0.0  ;;  %v19615_v28 = vld [vmem:[#allocation26_spill] sm:$0xff]  ;;  %vm19621_vm13 = vmmov %vm19613_vm3 }
 0xead   : > { %v10957_v40 = vpop.permute.xlu0 %10956  ;;  %vm19608_vm1 = vnez %v19607_v45 }
 0xeae   : > { %v11346_v43 = vmul.f32 0.2, %v11314_v29  ;;  %v11315_v14 = vadd.f32 %v18238_v38, %v11276_v0  ;;  %v11277_v11 = vadd.f32 %v11245_v3, %v11213_v51  ;;  %v11026_v26 = vrot.slane %v10957_v40, 1  ;;  %v11382_v29 = vld [vmem:[%s14516_s29 + $0xb8] sm:$0xff]  ;;  %v19616_v0 = vld [vmem:[#allocation20_spill] sm:$0xff] }
 0xeaf   : > { %v18483_v16 = vpop.permute.xlu1 %10958  ;;  %vm19617_vm12 = vnez %v19616_v0  ;;  %v11383_v40 = vld [vmem:[%s14516_s29 + $0xc0] sm:$0xff]  ;;  %v11389_v0 = vld [vmem:[%s14516_s29 + $0xf0] sm:$0xff] }
 0xeb0   : > { %v11410_v12 = vadd.f32 %v11378_v20, %v11346_v43  ;;  %v11347_v8 = vmul.f32 0.2, %v11315_v14  ;;  %v11316_v46 = vadd.f32 %v18238_v38, %v11277_v11  ;;  %v11027_v4 = vrot.slane %v18483_v16, 1 }
 0xeb1   : > { %v11149_v21 = vpop.permute.xlu0 %11148 }
 0xeb2   : > { %11442 = vst.msk [vmem:[%s18253_s27 + $0x98] sm:$0xff] %vm19601_vm0, %v11410_v12  ;;  %v11411_v15 = vadd.f32 %v11379_v41, %v11347_v8  ;;  %v11348_v63 = vmul.f32 0.2, %v11316_v46  ;;  %v11036_v22 = vsel %vm19602_vm10, %v11026_v26, %v11027_v4  ;;  %v11218_v37 = vadd.f32 %v11149_v21, %v11090_v5  ;;  %vm19626_vm10 = vmmov %vm19613_vm3 }
 0xeb3   : > { %v11151_v54 = vpop.permute.xlu1 %11150 }
 0xeb4   : > { %11443 = vst.msk [vmem:[%s18253_s27 + $0xa0] sm:$0xff] %vm19603_vm11, %v11411_v15  ;;  %v11412_v17 = vadd.f32 %v11380_v33, %v11348_v63  ;;  %v11282_v1 = vadd.f32 %v11218_v37, %v11036_v22  ;;  %v19619_v33 = vld [vmem:[#allocation6_spill] sm:$0xff]  ;;  %vm19627_vm11 = vmmov %vm19613_vm3 }
 0xeb5   : > { %v10953_v9 = vpop.permute.xlu0 %10952  ;;  %v11219_v21 = vadd.f32 %v11151_v54, %v19619_v33  ;;  %v19622_v22 = vld [vmem:[#allocation22_spill] sm:$0xff] }
 0xeb6   : > { %11444 = vst.msk [vmem:[%s18253_s27 + $0xa8] sm:$0xff] %vm19604_vm14, %v11412_v17  ;;  %v11321_v35 = vadd.f32 %v18238_v38, %v11282_v1  ;;  %v11024_v25 = vrot.slane %v10953_v9, 1  ;;  %vm19623_vm9 = vnez %v19622_v22  ;;  %v19624_v1 = vld [vmem:[#allocation21_spill] sm:$0xff] }
 0xeb7   : > { %v10955_v53 = vpop.permute.xlu1 %10954  ;;  %vm19625_vm15 = vnez %v19624_v1 }
 0xeb8   : > { %v11353_v13 = vmul.f32 0.2, %v11321_v35  ;;  %v11039_v7 = vsel %vm19606_vm8, %v11023_v52, %v11024_v25  ;;  %v11025_v6 = vrot.slane %v10955_v53, 1  ;;  %v11092_v9 = vsel %vm19625_vm15, %v18168_v10, 0.0  ;;  %v19628_v10 = vld [vmem:[#allocation24_spill] sm:$0xff] }
 0xeb9   : > { %v11247_v36 = vsel %vm19608_vm1, %v11039_v7, 0.0  ;;  %v11145_v47 = vpop.permute.xlu0 %11144  ;;  %v11386_v7 = vld [vmem:[%s14516_s29 + $0xd8] sm:$0xff]  ;;  %vm19629_vm14 = vnez %v19628_v10  ;;  %vm19632_vm1 = vmmov %vm19613_vm3 }
 0xeba   : > { %v11417_v55 = vadd.f32 %v11385_v23, %v11353_v13  ;;  %v11279_v2 = vadd.f32 %v11247_v36, %v11215_v58  ;;  %v11038_v59 = vsel %vm19612_vm5, %v11024_v25, %v11025_v6  ;;  %v11216_v24 = vadd.f32 %v11145_v47, %v11088_v34  ;;  %v19630_v36 = vld [vmem:[#allocation23_spill] sm:$0xff]  ;;  %vm19633_vm7 = vmmov %vm19632_vm1 }
 0xebb   : > { %v11037_v27 = vsel %vm19613_vm3, %v11025_v6, %v11026_v26  ;;  %v11147_v52 = vpop.permute.xlu1 %11146  ;;  %v11384_v26 = vld [vmem:[%s14516_s29 + $0xc8] sm:$0xff]  ;;  %vm19631_vm8 = vnez %v19630_v36  ;;  %vm19634_vm5 = vmmov %vm19601_vm0 }
 0xebc   : > { %11449 = vst.msk [vmem:[%s18253_s27 + $0xd0] sm:$0xff] %vm19614_vm4, %v11417_v55  ;;  %v11318_v18 = vadd.f32 %v18238_v38, %v11279_v2  ;;  %v11280_v31 = vadd.f32 %v11216_v24, %v11038_v59  ;;  %v11217_v62 = vadd.f32 %v11147_v52, %v19615_v28  ;;  %v11249_v30 = vsel %vm19617_vm12, %v11037_v27, 0.0  ;;  %v11387_v2 = vld [vmem:[%s14516_s29 + $0xe0] sm:$0xff]  ;;  %vm19637_vm4 = vmmov %vm19601_vm0 }
 0xebd   : > { %v10965_v51 = vpop.permute.xlu0 %10964  ;;  %v11094_v47 = vsel %vm19631_vm8, %v18186_v50, 0.0  ;;  %vm19638_vm12 = vmmov %vm19601_vm0 }
 0xebe   : > { %v11350_v20 = vmul.f32 0.2, %v11318_v18  ;;  %v11319_v44 = vadd.f32 %v18238_v38, %v11280_v31  ;;  %v11281_v3 = vadd.f32 %v11249_v30, %v11217_v62  ;;  %v11030_v5 = vrot.slane %v10965_v51, 1  ;;  %v11388_v31 = vld [vmem:[%s14516_s29 + $0xe8] sm:$0xff] }
 0xebf   : > { %v10967_v43 = vpop.permute.xlu1 %10966 }
 0xec0   : > { %v11414_v14 = vadd.f32 %v11382_v29, %v11350_v20  ;;  %v11351_v11 = vmul.f32 0.2, %v11319_v44  ;;  %v11320_v41 = vadd.f32 %v18238_v38, %v11281_v3  ;;  %v11031_v23 = vrot.slane %v10967_v43, 1  ;;  %v11390_v3 = vld [vmem:[%s14516_s29 + $0xf8] sm:$0xff] }
 0xec1   : > { %v10961_v16 = vpop.permute.xlu0 %10960 }
 0xec2   : > { %11446 = vst.msk [vmem:[%s18253_s27 + $0xb8] sm:$0xff] %vm19618_vm6, %v11414_v14  ;;  %v11415_v12 = vadd.f32 %v11383_v40, %v11351_v11  ;;  %v11352_v8 = vmul.f32 0.2, %v11320_v41  ;;  %v11028_v46 = vrot.slane %v10961_v16, 1  ;;  %v11063_v59 = vsel %vm19633_vm7, %v11031_v23, %v11000_v60  ;;  %v19635_v60 = vld [vmem:[#allocation25_spill] sm:$0xff]  ;;  %vm19639_vm6 = vmmov %vm19601_vm0 }
 0xec3   : > { %v10963_v57 = vpop.permute.xlu1 %10962  ;;  %vm19636_vm3 = vnez %v19635_v60 }
 0xec4   : > { %11447 = vst.msk [vmem:[%s18253_s27 + $0xc0] sm:$0xff] %vm19620_vm2, %v11415_v12  ;;  %v11416_v42 = vadd.f32 %v11384_v26, %v11352_v8  ;;  %v11035_v15 = vsel %vm19621_vm13, %v11027_v4, %v11028_v46  ;;  %v11029_v63 = vrot.slane %v10963_v57, 1  ;;  %v11255_v29 = vsel %vm19636_vm3, %v11063_v59, 0.0  ;;  %vm19640_vm2 = vmmov %vm19601_vm0 }
 0xec5   : > { %v11251_v37 = vsel %vm19623_vm9, %v11035_v15, 0.0  ;;  %v11153_v17 = vpop.permute.xlu0 %11152 }
 0xec6   : > { %11448 = vst.msk [vmem:[%s18253_s27 + $0xc8] sm:$0xff] %vm19601_vm0, %v11416_v42  ;;  %v11283_v54 = vadd.f32 %v11251_v37, %v11219_v21  ;;  %v11034_v35 = vsel %vm19626_vm10, %v11028_v46, %v11029_v63  ;;  %v11220_v25 = vadd.f32 %v11153_v17, %v11092_v9  ;;  %v11033_v4 = vsel %vm19627_vm11, %v11029_v63, %v11030_v5 }
 0xec7   : > { %v11155_v53 = vpop.permute.xlu1 %11154  ;;  %v11253_v6 = vsel %vm19629_vm14, %v11033_v4, 0.0 }
 0xec8   : > { %v11322_v39 = vadd.f32 %v18238_v38, %v11283_v54  ;;  %v11284_v58 = vadd.f32 %v11220_v25, %v11034_v35  ;;  %v11221_v13 = vadd.f32 %v11155_v53, %v18182_v19  ;;  %v11032_v19 = vsel %vm19632_vm1, %v11030_v5, %v11031_v23 }
 0xec9   : > { %v11157_v45 = vpop.permute.xlu0 %11156 }
 0xeca   : > { %v11354_v61 = vmul.f32 0.2, %v11322_v39  ;;  %v11323_v49 = vadd.f32 %v18238_v38, %v11284_v58  ;;  %v11285_v34 = vadd.f32 %v11253_v6, %v11221_v13  ;;  %v11222_v55 = vadd.f32 %v11157_v45, %v11094_v47 }
 0xecb   : > { %v11159_v24 = vpop.permute.xlu1 %11158 }
 0xecc   : > { %v11418_v27 = vadd.f32 %v11386_v7, %v11354_v61  ;;  %v11355_v52 = vmul.f32 0.2, %v11323_v49  ;;  %v11324_v50 = vadd.f32 %v18238_v38, %v11285_v34  ;;  %v11286_v18 = vadd.f32 %v11222_v55, %v11032_v19 }
 0xecd   : > { %v11223_v28 = vadd.f32 %v11159_v24, %v18178_v48 }
 0xece   : > { %11450 = vst.msk [vmem:[%s18253_s27 + $0xd8] sm:$0xff] %vm19634_vm5, %v11418_v27  ;;  %v11419_v62 = vadd.f32 %v11387_v2, %v11355_v52  ;;  %v11356_v56 = vmul.f32 0.2, %v11324_v50  ;;  %v11325_v32 = vadd.f32 %v18238_v38, %v11286_v18 }
 0xecf   : > { %v11287_v30 = vadd.f32 %v11255_v29, %v11223_v28 }
 0xed0   : > { %11451 = vst.msk [vmem:[%s18253_s27 + $0xe0] sm:$0xff] %vm19637_vm4, %v11419_v62  ;;  %v11420_v51 = vadd.f32 %v11388_v31, %v11356_v56  ;;  %v11357_v20 = vmul.f32 0.2, %v11325_v32 }
 0xed1   : > { %v11326_v44 = vadd.f32 %v18238_v38, %v11287_v30 }
 0xed2   : > { %11452 = vst.msk [vmem:[%s18253_s27 + $0xe8] sm:$0xff] %vm19638_vm12, %v11420_v51  ;;  %v11421_v48 = vadd.f32 %v11389_v0, %v11357_v20 }
 0xed3   : > { %v11358_v40 = vmul.f32 0.2, %v11326_v44 }
 0xed4   : > { %11453 = vst.msk [vmem:[%s18253_s27 + $0xf0] sm:$0xff] %vm19639_vm6, %v11421_v48 }
 0xed5   : > { %v11422_v43 = vadd.f32 %v11390_v3, %v11358_v40 }
 0xed7   : > { %11454 = vst.msk [vmem:[%s18253_s27 + $0xf8] sm:$0xff] %vm19640_vm2, %v11422_v43 }
 0xed8 PF: > { %s25_s18 = sadd.s32 1, %s14389_s18  }
 0xed9   : > { %p22_p4 = scmp.ge.s32.totalorder %s25_s18, 4  }
 0xedb   :  { %24 = sbr.rel (!%p22_p4) target bundleno = 1 (0x1), region = 128 }

</bundles_post_ra>
